<compile_context>
chip_gen: v7x
topology: tpu7x:2x2x1
jax: 0.10.0
libtpu: 0.0.40
codegen_flags: <defaults>
</compile_context>

<pallas_src>
import jax
import jax.numpy as jnp
from jax import lax
from jax.experimental import pallas as pl
from jax.experimental.pallas import tpu as pltpu

# ----------------------------- small synthetic config -----------------------------
B = 2            # batch
IMG = 32         # input spatial size (NCHW: (B, 3, 32, 32))
STEM_C1 = 8      # stem conv1 output channels (width // 2)
STEM_C = 16      # stem output channels (width)
C_VIS = 64       # visual embed dim fed to attnpool (stands in for layer4 channels)
D_EMB = 32       # joint embedding dim (c_proj / text_projection output)
N_CLS = 4        # number of classnames
N_CTX = 4        # number of context tokens
L_TXT = 16       # text context length
W_TXT = 64       # text transformer width (ctx_dim)
N_HEAD = 4
HD = W_TXT // N_HEAD

N_PROMPT = 2 * N_CLS          # positive + negative prompts, stacked


def _pick_text_grid():
    """1 grid step on single-TensorCore chips (v5e/v6e); 2 'parallel' steps on v7x
    so the prompt tiles shard across the two TensorCores."""
    try:
        kind = jax.devices()[0].device_kind.lower()
    except Exception:
        return 1
    return 2 if "v7" in kind else 1


TEXT_GRID = _pick_text_grid()
NPT = N_PROMPT // TEXT_GRID   # prompts per grid step
NT = NPT * L_TXT              # flattened token rows per grid step
WIDE = N_HEAD * NT            # wide (all-heads side-by-side) score width


# ================================ Pallas kernels ==================================
def _text_kernel(x_ref, onehot_ref, hm_ref, bias_ref, blk_ref,
                 ln1g_ref, ln1b_ref, wq_ref, wk_ref, wv_ref,
                 bq_ref, bk_ref, bv_ref, wo_ref, bo_ref,
                 ln2g_ref, ln2b_ref, wf1_ref, bf1_ref, wf2_ref, bf2_ref,
                 lnfg_ref, lnfb_ref, tproj_ref, out_ref):
    """NPT prompts (flattened to NT = NPT*L token rows, pos-emb already added) per
    grid step: one ResidualAttentionBlock with all heads fused via a precomputed
    head-channel-masked wide key/value matmul + precomputed block-diagonal causal
    bias, exact per-head softmax (per-head row max), QuickGELU MLP, ln_final,
    batched EOT gather via a precomputed bf16 one-hot matmul, projection, L2-norm.
    TODO(synk): the wide trick costs N_HEAD x MXU FLOPs; at real CLIP sizes switch
    to a per-head (H, NT, HD) batched dot_general."""

    def layer_norm(v, g, b):
        mu = jnp.mean(v, axis=-1, keepdims=True)
        var = jnp.mean((v - mu) ** 2, axis=-1, keepdims=True)
        return (v - mu) * lax.rsqrt(var + 1e-5) * g + b

    def mm(a, w_ref, b_ref=None):
        r = jnp.dot(a.astype(jnp.bfloat16), w_ref[...],
                    preferred_element_type=jnp.float32)
        return r if b_ref is None else r + b_ref[...]

    x = x_ref[...]                                                         # (NT, W)

    # --- residual attention block (all heads fused) ---
    h = layer_norm(x, ln1g_ref[...], ln1b_ref[...])
    q = mm(h, wq_ref, bq_ref) * (HD ** -0.5)
    k = mm(h, wk_ref, bk_ref)
    v = mm(h, wv_ref, bv_ref)

    # wide K/V: block b keeps only head b's channels (precomputed mask hm), so a
    # single (NT,W)@(W,WIDE) matmul yields all per-head scores side by side.
    hm = hm_ref[...]                                                       # (WIDE, W)
    k_blk = jnp.concatenate([k] * N_HEAD, axis=0) * hm                     # (WIDE, W)
    v_blk = jnp.concatenate([v] * N_HEAD, axis=0) * hm                     # (WIDE, W)

    dn_t = (((1,), (1,)), ((), ()))                                        # A @ B.T
    s = lax.dot_general(q.astype(jnp.bfloat16), k_blk.astype(jnp.bfloat16),
                        dn_t, preferred_element_type=jnp.float32)          # (NT, WIDE)
    s = s + bias_ref[...]    # precomputed block-diagonal per-prompt causal bias, f32

    # exact per-head softmax: per-head row maxes (static column slices), broadcast
    # back across each head block with the precomputed indicator via the MXU.
    blk = blk_ref[...]                                                     # (WIDE, H)
    m = jnp.concatenate(
        [jnp.max(s[:, hh * NT:(hh + 1) * NT], axis=-1, keepdims=True)
         for hh in range(N_HEAD)], axis=-1)                                # (NT, H)
    m_w = lax.dot_general(m, blk, dn_t, preferred_element_type=jnp.float32)
    e = jnp.exp(s - m_w)
    den = jnp.dot(e, blk, preferred_element_type=jnp.float32)              # (NT, H)
    den_w = lax.dot_general(den, blk, dn_t,
                            preferred_element_type=jnp.float32)            # (NT, WIDE)
    p = e * pl.reciprocal(den_w, approx=True)

    attn = jnp.dot(p.astype(jnp.bfloat16), v_blk.astype(jnp.bfloat16),
                   preferred_element_type=jnp.float32)                     # (NT, W)
    x = x + mm(attn, wo_ref, bo_ref)

    # --- MLP (QuickGELU) ---
    h2 = layer_norm(x, ln2g_ref[...], ln2b_ref[...])
    a = mm(h2, wf1_ref, bf1_ref)
    a = a * jax.nn.sigmoid(1.702 * a)
    x = x + mm(a, wf2_ref, bf2_ref)

    # --- ln_final, EOT gather (precomputed bf16 one-hot matmul), proj, L2-norm ---
    xf = layer_norm(x, lnfg_ref[...], lnfb_ref[...])
    feat = jnp.dot(onehot_ref[0], xf.astype(jnp.bfloat16),
                   preferred_element_type=jnp.float32)                     # (NPT, W)
    tf = mm(feat, tproj_ref)                                               # (NPT, D)
    out_ref[0] = tf * lax.rsqrt(jnp.sum(tf * tf, axis=-1, keepdims=True) + 1e-12)


def text_encode_all(prompts_all, onehot_local, tw):
    """prompts_all: (2*N_CLS, L, W) positive+negative prompts (pos-emb already
    added), one pallas_call for everything."""
    prompts_flat = prompts_all.reshape(N_PROMPT * L_TXT, W_TXT)
    weights = [tw["hm"], tw["attn_bias"], tw["blk"],
               tw["ln1_g"], tw["ln1_b"],
               tw["w_q"], tw["w_k"], tw["w_v"], tw["b_q"], tw["b_k"], tw["b_v"],
               tw["w_out"], tw["b_out"], tw["ln2_g"], tw["ln2_b"],
               tw["w_fc1"], tw["b_fc1"], tw["w_fc2"], tw["b_fc2"],
               tw["lnf_g"], tw["lnf_b"], tw["text_projection"]]

    def full(arr):
        return pl.BlockSpec(arr.shape, lambda i, nd=arr.ndim: (0,) * nd)

    out = pl.pallas_call(
        _text_kernel,
        out_shape=jax.ShapeDtypeStruct((TEXT_GRID, NPT, D_EMB), jnp.float32),
        grid=(TEXT_GRID,),
        in_specs=[pl.BlockSpec((NT, W_TXT), lambda i: (i, 0)),
                  pl.BlockSpec((1, NPT, NT), lambda i: (i, 0, 0))] +
                 [full(w) for w in weights],
        out_specs=pl.BlockSpec((1, NPT, D_EMB), lambda i: (i, 0, 0)),
        compiler_params=pltpu.CompilerParams(dimension_semantics=("parallel",)),
    )(prompts_flat, onehot_local, *weights)
    return out.reshape(N_PROMPT, D_EMB)


def _vision_head_kernel(tok_ref, wp_ref, bp_ref, wvc_ref, bvc_ref,
                        txt_ref, temp_ref, sT_ref, img_ref, o_ref):
    """Per-batch tile (grid over B): relu(tok @ Wproxy + b) -> folded v/c proj ->
    L2-norm -> one A@B.T against the stacked [pos; neg] text features -> spatial
    softmax over the HW rows of this batch -> aggregated DenseCLIP logits."""
    a = jnp.dot(tok_ref[...].astype(jnp.bfloat16), wp_ref[...],
                preferred_element_type=jnp.float32) + bp_ref[...]
    a = jnp.maximum(a, 0.0)
    c = jnp.dot(a.astype(jnp.bfloat16), wvc_ref[...],
                preferred_element_type=jnp.float32) + bvc_ref[...]
    img = c * lax.rsqrt(jnp.sum(c * c, axis=-1, keepdims=True) + 1e-12)
    img_ref[...] = img                                                     # (HW, D)

    scale = jnp.exp(temp_ref[0])          # logit_scale = temperature.exp()
    sT = jnp.exp(sT_ref[0])               # spatial_T.exp()
    dn_t = (((1,), (1,)), ((), ()))       # A @ B.T

    # single matmul against stacked [pos; neg] text features, split columns
    both = lax.dot_general(img.astype(jnp.bfloat16), txt_ref[...].astype(jnp.bfloat16),
                           dn_t, preferred_element_type=jnp.float32)       # (HW, 2C)
    n_cls = txt_ref.shape[0] // 2
    lg = both[:, :n_cls]
    ln = both[:, n_cls:]

    # spatial softmax over the HW rows of this batch tile (max-subtracted so a
    # large learned spatial_T cannot overflow f32 exp).
    mx = jnp.max(lg, axis=0, keepdims=True)                                # (1, C)
    e = jnp.exp((lg - mx) * sT)
    den = jnp.sum(e, axis=0, keepdims=True)                                # (1, C)
    prob = e * pl.reciprocal(den, approx=True)                             # (HW, C)

    # logits_ = sum_hw(scale*lg*prob) - sum_hw(scale*ln*prob)
    o_ref[0] = scale * jnp.sum((lg - ln) * prob, axis=0, keepdims=True)    # (1, C)


def vision_head(tok, wp, bp, wvc, bvc, txt_both, temperature, spatial_T, hw):
    bhw, cin = tok.shape
    nb = bhw // hw
    d = wvc.shape[1]
    n_cls = txt_both.shape[0] // 2

    def full(arr):
        return pl.BlockSpec(arr.shape, lambda b, nd=arr.ndim: (0,) * nd)

    img_n, logits3 = pl.pallas_call(
        _vision_head_kernel,
        out_shape=(jax.ShapeDtypeStruct((bhw, d), jnp.float32),
                   jax.ShapeDtypeStruct((nb, 1, n_cls), jnp.float32)),
        grid=(nb,),
        in_specs=[pl.BlockSpec((hw, cin), lambda b: (b, 0)),
                  full(wp), full(bp), full(wvc), full(bvc), full(txt_both),
                  pl.BlockSpec(memory_space=pltpu.MemorySpace.SMEM),
                  pl.BlockSpec(memory_space=pltpu.MemorySpace.SMEM)],
        out_specs=(pl.BlockSpec((hw, d), lambda b: (b, 0)),
                   pl.BlockSpec((1, 1, n_cls), lambda b: (b, 0, 0))),
        compiler_params=pltpu.CompilerParams(dimension_semantics=("parallel",)),
    )(tok, wp, bp, wvc, bvc, txt_both,
      temperature.reshape(1), spatial_T.reshape(1))
    return img_n, logits3.reshape(nb, n_cls)


# ================================ JAX glue (backbone, prompts) ====================
def conv3x3(x, w, stride):
    return lax.conv_general_dilated(
        x, w, window_strides=(stride, stride), padding=((1, 1), (1, 1)),
        dimension_numbers=("NCHW", "OIHW", "NCHW"))


def batchnorm(x, bn):
    g = bn["g"][None, :, None, None]
    b = bn["b"][None, :, None, None]
    m = bn["m"][None, :, None, None]
    v = bn["v"][None, :, None, None]
    return (x - m) * lax.rsqrt(v + 1e-5) * g + b


def avgpool2(x):
    b, c, h, w = x.shape
    return x.reshape(b, c, h // 2, 2, w // 2, 2).mean(axis=(3, 5))


def stem(image, p):
    # CLIP ModifiedResNet stem: 3x (conv3x3 -> BN -> relu), then AvgPool2d(2)
    x = jax.nn.relu(batchnorm(conv3x3(image, p["conv1_w"], 2), p["bn1"]))
    x = jax.nn.relu(batchnorm(conv3x3(x, p["conv2_w"], 1), p["bn2"]))
    x = jax.nn.relu(batchnorm(conv3x3(x, p["conv3_w"], 1), p["bn3"]))
    # TODO(synk): CLIP ModifiedResNet bottleneck stages layer1-layer4 are not
    # replicated; a single proxy projection fused into the vision Pallas kernel
    # stands in for them in this synthetic model.
    return avgpool2(x)


def denseclip_forward(image, p):
    # --- visual: stem convs (XLA) -> batch-major token rows ---
    x = stem(image, p)                                        # (B, STEM_C, h, w)
    b, c, h, w = x.shape
    hw = h * w
    tok = x.transpose(0, 2, 3, 1).reshape(b * hw, c)          # batch-major token rows

    # fold v_proj and c_proj (no nonlinearity between them): W = Wv@Wc, b = bv@Wc+bc
    c_wt_f32 = p["c_wt"].astype(jnp.float32)
    wvc = (p["v_wt"].astype(jnp.float32) @ c_wt_f32).astype(jnp.bfloat16)  # (C_VIS, D)
    bvc = p["v_b"] @ c_wt_f32 + p["c_b"]                                   # (1, D)

    # --- PromptLearner.forward (class_token_position='end', neg_prompt_wcls=True),
    #     positional-embedding add hoisted out of the text kernel ---
    ctx = jnp.broadcast_to(p["ctx"][None], (N_CLS, N_CTX, W_TXT))
    ctx_neg = jnp.broadcast_to(p["ctx_neg"][None], (N_CLS, N_CTX, W_TXT))
    prompts = jnp.concatenate([p["token_prefix"], ctx, p["token_suffix"]], axis=1)
    prompts_neg = jnp.concatenate([p["token_prefix"], ctx_neg, p["token_suffix"]], axis=1)
    prompts_all = (jnp.concatenate([prompts, prompts_neg], axis=0)
                   + p["text"]["pos"][None])                              # (2*N_CLS, L, W)

    # EOT one-hot (bf16), precomputed so the kernel does a single exact gather matmul
    eot = jnp.argmax(p["tokenized_prompts"], axis=-1).astype(jnp.int32)   # (N_CLS,)
    eot_all = jnp.concatenate([eot, eot])                                  # (2*N_CLS,)
    tgt = (jnp.arange(N_PROMPT, dtype=jnp.int32) % NPT) * L_TXT + eot_all
    onehot = (jnp.arange(NT, dtype=jnp.int32)[None, :] == tgt[:, None])
    onehot_local = onehot.astype(jnp.bfloat16).reshape(TEXT_GRID, NPT, NT)

    # --- TextEncoder: positive + negative prompts in ONE pallas_call ---
    txt_all_n = text_encode_all(prompts_all, onehot_local, p["text"])     # (2*N_CLS, D)
    text_features = txt_all_n[:N_CLS]

    # --- fused vision projection + DenseCLIP head (batch-sharded grid) ---
    img_n, logits_ = vision_head(tok, p["proxy_w"], p["proxy_b"], wvc, bvc,
                                 txt_all_n, p["temperature"], p["spatial_T"], hw)
    image_features = img_n.reshape(b, hw, D_EMB).transpose(1, 0, 2)       # (HW, B, D)
    return [], logits_, image_features, text_features


# ================================ parameter init ==================================
def init_params(key):
    keys = iter(jax.random.split(key, 64))
    bf16 = jnp.bfloat16

    def nrm(shape, std=0.02):
        return std * jax.random.normal(next(keys), shape, jnp.float32)

    def bn(c):
        return {"g": 1.0 + nrm((c,), 0.05), "b": nrm((c,), 0.05),
                "m": nrm((c,), 0.05), "v": 1.0 + jnp.abs(nrm((c,), 0.05))}

    p = {}
    # visual stem
    p["conv1_w"] = nrm((STEM_C1, 3, 3, 3), 0.1)
    p["bn1"] = bn(STEM_C1)
    p["conv2_w"] = nrm((STEM_C1, STEM_C1, 3, 3), 0.1)
    p["bn2"] = bn(STEM_C1)
    p["conv3_w"] = nrm((STEM_C, STEM_C1, 3, 3), 0.1)
    p["bn3"] = bn(STEM_C)
    # proxy for layer1-4 plus attnpool v_proj / c_proj.  Kernel convention: x @ W,
    # i.e. PyTorch Linear weights pre-transposed; matmul weights stored in bf16.
    p["proxy_w"] = nrm((STEM_C, C_VIS), 0.1).astype(bf16)
    p["proxy_b"] = nrm((1, C_VIS), 0.02)
    p["v_wt"] = nrm((C_VIS, C_VIS)).astype(bf16)
    p["v_b"] = nrm((1, C_VIS))
    p["c_wt"] = nrm((C_VIS, D_EMB)).astype(bf16)
    p["c_b"] = nrm((1, D_EMB))
    # PromptLearner buffers/params
    p["ctx"] = nrm((N_CTX, W_TXT))
    p["ctx_neg"] = nrm((N_CTX, W_TXT))
    p["token_prefix"] = nrm((N_CLS, 1, W_TXT))
    p["token_suffix"] = nrm((N_CLS, L_TXT - 1 - N_CTX, W_TXT))
    p["temperature"] = jnp.array(3.91, jnp.float32)
    p["spatial_T"] = jnp.array(3.0, jnp.float32)
    toks = jax.random.randint(next(keys), (N_CLS, L_TXT), 1, 400)
    eot_pos = jnp.arange(N_CLS) + (1 + N_CTX + 2)
    toks = toks.at[jnp.arange(N_CLS), eot_pos].set(49407)      # EOT token id (max)
    p["tokenized_prompts"] = toks.astype(jnp.int32)

    # grid-invariant attention masks, precomputed once (kept out of the kernel VPU):
    #   hm        (WIDE, W): head-channel mask for the wide K/V blocks
    #   attn_bias (NT, WIDE): block-diagonal per-prompt causal additive bias
    #   blk       (WIDE, H): per-head block indicator (softmax denom / broadcasts)
    ri = jnp.arange(NT)[:, None]
    ci = jnp.arange(WIDE)[None, :] % NT
    ok = (ri // L_TXT == ci // L_TXT) & (ci % L_TXT <= ri % L_TXT)
    attn_bias = jnp.where(ok, 0.0, -1e30).astype(jnp.float32)
    hm = (jnp.arange(WIDE)[:, None] // NT ==
          jnp.arange(W_TXT)[None, :] // HD).astype(jnp.float32)
    blk = (jnp.arange(WIDE)[:, None] // NT ==
           jnp.arange(N_HEAD)[None, :]).astype(jnp.float32)

    # text transformer (single ResidualAttentionBlock) + ln_final + projection
    # TODO(synk): CLIP's text transformer has 12 layers; synthetic model uses 1.
    p["text"] = {
        "pos": nrm((L_TXT, W_TXT), 0.01),
        "hm": hm, "attn_bias": attn_bias, "blk": blk,
        "ln1_g": 1.0 + nrm((1, W_TXT)), "ln1_b": nrm((1, W_TXT)),
        "w_q": nrm((W_TXT, W_TXT)).astype(bf16),
        "w_k": nrm((W_TXT, W_TXT)).astype(bf16),
        "w_v": nrm((W_TXT, W_TXT)).astype(bf16),
        "b_q": nrm((1, W_TXT)), "b_k": nrm((1, W_TXT)), "b_v": nrm((1, W_TXT)),
        "w_out": nrm((W_TXT, W_TXT)).astype(bf16), "b_out": nrm((1, W_TXT)),
        "ln2_g": 1.0 + nrm((1, W_TXT)), "ln2_b": nrm((1, W_TXT)),
        "w_fc1": nrm((W_TXT, 4 * W_TXT)).astype(bf16), "b_fc1": nrm((1, 4 * W_TXT)),
        "w_fc2": nrm((4 * W_TXT, W_TXT)).astype(bf16), "b_fc2": nrm((1, W_TXT)),
        "lnf_g": 1.0 + nrm((1, W_TXT)), "lnf_b": nrm((1, W_TXT)),
        "text_projection": nrm((W_TXT, D_EMB), W_TXT ** -0.5).astype(bf16),
    }
    return p


# ================================ main ============================================
if __name__ == "__main__":
    key = jax.random.PRNGKey(0)
    pkey, ikey = jax.random.split(key)
    params = init_params(pkey)
    image = jax.random.normal(ikey, (B, 3, IMG, IMG), jnp.float32)

    fwd = jax.jit(denseclip_forward)
    _, logits_, image_features, text_features = fwd(image, params)
    jax.block_until_ready((logits_, image_features, text_features))

    hw = (IMG // 4) * (IMG // 4)
    assert logits_.shape == (B, N_CLS), logits_.shape
    assert image_features.shape == (hw, B, D_EMB), image_features.shape
    assert text_features.shape == (N_CLS, D_EMB), text_features.shape
    assert bool(jnp.all(jnp.isfinite(logits_)))
    assert bool(jnp.all(jnp.isfinite(image_features)))
    assert bool(jnp.all(jnp.isfinite(text_features)))
    print("KERNEL_OK")
</pallas_src>

<mosaic_0001>
module attributes {stable_mosaic.version = 11 : i64} {
  func.func @_text_kernel(%arg0: i32, %arg1: memref<128x64xf32, #tpu.memory_space<vmem>>, %arg2: memref<1x8x128xbf16, #tpu.memory_space<vmem>>, %arg3: memref<512x64xf32, #tpu.memory_space<vmem>>, %arg4: memref<128x512xf32, #tpu.memory_space<vmem>>, %arg5: memref<512x4xf32, #tpu.memory_space<vmem>>, %arg6: memref<1x64xf32, #tpu.memory_space<vmem>>, %arg7: memref<1x64xf32, #tpu.memory_space<vmem>>, %arg8: memref<64x64xbf16, #tpu.memory_space<vmem>>, %arg9: memref<64x64xbf16, #tpu.memory_space<vmem>>, %arg10: memref<64x64xbf16, #tpu.memory_space<vmem>>, %arg11: memref<1x64xf32, #tpu.memory_space<vmem>>, %arg12: memref<1x64xf32, #tpu.memory_space<vmem>>, %arg13: memref<1x64xf32, #tpu.memory_space<vmem>>, %arg14: memref<64x64xbf16, #tpu.memory_space<vmem>>, %arg15: memref<1x64xf32, #tpu.memory_space<vmem>>, %arg16: memref<1x64xf32, #tpu.memory_space<vmem>>, %arg17: memref<1x64xf32, #tpu.memory_space<vmem>>, %arg18: memref<64x256xbf16, #tpu.memory_space<vmem>>, %arg19: memref<1x256xf32, #tpu.memory_space<vmem>>, %arg20: memref<256x64xbf16, #tpu.memory_space<vmem>>, %arg21: memref<1x64xf32, #tpu.memory_space<vmem>>, %arg22: memref<1x64xf32, #tpu.memory_space<vmem>>, %arg23: memref<1x64xf32, #tpu.memory_space<vmem>>, %arg24: memref<64x32xbf16, #tpu.memory_space<vmem>>, %arg25: memref<1x8x32xf32, #tpu.memory_space<vmem>>) attributes {dimension_semantics = [#tpu.dimension_semantics<parallel>], iteration_bounds = array<i64: 1>, scalar_prefetch = 0 : i64, scratch_operands = 0 : i64, tpu.core_type = #tpu.core_type<tc>, window_params = [{transform_indices = @transform_0, window_bounds = array<i64: 128, 64>}, {transform_indices = @transform_1, window_bounds = array<i64: 1, 8, 128>}, {pipeline_mode = #tpu.pipeline_mode<synchronous>, transform_indices = @transform_2, window_bounds = array<i64: 512, 64>}, {pipeline_mode = #tpu.pipeline_mode<synchronous>, transform_indices = @transform_3, window_bounds = array<i64: 128, 512>}, {pipeline_mode = #tpu.pipeline_mode<synchronous>, transform_indices = @transform_4, window_bounds = array<i64: 512, 4>}, {pipeline_mode = #tpu.pipeline_mode<synchronous>, transform_indices = @transform_5, window_bounds = array<i64: 1, 64>}, {pipeline_mode = #tpu.pipeline_mode<synchronous>, transform_indices = @transform_6, window_bounds = array<i64: 1, 64>}, {pipeline_mode = #tpu.pipeline_mode<synchronous>, transform_indices = @transform_7, window_bounds = array<i64: 64, 64>}, {pipeline_mode = #tpu.pipeline_mode<synchronous>, transform_indices = @transform_8, window_bounds = array<i64: 64, 64>}, {pipeline_mode = #tpu.pipeline_mode<synchronous>, transform_indices = @transform_9, window_bounds = array<i64: 64, 64>}, {pipeline_mode = #tpu.pipeline_mode<synchronous>, transform_indices = @transform_10, window_bounds = array<i64: 1, 64>}, {pipeline_mode = #tpu.pipeline_mode<synchronous>, transform_indices = @transform_11, window_bounds = array<i64: 1, 64>}, {pipeline_mode = #tpu.pipeline_mode<synchronous>, transform_indices = @transform_12, window_bounds = array<i64: 1, 64>}, {pipeline_mode = #tpu.pipeline_mode<synchronous>, transform_indices = @transform_13, window_bounds = array<i64: 64, 64>}, {pipeline_mode = #tpu.pipeline_mode<synchronous>, transform_indices = @transform_14, window_bounds = array<i64: 1, 64>}, {pipeline_mode = #tpu.pipeline_mode<synchronous>, transform_indices = @transform_15, window_bounds = array<i64: 1, 64>}, {pipeline_mode = #tpu.pipeline_mode<synchronous>, transform_indices = @transform_16, window_bounds = array<i64: 1, 64>}, {pipeline_mode = #tpu.pipeline_mode<synchronous>, transform_indices = @transform_17, window_bounds = array<i64: 64, 256>}, {pipeline_mode = #tpu.pipeline_mode<synchronous>, transform_indices = @transform_18, window_bounds = array<i64: 1, 256>}, {pipeline_mode = #tpu.pipeline_mode<synchronous>, transform_indices = @transform_19, window_bounds = array<i64: 256, 64>}, {pipeline_mode = #tpu.pipeline_mode<synchronous>, transform_indices = @transform_20, window_bounds = array<i64: 1, 64>}, {pipeline_mode = #tpu.pipeline_mode<synchronous>, transform_indices = @transform_21, window_bounds = array<i64: 1, 64>}, {pipeline_mode = #tpu.pipeline_mode<synchronous>, transform_indices = @transform_22, window_bounds = array<i64: 1, 64>}, {pipeline_mode = #tpu.pipeline_mode<synchronous>, transform_indices = @transform_23, window_bounds = array<i64: 64, 32>}, {transform_indices = @transform_24, window_bounds = array<i64: 1, 8, 32>}]} {
    %c0 = arith.constant 0 : index
    %c0_0 = arith.constant 0 : index
    %0 = vector.load %arg1[%c0, %c0_0] : memref<128x64xf32, #tpu.memory_space<vmem>>, vector<128x64xf32>
    %c0_1 = arith.constant 0 : index
    %c0_2 = arith.constant 0 : index
    %1 = vector.load %arg6[%c0_1, %c0_2] : memref<1x64xf32, #tpu.memory_space<vmem>>, vector<1x64xf32>
    %c0_3 = arith.constant 0 : index
    %c0_4 = arith.constant 0 : index
    %2 = vector.load %arg7[%c0_3, %c0_4] : memref<1x64xf32, #tpu.memory_space<vmem>>, vector<1x64xf32>
    %cst = arith.constant dense<0.000000e+00> : vector<128xf32>
    %3 = vector.multi_reduction <add>, %0, %cst [1] : vector<128x64xf32> to vector<128xf32>
    %4 = vector.shape_cast %3 : vector<128xf32> to vector<128x1xf32>
    %cst_5 = arith.constant 6.400000e+01 : f32
    %5 = vector.broadcast %cst_5 : f32 to vector<128x1xf32>
    %6 = arith.divf %4, %5 : vector<128x1xf32>
    %7 = vector.broadcast %6 : vector<128x1xf32> to vector<128x64xf32>
    %8 = arith.subf %0, %7 : vector<128x64xf32>
    %9 = arith.mulf %8, %8 : vector<128x64xf32>
    %cst_6 = arith.constant dense<0.000000e+00> : vector<128xf32>
    %10 = vector.multi_reduction <add>, %9, %cst_6 [1] : vector<128x64xf32> to vector<128xf32>
    %11 = vector.shape_cast %10 : vector<128xf32> to vector<128x1xf32>
    %cst_7 = arith.constant 6.400000e+01 : f32
    %12 = vector.broadcast %cst_7 : f32 to vector<128x1xf32>
    %13 = arith.divf %11, %12 : vector<128x1xf32>
    %14 = vector.broadcast %6 : vector<128x1xf32> to vector<128x64xf32>
    %15 = arith.subf %0, %14 : vector<128x64xf32>
    %cst_8 = arith.constant 9.99999974E-6 : f32
    %16 = vector.broadcast %cst_8 : f32 to vector<128x1xf32>
    %17 = arith.addf %13, %16 : vector<128x1xf32>
    %18 = math.rsqrt %17 : vector<128x1xf32>
    %19 = vector.broadcast %18 : vector<128x1xf32> to vector<128x64xf32>
    %20 = arith.mulf %15, %19 : vector<128x64xf32>
    %21 = vector.broadcast %1 : vector<1x64xf32> to vector<128x64xf32>
    %22 = arith.mulf %20, %21 : vector<128x64xf32>
    %23 = vector.broadcast %2 : vector<1x64xf32> to vector<128x64xf32>
    %24 = arith.addf %22, %23 : vector<128x64xf32>
    %25 = arith.truncf %24 : vector<128x64xf32> to vector<128x64xbf16>
    %c0_9 = arith.constant 0 : index
    %c0_10 = arith.constant 0 : index
    %26 = vector.load %arg8[%c0_9, %c0_10] : memref<64x64xbf16, #tpu.memory_space<vmem>>, vector<64x64xbf16>
    %cst_11 = arith.constant dense<0.000000e+00> : vector<128x64xf32>
    %27 = tpu.matmul %25, %26, %cst_11 {dimension_numbers = #tpu.dot_dimension_numbers<[1], [0], [0], [1], [0, 0, 1, 1], [], []>} : vector<128x64xbf16>, vector<64x64xbf16>, vector<128x64xf32> -> vector<128x64xf32>
    %c0_12 = arith.constant 0 : index
    %c0_13 = arith.constant 0 : index
    %28 = vector.load %arg11[%c0_12, %c0_13] : memref<1x64xf32, #tpu.memory_space<vmem>>, vector<1x64xf32>
    %29 = vector.broadcast %28 : vector<1x64xf32> to vector<128x64xf32>
    %30 = arith.addf %27, %29 : vector<128x64xf32>
    %cst_14 = arith.constant 2.500000e-01 : f32
    %31 = vector.broadcast %cst_14 : f32 to vector<128x64xf32>
    %32 = arith.mulf %30, %31 : vector<128x64xf32>
    %33 = arith.truncf %24 : vector<128x64xf32> to vector<128x64xbf16>
    %c0_15 = arith.constant 0 : index
    %c0_16 = arith.constant 0 : index
    %34 = vector.load %arg9[%c0_15, %c0_16] : memref<64x64xbf16, #tpu.memory_space<vmem>>, vector<64x64xbf16>
    %cst_17 = arith.constant dense<0.000000e+00> : vector<128x64xf32>
    %35 = tpu.matmul %33, %34, %cst_17 {dimension_numbers = #tpu.dot_dimension_numbers<[1], [0], [0], [1], [0, 0, 1, 1], [], []>} : vector<128x64xbf16>, vector<64x64xbf16>, vector<128x64xf32> -> vector<128x64xf32>
    %c0_18 = arith.constant 0 : index
    %c0_19 = arith.constant 0 : index
    %36 = vector.load %arg12[%c0_18, %c0_19] : memref<1x64xf32, #tpu.memory_space<vmem>>, vector<1x64xf32>
    %37 = vector.broadcast %36 : vector<1x64xf32> to vector<128x64xf32>
    %38 = arith.addf %35, %37 : vector<128x64xf32>
    %39 = arith.truncf %24 : vector<128x64xf32> to vector<128x64xbf16>
    %c0_20 = arith.constant 0 : index
    %c0_21 = arith.constant 0 : index
    %40 = vector.load %arg10[%c0_20, %c0_21] : memref<64x64xbf16, #tpu.memory_space<vmem>>, vector<64x64xbf16>
    %cst_22 = arith.constant dense<0.000000e+00> : vector<128x64xf32>
    %41 = tpu.matmul %39, %40, %cst_22 {dimension_numbers = #tpu.dot_dimension_numbers<[1], [0], [0], [1], [0, 0, 1, 1], [], []>} : vector<128x64xbf16>, vector<64x64xbf16>, vector<128x64xf32> -> vector<128x64xf32>
    %c0_23 = arith.constant 0 : index
    %c0_24 = arith.constant 0 : index
    %42 = vector.load %arg13[%c0_23, %c0_24] : memref<1x64xf32, #tpu.memory_space<vmem>>, vector<1x64xf32>
    %43 = vector.broadcast %42 : vector<1x64xf32> to vector<128x64xf32>
    %44 = arith.addf %41, %43 : vector<128x64xf32>
    %c0_25 = arith.constant 0 : index
    %c0_26 = arith.constant 0 : index
    %45 = vector.load %arg3[%c0_25, %c0_26] : memref<512x64xf32, #tpu.memory_space<vmem>>, vector<512x64xf32>
    %46 = tpu.concatenate %38, %38, %38, %38 in 0 : vector<128x64xf32>, vector<128x64xf32>, vector<128x64xf32>, vector<128x64xf32> -> vector<512x64xf32>
    %47 = arith.mulf %46, %45 : vector<512x64xf32>
    %48 = tpu.concatenate %44, %44, %44, %44 in 0 : vector<128x64xf32>, vector<128x64xf32>, vector<128x64xf32>, vector<128x64xf32> -> vector<512x64xf32>
    %49 = arith.mulf %48, %45 : vector<512x64xf32>
    %50 = arith.truncf %32 : vector<128x64xf32> to vector<128x64xbf16>
    %51 = arith.truncf %47 : vector<512x64xf32> to vector<512x64xbf16>
    %cst_27 = arith.constant dense<0.000000e+00> : vector<128x512xf32>
    %52 = tpu.matmul %50, %51, %cst_27 {dimension_numbers = #tpu.dot_dimension_numbers<[1], [1], [0], [0], [0, 0, 1, 0], [], []>} : vector<128x64xbf16>, vector<512x64xbf16>, vector<128x512xf32> -> vector<128x512xf32>
    %c0_28 = arith.constant 0 : index
    %c0_29 = arith.constant 0 : index
    %53 = vector.load %arg4[%c0_28, %c0_29] : memref<128x512xf32, #tpu.memory_space<vmem>>, vector<128x512xf32>
    %54 = arith.addf %52, %53 : vector<128x512xf32>
    %c0_30 = arith.constant 0 : index
    %c0_31 = arith.constant 0 : index
    %55 = vector.load %arg5[%c0_30, %c0_31] : memref<512x4xf32, #tpu.memory_space<vmem>>, vector<512x4xf32>
    %56 = vector.extract_strided_slice %54 {offsets = [0, 0], sizes = [128, 128], strides = [1, 1]} : vector<128x512xf32> to vector<128x128xf32>
    %cst_32 = arith.constant dense<0xFF800000> : vector<128xf32>
    %57 = vector.multi_reduction <maximumf>, %56, %cst_32 [1] : vector<128x128xf32> to vector<128xf32>
    %58 = vector.shape_cast %57 : vector<128xf32> to vector<128x1xf32>
    %59 = vector.extract_strided_slice %54 {offsets = [0, 128], sizes = [128, 128], strides = [1, 1]} : vector<128x512xf32> to vector<128x128xf32>
    %cst_33 = arith.constant dense<0xFF800000> : vector<128xf32>
    %60 = vector.multi_reduction <maximumf>, %59, %cst_33 [1] : vector<128x128xf32> to vector<128xf32>
    %61 = vector.shape_cast %60 : vector<128xf32> to vector<128x1xf32>
    %62 = vector.extract_strided_slice %54 {offsets = [0, 256], sizes = [128, 128], strides = [1, 1]} : vector<128x512xf32> to vector<128x128xf32>
    %cst_34 = arith.constant dense<0xFF800000> : vector<128xf32>
    %63 = vector.multi_reduction <maximumf>, %62, %cst_34 [1] : vector<128x128xf32> to vector<128xf32>
    %64 = vector.shape_cast %63 : vector<128xf32> to vector<128x1xf32>
    %65 = vector.extract_strided_slice %54 {offsets = [0, 384], sizes = [128, 128], strides = [1, 1]} : vector<128x512xf32> to vector<128x128xf32>
    %cst_35 = arith.constant dense<0xFF800000> : vector<128xf32>
    %66 = vector.multi_reduction <maximumf>, %65, %cst_35 [1] : vector<128x128xf32> to vector<128xf32>
    %67 = vector.shape_cast %66 : vector<128xf32> to vector<128x1xf32>
    %68 = tpu.concatenate %58, %61, %64, %67 in 1 : vector<128x1xf32>, vector<128x1xf32>, vector<128x1xf32>, vector<128x1xf32> -> vector<128x4xf32>
    %cst_36 = arith.constant dense<0.000000e+00> : vector<128x512xf32>
    %69 = tpu.matmul %68, %55, %cst_36 {dimension_numbers = #tpu.dot_dimension_numbers<[1], [1], [0], [0], [0, 0, 1, 0], [], []>} : vector<128x4xf32>, vector<512x4xf32>, vector<128x512xf32> -> vector<128x512xf32>
    %70 = arith.subf %54, %69 : vector<128x512xf32>
    %71 = math.exp %70 : vector<128x512xf32>
    %cst_37 = arith.constant dense<0.000000e+00> : vector<128x4xf32>
    %72 = tpu.matmul %71, %55, %cst_37 {dimension_numbers = #tpu.dot_dimension_numbers<[1], [0], [0], [1], [0, 0, 1, 1], [], []>} : vector<128x512xf32>, vector<512x4xf32>, vector<128x4xf32> -> vector<128x4xf32>
    %cst_38 = arith.constant dense<0.000000e+00> : vector<128x512xf32>
    %73 = tpu.matmul %72, %55, %cst_38 {dimension_numbers = #tpu.dot_dimension_numbers<[1], [1], [0], [0], [0, 0, 1, 0], [], []>} : vector<128x4xf32>, vector<512x4xf32>, vector<128x512xf32> -> vector<128x512xf32>
    %74 = tpu.reciprocal %73 {approx = true} : vector<128x512xf32> -> vector<128x512xf32>
    %75 = arith.mulf %71, %74 : vector<128x512xf32>
    %76 = arith.truncf %75 : vector<128x512xf32> to vector<128x512xbf16>
    %77 = arith.truncf %49 : vector<512x64xf32> to vector<512x64xbf16>
    %cst_39 = arith.constant dense<0.000000e+00> : vector<128x64xf32>
    %78 = tpu.matmul %76, %77, %cst_39 {dimension_numbers = #tpu.dot_dimension_numbers<[1], [0], [0], [1], [0, 0, 1, 1], [], []>} : vector<128x512xbf16>, vector<512x64xbf16>, vector<128x64xf32> -> vector<128x64xf32>
    %79 = arith.truncf %78 : vector<128x64xf32> to vector<128x64xbf16>
    %c0_40 = arith.constant 0 : index
    %c0_41 = arith.constant 0 : index
    %80 = vector.load %arg14[%c0_40, %c0_41] : memref<64x64xbf16, #tpu.memory_space<vmem>>, vector<64x64xbf16>
    %cst_42 = arith.constant dense<0.000000e+00> : vector<128x64xf32>
    %81 = tpu.matmul %79, %80, %cst_42 {dimension_numbers = #tpu.dot_dimension_numbers<[1], [0], [0], [1], [0, 0, 1, 1], [], []>} : vector<128x64xbf16>, vector<64x64xbf16>, vector<128x64xf32> -> vector<128x64xf32>
    %c0_43 = arith.constant 0 : index
    %c0_44 = arith.constant 0 : index
    %82 = vector.load %arg15[%c0_43, %c0_44] : memref<1x64xf32, #tpu.memory_space<vmem>>, vector<1x64xf32>
    %83 = vector.broadcast %82 : vector<1x64xf32> to vector<128x64xf32>
    %84 = arith.addf %81, %83 : vector<128x64xf32>
    %85 = arith.addf %0, %84 : vector<128x64xf32>
    %c0_45 = arith.constant 0 : index
    %c0_46 = arith.constant 0 : index
    %86 = vector.load %arg16[%c0_45, %c0_46] : memref<1x64xf32, #tpu.memory_space<vmem>>, vector<1x64xf32>
    %c0_47 = arith.constant 0 : index
    %c0_48 = arith.constant 0 : index
    %87 = vector.load %arg17[%c0_47, %c0_48] : memref<1x64xf32, #tpu.memory_space<vmem>>, vector<1x64xf32>
    %cst_49 = arith.constant dense<0.000000e+00> : vector<128xf32>
    %88 = vector.multi_reduction <add>, %85, %cst_49 [1] : vector<128x64xf32> to vector<128xf32>
    %89 = vector.shape_cast %88 : vector<128xf32> to vector<128x1xf32>
    %cst_50 = arith.constant 6.400000e+01 : f32
    %90 = vector.broadcast %cst_50 : f32 to vector<128x1xf32>
    %91 = arith.divf %89, %90 : vector<128x1xf32>
    %92 = vector.broadcast %91 : vector<128x1xf32> to vector<128x64xf32>
    %93 = arith.subf %85, %92 : vector<128x64xf32>
    %94 = arith.mulf %93, %93 : vector<128x64xf32>
    %cst_51 = arith.constant dense<0.000000e+00> : vector<128xf32>
    %95 = vector.multi_reduction <add>, %94, %cst_51 [1] : vector<128x64xf32> to vector<128xf32>
    %96 = vector.shape_cast %95 : vector<128xf32> to vector<128x1xf32>
    %cst_52 = arith.constant 6.400000e+01 : f32
    %97 = vector.broadcast %cst_52 : f32 to vector<128x1xf32>
    %98 = arith.divf %96, %97 : vector<128x1xf32>
    %99 = vector.broadcast %91 : vector<128x1xf32> to vector<128x64xf32>
    %100 = arith.subf %85, %99 : vector<128x64xf32>
    %cst_53 = arith.constant 9.99999974E-6 : f32
    %101 = vector.broadcast %cst_53 : f32 to vector<128x1xf32>
    %102 = arith.addf %98, %101 : vector<128x1xf32>
    %103 = math.rsqrt %102 : vector<128x1xf32>
    %104 = vector.broadcast %103 : vector<128x1xf32> to vector<128x64xf32>
    %105 = arith.mulf %100, %104 : vector<128x64xf32>
    %106 = vector.broadcast %86 : vector<1x64xf32> to vector<128x64xf32>
    %107 = arith.mulf %105, %106 : vector<128x64xf32>
    %108 = vector.broadcast %87 : vector<1x64xf32> to vector<128x64xf32>
    %109 = arith.addf %107, %108 : vector<128x64xf32>
    %110 = arith.truncf %109 : vector<128x64xf32> to vector<128x64xbf16>
    %c0_54 = arith.constant 0 : index
    %c0_55 = arith.constant 0 : index
    %111 = vector.load %arg18[%c0_54, %c0_55] : memref<64x256xbf16, #tpu.memory_space<vmem>>, vector<64x256xbf16>
    %cst_56 = arith.constant dense<0.000000e+00> : vector<128x256xf32>
    %112 = tpu.matmul %110, %111, %cst_56 {dimension_numbers = #tpu.dot_dimension_numbers<[1], [0], [0], [1], [0, 0, 1, 1], [], []>} : vector<128x64xbf16>, vector<64x256xbf16>, vector<128x256xf32> -> vector<128x256xf32>
    %c0_57 = arith.constant 0 : index
    %c0_58 = arith.constant 0 : index
    %113 = vector.load %arg19[%c0_57, %c0_58] : memref<1x256xf32, #tpu.memory_space<vmem>>, vector<1x256xf32>
    %114 = vector.broadcast %113 : vector<1x256xf32> to vector<128x256xf32>
    %115 = arith.addf %112, %114 : vector<128x256xf32>
    %cst_59 = arith.constant 1.702000e+00 : f32
    %116 = vector.broadcast %cst_59 : f32 to vector<128x256xf32>
    %117 = arith.mulf %116, %115 : vector<128x256xf32>
    %118 = arith.negf %117 : vector<128x256xf32>
    %119 = math.exp %118 : vector<128x256xf32>
    %cst_60 = arith.constant 1.000000e+00 : f32
    %120 = vector.broadcast %cst_60 : f32 to vector<128x256xf32>
    %121 = arith.addf %120, %119 : vector<128x256xf32>
    %122 = arith.divf %120, %121 : vector<128x256xf32>
    %123 = arith.mulf %115, %122 : vector<128x256xf32>
    %124 = arith.truncf %123 : vector<128x256xf32> to vector<128x256xbf16>
    %c0_61 = arith.constant 0 : index
    %c0_62 = arith.constant 0 : index
    %125 = vector.load %arg20[%c0_61, %c0_62] : memref<256x64xbf16, #tpu.memory_space<vmem>>, vector<256x64xbf16>
    %cst_63 = arith.constant dense<0.000000e+00> : vector<128x64xf32>
    %126 = tpu.matmul %124, %125, %cst_63 {dimension_numbers = #tpu.dot_dimension_numbers<[1], [0], [0], [1], [0, 0, 1, 1], [], []>} : vector<128x256xbf16>, vector<256x64xbf16>, vector<128x64xf32> -> vector<128x64xf32>
    %c0_64 = arith.constant 0 : index
    %c0_65 = arith.constant 0 : index
    %127 = vector.load %arg21[%c0_64, %c0_65] : memref<1x64xf32, #tpu.memory_space<vmem>>, vector<1x64xf32>
    %128 = vector.broadcast %127 : vector<1x64xf32> to vector<128x64xf32>
    %129 = arith.addf %126, %128 : vector<128x64xf32>
    %130 = arith.addf %85, %129 : vector<128x64xf32>
    %c0_66 = arith.constant 0 : index
    %c0_67 = arith.constant 0 : index
    %131 = vector.load %arg22[%c0_66, %c0_67] : memref<1x64xf32, #tpu.memory_space<vmem>>, vector<1x64xf32>
    %c0_68 = arith.constant 0 : index
    %c0_69 = arith.constant 0 : index
    %132 = vector.load %arg23[%c0_68, %c0_69] : memref<1x64xf32, #tpu.memory_space<vmem>>, vector<1x64xf32>
    %cst_70 = arith.constant dense<0.000000e+00> : vector<128xf32>
    %133 = vector.multi_reduction <add>, %130, %cst_70 [1] : vector<128x64xf32> to vector<128xf32>
    %134 = vector.shape_cast %133 : vector<128xf32> to vector<128x1xf32>
    %cst_71 = arith.constant 6.400000e+01 : f32
    %135 = vector.broadcast %cst_71 : f32 to vector<128x1xf32>
    %136 = arith.divf %134, %135 : vector<128x1xf32>
    %137 = vector.broadcast %136 : vector<128x1xf32> to vector<128x64xf32>
    %138 = arith.subf %130, %137 : vector<128x64xf32>
    %139 = arith.mulf %138, %138 : vector<128x64xf32>
    %cst_72 = arith.constant dense<0.000000e+00> : vector<128xf32>
    %140 = vector.multi_reduction <add>, %139, %cst_72 [1] : vector<128x64xf32> to vector<128xf32>
    %141 = vector.shape_cast %140 : vector<128xf32> to vector<128x1xf32>
    %cst_73 = arith.constant 6.400000e+01 : f32
    %142 = vector.broadcast %cst_73 : f32 to vector<128x1xf32>
    %143 = arith.divf %141, %142 : vector<128x1xf32>
    %144 = vector.broadcast %136 : vector<128x1xf32> to vector<128x64xf32>
    %145 = arith.subf %130, %144 : vector<128x64xf32>
    %cst_74 = arith.constant 9.99999974E-6 : f32
    %146 = vector.broadcast %cst_74 : f32 to vector<128x1xf32>
    %147 = arith.addf %143, %146 : vector<128x1xf32>
    %148 = math.rsqrt %147 : vector<128x1xf32>
    %149 = vector.broadcast %148 : vector<128x1xf32> to vector<128x64xf32>
    %150 = arith.mulf %145, %149 : vector<128x64xf32>
    %151 = vector.broadcast %131 : vector<1x64xf32> to vector<128x64xf32>
    %152 = arith.mulf %150, %151 : vector<128x64xf32>
    %153 = vector.broadcast %132 : vector<1x64xf32> to vector<128x64xf32>
    %154 = arith.addf %152, %153 : vector<128x64xf32>
    %c0_75 = arith.constant 0 : index
    %c0_76 = arith.constant 0 : index
    %c0_77 = arith.constant 0 : index
    %155 = vector.load %arg2[%c0_75, %c0_76, %c0_77] : memref<1x8x128xbf16, #tpu.memory_space<vmem>>, vector<1x8x128xbf16>
    %156 = vector.shape_cast %155 : vector<1x8x128xbf16> to vector<8x128xbf16>
    %157 = arith.truncf %154 : vector<128x64xf32> to vector<128x64xbf16>
    %cst_78 = arith.constant dense<0.000000e+00> : vector<8x64xf32>
    %158 = tpu.matmul %156, %157, %cst_78 {dimension_numbers = #tpu.dot_dimension_numbers<[1], [0], [0], [1], [0, 0, 1, 1], [], []>} : vector<8x128xbf16>, vector<128x64xbf16>, vector<8x64xf32> -> vector<8x64xf32>
    %159 = arith.truncf %158 : vector<8x64xf32> to vector<8x64xbf16>
    %c0_79 = arith.constant 0 : index
    %c0_80 = arith.constant 0 : index
    %160 = vector.load %arg24[%c0_79, %c0_80] : memref<64x32xbf16, #tpu.memory_space<vmem>>, vector<64x32xbf16>
    %cst_81 = arith.constant dense<0.000000e+00> : vector<8x32xf32>
    %161 = tpu.matmul %159, %160, %cst_81 {dimension_numbers = #tpu.dot_dimension_numbers<[1], [0], [0], [1], [0, 0, 1, 1], [], []>} : vector<8x64xbf16>, vector<64x32xbf16>, vector<8x32xf32> -> vector<8x32xf32>
    %162 = arith.mulf %161, %161 : vector<8x32xf32>
    %cst_82 = arith.constant dense<0.000000e+00> : vector<8xf32>
    %163 = vector.multi_reduction <add>, %162, %cst_82 [1] : vector<8x32xf32> to vector<8xf32>
    %164 = vector.shape_cast %163 : vector<8xf32> to vector<8x1xf32>
    %cst_83 = arith.constant 9.99999996E-13 : f32
    %165 = vector.broadcast %cst_83 : f32 to vector<8x1xf32>
    %166 = arith.addf %164, %165 : vector<8x1xf32>
    %167 = math.rsqrt %166 : vector<8x1xf32>
    %168 = vector.broadcast %167 : vector<8x1xf32> to vector<8x32xf32>
    %169 = arith.mulf %161, %168 : vector<8x32xf32>
    %c0_84 = arith.constant 0 : index
    %c0_85 = arith.constant 0 : index
    %c0_86 = arith.constant 0 : index
    %170 = vector.load %arg25[%c0_84, %c0_85, %c0_86] : memref<1x8x32xf32, #tpu.memory_space<vmem>>, vector<1x8x32xf32>
    %171 = vector.shape_cast %170 : vector<1x8x32xf32> to vector<8x32xf32>
    %172 = vector.shape_cast %169 : vector<8x32xf32> to vector<1x8x32xf32>
    tpu.vector_store %arg25[%c0_84, %c0_85, %c0_86], %172 {strides = array<i32>} : memref<1x8x32xf32, #tpu.memory_space<vmem>>, vector<1x8x32xf32>,
    return
  }
  func.func @transform_0(%arg0: i32) -> (i32, i32) {
    %c0_i32 = arith.constant 0 : i32
    %c0_i32_0 = arith.constant 0 : i32
    return %arg0, %c0_i32 : i32, i32
  }
  func.func @transform_1(%arg0: i32) -> (i32, i32, i32) {
    %c0_i32 = arith.constant 0 : i32
    %c0_i32_0 = arith.constant 0 : i32
    %c0_i32_1 = arith.constant 0 : i32
    return %arg0, %c0_i32, %c0_i32_0 : i32, i32, i32
  }
  func.func @transform_2(%arg0: i32) -> (i32, i32) {
    %c0_i32 = arith.constant 0 : i32
    %c0_i32_0 = arith.constant 0 : i32
    %c0_i32_1 = arith.constant 0 : i32
    return %c0_i32, %c0_i32_0 : i32, i32
  }
  func.func @transform_3(%arg0: i32) -> (i32, i32) {
    %c0_i32 = arith.constant 0 : i32
    %c0_i32_0 = arith.constant 0 : i32
    %c0_i32_1 = arith.constant 0 : i32
    return %c0_i32, %c0_i32_0 : i32, i32
  }
  func.func @transform_4(%arg0: i32) -> (i32, i32) {
    %c0_i32 = arith.constant 0 : i32
    %c0_i32_0 = arith.constant 0 : i32
    %c0_i32_1 = arith.constant 0 : i32
    return %c0_i32, %c0_i32_0 : i32, i32
  }
  func.func @transform_5(%arg0: i32) -> (i32, i32) {
    %c0_i32 = arith.constant 0 : i32
    %c0_i32_0 = arith.constant 0 : i32
    %c0_i32_1 = arith.constant 0 : i32
    return %c0_i32, %c0_i32_0 : i32, i32
  }
  func.func @transform_6(%arg0: i32) -> (i32, i32) {
    %c0_i32 = arith.constant 0 : i32
    %c0_i32_0 = arith.constant 0 : i32
    %c0_i32_1 = arith.constant 0 : i32
    return %c0_i32, %c0_i32_0 : i32, i32
  }
  func.func @transform_7(%arg0: i32) -> (i32, i32) {
    %c0_i32 = arith.constant 0 : i32
    %c0_i32_0 = arith.constant 0 : i32
    %c0_i32_1 = arith.constant 0 : i32
    return %c0_i32, %c0_i32_0 : i32, i32
  }
  func.func @transform_8(%arg0: i32) -> (i32, i32) {
    %c0_i32 = arith.constant 0 : i32
    %c0_i32_0 = arith.constant 0 : i32
    %c0_i32_1 = arith.constant 0 : i32
    return %c0_i32, %c0_i32_0 : i32, i32
  }
  func.func @transform_9(%arg0: i32) -> (i32, i32) {
    %c0_i32 = arith.constant 0 : i32
    %c0_i32_0 = arith.constant 0 : i32
    %c0_i32_1 = arith.constant 0 : i32
    return %c0_i32, %c0_i32_0 : i32, i32
  }
  func.func @transform_10(%arg0: i32) -> (i32, i32) {
    %c0_i32 = arith.constant 0 : i32
    %c0_i32_0 = arith.constant 0 : i32
    %c0_i32_1 = arith.constant 0 : i32
    return %c0_i32, %c0_i32_0 : i32, i32
  }
  func.func @transform_11(%arg0: i32) -> (i32, i32) {
    %c0_i32 = arith.constant 0 : i32
    %c0_i32_0 = arith.constant 0 : i32
    %c0_i32_1 = arith.constant 0 : i32
    return %c0_i32, %c0_i32_0 : i32, i32
  }
  func.func @transform_12(%arg0: i32) -> (i32, i32) {
    %c0_i32 = arith.constant 0 : i32
    %c0_i32_0 = arith.constant 0 : i32
    %c0_i32_1 = arith.constant 0 : i32
    return %c0_i32, %c0_i32_0 : i32, i32
  }
  func.func @transform_13(%arg0: i32) -> (i32, i32) {
    %c0_i32 = arith.constant 0 : i32
    %c0_i32_0 = arith.constant 0 : i32
    %c0_i32_1 = arith.constant 0 : i32
    return %c0_i32, %c0_i32_0 : i32, i32
  }
  func.func @transform_14(%arg0: i32) -> (i32, i32) {
    %c0_i32 = arith.constant 0 : i32
    %c0_i32_0 = arith.constant 0 : i32
    %c0_i32_1 = arith.constant 0 : i32
    return %c0_i32, %c0_i32_0 : i32, i32
  }
  func.func @transform_15(%arg0: i32) -> (i32, i32) {
    %c0_i32 = arith.constant 0 : i32
    %c0_i32_0 = arith.constant 0 : i32
    %c0_i32_1 = arith.constant 0 : i32
    return %c0_i32, %c0_i32_0 : i32, i32
  }
  func.func @transform_16(%arg0: i32) -> (i32, i32) {
    %c0_i32 = arith.constant 0 : i32
    %c0_i32_0 = arith.constant 0 : i32
    %c0_i32_1 = arith.constant 0 : i32
    return %c0_i32, %c0_i32_0 : i32, i32
  }
  func.func @transform_17(%arg0: i32) -> (i32, i32) {
    %c0_i32 = arith.constant 0 : i32
    %c0_i32_0 = arith.constant 0 : i32
    %c0_i32_1 = arith.constant 0 : i32
    return %c0_i32, %c0_i32_0 : i32, i32
  }
  func.func @transform_18(%arg0: i32) -> (i32, i32) {
    %c0_i32 = arith.constant 0 : i32
    %c0_i32_0 = arith.constant 0 : i32
    %c0_i32_1 = arith.constant 0 : i32
    return %c0_i32, %c0_i32_0 : i32, i32
  }
  func.func @transform_19(%arg0: i32) -> (i32, i32) {
    %c0_i32 = arith.constant 0 : i32
    %c0_i32_0 = arith.constant 0 : i32
    %c0_i32_1 = arith.constant 0 : i32
    return %c0_i32, %c0_i32_0 : i32, i32
  }
  func.func @transform_20(%arg0: i32) -> (i32, i32) {
    %c0_i32 = arith.constant 0 : i32
    %c0_i32_0 = arith.constant 0 : i32
    %c0_i32_1 = arith.constant 0 : i32
    return %c0_i32, %c0_i32_0 : i32, i32
  }
  func.func @transform_21(%arg0: i32) -> (i32, i32) {
    %c0_i32 = arith.constant 0 : i32
    %c0_i32_0 = arith.constant 0 : i32
    %c0_i32_1 = arith.constant 0 : i32
    return %c0_i32, %c0_i32_0 : i32, i32
  }
  func.func @transform_22(%arg0: i32) -> (i32, i32) {
    %c0_i32 = arith.constant 0 : i32
    %c0_i32_0 = arith.constant 0 : i32
    %c0_i32_1 = arith.constant 0 : i32
    return %c0_i32, %c0_i32_0 : i32, i32
  }
  func.func @transform_23(%arg0: i32) -> (i32, i32) {
    %c0_i32 = arith.constant 0 : i32
    %c0_i32_0 = arith.constant 0 : i32
    %c0_i32_1 = arith.constant 0 : i32
    return %c0_i32, %c0_i32_0 : i32, i32
  }
  func.func @transform_24(%arg0: i32) -> (i32, i32, i32) {
    %c0_i32 = arith.constant 0 : i32
    %c0_i32_0 = arith.constant 0 : i32
    %c0_i32_1 = arith.constant 0 : i32
    return %arg0, %c0_i32, %c0_i32_0 : i32, i32, i32
  }
}

module attributes {stable_mosaic.version = 11 : i64} {
  func.func @_vision_head_kernel(%arg0: i32, %arg1: memref<64x16xf32, #tpu.memory_space<vmem>>, %arg2: memref<16x64xbf16, #tpu.memory_space<vmem>>, %arg3: memref<1x64xf32, #tpu.memory_space<vmem>>, %arg4: memref<64x32xbf16, #tpu.memory_space<vmem>>, %arg5: memref<1x32xf32, #tpu.memory_space<vmem>>, %arg6: memref<8x32xf32, #tpu.memory_space<vmem>>, %arg7: memref<1xf32, #tpu.memory_space<smem>>, %arg8: memref<1xf32, #tpu.memory_space<smem>>, %arg9: memref<64x32xf32, #tpu.memory_space<vmem>>, %arg10: memref<1x1x4xf32, #tpu.memory_space<vmem>>) attributes {dimension_semantics = [#tpu.dimension_semantics<parallel>], iteration_bounds = array<i64: 2>, scalar_prefetch = 0 : i64, scratch_operands = 0 : i64, tpu.core_type = #tpu.core_type<tc>, window_params = [{transform_indices = @transform_0, window_bounds = array<i64: 64, 16>}, {pipeline_mode = #tpu.pipeline_mode<synchronous>, transform_indices = @transform_1, window_bounds = array<i64: 16, 64>}, {pipeline_mode = #tpu.pipeline_mode<synchronous>, transform_indices = @transform_2, window_bounds = array<i64: 1, 64>}, {pipeline_mode = #tpu.pipeline_mode<synchronous>, transform_indices = @transform_3, window_bounds = array<i64: 64, 32>}, {pipeline_mode = #tpu.pipeline_mode<synchronous>, transform_indices = @transform_4, window_bounds = array<i64: 1, 32>}, {pipeline_mode = #tpu.pipeline_mode<synchronous>, transform_indices = @transform_5, window_bounds = array<i64: 8, 32>}, {transform_indices = @transform_6, window_bounds = array<i64: 1>}, {transform_indices = @transform_7, window_bounds = array<i64: 1>}, {transform_indices = @transform_8, window_bounds = array<i64: 64, 32>}, {transform_indices = @transform_9, window_bounds = array<i64: 1, 1, 4>}]} {
    %c0 = arith.constant 0 : index
    %c0_0 = arith.constant 0 : index
    %0 = vector.load %arg1[%c0, %c0_0] : memref<64x16xf32, #tpu.memory_space<vmem>>, vector<64x16xf32>
    %1 = arith.truncf %0 : vector<64x16xf32> to vector<64x16xbf16>
    %c0_1 = arith.constant 0 : index
    %c0_2 = arith.constant 0 : index
    %2 = vector.load %arg2[%c0_1, %c0_2] : memref<16x64xbf16, #tpu.memory_space<vmem>>, vector<16x64xbf16>
    %cst = arith.constant dense<0.000000e+00> : vector<64x64xf32>
    %3 = tpu.matmul %1, %2, %cst {dimension_numbers = #tpu.dot_dimension_numbers<[1], [0], [0], [1], [0, 0, 1, 1], [], []>} : vector<64x16xbf16>, vector<16x64xbf16>, vector<64x64xf32> -> vector<64x64xf32>
    %c0_3 = arith.constant 0 : index
    %c0_4 = arith.constant 0 : index
    %4 = vector.load %arg3[%c0_3, %c0_4] : memref<1x64xf32, #tpu.memory_space<vmem>>, vector<1x64xf32>
    %5 = vector.broadcast %4 : vector<1x64xf32> to vector<64x64xf32>
    %6 = arith.addf %3, %5 : vector<64x64xf32>
    %cst_5 = arith.constant 0.000000e+00 : f32
    %7 = vector.broadcast %cst_5 : f32 to vector<64x64xf32>
    %8 = arith.maximumf %6, %7 : vector<64x64xf32>
    %9 = arith.truncf %8 : vector<64x64xf32> to vector<64x64xbf16>
    %c0_6 = arith.constant 0 : index
    %c0_7 = arith.constant 0 : index
    %10 = vector.load %arg4[%c0_6, %c0_7] : memref<64x32xbf16, #tpu.memory_space<vmem>>, vector<64x32xbf16>
    %cst_8 = arith.constant dense<0.000000e+00> : vector<64x32xf32>
    %11 = tpu.matmul %9, %10, %cst_8 {dimension_numbers = #tpu.dot_dimension_numbers<[1], [0], [0], [1], [0, 0, 1, 1], [], []>} : vector<64x64xbf16>, vector<64x32xbf16>, vector<64x32xf32> -> vector<64x32xf32>
    %c0_9 = arith.constant 0 : index
    %c0_10 = arith.constant 0 : index
    %12 = vector.load %arg5[%c0_9, %c0_10] : memref<1x32xf32, #tpu.memory_space<vmem>>, vector<1x32xf32>
    %13 = vector.broadcast %12 : vector<1x32xf32> to vector<64x32xf32>
    %14 = arith.addf %11, %13 : vector<64x32xf32>
    %15 = arith.mulf %14, %14 : vector<64x32xf32>
    %cst_11 = arith.constant dense<0.000000e+00> : vector<64xf32>
    %16 = vector.multi_reduction <add>, %15, %cst_11 [1] : vector<64x32xf32> to vector<64xf32>
    %17 = vector.shape_cast %16 : vector<64xf32> to vector<64x1xf32>
    %cst_12 = arith.constant 9.99999996E-13 : f32
    %18 = vector.broadcast %cst_12 : f32 to vector<64x1xf32>
    %19 = arith.addf %17, %18 : vector<64x1xf32>
    %20 = math.rsqrt %19 : vector<64x1xf32>
    %21 = vector.broadcast %20 : vector<64x1xf32> to vector<64x32xf32>
    %22 = arith.mulf %14, %21 : vector<64x32xf32>
    %c0_13 = arith.constant 0 : index
    %c0_14 = arith.constant 0 : index
    %23 = vector.load %arg9[%c0_13, %c0_14] : memref<64x32xf32, #tpu.memory_space<vmem>>, vector<64x32xf32>
    tpu.vector_store %arg9[%c0_13, %c0_14], %22 {strides = array<i32>} : memref<64x32xf32, #tpu.memory_space<vmem>>, vector<64x32xf32>,
    %c0_15 = arith.constant 0 : index
    %24 = memref.load %arg7[%c0_15] : memref<1xf32, #tpu.memory_space<smem>>
    %25 = math.exp %24 : f32
    %c0_16 = arith.constant 0 : index
    %26 = memref.load %arg8[%c0_16] : memref<1xf32, #tpu.memory_space<smem>>
    %27 = math.exp %26 : f32
    %28 = arith.truncf %22 : vector<64x32xf32> to vector<64x32xbf16>
    %c0_17 = arith.constant 0 : index
    %c0_18 = arith.constant 0 : index
    %29 = vector.load %arg6[%c0_17, %c0_18] : memref<8x32xf32, #tpu.memory_space<vmem>>, vector<8x32xf32>
    %30 = arith.truncf %29 : vector<8x32xf32> to vector<8x32xbf16>
    %cst_19 = arith.constant dense<0.000000e+00> : vector<64x8xf32>
    %31 = tpu.matmul %28, %30, %cst_19 {dimension_numbers = #tpu.dot_dimension_numbers<[1], [1], [0], [0], [0, 0, 1, 0], [], []>} : vector<64x32xbf16>, vector<8x32xbf16>, vector<64x8xf32> -> vector<64x8xf32>
    %32 = vector.extract_strided_slice %31 {offsets = [0, 0], sizes = [64, 4], strides = [1, 1]} : vector<64x8xf32> to vector<64x4xf32>
    %33 = vector.extract_strided_slice %31 {offsets = [0, 4], sizes = [64, 4], strides = [1, 1]} : vector<64x8xf32> to vector<64x4xf32>
    %cst_20 = arith.constant dense<0xFF800000> : vector<4xf32>
    %34 = vector.multi_reduction <maximumf>, %32, %cst_20 [0] : vector<64x4xf32> to vector<4xf32>
    %35 = vector.shape_cast %34 : vector<4xf32> to vector<1x4xf32>
    %36 = vector.broadcast %35 : vector<1x4xf32> to vector<64x4xf32>
    %37 = arith.subf %32, %36 : vector<64x4xf32>
    %38 = vector.broadcast %27 : f32 to vector<64x4xf32>
    %39 = arith.mulf %37, %38 : vector<64x4xf32>
    %40 = math.exp %39 : vector<64x4xf32>
    %cst_21 = arith.constant dense<0.000000e+00> : vector<4xf32>
    %41 = vector.multi_reduction <add>, %40, %cst_21 [0] : vector<64x4xf32> to vector<4xf32>
    %42 = vector.shape_cast %41 : vector<4xf32> to vector<1x4xf32>
    %43 = tpu.reciprocal %42 {approx = true} : vector<1x4xf32> -> vector<1x4xf32>
    %44 = vector.broadcast %43 : vector<1x4xf32> to vector<64x4xf32>
    %45 = arith.mulf %40, %44 : vector<64x4xf32>
    %46 = arith.subf %32, %33 : vector<64x4xf32>
    %47 = arith.mulf %46, %45 : vector<64x4xf32>
    %cst_22 = arith.constant dense<0.000000e+00> : vector<4xf32>
    %48 = vector.multi_reduction <add>, %47, %cst_22 [0] : vector<64x4xf32> to vector<4xf32>
    %49 = vector.shape_cast %48 : vector<4xf32> to vector<1x4xf32>
    %50 = vector.broadcast %25 : f32 to vector<1x4xf32>
    %51 = arith.mulf %50, %49 : vector<1x4xf32>
    %c0_23 = arith.constant 0 : index
    %c0_24 = arith.constant 0 : index
    %c0_25 = arith.constant 0 : index
    %52 = vector.load %arg10[%c0_23, %c0_24, %c0_25] : memref<1x1x4xf32, #tpu.memory_space<vmem>>, vector<1x1x4xf32>
    %53 = vector.shape_cast %52 : vector<1x1x4xf32> to vector<1x4xf32>
    %54 = vector.shape_cast %51 : vector<1x4xf32> to vector<1x1x4xf32>
    tpu.vector_store %arg10[%c0_23, %c0_24, %c0_25], %54 {strides = array<i32>} : memref<1x1x4xf32, #tpu.memory_space<vmem>>, vector<1x1x4xf32>,
    return
  }
  func.func @transform_0(%arg0: i32) -> (i32, i32) {
    %c0_i32 = arith.constant 0 : i32
    %c0_i32_0 = arith.constant 0 : i32
    return %arg0, %c0_i32 : i32, i32
  }
  func.func @transform_1(%arg0: i32) -> (i32, i32) {
    %c0_i32 = arith.constant 0 : i32
    %c0_i32_0 = arith.constant 0 : i32
    %c0_i32_1 = arith.constant 0 : i32
    return %c0_i32, %c0_i32_0 : i32, i32
  }
  func.func @transform_2(%arg0: i32) -> (i32, i32) {
    %c0_i32 = arith.constant 0 : i32
    %c0_i32_0 = arith.constant 0 : i32
    %c0_i32_1 = arith.constant 0 : i32
    return %c0_i32, %c0_i32_0 : i32, i32
  }
  func.func @transform_3(%arg0: i32) -> (i32, i32) {
    %c0_i32 = arith.constant 0 : i32
    %c0_i32_0 = arith.constant 0 : i32
    %c0_i32_1 = arith.constant 0 : i32
    return %c0_i32, %c0_i32_0 : i32, i32
  }
  func.func @transform_4(%arg0: i32) -> (i32, i32) {
    %c0_i32 = arith.constant 0 : i32
    %c0_i32_0 = arith.constant 0 : i32
    %c0_i32_1 = arith.constant 0 : i32
    return %c0_i32, %c0_i32_0 : i32, i32
  }
  func.func @transform_5(%arg0: i32) -> (i32, i32) {
    %c0_i32 = arith.constant 0 : i32
    %c0_i32_0 = arith.constant 0 : i32
    %c0_i32_1 = arith.constant 0 : i32
    return %c0_i32, %c0_i32_0 : i32, i32
  }
  func.func @transform_6(%arg0: i32) -> i32 {
    %c0_i32 = arith.constant 0 : i32
    %c0_i32_0 = arith.constant 0 : i32
    return %c0_i32 : i32
  }
  func.func @transform_7(%arg0: i32) -> i32 {
    %c0_i32 = arith.constant 0 : i32
    %c0_i32_0 = arith.constant 0 : i32
    return %c0_i32 : i32
  }
  func.func @transform_8(%arg0: i32) -> (i32, i32) {
    %c0_i32 = arith.constant 0 : i32
    %c0_i32_0 = arith.constant 0 : i32
    return %arg0, %c0_i32 : i32, i32
  }
  func.func @transform_9(%arg0: i32) -> (i32, i32, i32) {
    %c0_i32 = arith.constant 0 : i32
    %c0_i32_0 = arith.constant 0 : i32
    %c0_i32_1 = arith.constant 0 : i32
    return %arg0, %c0_i32, %c0_i32_0 : i32, i32, i32
  }
}

</mosaic_0001>

<bundles_post_ra>
// kernel: denseclip_forward.2
= control target key start
LH: loop header
LB: loop body
LE: loop exit
PB: predicated region body
PF: predicated region fallthrough
CT: control target
= control target key end

     0   :  { %vm96_vm0 = vcmask 523264   ;;  %vm1691_vm1 = vcmask 31744   ;;  %vm1640_vm3 = vcmask 7168   ;;  %vm1657_vm4 = vcmask 15360   ;;  %s11021_s0 = inlined_call_operand.vmem [shape: f32[128,64], index: 0, kind: input, shape index: {}]   ;;  %s11022_s7 = inlined_call_operand.vmem [shape: bf16[64,64], index: 7, kind: input, shape index: {}]   ;;  %s11023_s8 = inlined_call_operand.vmem [shape: bf16[64,64], index: 8, kind: input, shape index: {}]   ;;  %s11024_s9 = inlined_call_operand.vmem [shape: bf16[64,64], index: 9, kind: input, shape index: {}]   ;;  %s11025_s5 = inlined_call_operand.vmem [shape: f32[1,64], index: 5, kind: input, shape index: {}]   ;;  %s11026_s6 = inlined_call_operand.vmem [shape: f32[1,64], index: 6, kind: input, shape index: {}]   ;;  %s11027_s10 = inlined_call_operand.vmem [shape: f32[1,64], index: 10, kind: input, shape index: {}]   ;;  %s11028_s11 = inlined_call_operand.vmem [shape: f32[1,64], index: 11, kind: input, shape index: {}]   ;;  %s11029_s2 = inlined_call_operand.vmem [shape: f32[512,64], index: 2, kind: input, shape index: {}]   ;;  %s11030_s12 = inlined_call_operand.vmem [shape: f32[1,64], index: 12, kind: input, shape index: {}]   ;;  %s11031_s4 = inlined_call_operand.vmem [shape: f32[512,4], index: 4, kind: input, shape index: {}]   ;;  %s11032_s3 = inlined_call_operand.vmem [shape: f32[128,512], index: 3, kind: input, shape index: {}]   ;;  %s11033_s13 = inlined_call_operand.vmem [shape: bf16[64,64], index: 13, kind: input, shape index: {}]   ;;  %s11034_s14 = inlined_call_operand.vmem [shape: f32[1,64], index: 14, kind: input, shape index: {}]   ;;  %s11035_s17 = inlined_call_operand.vmem [shape: bf16[64,256], index: 17, kind: input, shape index: {}]   ;;  %s11036_s15 = inlined_call_operand.vmem [shape: f32[1,64], index: 15, kind: input, shape index: {}]   ;;  %s11037_s16 = inlined_call_operand.vmem [shape: f32[1,64], index: 16, kind: input, shape index: {}]   ;;  %s11038_s19 = inlined_call_operand.vmem [shape: bf16[256,64], index: 19, kind: input, shape index: {}]   ;;  %s11039_s18 = inlined_call_operand.vmem [shape: f32[1,256], index: 18, kind: input, shape index: {}]   ;;  %s11040_s20 = inlined_call_operand.vmem [shape: f32[1,64], index: 20, kind: input, shape index: {}]   ;;  %s11041_s23 = inlined_call_operand.vmem [shape: bf16[64,32], index: 23, kind: input, shape index: {}]   ;;  %s11042_s21 = inlined_call_operand.vmem [shape: f32[1,64], index: 21, kind: input, shape index: {}]   ;;  %s11043_s22 = inlined_call_operand.vmem [shape: f32[1,64], index: 22, kind: input, shape index: {}]   ;;  %s11044_s1 = inlined_call_operand.vmem [shape: bf16[1,8,128], index: 1, kind: input, shape index: {}]   ;;  %s11045_s24 = inlined_call_operand.vmem [shape: f32[1,8,32], index: 24, kind: output, shape index: {}]  }
   0x1   :  { %11243 = sst [smem:[#allocation128_spill]] %s11021_s0  ;;  %vm8605_vm2 = vmpackc.low %vm1691_vm1, %vm1691_vm1  ;;  %vm1674_vm5 = vcmask 23552   ;;  %vm7068_vm6 = vmmov 0   ;;  %vm5035_vm7 = vcmask 261120  }
   0x2   :  { %11244 = sst [smem:[#allocation129_spill]] %s11022_s7  ;;  %s11252_s27 = sld [smem:[#allocation128_spill]] }
   0x3   :  { %11245 = sst [smem:[#allocation130_spill]] %s11023_s8  ;;  %s11253_s0 = sld [smem:[#allocation129_spill]] }
   0x4   :  { %11246 = sst [smem:[#allocation131_spill]] %s11024_s9 }
   0x5   :  { %11247 = sst [smem:[#allocation132_spill]] %s11025_s5  ;;  %s11255_s5 = sld [smem:[#allocation131_spill]] }
   0x6   :  { %11248 = sst [smem:[#allocation133_spill]] %s11026_s6  ;;  %s11256_s7 = sld [smem:[#allocation132_spill]] }
   0x7   :  { %11249 = sst [smem:[#allocation134_spill]] %s11027_s10  ;;  %s11257_s28 = sld [smem:[#allocation133_spill]] }
   0x8   :  { %11250 = sst [smem:[#allocation135_spill]] %s11028_s11  ;;  %v78_v0 = vld [vmem:[%s11252_s27] sm:$0xff]  ;;  %v80_v1 = vld [vmem:[%s11252_s27 + $0x10] sm:$0xff]  ;;  %v79_v2 = vld [vmem:[%s11252_s27 + $0x8] sm:$0xff] }
   0x9   :  { %11251 = sst [smem:[#allocation136_spill]] %s11029_s2  ;;  %v97_v3 = vsel %vm96_vm0, %v78_v0, 0.0  ;;  %v103_v4 = vsel %vm96_vm0, %v80_v1, 0.0  ;;  %v81_v5 = vld [vmem:[%s11252_s27 + $0x18] sm:$0xff]  ;;  %v100_v6 = vsel %vm96_vm0, %v79_v2, 0.0  ;;  %v82_v8 = vld [vmem:[%s11252_s27 + $0x20] sm:$0xff] }
   0xa   :  { %98 = vadd.xlane.f32.xlu0 %v97_v3  ;;  %104 = vadd.xlane.f32.xlu1 %v103_v4  ;;  %v106_v7 = vsel %vm96_vm0, %v81_v5, 0.0  ;;  %v83_v9 = vld [vmem:[%s11252_s27 + $0x28] sm:$0xff]  ;;  %v109_v10 = vsel %vm96_vm0, %v82_v8, 0.0  ;;  %v7221_v12 = vld [vmem:[%s11252_s27 + $0x30] sm:$0xff]  ;;  %v7226_v13 = vld [vmem:[%s11252_s27 + $0x38] sm:$0xff]  ;;  %s11254_s2 = sld [smem:[#allocation130_spill]] }
   0xb   :  { %v112_v11 = vsel %vm96_vm0, %v83_v9, 0.0  ;;  %v115_v14 = vsel %vm96_vm0, %v7221_v12, 0.0  ;;  %v118_v15 = vsel %vm96_vm0, %v7226_v13, 0.0  ;;  %v7235_v16 = vld [vmem:[%s11252_s27 + $0x40] sm:$0xff]  ;;  %v7240_v17 = vld [vmem:[%s11252_s27 + $0x48] sm:$0xff]  ;;  %v7249_v20 = vld [vmem:[%s11252_s27 + $0x50] sm:$0xff] }
   0xc   :  { %v121_v18 = vsel %vm96_vm0, %v7235_v16, 0.0  ;;  %v124_v19 = vsel %vm96_vm0, %v7240_v17, 0.0  ;;  %v7254_v21 = vld [vmem:[%s11252_s27 + $0x58] sm:$0xff]  ;;  %v127_v22 = vsel %vm96_vm0, %v7249_v20, 0.0  ;;  %v7263_v24 = vld [vmem:[%s11252_s27 + $0x60] sm:$0xff]  ;;  %v7268_v25 = vld [vmem:[%s11252_s27 + $0x68] sm:$0xff] }
   0xd   :  { %v130_v23 = vsel %vm96_vm0, %v7254_v21, 0.0  ;;  %v133_v26 = vsel %vm96_vm0, %v7263_v24, 0.0  ;;  %v136_v27 = vsel %vm96_vm0, %v7268_v25, 0.0  ;;  %v7277_v28 = vld [vmem:[%s11252_s27 + $0x70] sm:$0xff]  ;;  %v7282_v29 = vld [vmem:[%s11252_s27 + $0x78] sm:$0xff]  ;;  %s11259_s6 = sld [smem:[#allocation135_spill]] }
   0xe   :  { %101 = vadd.xlane.f32.xlu0 %v100_v6  ;;  %107 = vadd.xlane.f32.xlu1 %v106_v7  ;;  %v139_v30 = vsel %vm96_vm0, %v7277_v28, 0.0  ;;  %v142_v31 = vsel %vm96_vm0, %v7282_v29, 0.0  ;;  %s11260_s10 = sld [smem:[#allocation136_spill]] }
  0x12   :  { %110 = vadd.xlane.f32.xlu0 %v109_v10  ;;  %113 = vadd.xlane.f32.xlu1 %v112_v11 }
  0x16   :  { %116 = vadd.xlane.f32.xlu0 %v115_v14  ;;  %119 = vadd.xlane.f32.xlu1 %v118_v15 }
  0x1a   :  { %122 = vadd.xlane.f32.xlu0 %v121_v18  ;;  %125 = vadd.xlane.f32.xlu1 %v124_v19 }
  0x1e   :  { %128 = vadd.xlane.f32.xlu0 %v127_v22  ;;  %131 = vadd.xlane.f32.xlu1 %v130_v23 }
  0x22   :  { %134 = vadd.xlane.f32.xlu0 %v133_v26  ;;  %137 = vadd.xlane.f32.xlu1 %v136_v27 }
  0x26   :  { %140 = vadd.xlane.f32.xlu0 %v139_v30  ;;  %143 = vadd.xlane.f32.xlu1 %v142_v31 }
  0x97   :  { %v99_v32 = vpop.xlane.xlu0 %98  ;;  %v105_v33 = vpop.xlane.xlu1 %104 }
  0x98   :  { %v146_v34 = vmul.f32 0.015625, %v99_v32  ;;  %v148_v35 = vmul.f32 0.015625, %v105_v33 }
  0x9a   :  { %v7288_v36 = vsub.f32 %v78_v0, %v146_v34  ;;  %v7290_v37 = vsub.f32 %v80_v1, %v148_v35 }
  0x9b   :  { %v102_v38 = vpop.xlane.xlu0 %101  ;;  %v108_v39 = vpop.xlane.xlu1 %107 }
  0x9c   :  { %v147_v40 = vmul.f32 0.015625, %v102_v38  ;;  %v149_v41 = vmul.f32 0.015625, %v108_v39  ;;  %v178_v42 = vmul.f32 %v7288_v36, %v7288_v36  ;;  %v180_v43 = vmul.f32 %v7290_v37, %v7290_v37 }
  0x9e   :  { %v7296_v44 = vsub.f32 %v79_v2, %v147_v40  ;;  %v7298_v45 = vsub.f32 %v81_v5, %v149_v41  ;;  %v194_v46 = vsel %vm96_vm0, %v178_v42, 0.0  ;;  %v200_v49 = vsel %vm96_vm0, %v180_v43, 0.0 }
  0x9f   :  { %195 = vadd.xlane.f32.xlu0 %v194_v46  ;;  %v111_v47 = vpop.xlane.xlu0 %110  ;;  %v114_v48 = vpop.xlane.xlu1 %113 }
  0xa0   :  { %v150_v50 = vmul.f32 0.015625, %v111_v47  ;;  %v151_v51 = vmul.f32 0.015625, %v114_v48  ;;  %v179_v52 = vmul.f32 %v7296_v44, %v7296_v44  ;;  %v181_v53 = vmul.f32 %v7298_v45, %v7298_v45 }
  0xa2   :  { %v7306_v54 = vsub.f32 %v82_v8, %v150_v50  ;;  %v7308_v55 = vsub.f32 %v83_v9, %v151_v51  ;;  %v197_v56 = vsel %vm96_vm0, %v179_v52, 0.0  ;;  %v203_v59 = vsel %vm96_vm0, %v181_v53, 0.0  ;;  %v6521_v53 = vld [vmem:[%s11254_s2] sm:$0xff]  }
  0xa3   :  { %201 = vadd.xlane.f32.xlu0 %v200_v49  ;;  %198 = vadd.xlane.f32.xlu1 %v197_v56  ;;  %v117_v57 = vpop.xlane.xlu0 %116  ;;  %v120_v58 = vpop.xlane.xlu1 %119  ;;  %v6522_v56 = vld [vmem:[%s11253_s0 + $0x8] sm:$0xff]  }
  0xa4   :  { %v152_v60 = vmul.f32 0.015625, %v117_v57  ;;  %v153_v61 = vmul.f32 0.015625, %v120_v58  ;;  %v182_v62 = vmul.f32 %v7306_v54, %v7306_v54  ;;  %v183_v63 = vmul.f32 %v7308_v55, %v7308_v55  ;;  %6141 = vmatprep.subr.bf16.mxu1 %v6521_v53  ;;  %v6523_v57 = vld [vmem:[%s11254_s2 + $0x8] sm:$0xff]   ;;  %v6524_v58 = vld [vmem:[%s11253_s0 + $0x10] sm:$0xff]  }
  0xa5   :  { %6142 = vmatpush3.bf16.msra.mxu1 %v6521_v53 }
  0xa6   :  { %v7317_v0 = vsub.f32 %v7221_v12, %v152_v60  ;;  %v7320_v1 = vsub.f32 %v7226_v13, %v153_v61  ;;  %v206_v2 = vsel %vm96_vm0, %v182_v62, 0.0  ;;  %v209_v5 = vsel %vm96_vm0, %v183_v63, 0.0  ;;  %6143 = vmatprep.subr.bf16.mxu1 %v6523_v57  ;;  %v6526_v60 = vld [vmem:[%s11253_s0 + $0x18] sm:$0xff]   ;;  %v7405_v62 = vld [vmem:[%s11255_s5] sm:$0xff]  }
  0xa7   :  { %204 = vadd.xlane.f32.xlu1 %v203_v59  ;;  %207 = vadd.xlane.f32.xlu0 %v206_v2  ;;  %v123_v3 = vpop.xlane.xlu0 %122  ;;  %v126_v4 = vpop.xlane.xlu1 %125  ;;  %v6525_v59 = vld [vmem:[%s11254_s2 + $0x10] sm:$0xff]   ;;  %v6527_v61 = vld [vmem:[%s11254_s2 + $0x18] sm:$0xff]  }
  0xa8   :  { %v154_v6 = vmul.f32 0.015625, %v123_v3  ;;  %v155_v7 = vmul.f32 0.015625, %v126_v4  ;;  %v184_v8 = vmul.f32 %v7317_v0, %v7317_v0  ;;  %v185_v9 = vmul.f32 %v7320_v1, %v7320_v1 }
  0xa9   :  { %6144 = vmatpush3.bf16.msra.mxu1 %v6523_v57 }
  0xaa   :  { %v7329_v10 = vsub.f32 %v7235_v16, %v154_v6  ;;  %v7332_v11 = vsub.f32 %v7240_v17, %v155_v7  ;;  %v212_v12 = vsel %vm96_vm0, %v184_v8, 0.0  ;;  %v215_v15 = vsel %vm96_vm0, %v185_v9, 0.0  ;;  %6145 = vmatprep.subr.bf16.mxu1 %v6525_v59 }
  0xab   :  { %210 = vadd.xlane.f32.xlu1 %v209_v5  ;;  %213 = vadd.xlane.f32.xlu0 %v212_v12  ;;  %v129_v13 = vpop.xlane.xlu0 %128  ;;  %v132_v14 = vpop.xlane.xlu1 %131 }
  0xac   :  { %v156_v18 = vmul.f32 0.015625, %v129_v13  ;;  %v157_v19 = vmul.f32 0.015625, %v132_v14  ;;  %v186_v22 = vmul.f32 %v7329_v10, %v7329_v10  ;;  %v187_v16 = vmul.f32 %v7332_v11, %v7332_v11 }
  0xad   :  { %6146 = vmatpush3.bf16.msra.mxu1 %v6525_v59 }
  0xae   :  { %v7341_v23 = vsub.f32 %v7249_v20, %v156_v18  ;;  %v7344_v17 = vsub.f32 %v7254_v21, %v157_v19  ;;  %v218_v26 = vsel %vm96_vm0, %v186_v22, 0.0  ;;  %v221_v31 = vsel %vm96_vm0, %v187_v16, 0.0  ;;  %6147 = vmatprep.subr.bf16.mxu1 %v6527_v61 }
  0xaf   :  { %216 = vadd.xlane.f32.xlu1 %v215_v15  ;;  %219 = vadd.xlane.f32.xlu0 %v218_v26  ;;  %v135_v27 = vpop.xlane.xlu0 %134  ;;  %v138_v30 = vpop.xlane.xlu1 %137 }
  0xb0   :  { %v158_v32 = vmul.f32 0.015625, %v135_v27  ;;  %v159_v33 = vmul.f32 0.015625, %v138_v30  ;;  %v188_v34 = vmul.f32 %v7341_v23, %v7341_v23  ;;  %v189_v20 = vmul.f32 %v7344_v17, %v7344_v17 }
  0xb1   :  { %6148 = vmatpush3.bf16.msra.mxu1 %v6527_v61 }
  0xb2   :  { %v7353_v35 = vsub.f32 %v7263_v24, %v158_v32  ;;  %v7356_v21 = vsub.f32 %v7268_v25, %v159_v33  ;;  %v224_v38 = vsel %vm96_vm0, %v188_v34, 0.0  ;;  %v227_v41 = vsel %vm96_vm0, %v189_v20, 0.0 }
  0xb3   :  { %222 = vadd.xlane.f32.xlu1 %v221_v31  ;;  %225 = vadd.xlane.f32.xlu0 %v224_v38  ;;  %v141_v39 = vpop.xlane.xlu0 %140  ;;  %v144_v40 = vpop.xlane.xlu1 %143 }
  0xb4   :  { %v160_v42 = vmul.f32 0.015625, %v141_v39  ;;  %v161_v43 = vmul.f32 0.015625, %v144_v40  ;;  %v190_v46 = vmul.f32 %v7353_v35, %v7353_v35  ;;  %v191_v24 = vmul.f32 %v7356_v21, %v7356_v21  ;;  %v7412_v40 = vld [vmem:[%s11256_s7] ss:$0 sm:$0xff] }
  0xb6   :  { %v7365_v47 = vsub.f32 %v7277_v28, %v160_v42  ;;  %v7368_v25 = vsub.f32 %v7282_v29, %v161_v43  ;;  %v230_v48 = vsel %vm96_vm0, %v190_v46, 0.0  ;;  %v233_v49 = vsel %vm96_vm0, %v191_v24, 0.0  ;;  %v6520_v28 = vld [vmem:[%s11253_s0] sm:$0xff]   ;;  %s11258_s0 = sld [smem:[#allocation134_spill]] }
  0xb7   :  { %228 = vadd.xlane.f32.xlu1 %v227_v41  ;;  %231 = vadd.xlane.f32.xlu0 %v230_v48 }
  0xb8   :  { %v192_v50 = vmul.f32 %v7365_v47, %v7365_v47  ;;  %v193_v51 = vmul.f32 %v7368_v25, %v7368_v25  ;;  %6117 = vmatprep.subr.bf16.mxu0 %v6520_v28 }
  0xb9   :  { %6118 = vmatpush3.bf16.msra.mxu0 %v6520_v28 }
  0xba   :  { %v236_v52 = vsel %vm96_vm0, %v192_v50, 0.0  ;;  %v239_v29 = vsel %vm96_vm0, %v193_v51, 0.0  ;;  %6119 = vmatprep.subr.bf16.mxu0 %v6522_v56 }
  0xbb   :  { %234 = vadd.xlane.f32.xlu1 %v233_v49  ;;  %237 = vadd.xlane.f32.xlu0 %v236_v52  ;;  %v7419_v52 = vld [vmem:[%s11257_s28] ss:$0 sm:$0xff] }
  0xbd   :  { %6120 = vmatpush3.bf16.msra.mxu0 %v6522_v56 }
  0xbe   :  { %6121 = vmatprep.subr.bf16.mxu0 %v6524_v58 }
  0xbf   :  { %240 = vadd.xlane.f32.xlu1 %v239_v29 }
  0xc1   :  { %6122 = vmatpush3.bf16.msra.mxu0 %v6524_v58 }
  0xc2   :  { %6123 = vmatprep.subr.bf16.mxu0 %v6526_v60 }
  0xc5   :  { %6124 = vmatpush3.bf16.msra.mxu0 %v6526_v60 }
  0xc6   :  { %6165 = vmatprep.subr.bf16.mxu0 %v7405_v62 }
 0x12c   :  { %v196_v63 = vpop.xlane.xlu0 %195 }
 0x12d   :  { %v242_v2 = vmul.f32 0.015625, %v196_v63 }
 0x12f   :  { %v258_v3 = vadd.f32 1e-05, %v242_v2 }
 0x130   :  { %v199_v4 = vpop.xlane.xlu1 %198  ;;  %v202_v5 = vpop.xlane.xlu0 %201 }
 0x131   :  { %6568 = vrsqrt.f32 %v258_v3  ;;  %v243_v6 = vmul.f32 0.015625, %v199_v4  ;;  %v244_v7 = vmul.f32 0.015625, %v202_v5 }
 0x133   :  { %v259_v8 = vadd.f32 1e-05, %v243_v6  ;;  %v260_v9 = vadd.f32 1e-05, %v244_v7 }
 0x134   :  { %v205_v12 = vpop.xlane.xlu1 %204  ;;  %v208_v13 = vpop.xlane.xlu0 %207 }
 0x135   :  { %6570 = vrsqrt.f32 %v259_v8  ;;  %v245_v14 = vmul.f32 0.015625, %v205_v12  ;;  %v246_v15 = vmul.f32 0.015625, %v208_v13 }
 0x136   :  { %6572 = vrsqrt.f32 %v260_v9 }
 0x137   :  { %v261_v18 = vadd.f32 1e-05, %v245_v14  ;;  %v262_v19 = vadd.f32 1e-05, %v246_v15 }
 0x138   :  { %v211_v22 = vpop.xlane.xlu1 %210  ;;  %v214_v16 = vpop.xlane.xlu0 %213 }
 0x139   :  { %6574 = vrsqrt.f32 %v261_v18  ;;  %v247_v26 = vmul.f32 0.015625, %v211_v22  ;;  %v248_v27 = vmul.f32 0.015625, %v214_v16 }
 0x13a   :  { %6576 = vrsqrt.f32 %v262_v19 }
 0x13b   :  { %v6569_v30 = vpop.eup %6568  ;;  %v263_v31 = vadd.f32 1e-05, %v247_v26  ;;  %v264_v32 = vadd.f32 1e-05, %v248_v27 }
 0x13c   :  { %v217_v33 = vpop.xlane.xlu1 %216  ;;  %v220_v34 = vpop.xlane.xlu0 %219  ;;  %v290_v20 = vmul.f32 %v6569_v30, %v7288_v36  ;;  %v6529_v30 = vld [vmem:[%s11255_s5 + $0x8] sm:$0xff]  }
 0x13d   :  { %6578 = vrsqrt.f32 %v263_v31  ;;  %v249_v38 = vmul.f32 0.015625, %v217_v33  ;;  %v250_v39 = vmul.f32 0.015625, %v220_v34 }
 0x13e   :  { %6580 = vrsqrt.f32 %v264_v32  ;;  %v312_v50 = vmul.f32 %v7412_v40, %v290_v20 }
 0x13f   :  { %v6571_v41 = vpop.eup %6570  ;;  %v265_v42 = vadd.f32 1e-05, %v249_v38  ;;  %v266_v43 = vadd.f32 1e-05, %v250_v39 }
 0x140   :  { %v6573_v46 = vpop.eup %6572  ;;  %v223_v24 = vpop.xlane.xlu1 %222  ;;  %v291_v49 = vmul.f32 %v6571_v41, %v7296_v44  ;;  %v334_v61 = vadd.f32 %v7419_v52, %v312_v50 }
 0x141   :  { %v226_v48 = vpop.xlane.xlu0 %225  ;;  %6582 = vrsqrt.f32 %v265_v42  ;;  %v251_v36 = vmul.f32 0.015625, %v223_v24  ;;  %v292_v28 = vmul.f32 %v6573_v46, %v7290_v37  ;;  %v6530_v24 = vld [vmem:[%s11255_s5 + $0x10] sm:$0xff]  }
 0x142   :  { %v252_v51 = vmul.f32 0.015625, %v226_v48  ;;  %6584 = vrsqrt.f32 %v266_v43  ;;  %v313_v29 = vmul.f32 %v7412_v40, %v291_v49 }
 0x143   :  { %v6575_v53 = vpop.eup %6574  ;;  %v267_v56 = vadd.f32 1e-05, %v251_v36  ;;  %v314_v44 = vmul.f32 %v7412_v40, %v292_v28 }
 0x144   :  { %v268_v57 = vadd.f32 1e-05, %v252_v51  ;;  %v6577_v58 = vpop.eup %6576  ;;  %v229_v59 = vpop.xlane.xlu1 %228  ;;  %v335_v63 = vadd.f32 %v7419_v52, %v313_v29  ;;  %v293_v2 = vmul.f32 %v6575_v53, %v7298_v45  ;;  %v6531_v53 = vld [vmem:[%s11255_s5 + $0x18] sm:$0xff]  }
 0x145   :  { %v232_v60 = vpop.xlane.xlu0 %231  ;;  %6586 = vrsqrt.f32 %v267_v56  ;;  %v253_v3 = vmul.f32 0.015625, %v229_v59  ;;  %v294_v6 = vmul.f32 %v6577_v58, %v7306_v54  ;;  %v336_v12 = vadd.f32 %v7419_v52, %v314_v44 }
 0x146   :  { %v254_v37 = vmul.f32 0.015625, %v232_v60  ;;  %6588 = vrsqrt.f32 %v268_v57  ;;  %v7427_v4 = vpack.c.bf16 %v335_v63, %v334_v61  ;;  %v315_v5 = vmul.f32 %v7412_v40, %v293_v2 }
 0x147   :  { %v6579_v7 = vpop.eup %6578  ;;  %v269_v8 = vadd.f32 1e-05, %v253_v3  ;;  %v316_v54 = vmul.f32 %v7412_v40, %v294_v6 }
 0x148   :  { %v270_v9 = vadd.f32 1e-05, %v254_v37  ;;  %v6581_v13 = vpop.eup %6580  ;;  %v235_v14 = vpop.xlane.xlu1 %234  ;;  %6125 = vmatprep.mubr.msk.bf16.mxu0 %vm96_vm0, %v7427_v4  ;;  %6149 = vmatprep.mubr.msk.bf16.mxu1 %vm96_vm0, %v7427_v4  ;;  %v337_v15 = vadd.f32 %v7419_v52, %v315_v5  ;;  %v295_v18 = vmul.f32 %v6579_v7, %v7308_v55 }
 0x149   :  { %v238_v45 = vpop.xlane.xlu0 %237  ;;  %6590 = vrsqrt.f32 %v269_v8  ;;  %v255_v19 = vmul.f32 0.015625, %v235_v14  ;;  %v296_v16 = vmul.f32 %v6581_v13, %v7317_v0  ;;  %v338_v55 = vadd.f32 %v7419_v52, %v316_v54  ;;  %v7528_v54 = vld [vmem:[%s11260_s10 + $0x90] sm:$0xff] }
 0x14a   :  { %v256_v22 = vmul.f32 0.015625, %v238_v45  ;;  %6592 = vrsqrt.f32 %v270_v9  ;;  %v7440_v26 = vpack.c.bf16 %v337_v15, %v336_v12  ;;  %v317_v27 = vmul.f32 %v7412_v40, %v295_v18 }
 0x14b   :  { %v6583_v31 = vpop.eup %6582  ;;  %v271_v32 = vadd.f32 1e-05, %v255_v19  ;;  %v318_v39 = vmul.f32 %v7412_v40, %v296_v16  ;;  %v7537_v16 = vld [vmem:[%s11260_s10 + $0x190] sm:$0xff] }
 0x14c   :  { %v272_v33 = vadd.f32 1e-05, %v256_v22  ;;  %v6585_v34 = vpop.eup %6584  ;;  %v241_v20 = vpop.xlane.xlu1 %240  ;;  %6126 = vmatmul.mubr.msk.bf16.vlgmr.msra.gmra.mrb[0].mxu0 %vm96_vm0, %v7440_v26  ;;  %6150 = vmatmul.mubr.msk.bf16.vlgmr.msra.gmra.mrb[0].mxu1 %vm96_vm0, %v7440_v26  ;;  %v339_v0 = vadd.f32 %v7419_v52, %v317_v27  ;;  %v297_v38 = vmul.f32 %v6583_v31, %v7320_v1  ;;  %11261 = vst [vmem:[#allocation2_spill] sm:$0xff] %v7537_v16 }
 0x14d   :  { %6594 = vrsqrt.f32 %v271_v32  ;;  %v257_v41 = vmul.f32 0.015625, %v241_v20  ;;  %v298_v42 = vmul.f32 %v6585_v34, %v7329_v10  ;;  %6166 = vmatpush3.bf16.msra.mxu0 %v7405_v62  ;;  %v340_v10 = vadd.f32 %v7419_v52, %v318_v39  ;;  %v7554_v20 = vld [vmem:[%s11260_s10] sm:$0xff] }
 0x14e   :  { %6596 = vrsqrt.f32 %v272_v33  ;;  %v7456_v43 = vpack.c.bf16 %v339_v0, %v338_v55  ;;  %v319_v46 = vmul.f32 %v7412_v40, %v297_v38  ;;  %6167 = vmatprep.subr.bf16.mxu0 %v6529_v30  ;;  %v7549_v33 = vld [vmem:[%s11260_s10 + $0x180] sm:$0xff] }
 0x14f   :  { %v6587_v48 = vpop.eup %6586  ;;  %v273_v1 = vadd.f32 1e-05, %v257_v41  ;;  %v320_v49 = vmul.f32 %v7412_v40, %v298_v42  ;;  %v7564_v41 = vld [vmem:[%s11260_s10 + $0x98] sm:$0xff] }
 0x150   :  { %v6589_v50 = vpop.eup %6588  ;;  %6129 = vmatprep.mubr.msk.bf16.mxu0 %vm96_vm0, %v7456_v43  ;;  %6153 = vmatprep.mubr.msk.bf16.mxu1 %vm96_vm0, %v7456_v43  ;;  %v341_v62 = vadd.f32 %v7419_v52, %v319_v46  ;;  %v299_v36 = vmul.f32 %v6587_v48, %v7332_v11  ;;  %11262 = vst [vmem:[#allocation3_spill] sm:$0xff] %v7564_v41  ;;  %v7569_v42 = vld [vmem:[%s11260_s10 + $0x198] sm:$0xff] }
 0x151   :  { %6598 = vrsqrt.f32 %v273_v1  ;;  %v300_v51 = vmul.f32 %v6589_v50, %v7341_v23  ;;  %6168 = vmatpush3.bf16.msra.mxu0 %v6529_v30  ;;  %v342_v57 = vadd.f32 %v7419_v52, %v320_v49  ;;  %v7542_v30 = vld [vmem:[%s11260_s10 + $0x80] sm:$0xff]  ;;  %11263 = vst [vmem:[#allocation4_spill] sm:$0xff] %v7569_v42 }
 0x152   :  { %v353_v28 = vpack.c.bf16 %v341_v62, %v340_v10  ;;  %v321_v29 = vmul.f32 %v7412_v40, %v299_v36  ;;  %6169 = vmatprep.subr.bf16.mxu0 %v6530_v24  ;;  %v7587_v10 = vld [vmem:[%s11260_s10 + $0x88] sm:$0xff] }
 0x153   :  { %v6591_v56 = vpop.eup %6590  ;;  %v322_v58 = vmul.f32 %v7412_v40, %v300_v51  ;;  %v7592_v62 = vld [vmem:[%s11260_s10 + $0x188] sm:$0xff] }
 0x154   :  { %v6593_v44 = vpop.eup %6592  ;;  %6130 = vmatmul.mubr.msk.bf16.gmra.mrb[4].mxu0 %vm96_vm0, %v353_v28  ;;  %6154 = vmatmul.mubr.msk.bf16.gmra.mrb[4].mxu1 %vm96_vm0, %v353_v28  ;;  %v343_v11 = vadd.f32 %v7419_v52, %v321_v29  ;;  %v301_v23 = vmul.f32 %v6591_v56, %v7344_v17  ;;  %v7605_v56 = vld [vmem:[%s11260_s10 + $0x108] sm:$0xff] }
 0x155   :  { %v302_v59 = vmul.f32 %v6593_v44, %v7353_v35  ;;  %6170 = vmatpush3.bf16.msra.mxu0 %v6530_v24  ;;  %v344_v37 = vadd.f32 %v7419_v52, %v322_v58  ;;  %v7574_v24 = vld [vmem:[%s11260_s10 + $0x100] sm:$0xff] }
 0x156   :  { %v354_v60 = vpack.c.bf16 %v343_v11, %v342_v57  ;;  %v323_v61 = vmul.f32 %v7412_v40, %v301_v23  ;;  %6171 = vmatprep.subr.bf16.mxu0 %v6531_v53 }
 0x157   :  { %v6595_v63 = vpop.eup %6594  ;;  %v324_v2 = vmul.f32 %v7412_v40, %v302_v59 }
 0x158   :  { %v6597_v3 = vpop.eup %6596  ;;  %6133 = vmatprep.mubr.msk.bf16.mxu0 %vm96_vm0, %v354_v60  ;;  %6157 = vmatprep.mubr.msk.bf16.mxu1 %vm96_vm0, %v354_v60  ;;  %v345_v17 = vadd.f32 %v7419_v52, %v323_v61  ;;  %v303_v5 = vmul.f32 %v6595_v63, %v7356_v21 }
 0x159   :  { %v304_v35 = vmul.f32 %v6597_v3, %v7365_v47  ;;  %6172 = vmatpush3.bf16.msra.mxu0 %v6531_v53  ;;  %v346_v9 = vadd.f32 %v7419_v52, %v324_v2  ;;  %v7600_v53 = vld [vmem:[%s11260_s10 + $0x8] sm:$0xff]  ;;  %v7626_v3 = vld [vmem:[%s11260_s10 + $0xb0] sm:$0xff] }
 0x15a   :  { %v355_v6 = vpack.c.bf16 %v345_v17, %v344_v37  ;;  %v325_v7 = vmul.f32 %v7412_v40, %v303_v5  ;;  %11265 = vst [vmem:[#allocation6_spill] sm:$0xff] %v7626_v3 }
 0x15b   :  { %v6599_v8 = vpop.eup %6598  ;;  %v326_v14 = vmul.f32 %v7412_v40, %v304_v35 }
 0x15c   :  { %6134 = vmatmul.mubr.msk.bf16.gmra.mrb[8].mxu0 %vm96_vm0, %v355_v6  ;;  %6158 = vmatmul.mubr.msk.bf16.gmra.mrb[8].mxu1 %vm96_vm0, %v355_v6  ;;  %v347_v12 = vadd.f32 %v7419_v52, %v325_v7  ;;  %v305_v13 = vmul.f32 %v6599_v8, %v7368_v25  ;;  %v7518_v25 = vld [vmem:[%s11258_s0] ss:$0 sm:$0xff] }
 0x15d   :  { %v348_v45 = vadd.f32 %v7419_v52, %v326_v14 }
 0x15e   :  { %v356_v21 = vpack.c.bf16 %v347_v12, %v346_v9  ;;  %v327_v47 = vmul.f32 %v7412_v40, %v305_v13  ;;  %v7523_v40 = vld [vmem:[%s11259_s6] ss:$0 sm:$0xff]  ;;  %v7648_v12 = vld [vmem:[%s11260_s10 + $0x1b0] sm:$0xff] }
 0x15f   :  { %11267 = vst [vmem:[#allocation8_spill] sm:$0xff] %v7648_v12 }
 0x160   :  { %6137 = vmatprep.mubr.msk.bf16.mxu0 %vm96_vm0, %v356_v21  ;;  %6161 = vmatprep.mubr.msk.bf16.mxu1 %vm96_vm0, %v356_v21  ;;  %v349_v15 = vadd.f32 %v7419_v52, %v327_v47 }
 0x162   :  { %v357_v18 = vpack.c.bf16 %v349_v15, %v348_v45 }
 0x164   :  { %6138 = vmatmul.mubr.msk.bf16.gmra.mrb[12].mxu0 %vm96_vm0, %v357_v18  ;;  %6162 = vmatmul.mubr.msk.bf16.gmra.mrb[12].mxu1 %vm96_vm0, %v357_v18 }
 0x165   :  { %6173 = vmatprep.mubr.msk.bf16.mxu0 %vm96_vm0, %v7427_v4 }
 0x16c   :  { %6174 = vmatmul.mubr.msk.bf16.vlgmr.msra.gmra.mrb[16].mxu0 %vm96_vm0, %v7440_v26 }
 0x16d   :  { %6177 = vmatprep.mubr.msk.bf16.mxu0 %vm96_vm0, %v7456_v43 }
 0x174   :  { %6178 = vmatmul.mubr.msk.bf16.gmra.mrb[20].mxu0 %vm96_vm0, %v353_v28 }
 0x175   :  { %6181 = vmatprep.mubr.msk.bf16.mxu0 %vm96_vm0, %v354_v60 }
 0x17c   :  { %6182 = vmatmul.mubr.msk.bf16.gmra.mrb[24].mxu0 %vm96_vm0, %v355_v6  ;;  %v7637_v6 = vld [vmem:[%s11260_s10 + $0x10] sm:$0xff] }
 0x17d   :  { %6185 = vmatprep.mubr.msk.bf16.mxu0 %vm96_vm0, %v356_v21  ;;  %v7653_v21 = vld [vmem:[%s11260_s10 + $0xa0] sm:$0xff] }
 0x17e   :  { %11268 = vst [vmem:[#allocation9_spill] sm:$0xff] %v7653_v21 }
 0x184   :  { %6186 = vmatmul.mubr.msk.bf16.gmra.mrb[28].mxu0 %vm96_vm0, %v357_v18 }
 0x21f   :  { %v6127_v52 = vpop.f32.mrb[0].mxu0  ;;  %v6151_v4 = vpop.f32.mrb[0].mxu1 }
 0x220   :  { %v464_v19 = vadd.f32 %v6127_v52, %v7518_v25  ;;  %v7532_v22 = vadd.f32 %v6151_v4, %v7523_v40  ;;  %v455_v26 = vpop.f32.mrb[1].mxu0  ;;  %v607_v27 = vpop.f32.mrb[1].mxu1 }
 0x221   :  { %v456_v31 = vadd.f32 %v7518_v25, %v455_v26  ;;  %v608_v32 = vadd.f32 %v7523_v40, %v607_v27  ;;  %v6128_v55 = vpop.f32.mrb[2].mxu0  ;;  %v6152_v34 = vpop.f32.mrb[2].mxu1 }
 0x222   :  { %v520_v0 = vmul.f32 0.25, %v464_v19  ;;  %v7558_v38 = vmul.f32 %v7528_v54, %v7532_v22  ;;  %v467_v39 = vadd.f32 %v6128_v55, %v7518_v25  ;;  %v458_v43 = vpop.f32.mrb[3].mxu0  ;;  %v610_v46 = vpop.f32.mrb[3].mxu1  ;;  %v7578_v48 = vmul.f32 %v7537_v16, %v7532_v22  ;;  %v7672_v55 = vld [vmem:[%s11260_s10 + $0xb8] sm:$0xff] }
 0x223   :  { %v518_v1 = vmul.f32 0.25, %v456_v31  ;;  %v886_v49 = vmul.f32 %v7542_v30, %v608_v32  ;;  %v7582_v50 = vadd.f32 %v6152_v34, %v7523_v40  ;;  %v918_v36 = vmul.f32 %v7549_v33, %v608_v32  ;;  %v7666_v31 = vld [vmem:[%s11260_s10 + $0x1a0] sm:$0xff]  ;;  %11270 = vst [vmem:[#allocation11_spill] sm:$0xff] %v7672_v55 }
 0x224   :  { %v521_v51 = vmul.f32 0.25, %v467_v39  ;;  %v459_v28 = vadd.f32 %v7518_v25, %v458_v43  ;;  %v611_v29 = vadd.f32 %v7523_v40, %v610_v46  ;;  %v870_v11 = vmul.f32 %v7554_v20, %v608_v32  ;;  %11269 = vst [vmem:[#allocation10_spill] sm:$0xff] %v7666_v31 }
 0x225   :  { %v7609_v57 = vmul.f32 %v7564_v41, %v7582_v50  ;;  %v7613_v44 = vmul.f32 %v7569_v42, %v7582_v50  ;;  %v7617_v23 = vmul.f32 %v7574_v24, %v608_v32  ;;  %v872_v39 = vmul.f32 %v7637_v6, %v7532_v22 }
 0x226   :  { %v7619_v58 = vpack.c.bf16 %v521_v51, %v520_v0  ;;  %v519_v59 = vmul.f32 0.25, %v459_v28  ;;  %v887_v60 = vmul.f32 %v7587_v10, %v611_v29  ;;  %v919_v61 = vmul.f32 %v7592_v62, %v611_v29  ;;  %v7706_v51 = vld [vmem:[%s11260_s10 + $0xa8] sm:$0xff] }
 0x227   :  { %v6131_v63 = vpop.f32.mrb[4].mxu0  ;;  %v6155_v2 = vpop.f32.mrb[4].mxu1  ;;  %v871_v37 = vmul.f32 %v7600_v53, %v611_v29  ;;  %v903_v17 = vmul.f32 %v7605_v56, %v611_v29  ;;  %v1015_v5 = vpack.c.bf16 %v7609_v57, %v7558_v38  ;;  %v1031_v35 = vpack.c.bf16 %v7613_v44, %v7578_v48  ;;  %v7680_v38 = vld [vmem:[%s11260_s10 + $0x18] sm:$0xff]  ;;  %11272 = vst [vmem:[#allocation13_spill] sm:$0xff] %v7706_v51 }
 0x228   :  { %11264 = vst [vmem:[#allocation5_spill] sm:$0xff] %v7619_v58  ;;  %v7639_v7 = vpack.c.bf16 %v519_v59, %v518_v1  ;;  %v480_v8 = vadd.f32 %v6131_v63, %v7518_v25  ;;  %v7643_v9 = vadd.f32 %v6155_v2, %v7523_v40  ;;  %v471_v13 = vpop.f32.mrb[5].mxu0  ;;  %v623_v14 = vpop.f32.mrb[5].mxu1  ;;  %v1014_v47 = vpack.c.bf16 %v887_v60, %v886_v49  ;;  %v7716_v59 = vld [vmem:[%s11260_s10 + $0x110] sm:$0xff]  ;;  %v7721_v60 = vld [vmem:[%s11260_s10 + $0x118] sm:$0xff]  ;;  %v7838_v58 = vld [vmem:[%s11260_s10 + $0x28] sm:$0xff] }
 0x229   :  { %v472_v45 = vadd.f32 %v7518_v25, %v471_v13  ;;  %v7657_v15 = vadd.f32 %v7523_v40, %v623_v14  ;;  %v6132_v18 = vpop.f32.mrb[6].mxu0  ;;  %v6156_v52 = vpop.f32.mrb[6].mxu1  ;;  %v1030_v4 = vpack.c.bf16 %v919_v61, %v918_v36  ;;  %v1006_v19 = vpack.c.bf16 %v871_v37, %v870_v11  ;;  %v7698_v36 = vld [vmem:[%s11260_s10 + $0x1b8] sm:$0xff] }
 0x22a   :  { %11266 = vst [vmem:[#allocation7_spill] sm:$0xff] %v7639_v7  ;;  %v524_v26 = vmul.f32 0.25, %v480_v8  ;;  %v7661_v27 = vmul.f32 %v7626_v3, %v7643_v9  ;;  %v483_v32 = vadd.f32 %v6132_v18, %v7518_v25  ;;  %6501 = vmatprep.subr.msk.bf16.mxu1 %vm96_vm0, %v1014_v47  ;;  %5435 = vmatprep.mubr.msk.bf16.mxu1 %vm96_vm0, %v7639_v7  ;;  %v474_v34 = vpop.f32.mrb[7].mxu0  ;;  %v626_v0 = vpop.f32.mrb[7].mxu1  ;;  %11271 = vst [vmem:[#allocation12_spill] sm:$0xff] %v7698_v36  ;;  %v7743_v47 = vld [vmem:[%s11260_s10 + $0x1a8] sm:$0xff] }
 0x22b   :  { %v7686_v43 = vmul.f32 %v7648_v12, %v7643_v9  ;;  %v522_v46 = vmul.f32 0.25, %v472_v45  ;;  %v7690_v1 = vmul.f32 %v7653_v21, %v7657_v15  ;;  %v7693_v49 = vadd.f32 %v6156_v52, %v7523_v40  ;;  %6509 = vmatprep.subr.msk.bf16.mxu0 %vm96_vm0, %v1030_v4  ;;  %5467 = vmatprep.mubr.msk.bf16.mxu0 %vm96_vm0, %v7639_v7  ;;  %v7752_v52 = vld [vmem:[%s11260_s10 + $0xd0] sm:$0xff]  ;;  %v7798_v44 = vld [vmem:[%s11260_s10 + $0xd8] sm:$0xff]  ;;  %v7843_v7 = vld [vmem:[%s11260_s10 + $0x120] sm:$0xff] }
 0x22c   :  { %v525_v28 = vmul.f32 0.25, %v483_v32  ;;  %v475_v29 = vadd.f32 %v7518_v25, %v474_v34  ;;  %v7710_v57 = vadd.f32 %v7523_v40, %v626_v0  ;;  %v1127_v11 = vsel %vm96_vm0, %v1006_v19, 0  ;;  %11274 = vst [vmem:[#allocation15_spill] sm:$0xff] %v7743_v47  ;;  %11275 = vst [vmem:[#allocation16_spill] sm:$0xff] %v7752_v52  ;;  %v7767_v0 = vld [vmem:[%s11260_s10 + $0x1d0] sm:$0xff] }
 0x22d   :  { %v7725_v61 = vmul.f32 %v7666_v31, %v7657_v15  ;;  %v7729_v63 = vmul.f32 %v7672_v55, %v7693_v49  ;;  %5420 = vmatpush3.bf16.xpose.msra.mxu1 %v1127_v11  ;;  %v1022_v2 = vpack.c.bf16 %v903_v17, %v7617_v23  ;;  %v873_v37 = vmul.f32 %v7680_v38, %v7582_v50  ;;  %v7896_v12 = vld [vmem:[%s11260_s10 + $0x1f0] sm:$0xff] }
 0x22e   :  { %v7734_v8 = vpack.c.bf16 %v525_v28, %v524_v26  ;;  %v7738_v13 = vmul.f32 %v7698_v36, %v7693_v49  ;;  %v523_v14 = vmul.f32 0.25, %v475_v29  ;;  %v891_v45 = vmul.f32 %v7706_v51, %v7710_v57  ;;  %6502 = vmatprep.subr.msk.bf16.mxu1 %vm96_vm0, %v1015_v5  ;;  %11277 = vst [vmem:[#allocation18_spill] sm:$0xff] %v7767_v0  ;;  %v7968_v31 = vld [vmem:[%s11260_s10 + $0x130] sm:$0xff] }
 0x22f   :  { %v1175_v23 = vsel %vm96_vm0, %v1022_v2, 0  ;;  %v6135_v17 = vpop.f32.mrb[8].mxu0  ;;  %v6159_v18 = vpop.f32.mrb[8].mxu1  ;;  %v1007_v4 = vpack.c.bf16 %v873_v37, %v872_v39  ;;  %v904_v19 = vmul.f32 %v7716_v59, %v7532_v22  ;;  %v905_v26 = vmul.f32 %v7721_v60, %v7582_v50  ;;  %v7772_v22 = vld [vmem:[%s11260_s10 + $0xc0] sm:$0xff]  ;;  %11280 = vst [vmem:[#allocation21_spill] sm:$0xff] %v7798_v44  ;;  %11287 = vst [vmem:[#allocation28_spill] sm:$0xff] %v7896_v12 }
 0x230   :  { %11273 = vst [vmem:[#allocation14_spill] sm:$0xff] %v7734_v8  ;;  %v7758_v32 = vpack.c.bf16 %v523_v14, %v522_v46  ;;  %5452 = vmatpush3.bf16.xpose.msra.mxu0 %v1175_v23  ;;  %v496_v5 = vadd.f32 %v6135_v17, %v7518_v25  ;;  %v7762_v34 = vadd.f32 %v6159_v18, %v7523_v40  ;;  %v487_v39 = vpop.f32.mrb[9].mxu0  ;;  %v639_v28 = vpop.f32.mrb[9].mxu1  ;;  %11278 = vst [vmem:[#allocation19_spill] sm:$0xff] %v7772_v22  ;;  %v7788_v2 = vld [vmem:[%s11260_s10 + $0x1c0] sm:$0xff] }
 0x231   :  { %v1016_v50 = vpack.c.bf16 %v891_v45, %v7690_v1  ;;  %v923_v46 = vmul.f32 %v7743_v47, %v7710_v57  ;;  %6510 = vmatprep.subr.msk.bf16.mxu0 %vm96_vm0, %v1031_v35  ;;  %v488_v29 = vadd.f32 %v7518_v25, %v487_v39  ;;  %v7783_v11 = vadd.f32 %v7523_v40, %v639_v28  ;;  %v6136_v37 = vpop.f32.mrb[10].mxu0  ;;  %v6160_v1 = vpop.f32.mrb[10].mxu1  ;;  %v7803_v35 = vld [vmem:[%s11260_s10 + $0x1d8] sm:$0xff] }
 0x232   :  { %11276 = vst [vmem:[#allocation17_spill] sm:$0xff] %v7758_v32  ;;  %11279 = vst [vmem:[#allocation20_spill] sm:$0xff] %v7788_v2  ;;  %v1023_v14 = vpack.c.bf16 %v905_v26, %v904_v19  ;;  %v528_v45 = vmul.f32 0.25, %v496_v5  ;;  %v7792_v23 = vmul.f32 %v7752_v52, %v7762_v34  ;;  %v499_v48 = vadd.f32 %v6136_v37, %v7518_v25  ;;  %v490_v17 = vpop.f32.mrb[11].mxu0  ;;  %v642_v18 = vpop.f32.mrb[11].mxu1  ;;  %v7820_v37 = vld [vmem:[%s11260_s10 + $0xc8] sm:$0xff] }
 0x233   :  { %11281 = vst [vmem:[#allocation22_spill] sm:$0xff] %v7803_v35  ;;  %v1130_v19 = vsel %vm96_vm0, %v1007_v4, 0  ;;  %v7808_v26 = vmul.f32 %v7767_v0, %v7762_v34  ;;  %v526_v5 = vmul.f32 0.25, %v488_v29  ;;  %v7812_v39 = vmul.f32 %v7772_v22, %v7783_v11  ;;  %11282 = vst [vmem:[#allocation23_spill] sm:$0xff] %v7820_v37  ;;  %v7825_v4 = vld [vmem:[%s11260_s10 + $0x20] sm:$0xff]  ;;  %v7848_v0 = vld [vmem:[%s11260_s10 + $0x128] sm:$0xff] }
 0x234   :  { %v7815_v28 = vadd.f32 %v6160_v1, %v7523_v40  ;;  %v7829_v29 = vmul.f32 %v7788_v2, %v7783_v11  ;;  %v529_v8 = vmul.f32 0.25, %v499_v48  ;;  %v491_v32 = vadd.f32 %v7518_v25, %v490_v17 }
 0x235   :  { %v7833_v1 = vadd.f32 %v7523_v40, %v642_v18  ;;  %5422 = vmatpush3.bf16.xpose.msra.mxu1 %v1130_v19  ;;  %v1178_v18 = vsel %vm96_vm0, %v1023_v14, 0  ;;  %v1032_v52 = vpack.c.bf16 %v923_v46, %v7725_v61  ;;  %v7872_v19 = vld [vmem:[%s11260_s10 + $0x1c8] sm:$0xff]  ;;  %v7877_v61 = vld [vmem:[%s11260_s10 + $0xf0] sm:$0xff]  ;;  %v1017_v46 = vpack.c.bf16 %v7729_v63, %v7661_v27 }
 0x236   :  { %v7852_v48 = vmul.f32 %v7798_v44, %v7815_v28  ;;  %v7856_v17 = vmul.f32 %v7803_v35, %v7815_v28  ;;  %v7860_v2 = vpack.c.bf16 %v529_v8, %v528_v45  ;;  %v527_v22 = vmul.f32 0.25, %v491_v32  ;;  %6503 = vmatprep.subr.msk.bf16.mxu1 %vm96_vm0, %v1016_v50  ;;  %11284 = vst [vmem:[#allocation25_spill] sm:$0xff] %v7872_v19 }
 0x237   :  { %v7864_v36 = vmul.f32 %v7820_v37, %v7833_v1  ;;  %v874_v44 = vmul.f32 %v7825_v4, %v7657_v15  ;;  %v6139_v14 = vpop.f32.mrb[12].mxu0  ;;  %v6163_v35 = vpop.f32.mrb[12].mxu1  ;;  %11285 = vst [vmem:[#allocation26_spill] sm:$0xff] %v7877_v61  ;;  %v875_v8 = vmul.f32 %v7838_v58, %v7710_v57  ;;  %v906_v32 = vmul.f32 %v7843_v7, %v7657_v15 }
 0x238   :  { %11283 = vst [vmem:[#allocation24_spill] sm:$0xff] %v7860_v2  ;;  %v907_v50 = vmul.f32 %v7848_v0, %v7710_v57  ;;  %v7887_v45 = vpack.c.bf16 %v527_v22, %v526_v5  ;;  %5454 = vmatpush3.bf16.xpose.msra.mxu0 %v1178_v18  ;;  %v512_v2 = vadd.f32 %v6139_v14, %v7518_v25  ;;  %v503_v15 = vpop.f32.mrb[13].mxu0  ;;  %v655_v55 = vpop.f32.mrb[13].mxu1  ;;  %v7901_v57 = vld [vmem:[%s11260_s10 + $0xe0] sm:$0xff] }
 0x239   :  { %v7891_v37 = vadd.f32 %v6163_v35, %v7523_v40  ;;  %11288 = vst [vmem:[#allocation29_spill] sm:$0xff] %v7901_v57  ;;  %v1033_v27 = vpack.c.bf16 %v7738_v13, %v7686_v43  ;;  %6511 = vmatprep.subr.msk.bf16.mxu0 %vm96_vm0, %v1032_v52  ;;  %v504_v63 = vadd.f32 %v7518_v25, %v503_v15  ;;  %v6140_v35 = vpop.f32.mrb[14].mxu0  ;;  %v6164_v5 = vpop.f32.mrb[14].mxu1  ;;  %v7921_v43 = vld [vmem:[%s11260_s10 + $0x1e0] sm:$0xff]  ;;  %v7927_v13 = vld [vmem:[%s11260_s10 + $0xf8] sm:$0xff] }
 0x23a   :  { %11286 = vst [vmem:[#allocation27_spill] sm:$0xff] %v7887_v45  ;;  %v7908_v22 = vadd.f32 %v7523_v40, %v655_v55  ;;  %v1008_v18 = vpack.c.bf16 %v875_v8, %v874_v44  ;;  %v1024_v14 = vpack.c.bf16 %v907_v50, %v906_v32  ;;  %v7912_v45 = vmul.f32 %v7872_v19, %v7833_v1  ;;  %v7932_v52 = vld [vmem:[%s11260_s10 + $0x1f8] sm:$0xff]  ;;  %v658_v44 = vpop.f32.mrb[15].mxu1 }
 0x23b   :  { %v532_v3 = vmul.f32 0.25, %v512_v2  ;;  %v7916_v47 = vmul.f32 %v7877_v61, %v7891_v37  ;;  %11289 = vst [vmem:[#allocation30_spill] sm:$0xff] %v7921_v43  ;;  %v515_v55 = vadd.f32 %v6140_v35, %v7518_v25  ;;  %11290 = vst [vmem:[#allocation31_spill] sm:$0xff] %v7927_v13  ;;  %v506_v2 = vpop.f32.mrb[15].mxu0  ;;  %v7936_v8 = vmul.f32 %v7896_v12, %v7891_v37  ;;  %v7948_v35 = vld [vmem:[%s11260_s10 + $0xe8] sm:$0xff]  ;;  %v7953_v61 = vld [vmem:[%s11260_s10 + $0x30] sm:$0xff] }
 0x23c   :  { %11291 = vst [vmem:[#allocation32_spill] sm:$0xff] %v7932_v52  ;;  %v530_v32 = vmul.f32 0.25, %v504_v63  ;;  %v7940_v50 = vmul.f32 %v7901_v57, %v7908_v22  ;;  %v7943_v15 = vadd.f32 %v6164_v5, %v7523_v40  ;;  %11293 = vst [vmem:[#allocation34_spill] sm:$0xff] %v7948_v35  ;;  %v507_v63 = vadd.f32 %v7518_v25, %v506_v2  ;;  %v7963_v5 = vld [vmem:[%s11260_s10 + $0x38] sm:$0xff]  ;;  %v7990_v2 = vld [vmem:[%s11260_s10 + $0x1e8] sm:$0xff] }
 0x23d   :  { %11292 = vst [vmem:[#allocation33_spill] sm:$0xff] %v7936_v8  ;;  %v533_v12 = vmul.f32 0.25, %v515_v55  ;;  %v7957_v19 = vadd.f32 %v7523_v40, %v658_v44  ;;  %v1133_v57 = vsel %vm96_vm0, %v1008_v18, 0  ;;  %v7973_v55 = vld [vmem:[%s11260_s10 + $0x138] sm:$0xff]  ;;  %v7977_v25 = vmul.f32 %v7921_v43, %v7908_v22  ;;  %11294 = vst [vmem:[#allocation35_spill] sm:$0xff] %v7990_v2 }
 0x23e   :  { %v7981_v40 = vmul.f32 %v7927_v13, %v7943_v15  ;;  %v7985_v18 = vmul.f32 %v7932_v52, %v7943_v15  ;;  %5424 = vmatpush3.bf16.xpose.msra.mxu1 %v1133_v57  ;;  %v1181_v44 = vsel %vm96_vm0, %v1024_v14, 0  ;;  %v7996_v43 = vld [vmem:[%s11030_s12] ss:$0 sm:$0xff]  ;;  %v531_v13 = vmul.f32 0.25, %v507_v63  ;;  %v8010_v57 = vld [vmem:[%s11260_s10 + $0x48] sm:$0xff] }
 0x23f   :  { %v7998_v51 = vpack.c.bf16 %v533_v12, %v532_v3  ;;  %v8002_v52 = vmul.f32 %v7948_v35, %v7957_v19  ;;  %6504 = vmatprep.subr.msk.bf16.mxu1 %vm96_vm0, %v1017_v46  ;;  %v876_v21 = vmul.f32 %v7953_v61, %v7643_v9  ;;  %v6175_v14 = vpop.f32.mrb[16].mxu0  ;;  %v877_v3 = vmul.f32 %v7963_v5, %v7693_v49 }
 0x240   :  { %v908_v12 = vmul.f32 %v7968_v31, %v7643_v9  ;;  %v909_v63 = vmul.f32 %v7973_v55, %v7693_v49  ;;  %v1018_v46 = vpack.c.bf16 %v7864_v36, %v7812_v39  ;;  %v8025_v35 = vpack.c.bf16 %v531_v13, %v530_v32  ;;  %5456 = vmatpush3.bf16.xpose.msra.mxu0 %v1181_v44  ;;  %v743_v16 = vpop.f32.mrb[17].mxu0  ;;  %v8039_v36 = vld [vmem:[%s11260_s10 + $0x140] sm:$0xff] }
 0x241   :  { %11295 = vst [vmem:[#allocation36_spill] sm:$0xff] %v7998_v51  ;;  %v8023_v51 = vld [vmem:[%s11260_s10 + $0x40] sm:$0xff]  ;;  %v8029_v42 = vmul.f32 %v7990_v2, %v7957_v19  ;;  %v8032_v9 = vadd.f32 %v6175_v14, %v7996_v43  ;;  %v1034_v49 = vpack.c.bf16 %v7912_v45, %v7829_v29  ;;  %6512 = vmatprep.subr.msk.bf16.mxu0 %vm96_vm0, %v1033_v27  ;;  %v6176_v13 = vpop.f32.mrb[18].mxu0  ;;  %v8100_v2 = vld [vmem:[%s11260_s10 + $0x150] sm:$0xff] }
 0x242   :  { %11296 = vst [vmem:[#allocation37_spill] sm:$0xff] %v8025_v35  ;;  %v8043_v39 = vadd.f32 %v7996_v43, %v743_v16  ;;  %v1009_v32 = vpack.c.bf16 %v877_v3, %v876_v21  ;;  %v1025_v44 = vpack.c.bf16 %v909_v63, %v908_v12  ;;  %v879_v14 = vmul.f32 %v8010_v57, %v7833_v1  ;;  %v746_v27 = vpop.f32.mrb[19].mxu0  ;;  %v8063_v21 = vld [vmem:[%s11260_s10 + $0x148] sm:$0xff]  ;;  %v8081_v63 = vld [vmem:[%s11260_s10 + $0x50] sm:$0xff] }
 0x243   :  { %v8049_v35 = vmul.f32 %v7637_v6, %v8032_v9  ;;  %v8053_v29 = vmul.f32 %v7716_v59, %v8032_v9  ;;  %v8056_v45 = vadd.f32 %v6176_v13, %v7996_v43  ;;  %v878_v16 = vmul.f32 %v8023_v51, %v7783_v11 }
 0x244   :  { %v8067_v6 = vmul.f32 %v7554_v20, %v8043_v39  ;;  %v8071_v59 = vmul.f32 %v7574_v24, %v8043_v39  ;;  %v8074_v3 = vadd.f32 %v7996_v43, %v746_v27  ;;  %v910_v12 = vmul.f32 %v8039_v36, %v7783_v11  ;;  %v8086_v20 = vld [vmem:[%s11260_s10 + $0x58] sm:$0xff] }
 0x245   :  { %11297 = vst [vmem:[#allocation38_spill] sm:$0xff] %v8049_v35  ;;  %11298 = vst [vmem:[#allocation39_spill] sm:$0xff] %v8053_v29  ;;  %v8090_v24 = vmul.f32 %v7680_v38, %v8056_v45  ;;  %v8094_v13 = vmul.f32 %v7721_v60, %v8056_v45  ;;  %v1136_v11 = vsel %vm96_vm0, %v1009_v32, 0  ;;  %v1010_v27 = vpack.c.bf16 %v879_v14, %v878_v16  ;;  %v8105_v29 = vld [vmem:[%s11260_s10 + $0x158] sm:$0xff] }
 0x246   :  { %11299 = vst [vmem:[#allocation40_spill] sm:$0xff] %v8067_v6  ;;  %11300 = vst [vmem:[#allocation41_spill] sm:$0xff] %v8071_v59  ;;  %v8109_v38 = vmul.f32 %v7600_v53, %v8074_v3  ;;  %v8113_v60 = vmul.f32 %v7605_v56, %v8074_v3  ;;  %5426 = vmatpush3.bf16.xpose.msra.mxu1 %v1136_v11  ;;  %v911_v32 = vmul.f32 %v8063_v21, %v7833_v1  ;;  %v8130_v1 = vld [vmem:[%s11260_s10 + $0x60] sm:$0xff]  ;;  %v11337_v59 = vld [vmem:[#allocation9_spill] sm:$0xff] }
 0x247   :  { %11301 = vst [vmem:[#allocation42_spill] sm:$0xff] %v8090_v24  ;;  %11302 = vst [vmem:[#allocation43_spill] sm:$0xff] %v8094_v13  ;;  %v1019_v14 = vpack.c.bf16 %v7852_v48, %v7792_v23  ;;  %v1184_v16 = vsel %vm96_vm0, %v1025_v44, 0  ;;  %6505 = vmatprep.subr.msk.bf16.mxu1 %vm96_vm0, %v1018_v46  ;;  %v1035_v13 = vpack.c.bf16 %v7856_v17, %v7808_v26  ;;  %v8135_v23 = vld [vmem:[%s11260_s10 + $0x68] sm:$0xff]  ;;  %v6179_v48 = vpop.f32.mrb[20].mxu0  ;;  %v1139_v35 = vsel %vm96_vm0, %v1010_v27, 0 }
 0x248   :  { %11303 = vst [vmem:[#allocation44_spill] sm:$0xff] %v8109_v38  ;;  %11304 = vst [vmem:[#allocation45_spill] sm:$0xff] %v8113_v60  ;;  %v880_v53 = vmul.f32 %v8081_v63, %v7762_v34  ;;  %v881_v56 = vmul.f32 %v8086_v20, %v7815_v28  ;;  %v1026_v46 = vpack.c.bf16 %v911_v32, %v910_v12  ;;  %5458 = vmatpush3.bf16.xpose.msra.mxu0 %v1184_v16  ;;  %v759_v24 = vpop.f32.mrb[21].mxu0  ;;  %v8156_v16 = vld [vmem:[%s11260_s10 + $0x160] sm:$0xff]  ;;  %v8199_v44 = vld [vmem:[%s11260_s10 + $0x78] sm:$0xff] }
 0x249   :  { %v912_v26 = vmul.f32 %v8100_v2, %v7762_v34  ;;  %v913_v17 = vmul.f32 %v8105_v29, %v7815_v28  ;;  %v8144_v11 = vadd.f32 %v6179_v48, %v7996_v43  ;;  %6513 = vmatprep.subr.msk.bf16.mxu0 %vm96_vm0, %v1034_v49  ;;  %v8151_v34 = vadd.f32 %v7996_v43, %v759_v24  ;;  %v6180_v28 = vpop.f32.mrb[22].mxu0 }
 0x24a   :  { %v1011_v41 = vpack.c.bf16 %v881_v56, %v880_v53  ;;  %v882_v48 = vmul.f32 %v8130_v1, %v7908_v22  ;;  %v883_v27 = vmul.f32 %v8135_v23, %v7957_v19  ;;  %v8171_v24 = vadd.f32 %v6180_v28, %v7996_v43  ;;  %v762_v56 = vpop.f32.mrb[23].mxu0 }
 0x24b   :  { %v1027_v32 = vpack.c.bf16 %v913_v17, %v912_v26  ;;  %v8164_v53 = vmul.f32 %v7953_v61, %v8144_v11  ;;  %v8168_v49 = vmul.f32 %v7968_v31, %v8144_v11  ;;  %v1187_v26 = vsel %vm96_vm0, %v1026_v46, 0  ;;  %v8177_v17 = vld [vmem:[%s11260_s10 + $0x168] sm:$0xff]  ;;  %v8194_v46 = vld [vmem:[%s11260_s10 + $0x70] sm:$0xff] }
 0x24c   :  { %v8181_v12 = vmul.f32 %v7825_v4, %v8151_v34  ;;  %v8185_v61 = vmul.f32 %v7843_v7, %v8151_v34  ;;  %v8188_v31 = vadd.f32 %v7996_v43, %v762_v56  ;;  %v1142_v28 = vsel %vm96_vm0, %v1011_v41, 0  ;;  %v8212_v41 = vld [vmem:[%s11260_s10 + $0x170] sm:$0xff]  ;;  %v8217_v56 = vld [vmem:[%s11260_s10 + $0x178] sm:$0xff] }
 0x24d   :  { %11305 = vst [vmem:[#allocation46_spill] sm:$0xff] %v8164_v53  ;;  %11306 = vst [vmem:[#allocation47_spill] sm:$0xff] %v8168_v49  ;;  %v8203_v4 = vmul.f32 %v7963_v5, %v8171_v24  ;;  %v8207_v7 = vmul.f32 %v7973_v55, %v8171_v24  ;;  %v1012_v49 = vpack.c.bf16 %v883_v27, %v882_v48  ;;  %v1190_v48 = vsel %vm96_vm0, %v1027_v32, 0 }
 0x24e   :  { %11307 = vst [vmem:[#allocation48_spill] sm:$0xff] %v8181_v12  ;;  %11308 = vst [vmem:[#allocation49_spill] sm:$0xff] %v8185_v61  ;;  %v914_v53 = vmul.f32 %v8156_v16, %v7908_v22  ;;  %v8223_v5 = vmul.f32 %v7838_v58, %v8188_v31  ;;  %v8227_v55 = vmul.f32 %v7848_v0, %v8188_v31  ;;  %5428 = vmatpush3.bf16.xpose.msra.mxu1 %v1139_v35  ;;  %v11375_v61 = vld [vmem:[#allocation16_spill] sm:$0xff] }
 0x24f   :  { %11309 = vst [vmem:[#allocation50_spill] sm:$0xff] %v8203_v4  ;;  %11310 = vst [vmem:[#allocation51_spill] sm:$0xff] %v8207_v7  ;;  %v915_v7 = vmul.f32 %v8177_v17, %v7957_v19  ;;  %6506 = vmatprep.subr.msk.bf16.mxu1 %vm96_vm0, %v1019_v14  ;;  %v884_v58 = vmul.f32 %v8194_v46, %v7891_v37  ;;  %v885_v0 = vmul.f32 %v8199_v44, %v7943_v15  ;;  %v6183_v35 = vpop.f32.mrb[24].mxu0 }
 0x250   :  { %11311 = vst [vmem:[#allocation52_spill] sm:$0xff] %v8223_v5  ;;  %11312 = vst [vmem:[#allocation53_spill] sm:$0xff] %v8227_v55  ;;  %v8243_v19 = vmul.f32 %v8212_v41, %v7891_v37  ;;  %v8247_v14 = vmul.f32 %v8217_v56, %v7943_v15  ;;  %v8251_v32 = vmul.f32 %v7542_v30, %v8043_v39  ;;  %5460 = vmatpush3.bf16.xpose.msra.mxu0 %v1187_v26  ;;  %v775_v4 = vpop.f32.mrb[25].mxu0 }
 0x251   :  { %v1028_v27 = vpack.c.bf16 %v915_v7, %v914_v53  ;;  %v8254_v22 = vadd.f32 %v6183_v35, %v7996_v43  ;;  %v1013_v8 = vpack.c.bf16 %v885_v0, %v884_v58  ;;  %v8258_v53 = vmul.f32 %v7587_v10, %v8074_v3  ;;  %6514 = vmatprep.subr.msk.bf16.mxu0 %vm96_vm0, %v1035_v13  ;;  %v6184_v30 = vpop.f32.mrb[26].mxu0  ;;  %v1045_v7 = vld [vmem:[%s11032_s3 + $0x38] sm:$0xff] }
 0x252   :  { %11313 = vst [vmem:[#allocation54_spill] sm:$0xff] %v8251_v32  ;;  %v8262_v37 = vmul.f32 %v7549_v33, %v8043_v39  ;;  %v8266_v15 = vadd.f32 %v7996_v43, %v775_v4  ;;  %v1145_v26 = vsel %vm96_vm0, %v1012_v49, 0  ;;  %v8273_v58 = vmul.f32 %v7592_v62, %v8074_v3  ;;  %v778_v13 = vpop.f32.mrb[27].mxu0  ;;  %v1052_v32 = vld [vmem:[%s11032_s3 + $0x70] sm:$0xff] }
 0x253   :  { %11314 = vst [vmem:[#allocation55_spill] sm:$0xff] %v8258_v53  ;;  %v8277_v10 = vmul.f32 %v8081_v63, %v8254_v22  ;;  %v8281_v33 = vmul.f32 %v8100_v2, %v8254_v22  ;;  %v8284_v39 = vadd.f32 %v6184_v30, %v7996_v43  ;;  %v8287_v49 = vsel %vm96_vm0, %v1028_v27, 0 }
 0x254   :  { %11315 = vst [vmem:[#allocation56_spill] sm:$0xff] %v8262_v37  ;;  %11316 = vst [vmem:[#allocation57_spill] sm:$0xff] %v8273_v58  ;;  %v8291_v4 = vmul.f32 %v8023_v51, %v8266_v15  ;;  %v8295_v62 = vmul.f32 %v8039_v36, %v8266_v15  ;;  %v779_v3 = vadd.f32 %v7996_v43, %v778_v13  ;;  %v8299_v2 = vsel %vm96_vm0, %v1013_v8, 0 }
 0x255   :  { %11317 = vst [vmem:[#allocation58_spill] sm:$0xff] %v8277_v10  ;;  %11318 = vst [vmem:[#allocation59_spill] sm:$0xff] %v8281_v33  ;;  %v8303_v63 = vmul.f32 %v8086_v20, %v8284_v39  ;;  %v8307_v0 = vmul.f32 %v8105_v29, %v8284_v39  ;;  %v11325_v27 = vpack.c.bf16 %v8002_v52, %v7940_v50  ;;  %v11331_v20 = vld [vmem:[#allocation4_spill] sm:$0xff] }
 0x256   :  { %11319 = vst [vmem:[#allocation60_spill] sm:$0xff] %v8291_v4  ;;  %11320 = vst [vmem:[#allocation61_spill] sm:$0xff] %v8295_v62  ;;  %v8314_v35 = vmul.f32 %v8010_v57, %v779_v3  ;;  %v8317_v8 = vmul.f32 %v8063_v21, %v779_v3  ;;  %5430 = vmatpush3.bf16.xpose.msra.mxu1 %v1142_v28  ;;  %v8329_v30 = vmul.f32 %v7528_v54, %v8032_v9  ;;  %v11327_v57 = vld [vmem:[#allocation3_spill] sm:$0xff]  ;;  %v11329_v28 = vld [vmem:[#allocation2_spill] sm:$0xff] }
 0x257   :  { %11321 = vst [vmem:[#allocation62_spill] sm:$0xff] %v8303_v63  ;;  %11322 = vst [vmem:[#allocation63_spill] sm:$0xff] %v8307_v0  ;;  %6507 = vmatprep.subr.msk.bf16.mxu1 %vm96_vm0, %v11325_v27  ;;  %v8333_v21 = vmul.f32 %v11327_v57, %v8056_v45  ;;  %v8337_v13 = vmul.f32 %v11329_v28, %v8032_v9  ;;  %v8341_v29 = vmul.f32 %v11331_v20, %v8056_v45  ;;  %v6187_v36 = vpop.f32.mrb[28].mxu0  ;;  %v11339_v57 = vld [vmem:[#allocation13_spill] sm:$0xff]  ;;  %v11341_v54 = vld [vmem:[#allocation10_spill] sm:$0xff] }
 0x258   :  { %11323 = vst [vmem:[#allocation64_spill] sm:$0xff] %v8314_v35  ;;  %11324 = vst [vmem:[#allocation65_spill] sm:$0xff] %v8317_v8  ;;  %v8349_v60 = vmul.f32 %v11337_v59, %v8151_v34  ;;  %v8353_v6 = vmul.f32 %v11339_v57, %v8188_v31  ;;  %5462 = vmatpush3.bf16.xpose.msra.mxu0 %v1190_v48  ;;  %v8356_v9 = vadd.f32 %v6187_v36, %v7996_v43  ;;  %v791_v45 = vpop.f32.mrb[29].mxu0  ;;  %v11344_v20 = vld [vmem:[#allocation15_spill] sm:$0xff]  ;;  %v11352_v28 = vld [vmem:[#allocation6_spill] sm:$0xff] }
 0x259   :  { %11326 = vst [vmem:[#allocation66_spill] sm:$0xff] %v8329_v30  ;;  %11328 = vst [vmem:[#allocation3_spill] sm:$0xff] %v8333_v21  ;;  %v8364_v27 = vmul.f32 %v11341_v54, %v8151_v34  ;;  %v11343_v59 = vpack.c.bf16 %v8029_v42, %v7977_v25  ;;  %v792_v48 = vadd.f32 %v7996_v43, %v791_v45  ;;  %v6188_v36 = vpop.f32.mrb[30].mxu0  ;;  %v11391_v62 = vld [vmem:[#allocation35_spill] sm:$0xff]  ;;  %v1507_v63 = vld [vmem:[%s11031_s4 + $0x1d8] sm:$0xff] }
 0x25a   :  { %11330 = vst [vmem:[#allocation2_spill] sm:$0xff] %v8337_v13  ;;  %11332 = vst [vmem:[#allocation4_spill] sm:$0xff] %v8341_v29  ;;  %v8375_v51 = vmul.f32 %v11344_v20, %v8188_v31  ;;  %v8381_v34 = vmul.f32 %v8194_v46, %v8356_v9  ;;  %v8385_v42 = vmul.f32 %v8212_v41, %v8356_v9  ;;  %v794_v54 = vpop.f32.mrb[31].mxu0  ;;  %v1476_v35 = vld [vmem:[%s11031_s4 + $0xe0] sm:$0xff]  ;;  %v1463_v13 = vld [vmem:[%s11031_s4 + $0x78] sm:$0xff] }
 0x25b   :  { %11338 = vst [vmem:[#allocation9_spill] sm:$0xff] %v8349_v60  ;;  %11340 = vst [vmem:[#allocation13_spill] sm:$0xff] %v8353_v6  ;;  %6515 = vmatprep.subr.msk.bf16.mxu0 %vm96_vm0, %v11343_v59  ;;  %v803_v25 = vadd.f32 %v6188_v36, %v7996_v43  ;;  %v8391_v31 = vmul.f32 %v8130_v1, %v792_v48  ;;  %v8394_v20 = vmul.f32 %v8156_v16, %v792_v48  ;;  %v11354_v1 = vld [vmem:[#allocation11_spill] sm:$0xff]  ;;  %v1048_v29 = vld [vmem:[%s11032_s3 + $0x50] sm:$0xff] }
 0x25c   :  { %11342 = vst [vmem:[#allocation10_spill] sm:$0xff] %v8364_v27  ;;  %11345 = vst [vmem:[#allocation15_spill] sm:$0xff] %v8375_v51  ;;  %v795_v59 = vadd.f32 %v7996_v43, %v794_v54  ;;  %v8407_v45 = vmul.f32 %v11352_v28, %v8144_v11  ;;  %v8411_v57 = vmul.f32 %v11354_v1, %v8171_v24  ;;  %v1479_v1 = vld [vmem:[%s11031_s4 + $0xf8] sm:$0xff]  ;;  %v1044_v27 = vld [vmem:[%s11032_s3 + $0x30] sm:$0xff] }
 0x25d   :  { %11346 = vst [vmem:[#allocation67_spill] sm:$0xff] %v8381_v34  ;;  %11347 = vst [vmem:[#allocation68_spill] sm:$0xff] %v8385_v42  ;;  %v8400_v41 = vmul.f32 %v8199_v44, %v803_v25  ;;  %v8403_v36 = vmul.f32 %v8217_v56, %v803_v25  ;;  %v11358_v44 = vld [vmem:[#allocation8_spill] sm:$0xff]  ;;  %v11362_v28 = vpack.c.bf16 %v7981_v40, %v7916_v47 }
 0x25e   :  { %11348 = vst [vmem:[#allocation69_spill] sm:$0xff] %v8391_v31  ;;  %11349 = vst [vmem:[#allocation70_spill] sm:$0xff] %v8394_v20  ;;  %v8414_v16 = vmul.f32 %v8135_v23, %v795_v59  ;;  %v8417_v43 = vmul.f32 %v8177_v17, %v795_v59  ;;  %5432 = vmatpush3.bf16.xpose.msra.mxu1 %v1145_v26  ;;  %v8421_v54 = vmul.f32 %v11358_v44, %v8144_v11  ;;  %v11360_v56 = vld [vmem:[#allocation12_spill] sm:$0xff]  ;;  %v11367_v11 = vld [vmem:[#allocation19_spill] sm:$0xff] }
 0x25f   :  { %11350 = vst [vmem:[#allocation71_spill] sm:$0xff] %v8400_v41  ;;  %11351 = vst [vmem:[#allocation72_spill] sm:$0xff] %v8403_v36  ;;  %v8425_v46 = vmul.f32 %v11360_v56, %v8171_v24  ;;  %6508 = vmatprep.subr.msk.bf16.mxu1 %vm96_vm0, %v11362_v28  ;;  %v8439_v44 = vmul.f32 %v11367_v11, %v8266_v15  ;;  %v11369_v56 = vld [vmem:[#allocation23_spill] sm:$0xff]  ;;  %v11371_v40 = vld [vmem:[#allocation20_spill] sm:$0xff]  ;;  %v8460_v24 = vmul.f32 %v11375_v61, %v8254_v22 }
 0x260   :  { %11353 = vst [vmem:[#allocation6_spill] sm:$0xff] %v8407_v45  ;;  %11355 = vst [vmem:[#allocation11_spill] sm:$0xff] %v8411_v57  ;;  %v8444_v47 = vmul.f32 %v11369_v56, %v779_v3  ;;  %v8448_v28 = vmul.f32 %v11371_v40, %v8266_v15  ;;  %v11373_v23 = vld [vmem:[#allocation25_spill] sm:$0xff]  ;;  %5464 = vmatpush3.bf16.xpose.msra.mxu0 %v8287_v49  ;;  %v11381_v40 = vld [vmem:[#allocation18_spill] sm:$0xff] }
 0x261   :  { %11356 = vst [vmem:[#allocation73_spill] sm:$0xff] %v8414_v16  ;;  %11357 = vst [vmem:[#allocation74_spill] sm:$0xff] %v8417_v43  ;;  %v8451_v45 = vmul.f32 %v11373_v23, %v779_v3  ;;  %v11377_v56 = vld [vmem:[#allocation21_spill] sm:$0xff]  ;;  %v8476_v11 = vmul.f32 %v11381_v40, %v8254_v22  ;;  %v11383_v61 = vld [vmem:[#allocation22_spill] sm:$0xff] }
 0x262   :  { %11359 = vst [vmem:[#allocation8_spill] sm:$0xff] %v8421_v54  ;;  %11361 = vst [vmem:[#allocation12_spill] sm:$0xff] %v8425_v46  ;;  %v8464_v26 = vmul.f32 %v11377_v56, %v8284_v39  ;;  %v11379_v15 = vld [vmem:[#allocation33_spill] sm:$0xff]  ;;  %v8480_v12 = vmul.f32 %v11383_v61, %v8284_v39  ;;  %v11387_v40 = vld [vmem:[#allocation34_spill] sm:$0xff]  ;;  %v8500_v56 = vmul.f32 %v11391_v62, %v795_v59 }
 0x263   :  { %11368 = vst [vmem:[#allocation19_spill] sm:$0xff] %v8439_v44  ;;  %11370 = vst [vmem:[#allocation23_spill] sm:$0xff] %v8444_v47  ;;  %v11380_v3 = vpack.c.bf16 %v7985_v18, %v11379_v15  ;;  %v8494_v23 = vmul.f32 %v11387_v40, %v795_v59  ;;  %v11389_v39 = vld [vmem:[#allocation30_spill] sm:$0xff]  ;;  %v11395_v22 = vld [vmem:[#allocation31_spill] sm:$0xff]  ;;  %v11401_v18 = vpack.c.bf16 %v8247_v14, %v8243_v19 }
 0x264   :  { %11372 = vst [vmem:[#allocation20_spill] sm:$0xff] %v8448_v28  ;;  %11374 = vst [vmem:[#allocation25_spill] sm:$0xff] %v8451_v45  ;;  %v8497_v61 = vmul.f32 %v11389_v39, %v792_v48  ;;  %v8511_v0 = vmul.f32 %v11395_v22, %v803_v25  ;;  %v11397_v59 = vld [vmem:[#allocation28_spill] sm:$0xff]  ;;  %v11404_v19 = vld [vmem:[#allocation17_spill] sm:$0xff] }
 0x265   :  { %11376 = vst [vmem:[#allocation16_spill] sm:$0xff] %v8460_v24  ;;  %11378 = vst [vmem:[#allocation21_spill] sm:$0xff] %v8464_v26  ;;  %6516 = vmatprep.subr.msk.bf16.mxu0 %vm96_vm0, %v11380_v3  ;;  %v11385_v3 = vld [vmem:[#allocation29_spill] sm:$0xff]  ;;  %v8520_v40 = vmul.f32 %v11397_v59, %v8356_v9  ;;  %v11399_v39 = vld [vmem:[#allocation32_spill] sm:$0xff]  ;;  %v1196_v62 = vsel %vm96_vm0, %v11401_v18, 0 }
 0x266   :  { %11382 = vst [vmem:[#allocation33_spill] sm:$0xff] %v8476_v11  ;;  %11384 = vst [vmem:[#allocation18_spill] sm:$0xff] %v8480_v12  ;;  %v8489_v49 = vmul.f32 %v11385_v3, %v792_v48  ;;  %v11393_v3 = vld [vmem:[#allocation26_spill] sm:$0xff]  ;;  %5434 = vmatpush3.bf16.xpose.msra.mxu1 %v8299_v2  ;;  %v8523_v15 = vmul.f32 %v11399_v39, %v803_v25  ;;  %v11402_v25 = vld [vmem:[#allocation7_spill] sm:$0xff] }
 0x267   :  { %11388 = vst [vmem:[#allocation29_spill] sm:$0xff] %v8494_v23  ;;  %11390 = vst [vmem:[#allocation34_spill] sm:$0xff] %v8497_v61  ;;  %v8508_v33 = vmul.f32 %v11393_v3, %v8356_v9  ;;  %v11403_v59 = vld [vmem:[#allocation5_spill] sm:$0xff]  ;;  %v11405_v14 = vld [vmem:[#allocation14_spill] sm:$0xff] }
 0x268   :  { %11386 = vst [vmem:[#allocation22_spill] sm:$0xff] %v8489_v49  ;;  %11392 = vst [vmem:[#allocation30_spill] sm:$0xff] %v8500_v56  ;;  %5466 = vmatpush3.bf16.xpose.msra.mxu0 %v1196_v62  ;;  %v11406_v18 = vld [vmem:[#allocation27_spill] sm:$0xff]  ;;  %v11407_v62 = vld [vmem:[#allocation24_spill] sm:$0xff] }
 0x269   :  { %11394 = vst [vmem:[#allocation35_spill] sm:$0xff] %v8508_v33  ;;  %11396 = vst [vmem:[#allocation26_spill] sm:$0xff] %v8511_v0  ;;  %v11408_v39 = vld [vmem:[#allocation37_spill] sm:$0xff]  ;;  %v1449_v22 = vld [vmem:[%s11031_s4 + $0x8] sm:$0xff] }
 0x26a   :  { %11398 = vst [vmem:[#allocation31_spill] sm:$0xff] %v8520_v40  ;;  %11400 = vst [vmem:[#allocation28_spill] sm:$0xff] %v8523_v15  ;;  %v1450_v3 = vld [vmem:[%s11031_s4 + $0x10] sm:$0xff]  ;;  %v1451_v48 = vld [vmem:[%s11031_s4 + $0x18] sm:$0xff] }
 0x26b   :  { %v8669_v36 = vpack.c.bf16 %v1451_v48, %v1450_v3  ;;  %v1468_v48 = vld [vmem:[%s11031_s4 + $0xa0] sm:$0xff]  ;;  %v1469_v3 = vld [vmem:[%s11031_s4 + $0xa8] sm:$0xff]  ;;  %v1455_v0 = vld [vmem:[%s11031_s4 + $0x38] sm:$0xff] }
 0x26c   :  { %v1453_v41 = vld [vmem:[%s11031_s4 + $0x28] sm:$0xff]  ;;  %v1040_v23 = vld [vmem:[%s11032_s3 + $0x10] sm:$0xff]  ;;  %v1459_v12 = vld [vmem:[%s11031_s4 + $0x58] sm:$0xff] }
 0x26d   :  { %5436 = vmatmul.mubr.msk.bf16.vlgmr.msra.gmra.mrb[16].mxu1 %vm96_vm0, %v11402_v25  ;;  %v1457_v16 = vld [vmem:[%s11031_s4 + $0x48] sm:$0xff]  ;;  %v1458_v11 = vld [vmem:[%s11031_s4 + $0x50] sm:$0xff]  ;;  %v1042_v47 = vld [vmem:[%s11032_s3 + $0x20] sm:$0xff] }
 0x26e   :  { %5437 = vmatprep.mubr.msk.bf16.mxu1 %vm96_vm0, %v11403_v59  ;;  %v8856_v4 = vpack.c.bf16 %v1459_v12, %v1458_v11  ;;  %v1508_v11 = vld [vmem:[%s11031_s4 + $0x1e0] sm:$0xff] }
 0x26f   :  { %5468 = vmatmul.mubr.msk.bf16.vlgmr.msra.gmra.mrb[32].mxu0 %vm96_vm0, %v11402_v25  ;;  %v11409_v25 = vld [vmem:[#allocation36_spill] sm:$0xff] }
 0x270   :  { %5469 = vmatprep.mubr.msk.bf16.mxu0 %vm96_vm0, %v11403_v59 }
 0x275   :  { %5438 = vmatmul.mubr.msk.bf16.gmra.mrb[20].mxu1 %vm96_vm0, %v11403_v59 }
 0x276   :  { %5439 = vmatprep.mubr.msk.bf16.mxu1 %vm96_vm0, %v11404_v19 }
 0x277   :  { %5470 = vmatmul.mubr.msk.bf16.gmra.mrb[36].mxu0 %vm96_vm0, %v11403_v59  ;;  %v1464_v59 = vld [vmem:[%s11031_s4 + $0x80] sm:$0xff] }
 0x278   :  { %5471 = vmatprep.mubr.msk.bf16.mxu0 %vm96_vm0, %v11404_v19 }
 0x27d   :  { %5440 = vmatmul.mubr.msk.bf16.gmra.mrb[24].mxu1 %vm96_vm0, %v11404_v19 }
 0x27e   :  { %5441 = vmatprep.mubr.msk.bf16.mxu1 %vm96_vm0, %v11405_v14 }
 0x27f   :  { %5472 = vmatmul.mubr.msk.bf16.gmra.mrb[40].mxu0 %vm96_vm0, %v11404_v19  ;;  %v1465_v19 = vld [vmem:[%s11031_s4 + $0x88] sm:$0xff] }
 0x280   :  { %5473 = vmatprep.mubr.msk.bf16.mxu0 %vm96_vm0, %v11405_v14 }
 0x285   :  { %5442 = vmatmul.mubr.msk.bf16.gmra.mrb[28].mxu1 %vm96_vm0, %v11405_v14 }
 0x286   :  { %5443 = vmatprep.mubr.msk.bf16.mxu1 %vm96_vm0, %v11406_v18 }
 0x287   :  { %5474 = vmatmul.mubr.msk.bf16.gmra.mrb[44].mxu0 %vm96_vm0, %v11405_v14  ;;  %v11410_v14 = vmov 0 }
 0x288   :  { %5475 = vmatprep.mubr.msk.bf16.mxu0 %vm96_vm0, %v11406_v18  ;;  %v11411_v14 = vsel %vm8605_vm2, 4294967295, %v11410_v14 }
 0x289   :  { %11412 = vst [vmem:[#allocation32_spill] sm:$0xff] %v11411_v14 }
 0x28d   :  { %5444 = vmatmul.mubr.msk.bf16.gmra.mrb[32].mxu1 %vm96_vm0, %v11406_v18 }
 0x28e   :  { %5445 = vmatprep.mubr.msk.bf16.mxu1 %vm96_vm0, %v11407_v62 }
 0x28f   :  { %5476 = vmatmul.mubr.msk.bf16.gmra.mrb[48].mxu0 %vm96_vm0, %v11406_v18  ;;  %v8609_v18 = vpack.c.bf16 %v1465_v19, %v1464_v59  ;;  %v1480_v59 = vld [vmem:[%s11031_s4 + $0x100] sm:$0xff]  ;;  %v1481_v19 = vld [vmem:[%s11031_s4 + $0x108] sm:$0xff] }
 0x290   :  { %5477 = vmatprep.mubr.msk.bf16.mxu0 %vm96_vm0, %v11407_v62 }
 0x291   :  { %11413 = vst [vmem:[#allocation7_spill] sm:$0xff] %v8609_v18  ;;  %6247 = vmatprep.subr.msk.bf16.mxu1 %vm8605_vm2, %v8609_v18 }
 0x295   :  { %5446 = vmatmul.mubr.msk.bf16.gmra.mrb[36].mxu1 %vm96_vm0, %v11407_v62 }
 0x296   :  { %5447 = vmatprep.mubr.msk.bf16.mxu1 %vm96_vm0, %v11408_v39 }
 0x297   :  { %5478 = vmatmul.mubr.msk.bf16.gmra.mrb[52].mxu0 %vm96_vm0, %v11407_v62  ;;  %v1496_v62 = vld [vmem:[%s11031_s4 + $0x180] sm:$0xff] }
 0x298   :  { %5479 = vmatprep.mubr.msk.bf16.mxu0 %vm96_vm0, %v11408_v39 }
 0x29d   :  { %5448 = vmatmul.mubr.msk.bf16.gmra.mrb[40].mxu1 %vm96_vm0, %v11408_v39 }
 0x29e   :  { %5449 = vmatprep.mubr.msk.bf16.mxu1 %vm96_vm0, %v11409_v25 }
 0x29f   :  { %5480 = vmatmul.mubr.msk.bf16.gmra.mrb[56].mxu0 %vm96_vm0, %v11408_v39  ;;  %v1497_v39 = vld [vmem:[%s11031_s4 + $0x188] sm:$0xff] }
 0x2a0   :  { %5481 = vmatprep.mubr.msk.bf16.mxu0 %vm96_vm0, %v11409_v25  ;;  %v8620_v2 = vpack.c.bf16 %v1497_v39, %v1496_v62  ;;  %v8636_v62 = vpack.c.bf16 %v1481_v19, %v1480_v59  ;;  %v1466_v39 = vld [vmem:[%s11031_s4 + $0x90] sm:$0xff]  ;;  %v1499_v19 = vld [vmem:[%s11031_s4 + $0x198] sm:$0xff] }
 0x2a2   :  { %11414 = vst [vmem:[#allocation5_spill] sm:$0xff] %v8620_v2  ;;  %6295 = vmatprep.subr.msk.bf16.mxu0 %vm8605_vm2, %v8620_v2 }
 0x2a3   :  { %6298 = vmatpush3.bf16.xpose.msk.msra.mxu0 %vm8605_vm2, %v8636_v62 }
 0x2a5   :  { %5450 = vmatmul.mubr.msk.bf16.gmra.mrb[44].mxu1 %vm96_vm0, %v11409_v25 }
 0x2a7   :  { %5482 = vmatmul.mubr.msk.bf16.gmra.mrb[60].mxu0 %vm96_vm0, %v11409_v25  ;;  %v1448_v25 = vld [vmem:[%s11031_s4] sm:$0xff] }
 0x2a8   :  { %v8634_v9 = vpack.c.bf16 %v1449_v22, %v1448_v25  ;;  %v1467_v22 = vld [vmem:[%s11031_s4 + $0x98] sm:$0xff]  ;;  %v1498_v25 = vld [vmem:[%s11031_s4 + $0x190] sm:$0xff] }
 0x2a9   :  { %v8656_v59 = vpack.c.bf16 %v1467_v22, %v1466_v39  ;;  %v8667_v42 = vpack.c.bf16 %v1499_v19, %v1498_v25  ;;  %v1482_v39 = vld [vmem:[%s11031_s4 + $0x110] sm:$0xff]  ;;  %v1483_v22 = vld [vmem:[%s11031_s4 + $0x118] sm:$0xff]  ;;  %v1500_v25 = vld [vmem:[%s11031_s4 + $0x1a0] sm:$0xff]  ;;  %v8700_v19 = vpack.c.bf16 %v1469_v3, %v1468_v48 }
 0x2aa   :  { %6250 = vmatpush3.bf16.xpose.msk.msra.mxu1 %vm8605_vm2, %v8634_v9  ;;  %v8680_v34 = vpack.c.bf16 %v1483_v22, %v1482_v39  ;;  %v1501_v39 = vld [vmem:[%s11031_s4 + $0x1a8] sm:$0xff]  ;;  %v1452_v22 = vld [vmem:[%s11031_s4 + $0x20] sm:$0xff] }
 0x2ab   :  { %6253 = vmatprep.subr.msk.bf16.mxu1 %vm8605_vm2, %v8656_v59  ;;  %6301 = vmatprep.subr.msk.bf16.mxu0 %vm8605_vm2, %v8667_v42  ;;  %v8711_v40 = vpack.c.bf16 %v1501_v39, %v1500_v25  ;;  %v8713_v15 = vpack.c.bf16 %v1453_v41, %v1452_v22  ;;  %v1484_v48 = vld [vmem:[%s11031_s4 + $0x120] sm:$0xff]  ;;  %v1485_v3 = vld [vmem:[%s11031_s4 + $0x128] sm:$0xff]  ;;  %v1470_v41 = vld [vmem:[%s11031_s4 + $0xb0] sm:$0xff] }
 0x2ac   :  { %6304 = vmatpush3.bf16.xpose.msk.msra.mxu0 %vm8605_vm2, %v8680_v34  ;;  %v8724_v33 = vpack.c.bf16 %v1485_v3, %v1484_v48  ;;  %v1471_v25 = vld [vmem:[%s11031_s4 + $0xb8] sm:$0xff]  ;;  %v1502_v39 = vld [vmem:[%s11031_s4 + $0x1b0] sm:$0xff] }
 0x2ad   :  { %6307 = vmatprep.subr.msk.bf16.mxu0 %vm8605_vm2, %v8711_v40  ;;  %v8744_v22 = vpack.c.bf16 %v1471_v25, %v1470_v41  ;;  %v1503_v48 = vld [vmem:[%s11031_s4 + $0x1b8] sm:$0xff]  ;;  %v1454_v3 = vld [vmem:[%s11031_s4 + $0x30] sm:$0xff] }
 0x2ae   :  { %v8755_v20 = vpack.c.bf16 %v1503_v48, %v1502_v39  ;;  %v8757_v43 = vpack.c.bf16 %v1455_v0, %v1454_v3  ;;  %v1486_v41 = vld [vmem:[%s11031_s4 + $0x130] sm:$0xff]  ;;  %v1487_v25 = vld [vmem:[%s11031_s4 + $0x138] sm:$0xff]  ;;  %v1472_v0 = vld [vmem:[%s11031_s4 + $0xc0] sm:$0xff] }
 0x2af   :  { %v8768_v31 = vpack.c.bf16 %v1487_v25, %v1486_v41  ;;  %v1473_v39 = vld [vmem:[%s11031_s4 + $0xc8] sm:$0xff]  ;;  %v1504_v48 = vld [vmem:[%s11031_s4 + $0x1c0] sm:$0xff] }
 0x2b0   :  { %v8788_v3 = vpack.c.bf16 %v1473_v39, %v1472_v0  ;;  %v1505_v41 = vld [vmem:[%s11031_s4 + $0x1c8] sm:$0xff]  ;;  %v1456_v25 = vld [vmem:[%s11031_s4 + $0x40] sm:$0xff] }
 0x2b1   :  { %v8799_v61 = vpack.c.bf16 %v1505_v41, %v1504_v48  ;;  %v8801_v56 = vpack.c.bf16 %v1457_v16, %v1456_v25  ;;  %v1488_v0 = vld [vmem:[%s11031_s4 + $0x140] sm:$0xff]  ;;  %v1489_v39 = vld [vmem:[%s11031_s4 + $0x148] sm:$0xff]  ;;  %v1474_v41 = vld [vmem:[%s11031_s4 + $0xd0] sm:$0xff] }
 0x2b2   :  { %6256 = vmatpush3.bf16.xpose.msk.msra.mxu1 %vm8605_vm2, %v8669_v36  ;;  %v8812_v49 = vpack.c.bf16 %v1489_v39, %v1488_v0  ;;  %v1038_v16 = vld [vmem:[%s11032_s3] sm:$0xff]  ;;  %v1039_v48 = vld [vmem:[%s11032_s3 + $0x8] sm:$0xff]  ;;  %v1475_v25 = vld [vmem:[%s11031_s4 + $0xd8] sm:$0xff] }
 0x2b3   :  { %6259 = vmatprep.subr.msk.bf16.mxu1 %vm8605_vm2, %v8700_v19  ;;  %v1506_v0 = vld [vmem:[%s11031_s4 + $0x1d0] sm:$0xff]  ;;  %v8841_v10 = vpack.c.bf16 %v1475_v25, %v1474_v41  ;;  %v1491_v25 = vld [vmem:[%s11031_s4 + $0x158] sm:$0xff] }
 0x2b4   :  { %6310 = vmatpush3.bf16.xpose.msk.msra.mxu0 %vm8605_vm2, %v8724_v33  ;;  %v8854_v8 = vpack.c.bf16 %v1507_v63, %v1506_v0  ;;  %v1490_v41 = vld [vmem:[%s11031_s4 + $0x150] sm:$0xff]  ;;  %v1477_v63 = vld [vmem:[%s11031_s4 + $0xe8] sm:$0xff]  ;;  %v1041_v0 = vld [vmem:[%s11032_s3 + $0x18] sm:$0xff] }
 0x2b5   :  { %6313 = vmatprep.subr.msk.bf16.mxu0 %vm8605_vm2, %v8755_v20  ;;  %v8872_v12 = vpack.c.bf16 %v1491_v25, %v1490_v41  ;;  %v8890_v41 = vpack.c.bf16 %v1477_v63, %v1476_v35  ;;  %v1460_v35 = vld [vmem:[%s11031_s4 + $0x60] sm:$0xff] }
 0x2ba   :  { %6262 = vmatpush3.bf16.xpose.msk.msra.mxu1 %vm8605_vm2, %v8713_v15 }
 0x2bb   :  { %6265 = vmatprep.subr.msk.bf16.mxu1 %vm8605_vm2, %v8744_v22 }
 0x2bc   :  { %6316 = vmatpush3.bf16.xpose.msk.msra.mxu0 %vm8605_vm2, %v8768_v31 }
 0x2bd   :  { %6319 = vmatprep.subr.msk.bf16.mxu0 %vm8605_vm2, %v8799_v61 }
 0x2c2   :  { %6268 = vmatpush3.bf16.xpose.msk.msra.mxu1 %vm8605_vm2, %v8757_v43 }
 0x2c3   :  { %6271 = vmatprep.subr.msk.bf16.mxu1 %vm8605_vm2, %v8788_v3 }
 0x2c4   :  { %6322 = vmatpush3.bf16.xpose.msk.msra.mxu0 %vm8605_vm2, %v8812_v49 }
 0x2c5   :  { %6325 = vmatprep.subr.msk.bf16.mxu0 %vm8605_vm2, %v8854_v8 }
 0x2ca   :  { %6274 = vmatpush3.bf16.xpose.msk.msra.mxu1 %vm8605_vm2, %v8801_v56 }
 0x2cb   :  { %6277 = vmatprep.subr.msk.bf16.mxu1 %vm8605_vm2, %v8841_v10 }
 0x2cc   :  { %6328 = vmatpush3.bf16.xpose.msk.msra.mxu0 %vm8605_vm2, %v8872_v12 }
 0x2d2   :  { %6280 = vmatpush3.bf16.xpose.msk.msra.mxu1 %vm8605_vm2, %v8856_v4 }
 0x2d3   :  { %6283 = vmatprep.subr.msk.bf16.mxu1 %vm8605_vm2, %v8890_v41 }
 0x340   :  { %v1256_v39 = vpop.f32.mrb[16].mxu1 }
 0x341   :  { %v8852_v24 = vadd.f32 %v1256_v39, %v1038_v16  ;;  %v1258_v26 = vpop.f32.mrb[17].mxu1 }
 0x342   :  { %v8867_v28 = vadd.f32 %v1258_v26, %v1039_v48  ;;  %v1260_v16 = vpop.f32.mrb[18].mxu1  ;;  %v1509_v26 = vld [vmem:[%s11031_s4 + $0x1e8] sm:$0xff]  ;;  %v1369_v48 = vpop.f32.mrb[32].mxu0 }
 0x343   :  { %11415 = vst [vmem:[#allocation17_spill] sm:$0xff] %v8852_v24  ;;  %v1262_v39 = vpop.f32.mrb[19].mxu1  ;;  %1512 = vmax.xlane.f32.xlu0 %v8852_v24  ;;  %v8892_v25 = vpack.c.bf16 %v1509_v26, %v1508_v11  ;;  %v1371_v45 = vpop.f32.mrb[33].mxu0  ;;  %v8895_v44 = vadd.f32 %v1369_v48, %v1040_v23  ;;  %v1461_v11 = vld [vmem:[%s11031_s4 + $0x68] sm:$0xff]  ;;  %v1492_v26 = vld [vmem:[%s11031_s4 + $0x160] sm:$0xff]  ;;  %v8937_v54 = vadd.f32 %v1260_v16, %v1042_v47 }
 0x344   :  { %11416 = vst [vmem:[#allocation14_spill] sm:$0xff] %v8867_v28  ;;  %1544 = vmax.xlane.f32.xlu1 %v8867_v28  ;;  %v1373_v55 = vpop.f32.mrb[34].mxu0  ;;  %v8909_v63 = vadd.f32 %v1371_v45, %v1041_v0  ;;  %v1493_v45 = vld [vmem:[%s11031_s4 + $0x168] sm:$0xff]  ;;  %v1478_v0 = vld [vmem:[%s11031_s4 + $0xf0] sm:$0xff]  ;;  %v8939_v57 = vpack.c.bf16 %v1461_v11, %v1460_v35 }
 0x345   :  { %11417 = vst [vmem:[#allocation27_spill] sm:$0xff] %v8892_v25  ;;  %11418 = vst [vmem:[#allocation24_spill] sm:$0xff] %v8895_v44  ;;  %v1375_v23 = vpop.f32.mrb[35].mxu0  ;;  %6331 = vmatprep.subr.msk.bf16.mxu0 %vm8605_vm2, %v8892_v25  ;;  %v1043_v48 = vld [vmem:[%s11032_s3 + $0x28] sm:$0xff]  ;;  %v8941_v5 = vpack.c.bf16 %v1493_v45, %v1492_v26  ;;  %v8948_v6 = vpack.c.bf16 %v1479_v1, %v1478_v0  ;;  %v8955_v11 = vadd.f32 %v1373_v55, %v1044_v27 }
 0x346   :  { %11419 = vst [vmem:[#allocation37_spill] sm:$0xff] %v8909_v63  ;;  %11420 = vst [vmem:[#allocation36_spill] sm:$0xff] %v8937_v54  ;;  %v8946_v51 = vadd.f32 %v1262_v39, %v1043_v48  ;;  %6286 = vmatpush3.bf16.xpose.msk.msra.mxu1 %vm8605_vm2, %v8939_v57  ;;  %v8963_v1 = vadd.f32 %v1375_v23, %v1045_v7  ;;  %v1046_v39 = vld [vmem:[%s11032_s3 + $0x40] sm:$0xff]  ;;  %v1047_v55 = vld [vmem:[%s11032_s3 + $0x48] sm:$0xff] }
 0x347   :  { %1576 = vmax.xlane.f32.xlu0 %v8895_v44  ;;  %11421 = vst [vmem:[#allocation75_spill] sm:$0xff] %v8939_v57  ;;  %11422 = vst [vmem:[#allocation76_spill] sm:$0xff] %v8941_v5  ;;  %6334 = vmatpush3.bf16.xpose.msk.msra.mxu0 %vm8605_vm2, %v8941_v5  ;;  %v1510_v7 = vld [vmem:[%s11031_s4 + $0x1f0] sm:$0xff]  ;;  %v1511_v23 = vld [vmem:[%s11031_s4 + $0x1f8] sm:$0xff] }
 0x348   :  { %v1266_v17 = vpop.f32.mrb[20].mxu1  ;;  %1608 = vmax.xlane.f32.xlu1 %v8909_v63  ;;  %11423 = vst [vmem:[#allocation77_spill] sm:$0xff] %v8946_v51  ;;  %11424 = vst [vmem:[#allocation78_spill] sm:$0xff] %v8948_v6  ;;  %6289 = vmatprep.subr.msk.bf16.mxu1 %vm8605_vm2, %v8948_v6  ;;  %v1462_v48 = vld [vmem:[%s11031_s4 + $0x70] sm:$0xff]  ;;  %v8987_v50 = vpack.c.bf16 %v1511_v23, %v1510_v7  ;;  %v1049_v7 = vld [vmem:[%s11032_s3 + $0x58] sm:$0xff] }
 0x349   :  { %v1268_v46 = vpop.f32.mrb[21].mxu1  ;;  %11425 = vst [vmem:[#allocation79_spill] sm:$0xff] %v8955_v11  ;;  %11426 = vst [vmem:[#allocation80_spill] sm:$0xff] %v8963_v1  ;;  %v8985_v0 = vadd.f32 %v1266_v17, %v1046_v39  ;;  %v8999_v38 = vpack.c.bf16 %v1463_v13, %v1462_v48  ;;  %v1494_v17 = vld [vmem:[%s11031_s4 + $0x170] sm:$0xff]  ;;  %v1495_v39 = vld [vmem:[%s11031_s4 + $0x178] sm:$0xff] }
 0x34a   :  { %v1270_v60 = vpop.f32.mrb[22].mxu1  ;;  %v1379_v47 = vpop.f32.mrb[36].mxu0  ;;  %11428 = vst [vmem:[#allocation82_spill] sm:$0xff] %v8987_v50  ;;  %v8995_v30 = vadd.f32 %v1268_v46, %v1047_v55  ;;  %6337 = vmatprep.subr.msk.bf16.mxu0 %vm8605_vm2, %v8987_v50  ;;  %v9014_v13 = vpack.c.bf16 %v1495_v39, %v1494_v17  ;;  %v1050_v17 = vld [vmem:[%s11032_s3 + $0x60] sm:$0xff] }
 0x34b   :  { %v1272_v16 = vpop.f32.mrb[23].mxu1  ;;  %1514 = vmax.xlane.f32.xlu0 %v8937_v54  ;;  %v1381_v35 = vpop.f32.mrb[37].mxu0  ;;  %11427 = vst [vmem:[#allocation81_spill] sm:$0xff] %v8985_v0  ;;  %11430 = vst [vmem:[#allocation84_spill] sm:$0xff] %v8999_v38  ;;  %v9017_v55 = vadd.f32 %v1379_v47, %v1048_v29  ;;  %v1051_v29 = vld [vmem:[%s11032_s3 + $0x68] sm:$0xff]  ;;  %v1070_v57 = vld [vmem:[%s11032_s3 + $0x100] sm:$0xff] }
 0x34c   :  { %1546 = vmax.xlane.f32.xlu1 %v8946_v51  ;;  %v1383_v26 = vpop.f32.mrb[38].mxu0  ;;  %11429 = vst [vmem:[#allocation83_spill] sm:$0xff] %v8995_v30  ;;  %11431 = vst [vmem:[#allocation85_spill] sm:$0xff] %v9014_v13  ;;  %v9027_v58 = vadd.f32 %v1381_v35, %v1049_v7  ;;  %v9039_v35 = vadd.f32 %v1270_v60, %v1050_v17  ;;  %v9044_v53 = vadd.f32 %v1272_v16, %v1051_v29 }
 0x34d   :  { %v1385_v45 = vpop.f32.mrb[39].mxu0  ;;  %11432 = vst [vmem:[#allocation86_spill] sm:$0xff] %v9017_v55  ;;  %v9059_v17 = vadd.f32 %v1383_v26, %v1052_v32 }
 0x34e   :  { %6292 = vmatpush3.bf16.xpose.msk.msra.mxu1 %vm8605_vm2, %v8999_v38  ;;  %11433 = vst [vmem:[#allocation87_spill] sm:$0xff] %v9027_v58  ;;  %11434 = vst [vmem:[#allocation88_spill] sm:$0xff] %v9039_v35  ;;  %v1066_v38 = vld [vmem:[%s11032_s3 + $0xe0] sm:$0xff] }
 0x34f   :  { %1578 = vmax.xlane.f32.xlu0 %v8955_v11  ;;  %6340 = vmatpush3.bf16.xpose.msk.msra.mxu0 %vm8605_vm2, %v9014_v13  ;;  %11435 = vst [vmem:[#allocation89_spill] sm:$0xff] %v9044_v53  ;;  %11436 = vst [vmem:[#allocation90_spill] sm:$0xff] %v9059_v17 }
 0x350   :  { %v1276_v27 = vpop.f32.mrb[24].mxu1  ;;  %1610 = vmax.xlane.f32.xlu1 %v8963_v1  ;;  %6342 = vmatprep.subr.bf16.mxu1 %v8609_v18 }
 0x351   :  { %v1278_v52 = vpop.f32.mrb[25].mxu1  ;;  %6374 = vmatprep.subr.bf16.mxu0 %v8620_v2  ;;  %v1062_v2 = vld [vmem:[%s11032_s3 + $0xc0] sm:$0xff] }
 0x352   :  { %v8997_v21 = vpop.f32.mrb[26].mxu1  ;;  %v1389_v23 = vpop.f32.mrb[40].mxu0 }
 0x353   :  { %v1282_v37 = vpop.f32.mrb[27].mxu1  ;;  %1516 = vmax.xlane.f32.xlu0 %v8985_v0  ;;  %v1391_v46 = vpop.f32.mrb[41].mxu0  ;;  %v1053_v0 = vld [vmem:[%s11032_s3 + $0x78] sm:$0xff] }
 0x354   :  { %1548 = vmax.xlane.f32.xlu1 %v8995_v30  ;;  %v9019_v48 = vpop.f32.mrb[42].mxu0  ;;  %v9063_v29 = vadd.f32 %v1385_v45, %v1053_v0  ;;  %v1056_v45 = vld [vmem:[%s11032_s3 + $0x90] sm:$0xff] }
 0x355   :  { %v1395_v39 = vpop.f32.mrb[43].mxu0 }
 0x356   :  { %11437 = vst [vmem:[#allocation91_spill] sm:$0xff] %v9063_v29 }
 0x357   :  { %1580 = vmax.xlane.f32.xlu0 %v9017_v55 }
 0x358   :  { %v1286_v47 = vpop.f32.mrb[28].mxu1  ;;  %1612 = vmax.xlane.f32.xlu1 %v9027_v58  ;;  %v1054_v58 = vld [vmem:[%s11032_s3 + $0x80] sm:$0xff] }
 0x359   :  { %v1288_v7 = vpop.f32.mrb[29].mxu1  ;;  %v9077_v32 = vadd.f32 %v1276_v27, %v1054_v58  ;;  %v9099_v27 = vadd.f32 %v1389_v23, %v1056_v45 }
 0x35a   :  { %v9046_v30 = vpop.f32.mrb[30].mxu1  ;;  %v9051_v1 = vpop.f32.mrb[44].mxu0 }
 0x35b   :  { %v9053_v55 = vpop.f32.mrb[31].mxu1  ;;  %1518 = vmax.xlane.f32.xlu0 %v9039_v35  ;;  %v9056_v60 = vpop.f32.mrb[45].mxu0  ;;  %v1055_v35 = vld [vmem:[%s11032_s3 + $0x88] sm:$0xff]  ;;  %11438 = vst [vmem:[#allocation92_spill] sm:$0xff] %v9077_v32  ;;  %11440 = vst [vmem:[#allocation94_spill] sm:$0xff] %v9099_v27 }
 0x35c   :  { %1550 = vmax.xlane.f32.xlu1 %v9044_v53  ;;  %v9061_v16 = vpop.f32.mrb[46].mxu0  ;;  %v9084_v0 = vadd.f32 %v1278_v52, %v1055_v35 }
 0x35d   :  { %v9068_v51 = vpop.f32.mrb[47].mxu0 }
 0x35e   :  { %11439 = vst [vmem:[#allocation93_spill] sm:$0xff] %v9084_v0 }
 0x35f   :  { %1582 = vmax.xlane.f32.xlu0 %v9059_v17  ;;  %v1057_v17 = vld [vmem:[%s11032_s3 + $0x98] sm:$0xff] }
 0x360   :  { %v9074_v11 = vpop.f32.mrb[32].mxu1  ;;  %1614 = vmax.xlane.f32.xlu1 %v9063_v29  ;;  %v9103_v35 = vadd.f32 %v1391_v46, %v1057_v17  ;;  %v1058_v29 = vld [vmem:[%s11032_s3 + $0xa0] sm:$0xff]  ;;  %v1060_v17 = vld [vmem:[%s11032_s3 + $0xb0] sm:$0xff] }
 0x361   :  { %v9079_v26 = vpop.f32.mrb[33].mxu1  ;;  %v9118_v23 = vadd.f32 %v8997_v21, %v1058_v29  ;;  %v9141_v29 = vadd.f32 %v9019_v48, %v1060_v17  ;;  %v9159_v17 = vadd.f32 %v1286_v47, %v1062_v2 }
 0x362   :  { %v9086_v53 = vpop.f32.mrb[34].mxu1  ;;  %v9091_v54 = vpop.f32.mrb[48].mxu0  ;;  %11441 = vst [vmem:[#allocation95_spill] sm:$0xff] %v9103_v35 }
 0x363   :  { %v9093_v63 = vpop.f32.mrb[35].mxu1  ;;  %1520 = vmax.xlane.f32.xlu0 %v9077_v32  ;;  %v9096_v58 = vpop.f32.mrb[49].mxu0  ;;  %v1059_v32 = vld [vmem:[%s11032_s3 + $0xa8] sm:$0xff]  ;;  %11442 = vst [vmem:[#allocation96_spill] sm:$0xff] %v9118_v23  ;;  %11444 = vst [vmem:[#allocation98_spill] sm:$0xff] %v9141_v29 }
 0x364   :  { %1552 = vmax.xlane.f32.xlu1 %v9084_v0  ;;  %v9101_v52 = vpop.f32.mrb[50].mxu0  ;;  %v9125_v45 = vadd.f32 %v1282_v37, %v1059_v32  ;;  %11446 = vst [vmem:[#allocation100_spill] sm:$0xff] %v9159_v17 }
 0x365   :  { %v9108_v28 = vpop.f32.mrb[51].mxu0 }
 0x366   :  { %11443 = vst [vmem:[#allocation97_spill] sm:$0xff] %v9125_v45 }
 0x367   :  { %1584 = vmax.xlane.f32.xlu0 %v9099_v27  ;;  %v1061_v27 = vld [vmem:[%s11032_s3 + $0xb8] sm:$0xff] }
 0x368   :  { %v9114_v44 = vpop.f32.mrb[36].mxu1  ;;  %1616 = vmax.xlane.f32.xlu1 %v9103_v35  ;;  %v9145_v32 = vadd.f32 %v1395_v39, %v1061_v27  ;;  %v1064_v27 = vld [vmem:[%s11032_s3 + $0xd0] sm:$0xff] }
 0x369   :  { %v9120_v46 = vpop.f32.mrb[37].mxu1 }
 0x36a   :  { %v9127_v0 = vpop.f32.mrb[38].mxu1  ;;  %v9132_v24 = vpop.f32.mrb[52].mxu0  ;;  %11445 = vst [vmem:[#allocation99_spill] sm:$0xff] %v9145_v32 }
 0x36b   :  { %v9134_v35 = vpop.f32.mrb[39].mxu1  ;;  %1522 = vmax.xlane.f32.xlu0 %v9118_v23  ;;  %v9137_v21 = vpop.f32.mrb[53].mxu0  ;;  %v1063_v23 = vld [vmem:[%s11032_s3 + $0xc8] sm:$0xff] }
 0x36c   :  { %1554 = vmax.xlane.f32.xlu1 %v9125_v45  ;;  %v9143_v37 = vpop.f32.mrb[54].mxu0  ;;  %v9166_v45 = vadd.f32 %v1288_v7, %v1063_v23 }
 0x36d   :  { %v9150_v14 = vpop.f32.mrb[55].mxu0 }
 0x36e   :  { %11447 = vst [vmem:[#allocation101_spill] sm:$0xff] %v9166_v45 }
 0x36f   :  { %1586 = vmax.xlane.f32.xlu0 %v9141_v29  ;;  %v1065_v29 = vld [vmem:[%s11032_s3 + $0xd8] sm:$0xff] }
 0x370   :  { %1618 = vmax.xlane.f32.xlu1 %v9145_v32  ;;  %v9157_v48 = vpop.f32.mrb[40].mxu1  ;;  %v9182_v32 = vadd.f32 %v9051_v1, %v1064_v27  ;;  %v9187_v23 = vadd.f32 %v9056_v60, %v1065_v29  ;;  %v9202_v27 = vadd.f32 %v9046_v30, %v1066_v38  ;;  %v1068_v29 = vld [vmem:[%s11032_s3 + $0xf0] sm:$0xff] }
 0x371   :  { %v9161_v39 = vpop.f32.mrb[41].mxu1  ;;  %v9226_v5 = vadd.f32 %v9061_v16, %v1068_v29  ;;  %v9244_v16 = vadd.f32 %v9074_v11, %v1070_v57  ;;  %v1073_v29 = vld [vmem:[%s11032_s3 + $0x118] sm:$0xff]  ;;  %v1074_v11 = vld [vmem:[%s11032_s3 + $0x120] sm:$0xff] }
 0x372   :  { %v9168_v18 = vpop.f32.mrb[42].mxu1  ;;  %v9173_v13 = vpop.f32.mrb[56].mxu0  ;;  %11448 = vst [vmem:[#allocation102_spill] sm:$0xff] %v9182_v32  ;;  %11449 = vst [vmem:[#allocation103_spill] sm:$0xff] %v9187_v23  ;;  %v9261_v57 = vadd.f32 %v9096_v58, %v1073_v29 }
 0x373   :  { %1524 = vmax.xlane.f32.xlu0 %v9159_v17  ;;  %v9176_v2 = vpop.f32.mrb[43].mxu1  ;;  %v9178_v47 = vpop.f32.mrb[57].mxu0  ;;  %v1067_v17 = vld [vmem:[%s11032_s3 + $0xe8] sm:$0xff]  ;;  %11450 = vst [vmem:[#allocation104_spill] sm:$0xff] %v9202_v27 }
 0x374   :  { %1556 = vmax.xlane.f32.xlu1 %v9166_v45  ;;  %v9184_v7 = vpop.f32.mrb[58].mxu0  ;;  %v9210_v45 = vadd.f32 %v9053_v55, %v1067_v17 }
 0x375   :  { %v9192_v50 = vpop.f32.mrb[59].mxu0 }
 0x377   :  { %1588 = vmax.xlane.f32.xlu0 %v9182_v32 }
 0x378   :  { %1620 = vmax.xlane.f32.xlu1 %v9187_v23  ;;  %v9199_v1 = vpop.f32.mrb[44].mxu1  ;;  %v1069_v23 = vld [vmem:[%s11032_s3 + $0xf8] sm:$0xff] }
 0x379   :  { %v9204_v60 = vpop.f32.mrb[45].mxu1  ;;  %v9231_v17 = vadd.f32 %v9068_v51, %v1069_v23  ;;  %v1072_v51 = vld [vmem:[%s11032_s3 + $0x110] sm:$0xff] }
 0x37a   :  { %v9212_v6 = vpop.f32.mrb[46].mxu1  ;;  %v9217_v32 = vpop.f32.mrb[60].mxu0 }
 0x37b   :  { %1526 = vmax.xlane.f32.xlu0 %v9202_v27  ;;  %v9220_v38 = vpop.f32.mrb[47].mxu1  ;;  %v9222_v30 = vpop.f32.mrb[61].mxu0  ;;  %11451 = vst [vmem:[#allocation105_spill] sm:$0xff] %v9231_v17  ;;  %v1071_v27 = vld [vmem:[%s11032_s3 + $0x108] sm:$0xff] }
 0x37c   :  { %1558 = vmax.xlane.f32.xlu1 %v9210_v45  ;;  %v9228_v55 = vpop.f32.mrb[62].mxu0  ;;  %v9250_v23 = vadd.f32 %v9079_v26, %v1071_v27  ;;  %v1075_v26 = vld [vmem:[%s11032_s3 + $0x128] sm:$0xff]  ;;  %v9272_v27 = vadd.f32 %v9086_v53, %v1074_v11  ;;  %v1078_v11 = vld [vmem:[%s11032_s3 + $0x140] sm:$0xff] }
 0x37d   :  { %v9236_v25 = vpop.f32.mrb[63].mxu0  ;;  %v9278_v58 = vadd.f32 %v9093_v63, %v1075_v26  ;;  %v1079_v63 = vld [vmem:[%s11032_s3 + $0x148] sm:$0xff]  ;;  %v9300_v26 = vadd.f32 %v9114_v44, %v1078_v11  ;;  %v1082_v11 = vld [vmem:[%s11032_s3 + $0x160] sm:$0xff] }
 0x37f   :  { %1590 = vmax.xlane.f32.xlu0 %v9226_v5 }
 0x380   :  { %1622 = vmax.xlane.f32.xlu1 %v9231_v17  ;;  %v9258_v17 = vadd.f32 %v9091_v54, %v1072_v51  ;;  %v1076_v54 = vld [vmem:[%s11032_s3 + $0x130] sm:$0xff]  ;;  %v1077_v51 = vld [vmem:[%s11032_s3 + $0x138] sm:$0xff] }
 0x381   :  { %v9286_v29 = vadd.f32 %v9101_v52, %v1076_v54  ;;  %v9289_v53 = vadd.f32 %v9108_v28, %v1077_v51  ;;  %v1080_v28 = vld [vmem:[%s11032_s3 + $0x150] sm:$0xff]  ;;  %v9306_v52 = vadd.f32 %v9120_v46, %v1079_v63  ;;  %v1081_v54 = vld [vmem:[%s11032_s3 + $0x158] sm:$0xff]  ;;  %v1083_v46 = vld [vmem:[%s11032_s3 + $0x168] sm:$0xff]  ;;  %v9328_v63 = vadd.f32 %v9127_v0, %v1082_v11 }
 0x382   :  { %v9314_v51 = vadd.f32 %v9132_v24, %v1080_v28  ;;  %v9317_v44 = vadd.f32 %v9137_v21, %v1081_v54  ;;  %v1084_v24 = vld [vmem:[%s11032_s3 + $0x170] sm:$0xff]  ;;  %v9334_v21 = vadd.f32 %v9134_v35, %v1083_v46  ;;  %v1085_v28 = vld [vmem:[%s11032_s3 + $0x178] sm:$0xff]  ;;  %v1086_v11 = vld [vmem:[%s11032_s3 + $0x180] sm:$0xff] }
 0x383   :  { %1528 = vmax.xlane.f32.xlu0 %v9244_v16  ;;  %11452 = vst [vmem:[#allocation106_spill] sm:$0xff] %v9306_v52  ;;  %11454 = vst [vmem:[#allocation108_spill] sm:$0xff] %v9328_v63  ;;  %v9342_v54 = vadd.f32 %v9143_v37, %v1084_v24  ;;  %v9345_v0 = vadd.f32 %v9150_v14, %v1085_v28  ;;  %v1087_v35 = vld [vmem:[%s11032_s3 + $0x188] sm:$0xff]  ;;  %v9356_v46 = vadd.f32 %v9157_v48, %v1086_v11  ;;  %v1088_v14 = vld [vmem:[%s11032_s3 + $0x190] sm:$0xff] }
 0x384   :  { %1560 = vmax.xlane.f32.xlu1 %v9250_v23  ;;  %11453 = vst [vmem:[#allocation107_spill] sm:$0xff] %v9317_v44  ;;  %11455 = vst [vmem:[#allocation109_spill] sm:$0xff] %v9334_v21  ;;  %v9362_v37 = vadd.f32 %v9161_v39, %v1087_v35  ;;  %v1089_v24 = vld [vmem:[%s11032_s3 + $0x198] sm:$0xff]  ;;  %v9370_v28 = vadd.f32 %v9173_v13, %v1088_v14  ;;  %v1090_v11 = vld [vmem:[%s11032_s3 + $0x1a0] sm:$0xff] }
 0x385   :  { %11456 = vst [vmem:[#allocation110_spill] sm:$0xff] %v9342_v54  ;;  %11457 = vst [vmem:[#allocation111_spill] sm:$0xff] %v9345_v0  ;;  %v9373_v48 = vadd.f32 %v9178_v47, %v1089_v24  ;;  %v1091_v39 = vld [vmem:[%s11032_s3 + $0x1a8] sm:$0xff]  ;;  %v9384_v35 = vadd.f32 %v9168_v18, %v1090_v11  ;;  %v1092_v13 = vld [vmem:[%s11032_s3 + $0x1b0] sm:$0xff] }
 0x386   :  { %11458 = vst [vmem:[#allocation112_spill] sm:$0xff] %v9356_v46  ;;  %11459 = vst [vmem:[#allocation113_spill] sm:$0xff] %v9362_v37  ;;  %v9390_v47 = vadd.f32 %v9176_v2, %v1091_v39  ;;  %v1093_v14 = vld [vmem:[%s11032_s3 + $0x1b8] sm:$0xff]  ;;  %v9398_v24 = vadd.f32 %v9184_v7, %v1092_v13  ;;  %v1094_v11 = vld [vmem:[%s11032_s3 + $0x1c0] sm:$0xff] }
 0x387   :  { %1592 = vmax.xlane.f32.xlu0 %v9258_v17  ;;  %11460 = vst [vmem:[#allocation114_spill] sm:$0xff] %v9370_v28  ;;  %11461 = vst [vmem:[#allocation115_spill] sm:$0xff] %v9373_v48  ;;  %v9401_v18 = vadd.f32 %v9192_v50, %v1093_v14  ;;  %v1095_v2 = vld [vmem:[%s11032_s3 + $0x1c8] sm:$0xff]  ;;  %v9412_v39 = vadd.f32 %v9199_v1, %v1094_v11  ;;  %v1096_v50 = vld [vmem:[%s11032_s3 + $0x1d0] sm:$0xff] }
 0x388   :  { %1624 = vmax.xlane.f32.xlu1 %v9261_v57  ;;  %11462 = vst [vmem:[#allocation116_spill] sm:$0xff] %v9384_v35  ;;  %11463 = vst [vmem:[#allocation117_spill] sm:$0xff] %v9390_v47  ;;  %v9418_v7 = vadd.f32 %v9204_v60, %v1095_v2  ;;  %v1097_v13 = vld [vmem:[%s11032_s3 + $0x1d8] sm:$0xff]  ;;  %v9426_v14 = vadd.f32 %v9217_v32, %v1096_v50  ;;  %v1098_v11 = vld [vmem:[%s11032_s3 + $0x1e0] sm:$0xff] }
 0x389   :  { %11464 = vst [vmem:[#allocation118_spill] sm:$0xff] %v9398_v24  ;;  %11465 = vst [vmem:[#allocation119_spill] sm:$0xff] %v9401_v18  ;;  %v9429_v1 = vadd.f32 %v9222_v30, %v1097_v13  ;;  %v1099_v60 = vld [vmem:[%s11032_s3 + $0x1e8] sm:$0xff]  ;;  %v9440_v2 = vadd.f32 %v9212_v6, %v1098_v11  ;;  %v1100_v32 = vld [vmem:[%s11032_s3 + $0x1f0] sm:$0xff] }
 0x38a   :  { %11466 = vst [vmem:[#allocation120_spill] sm:$0xff] %v9412_v39  ;;  %11467 = vst [vmem:[#allocation121_spill] sm:$0xff] %v9418_v7  ;;  %v9446_v30 = vadd.f32 %v9220_v38, %v1099_v60  ;;  %v1101_v50 = vld [vmem:[%s11032_s3 + $0x1f8] sm:$0xff]  ;;  %v9454_v13 = vadd.f32 %v9228_v55, %v1100_v32 }
 0x38b   :  { %1530 = vmax.xlane.f32.xlu0 %v9272_v27  ;;  %11468 = vst [vmem:[#allocation122_spill] sm:$0xff] %v9426_v14  ;;  %11469 = vst [vmem:[#allocation123_spill] sm:$0xff] %v9429_v1  ;;  %v9457_v6 = vadd.f32 %v9236_v25, %v1101_v50 }
 0x38c   :  { %1562 = vmax.xlane.f32.xlu1 %v9278_v58  ;;  %11470 = vst [vmem:[#allocation124_spill] sm:$0xff] %v9440_v2  ;;  %11471 = vst [vmem:[#allocation125_spill] sm:$0xff] %v9446_v30 }
 0x38d   :  { %11472 = vst [vmem:[#allocation126_spill] sm:$0xff] %v9454_v13  ;;  %11473 = vst [vmem:[#allocation127_spill] sm:$0xff] %v9457_v6 }
 0x38f   :  { %1594 = vmax.xlane.f32.xlu0 %v9286_v29 }
 0x390   :  { %1626 = vmax.xlane.f32.xlu1 %v9289_v53 }
 0x393   :  { %1532 = vmax.xlane.f32.xlu0 %v9300_v26 }
 0x394   :  { %1564 = vmax.xlane.f32.xlu1 %v9306_v52  ;;  %v11490_v52 = vld [vmem:[#allocation77_spill] sm:$0xff] }
 0x397   :  { %1596 = vmax.xlane.f32.xlu0 %v9314_v51 }
 0x398   :  { %1628 = vmax.xlane.f32.xlu1 %v9317_v44 }
 0x39b   :  { %1534 = vmax.xlane.f32.xlu0 %v9328_v63  ;;  %v11488_v63 = vld [vmem:[#allocation36_spill] sm:$0xff] }
 0x39c   :  { %1566 = vmax.xlane.f32.xlu1 %v9334_v21 }
 0x39f   :  { %1598 = vmax.xlane.f32.xlu0 %v9342_v54 }
 0x3a0   :  { %1630 = vmax.xlane.f32.xlu1 %v9345_v0 }
 0x3a3   :  { %1536 = vmax.xlane.f32.xlu0 %v9356_v46 }
 0x3a4   :  { %1568 = vmax.xlane.f32.xlu1 %v9362_v37 }
 0x3a7   :  { %1600 = vmax.xlane.f32.xlu0 %v9370_v28  ;;  %v11487_v28 = vld [vmem:[#allocation37_spill] sm:$0xff] }
 0x3a8   :  { %1632 = vmax.xlane.f32.xlu1 %v9373_v48  ;;  %v11485_v48 = vld [vmem:[#allocation24_spill] sm:$0xff] }
 0x3ab   :  { %1538 = vmax.xlane.f32.xlu0 %v9384_v35 }
 0x3ac   :  { %1570 = vmax.xlane.f32.xlu1 %v9390_v47  ;;  %v11483_v47 = vld [vmem:[#allocation5_spill] sm:$0xff] }
 0x3af   :  { %1602 = vmax.xlane.f32.xlu0 %v9398_v24 }
 0x3b0   :  { %1634 = vmax.xlane.f32.xlu1 %v9401_v18 }
 0x3b3   :  { %1540 = vmax.xlane.f32.xlu0 %v9412_v39  ;;  %v11481_v39 = vld [vmem:[#allocation7_spill] sm:$0xff] }
 0x3b4   :  { %1572 = vmax.xlane.f32.xlu1 %v9418_v7  ;;  %v11479_v7 = vld [vmem:[#allocation84_spill] sm:$0xff] }
 0x3b7   :  { %1604 = vmax.xlane.f32.xlu0 %v9426_v14  ;;  %v11480_v14 = vld [vmem:[#allocation85_spill] sm:$0xff] }
 0x3b8   :  { %1636 = vmax.xlane.f32.xlu1 %v9429_v1 }
 0x3bb   :  { %1542 = vmax.xlane.f32.xlu0 %v9440_v2 }
 0x3bc   :  { %1574 = vmax.xlane.f32.xlu1 %v9446_v30 }
 0x3bf   :  { %1606 = vmax.xlane.f32.xlu0 %v9454_v13 }
 0x3c0   :  { %1638 = vmax.xlane.f32.xlu1 %v9457_v6 }
 0x3d0   :  { %v1513_v38 = vpop.xlane.xlu0 %1512 }
 0x3d1   :  { %v1545_v11 = vpop.xlane.xlu1 %1544 }
 0x3d2   :  { %v1641_v60 = vsel %vm1640_vm3, %v1513_v38, %v1545_v11 }
 0x3d4   :  { %v1577_v2 = vpop.xlane.xlu0 %1576 }
 0x3d5   :  { %v1658_v30 = vsel %vm1657_vm4, %v1641_v60, %v1577_v2  ;;  %v1609_v1 = vpop.xlane.xlu1 %1608 }
 0x3d6   :  { %v1675_v55 = vsel %vm1674_vm5, %v1658_v30, %v1609_v1 }
 0x3d7   :  { %5515 = vmatprep.mubr.msk.f32.mxu1 %vm1691_vm1, %v1675_v55  ;;  %5579 = vmatprep.mubr.msk.f32.mxu0 %vm1691_vm1, %v1675_v55 }
 0x3d8   :  { %v1515_v25 = vpop.xlane.xlu0 %1514  ;;  %5516 = vmatmul.mubr.msk.f32.vlgmr.msra.gmra.mrb[48].mxu1 %vm1691_vm1, %v1675_v55  ;;  %5580 = vmatmul.mubr.msk.f32.vlgmr.msra.gmra.mrb[64].mxu0 %vm1691_vm1, %v1675_v55 }
 0x3d9   :  { %v1547_v32 = vpop.xlane.xlu1 %1546  ;;  %6344 = vmatpush3.bf16.msra.mxu1 %v8634_v9  ;;  %6376 = vmatpush3.bf16.msra.mxu0 %v8636_v62 }
 0x3da   :  { %6346 = vmatprep.subr.bf16.mxu1 %v8656_v59  ;;  %6378 = vmatprep.subr.bf16.mxu0 %v8667_v42  ;;  %v1642_v1 = vsel %vm1640_vm3, %v1515_v25, %v1547_v32 }
 0x3dc   :  { %v1579_v2 = vpop.xlane.xlu0 %1578 }
 0x3dd   :  { %v1659_v30 = vsel %vm1657_vm4, %v1642_v1, %v1579_v2  ;;  %v1611_v50 = vpop.xlane.xlu1 %1610  ;;  %6348 = vmatpush3.bf16.msra.mxu1 %v8669_v36  ;;  %6380 = vmatpush3.bf16.msra.mxu0 %v8680_v34 }
 0x3de   :  { %v1676_v38 = vsel %vm1674_vm5, %v1659_v30, %v1611_v50  ;;  %6350 = vmatprep.subr.bf16.mxu1 %v8700_v19  ;;  %6382 = vmatprep.subr.bf16.mxu0 %v8711_v40 }
 0x3df   :  { %5517 = vmatprep.mubr.msk.f32.mxu1 %vm1691_vm1, %v1676_v38  ;;  %5581 = vmatprep.mubr.msk.f32.mxu0 %vm1691_vm1, %v1676_v38 }
 0x3e0   :  { %v1517_v11 = vpop.xlane.xlu0 %1516  ;;  %5518 = vmatmul.mubr.msk.f32.gmra.mrb[50].mxu1 %vm1691_vm1, %v1676_v38  ;;  %5582 = vmatmul.mubr.msk.f32.gmra.mrb[66].mxu0 %vm1691_vm1, %v1676_v38 }
 0x3e1   :  { %v1549_v60 = vpop.xlane.xlu1 %1548  ;;  %6352 = vmatpush3.bf16.msra.mxu1 %v8713_v15  ;;  %6384 = vmatpush3.bf16.msra.mxu0 %v8724_v33 }
 0x3e2   :  { %6354 = vmatprep.subr.bf16.mxu1 %v8744_v22  ;;  %6386 = vmatprep.subr.bf16.mxu0 %v8755_v20  ;;  %v1643_v55 = vsel %vm1640_vm3, %v1517_v11, %v1549_v60 }
 0x3e4   :  { %v1581_v25 = vpop.xlane.xlu0 %1580 }
 0x3e5   :  { %v1660_v32 = vsel %vm1657_vm4, %v1643_v55, %v1581_v25  ;;  %v1613_v1 = vpop.xlane.xlu1 %1612  ;;  %6356 = vmatpush3.bf16.msra.mxu1 %v8757_v43  ;;  %6388 = vmatpush3.bf16.msra.mxu0 %v8768_v31 }
 0x3e6   :  { %v1677_v2 = vsel %vm1674_vm5, %v1660_v32, %v1613_v1  ;;  %6358 = vmatprep.subr.bf16.mxu1 %v8788_v3  ;;  %6390 = vmatprep.subr.bf16.mxu0 %v8799_v61  ;;  %v11474_v32 = vld [vmem:[#allocation27_spill] sm:$0xff] }
 0x3e7   :  { %5519 = vmatprep.mubr.msk.f32.mxu1 %vm1691_vm1, %v1677_v2  ;;  %5583 = vmatprep.mubr.msk.f32.mxu0 %vm1691_vm1, %v1677_v2 }
 0x3e8   :  { %v1519_v30 = vpop.xlane.xlu0 %1518  ;;  %5520 = vmatmul.mubr.msk.f32.gmra.mrb[52].mxu1 %vm1691_vm1, %v1677_v2  ;;  %5584 = vmatmul.mubr.msk.f32.gmra.mrb[68].mxu0 %vm1691_vm1, %v1677_v2 }
 0x3e9   :  { %v1551_v50 = vpop.xlane.xlu1 %1550  ;;  %6360 = vmatpush3.bf16.msra.mxu1 %v8801_v56  ;;  %6392 = vmatpush3.bf16.msra.mxu0 %v8812_v49 }
 0x3ea   :  { %6362 = vmatprep.subr.bf16.mxu1 %v8841_v10  ;;  %6394 = vmatprep.subr.bf16.mxu0 %v8854_v8  ;;  %v1644_v38 = vsel %vm1640_vm3, %v1519_v30, %v1551_v50  ;;  %v11475_v30 = vld [vmem:[#allocation75_spill] sm:$0xff]  ;;  %v11476_v50 = vld [vmem:[#allocation76_spill] sm:$0xff] }
 0x3ec   :  { %v1583_v11 = vpop.xlane.xlu0 %1582 }
 0x3ed   :  { %v1661_v60 = vsel %vm1657_vm4, %v1644_v38, %v1583_v11  ;;  %v1615_v55 = vpop.xlane.xlu1 %1614  ;;  %6364 = vmatpush3.bf16.msra.mxu1 %v8856_v4  ;;  %6396 = vmatpush3.bf16.msra.mxu0 %v8872_v12  ;;  %v11477_v38 = vld [vmem:[#allocation78_spill] sm:$0xff] }
 0x3ee   :  { %v1678_v25 = vsel %vm1674_vm5, %v1661_v60, %v1615_v55  ;;  %6366 = vmatprep.subr.bf16.mxu1 %v8890_v41  ;;  %6398 = vmatprep.subr.bf16.mxu0 %v11474_v32  ;;  %v11478_v11 = vld [vmem:[#allocation82_spill] sm:$0xff] }
 0x3ef   :  { %5521 = vmatprep.mubr.msk.f32.mxu1 %vm1691_vm1, %v1678_v25  ;;  %5585 = vmatprep.mubr.msk.f32.mxu0 %vm1691_vm1, %v1678_v25 }
 0x3f0   :  { %v1521_v1 = vpop.xlane.xlu0 %1520  ;;  %5522 = vmatmul.mubr.msk.f32.gmra.mrb[54].mxu1 %vm1691_vm1, %v1678_v25  ;;  %5586 = vmatmul.mubr.msk.f32.gmra.mrb[70].mxu0 %vm1691_vm1, %v1678_v25 }
 0x3f1   :  { %v1553_v2 = vpop.xlane.xlu1 %1552  ;;  %6368 = vmatpush3.bf16.msra.mxu1 %v11475_v30  ;;  %6400 = vmatpush3.bf16.msra.mxu0 %v11476_v50 }
 0x3f2   :  { %6370 = vmatprep.subr.bf16.mxu1 %v11477_v38  ;;  %6402 = vmatprep.subr.bf16.mxu0 %v11478_v11  ;;  %v1645_v60 = vsel %vm1640_vm3, %v1521_v1, %v1553_v2 }
 0x3f4   :  { %v1585_v55 = vpop.xlane.xlu0 %1584 }
 0x3f5   :  { %v1662_v6 = vsel %vm1657_vm4, %v1645_v60, %v1585_v55  ;;  %v1617_v13 = vpop.xlane.xlu1 %1616  ;;  %6372 = vmatpush3.bf16.msra.mxu1 %v11479_v7  ;;  %6404 = vmatpush3.bf16.msra.mxu0 %v11480_v14 }
 0x3f6   :  { %v1679_v25 = vsel %vm1674_vm5, %v1662_v6, %v1617_v13  ;;  %6407 = vmatprep.subr.msk.bf16.mxu1 %vm8605_vm2, %v11481_v39  ;;  %6455 = vmatprep.subr.msk.bf16.mxu0 %vm8605_vm2, %v11483_v47 }
 0x3f7   :  { %5523 = vmatprep.mubr.msk.f32.mxu1 %vm1691_vm1, %v1679_v25  ;;  %5587 = vmatprep.mubr.msk.f32.mxu0 %vm1691_vm1, %v1679_v25 }
 0x3f8   :  { %v1523_v1 = vpop.xlane.xlu0 %1522  ;;  %5524 = vmatmul.mubr.msk.f32.gmra.mrb[56].mxu1 %vm1691_vm1, %v1679_v25  ;;  %5588 = vmatmul.mubr.msk.f32.gmra.mrb[72].mxu0 %vm1691_vm1, %v1679_v25 }
 0x3f9   :  { %v1555_v2 = vpop.xlane.xlu1 %1554 }
 0x3fa   :  { %v1646_v13 = vsel %vm1640_vm3, %v1523_v1, %v1555_v2 }
 0x3fc   :  { %v1587_v6 = vpop.xlane.xlu0 %1586 }
 0x3fd   :  { %v1663_v60 = vsel %vm1657_vm4, %v1646_v13, %v1587_v6  ;;  %v1619_v39 = vpop.xlane.xlu1 %1618 }
 0x3fe   :  { %v1680_v55 = vsel %vm1674_vm5, %v1663_v60, %v1619_v39 }
 0x3ff   :  { %5525 = vmatprep.mubr.msk.f32.mxu1 %vm1691_vm1, %v1680_v55  ;;  %5589 = vmatprep.mubr.msk.f32.mxu0 %vm1691_vm1, %v1680_v55 }
 0x400   :  { %v1525_v47 = vpop.xlane.xlu0 %1524  ;;  %5526 = vmatmul.mubr.msk.f32.gmra.mrb[58].mxu1 %vm1691_vm1, %v1680_v55  ;;  %5590 = vmatmul.mubr.msk.f32.gmra.mrb[74].mxu0 %vm1691_vm1, %v1680_v55 }
 0x401   :  { %v1557_v24 = vpop.xlane.xlu1 %1556 }
 0x402   :  { %v1647_v25 = vsel %vm1640_vm3, %v1525_v47, %v1557_v24 }
 0x404   :  { %v1589_v35 = vpop.xlane.xlu0 %1588 }
 0x405   :  { %v1664_v1 = vsel %vm1657_vm4, %v1647_v25, %v1589_v35  ;;  %v1621_v2 = vpop.xlane.xlu1 %1620 }
 0x406   :  { %v1681_v13 = vsel %vm1674_vm5, %v1664_v1, %v1621_v2 }
 0x407   :  { %5527 = vmatprep.mubr.msk.f32.mxu1 %vm1691_vm1, %v1681_v13  ;;  %5591 = vmatprep.mubr.msk.f32.mxu0 %vm1691_vm1, %v1681_v13 }
 0x408   :  { %v1527_v6 = vpop.xlane.xlu0 %1526  ;;  %5528 = vmatmul.mubr.msk.f32.gmra.mrb[60].mxu1 %vm1691_vm1, %v1681_v13  ;;  %5592 = vmatmul.mubr.msk.f32.gmra.mrb[76].mxu0 %vm1691_vm1, %v1681_v13 }
 0x409   :  { %v1559_v60 = vpop.xlane.xlu1 %1558 }
 0x40a   :  { %v1648_v39 = vsel %vm1640_vm3, %v1527_v6, %v1559_v60 }
 0x40c   :  { %v1591_v55 = vpop.xlane.xlu0 %1590 }
 0x40d   :  { %v1665_v24 = vsel %vm1657_vm4, %v1648_v39, %v1591_v55  ;;  %v1623_v47 = vpop.xlane.xlu1 %1622 }
 0x40e   :  { %v1682_v35 = vsel %vm1674_vm5, %v1665_v24, %v1623_v47 }
 0x40f   :  { %5529 = vmatprep.mubr.msk.f32.mxu1 %vm1691_vm1, %v1682_v35  ;;  %5593 = vmatprep.mubr.msk.f32.mxu0 %vm1691_vm1, %v1682_v35 }
 0x410   :  { %v1529_v25 = vpop.xlane.xlu0 %1528  ;;  %5530 = vmatmul.mubr.msk.f32.gmra.mrb[62].mxu1 %vm1691_vm1, %v1682_v35  ;;  %5594 = vmatmul.mubr.msk.f32.gmra.mrb[78].mxu0 %vm1691_vm1, %v1682_v35 }
 0x411   :  { %v1561_v1 = vpop.xlane.xlu1 %1560 }
 0x412   :  { %v1649_v2 = vsel %vm1640_vm3, %v1529_v25, %v1561_v1 }
 0x414   :  { %v1593_v13 = vpop.xlane.xlu0 %1592 }
 0x415   :  { %v1666_v6 = vsel %vm1657_vm4, %v1649_v2, %v1593_v13  ;;  %v1625_v60 = vpop.xlane.xlu1 %1624 }
 0x416   :  { %v1683_v39 = vsel %vm1674_vm5, %v1666_v6, %v1625_v60 }
 0x417   :  { %5531 = vmatprep.mubr.msk.f32.mxu1 %vm1691_vm1, %v1683_v39  ;;  %5595 = vmatprep.mubr.msk.f32.mxu0 %vm1691_vm1, %v1683_v39 }
 0x418   :  { %v1531_v55 = vpop.xlane.xlu0 %1530  ;;  %5532 = vmatmul.mubr.msk.f32.gmra.mrb[64].mxu1 %vm1691_vm1, %v1683_v39  ;;  %5596 = vmatmul.mubr.msk.f32.gmra.mrb[80].mxu0 %vm1691_vm1, %v1683_v39 }
 0x419   :  { %v1563_v24 = vpop.xlane.xlu1 %1562 }
 0x41a   :  { %v1650_v47 = vsel %vm1640_vm3, %v1531_v55, %v1563_v24 }
 0x41c   :  { %v1595_v35 = vpop.xlane.xlu0 %1594 }
 0x41d   :  { %v1667_v25 = vsel %vm1657_vm4, %v1650_v47, %v1595_v35  ;;  %v1627_v1 = vpop.xlane.xlu1 %1626 }
 0x41e   :  { %v1684_v2 = vsel %vm1674_vm5, %v1667_v25, %v1627_v1 }
 0x41f   :  { %5533 = vmatprep.mubr.msk.f32.mxu1 %vm1691_vm1, %v1684_v2  ;;  %5597 = vmatprep.mubr.msk.f32.mxu0 %vm1691_vm1, %v1684_v2 }
 0x420   :  { %v1533_v13 = vpop.xlane.xlu0 %1532  ;;  %5534 = vmatmul.mubr.msk.f32.gmra.mrb[66].mxu1 %vm1691_vm1, %v1684_v2  ;;  %5598 = vmatmul.mubr.msk.f32.gmra.mrb[82].mxu0 %vm1691_vm1, %v1684_v2 }
 0x421   :  { %v1565_v6 = vpop.xlane.xlu1 %1564 }
 0x422   :  { %v1651_v60 = vsel %vm1640_vm3, %v1533_v13, %v1565_v6 }
 0x424   :  { %v1597_v39 = vpop.xlane.xlu0 %1596 }
 0x425   :  { %v1668_v55 = vsel %vm1657_vm4, %v1651_v60, %v1597_v39  ;;  %v1629_v24 = vpop.xlane.xlu1 %1628 }
 0x426   :  { %v1685_v47 = vsel %vm1674_vm5, %v1668_v55, %v1629_v24 }
 0x427   :  { %5535 = vmatprep.mubr.msk.f32.mxu1 %vm1691_vm1, %v1685_v47  ;;  %5599 = vmatprep.mubr.msk.f32.mxu0 %vm1691_vm1, %v1685_v47 }
 0x428   :  { %v1535_v35 = vpop.xlane.xlu0 %1534  ;;  %5536 = vmatmul.mubr.msk.f32.gmra.mrb[68].mxu1 %vm1691_vm1, %v1685_v47  ;;  %5600 = vmatmul.mubr.msk.f32.gmra.mrb[84].mxu0 %vm1691_vm1, %v1685_v47 }
 0x429   :  { %v1567_v25 = vpop.xlane.xlu1 %1566 }
 0x42a   :  { %v1652_v1 = vsel %vm1640_vm3, %v1535_v35, %v1567_v25 }
 0x42c   :  { %v1599_v2 = vpop.xlane.xlu0 %1598 }
 0x42d   :  { %v1669_v13 = vsel %vm1657_vm4, %v1652_v1, %v1599_v2  ;;  %v1631_v6 = vpop.xlane.xlu1 %1630 }
 0x42e   :  { %v1686_v60 = vsel %vm1674_vm5, %v1669_v13, %v1631_v6 }
 0x42f   :  { %5537 = vmatprep.mubr.msk.f32.mxu1 %vm1691_vm1, %v1686_v60  ;;  %5601 = vmatprep.mubr.msk.f32.mxu0 %vm1691_vm1, %v1686_v60 }
 0x430   :  { %5538 = vmatmul.mubr.msk.f32.gmra.mrb[70].mxu1 %vm1691_vm1, %v1686_v60  ;;  %5602 = vmatmul.mubr.msk.f32.gmra.mrb[86].mxu0 %vm1691_vm1, %v1686_v60  ;;  %v1537_v39 = vpop.xlane.xlu0 %1536 }
 0x431   :  { %v1569_v55 = vpop.xlane.xlu1 %1568 }
 0x432   :  { %v1653_v24 = vsel %vm1640_vm3, %v1537_v39, %v1569_v55 }
 0x434   :  { %v1601_v47 = vpop.xlane.xlu0 %1600 }
 0x435   :  { %v1670_v35 = vsel %vm1657_vm4, %v1653_v24, %v1601_v47  ;;  %v1633_v25 = vpop.xlane.xlu1 %1632 }
 0x436   :  { %v1687_v1 = vsel %vm1674_vm5, %v1670_v35, %v1633_v25 }
 0x437   :  { %5539 = vmatprep.mubr.msk.f32.mxu1 %vm1691_vm1, %v1687_v1  ;;  %5603 = vmatprep.mubr.msk.f32.mxu0 %vm1691_vm1, %v1687_v1 }
 0x438   :  { %5540 = vmatmul.mubr.msk.f32.gmra.mrb[72].mxu1 %vm1691_vm1, %v1687_v1  ;;  %5604 = vmatmul.mubr.msk.f32.gmra.mrb[88].mxu0 %vm1691_vm1, %v1687_v1  ;;  %v1539_v2 = vpop.xlane.xlu0 %1538 }
 0x439   :  { %v1571_v13 = vpop.xlane.xlu1 %1570 }
 0x43a   :  { %v1654_v6 = vsel %vm1640_vm3, %v1539_v2, %v1571_v13 }
 0x43c   :  { %v1603_v60 = vpop.xlane.xlu0 %1602 }
 0x43d   :  { %v1671_v39 = vsel %vm1657_vm4, %v1654_v6, %v1603_v60  ;;  %v1635_v55 = vpop.xlane.xlu1 %1634 }
 0x43e   :  { %v1688_v24 = vsel %vm1674_vm5, %v1671_v39, %v1635_v55 }
 0x43f   :  { %5541 = vmatprep.mubr.msk.f32.mxu1 %vm1691_vm1, %v1688_v24  ;;  %5605 = vmatprep.mubr.msk.f32.mxu0 %vm1691_vm1, %v1688_v24 }
 0x440   :  { %5542 = vmatmul.mubr.msk.f32.gmra.mrb[74].mxu1 %vm1691_vm1, %v1688_v24  ;;  %5606 = vmatmul.mubr.msk.f32.gmra.mrb[90].mxu0 %vm1691_vm1, %v1688_v24  ;;  %v1541_v47 = vpop.xlane.xlu0 %1540 }
 0x441   :  { %v1573_v35 = vpop.xlane.xlu1 %1572 }
 0x442   :  { %v1655_v25 = vsel %vm1640_vm3, %v1541_v47, %v1573_v35 }
 0x444   :  { %v1605_v1 = vpop.xlane.xlu0 %1604 }
 0x445   :  { %v1672_v2 = vsel %vm1657_vm4, %v1655_v25, %v1605_v1  ;;  %v1637_v13 = vpop.xlane.xlu1 %1636 }
 0x446   :  { %v1689_v6 = vsel %vm1674_vm5, %v1672_v2, %v1637_v13  ;;  %v11484_v13 = vld [vmem:[#allocation17_spill] sm:$0xff] }
 0x447   :  { %5543 = vmatprep.mubr.msk.f32.mxu1 %vm1691_vm1, %v1689_v6  ;;  %5607 = vmatprep.mubr.msk.f32.mxu0 %vm1691_vm1, %v1689_v6 }
 0x448   :  { %5544 = vmatmul.mubr.msk.f32.gmra.mrb[76].mxu1 %vm1691_vm1, %v1689_v6  ;;  %5608 = vmatmul.mubr.msk.f32.gmra.mrb[92].mxu0 %vm1691_vm1, %v1689_v6  ;;  %v1543_v60 = vpop.xlane.xlu0 %1542 }
 0x449   :  { %v1575_v39 = vpop.xlane.xlu1 %1574 }
 0x44a   :  { %v1656_v55 = vsel %vm1640_vm3, %v1543_v60, %v1575_v39 }
 0x44c   :  { %v1607_v24 = vpop.xlane.xlu0 %1606 }
 0x44d   :  { %v1673_v47 = vsel %vm1657_vm4, %v1656_v55, %v1607_v24  ;;  %v1639_v35 = vpop.xlane.xlu1 %1638  ;;  %v11486_v55 = vld [vmem:[#allocation14_spill] sm:$0xff] }
 0x44e   :  { %v1690_v25 = vsel %vm1674_vm5, %v1673_v47, %v1639_v35 }
 0x44f   :  { %5545 = vmatprep.mubr.msk.f32.mxu1 %vm1691_vm1, %v1690_v25  ;;  %5609 = vmatprep.mubr.msk.f32.mxu0 %vm1691_vm1, %v1690_v25 }
 0x450   :  { %5546 = vmatmul.mubr.msk.f32.gmra.mrb[78].mxu1 %vm1691_vm1, %v1690_v25  ;;  %5610 = vmatmul.mubr.msk.f32.gmra.mrb[94].mxu0 %vm1691_vm1, %v1690_v25 }
 0x4ab   :  { %v1998_v1 = vpop.f32.mrb[48].mxu1  ;;  %v2159_v2 = vpop.f32.mrb[64].mxu0 }
 0x4ac   :  { %v2254_v6 = vsub.f32 %v11484_v13, %v1998_v1  ;;  %v2256_v60 = vsub.f32 %v11485_v48, %v2159_v2  ;;  %v2000_v39 = vpop.f32.mrb[49].mxu1  ;;  %v2161_v37 = vpop.f32.mrb[65].mxu0  ;;  %v11489_v13 = vld [vmem:[#allocation79_spill] sm:$0xff] }
 0x4ad   :  { %v2255_v24 = vsub.f32 %v11486_v55, %v2000_v39  ;;  %v2257_v47 = vsub.f32 %v11487_v28, %v2161_v37  ;;  %v11491_v55 = vld [vmem:[#allocation80_spill] sm:$0xff] }
 0x4ae   :  { %v2318_v35 = vmul.f32 1.442695, %v2254_v6  ;;  %v2322_v21 = vmul.f32 1.442695, %v2256_v60 }
 0x4af   :  { %v2320_v46 = vmul.f32 1.442695, %v2255_v24  ;;  %v2324_v0 = vmul.f32 1.442695, %v2257_v47 }
 0x4b0   :  { %6600 = vpow2.f32 %v2318_v35  ;;  %v11493_v35 = vld [vmem:[#allocation86_spill] sm:$0xff] }
 0x4b1   :  { %6602 = vpow2.f32 %v2320_v46 }
 0x4b2   :  { %6604 = vpow2.f32 %v2324_v0 }
 0x4b3   :  { %v2004_v25 = vpop.f32.mrb[50].mxu1  ;;  %v2165_v54 = vpop.f32.mrb[66].mxu0  ;;  %6606 = vpow2.f32 %v2322_v21 }
 0x4b4   :  { %v2258_v1 = vsub.f32 %v11488_v63, %v2004_v25  ;;  %v2260_v48 = vsub.f32 %v11489_v13, %v2165_v54  ;;  %v2006_v2 = vpop.f32.mrb[51].mxu1  ;;  %v2167_v44 = vpop.f32.mrb[67].mxu0  ;;  %v11492_v54 = vld [vmem:[#allocation81_spill] sm:$0xff]  ;;  %v11494_v13 = vld [vmem:[#allocation83_spill] sm:$0xff] }
 0x4b5   :  { %v2259_v39 = vsub.f32 %v11490_v52, %v2006_v2  ;;  %v2261_v37 = vsub.f32 %v11491_v55, %v2167_v44  ;;  %v11495_v2 = vld [vmem:[#allocation87_spill] sm:$0xff] }
 0x4b6   :  { %v2326_v28 = vmul.f32 1.442695, %v2258_v1  ;;  %v2330_v60 = vmul.f32 1.442695, %v2260_v48 }
 0x4b7   :  { %v2328_v6 = vmul.f32 1.442695, %v2259_v39  ;;  %v2332_v24 = vmul.f32 1.442695, %v2261_v37 }
 0x4b8   :  { %6608 = vpow2.f32 %v2326_v28 }
 0x4b9   :  { %6610 = vpow2.f32 %v2328_v6 }
 0x4ba   :  { %v9617_v0 = vpop.eup %6600  ;;  %6612 = vpow2.f32 %v2332_v24 }
 0x4bb   :  { %v2010_v21 = vpop.f32.mrb[52].mxu1  ;;  %v2171_v46 = vpop.f32.mrb[68].mxu0  ;;  %6614 = vpow2.f32 %v2330_v60 }
 0x4bc   :  { %v9619_v63 = vpop.eup %6602  ;;  %v2262_v47 = vsub.f32 %v11492_v54, %v2010_v21  ;;  %v2264_v52 = vsub.f32 %v11493_v35, %v2171_v46  ;;  %v2012_v25 = vpop.f32.mrb[53].mxu1  ;;  %v11496_v54 = vld [vmem:[#allocation88_spill] sm:$0xff] }
 0x4bd   :  { %v2173_v44 = vpop.f32.mrb[69].mxu0  ;;  %v9623_v1 = vpop.eup %6604  ;;  %v2263_v48 = vsub.f32 %v11494_v13, %v2012_v25  ;;  %2510 = vmatprep.mubr.f32.mxu1 %v9619_v63 }
 0x4be   :  { %v2265_v39 = vsub.f32 %v11495_v2, %v2173_v44  ;;  %v9628_v55 = vpop.eup %6606  ;;  %v2334_v37 = vmul.f32 1.442695, %v2262_v47  ;;  %2655 = vmatprep.mubr.f32.mxu0 %v9623_v1  ;;  %2511 = vmatmul.mubr.f32.vlgmr.msra.gmra.mrb[80].mxu1 %v9617_v0  ;;  %v2338_v24 = vmul.f32 1.442695, %v2264_v52  ;;  %v11497_v47 = vld [vmem:[#allocation90_spill] sm:$0xff]  ;;  %v11498_v44 = vld [vmem:[#allocation89_spill] sm:$0xff] }
 0x4bf   :  { %v2336_v28 = vmul.f32 1.442695, %v2263_v48  ;;  %2656 = vmatmul.mubr.f32.vlgmr.msra.gmra.mrb[96].mxu0 %v9628_v55  ;;  %6410 = vmatpush3.bf16.xpose.msk.msra.mxu1 %vm8605_vm2, %v8634_v9 }
 0x4c0   :  { %v2340_v6 = vmul.f32 1.442695, %v2265_v39  ;;  %6458 = vmatpush3.bf16.xpose.msk.msra.mxu0 %vm8605_vm2, %v8636_v62  ;;  %6413 = vmatprep.subr.msk.bf16.mxu1 %vm8605_vm2, %v8656_v59  ;;  %6616 = vpow2.f32 %v2334_v37 }
 0x4c1   :  { %6461 = vmatprep.subr.msk.bf16.mxu0 %vm8605_vm2, %v8667_v42  ;;  %6618 = vpow2.f32 %v2336_v28  ;;  %v11499_v42 = vld [vmem:[#allocation91_spill] sm:$0xff] }
 0x4c2   :  { %v9645_v60 = vpop.eup %6608  ;;  %6620 = vpow2.f32 %v2340_v6 }
 0x4c3   :  { %v2016_v21 = vpop.f32.mrb[54].mxu1  ;;  %v2177_v9 = vpop.f32.mrb[70].mxu0  ;;  %6622 = vpow2.f32 %v2338_v24 }
 0x4c4   :  { %v9647_v46 = vpop.eup %6610  ;;  %v2266_v62 = vsub.f32 %v11496_v54, %v2016_v21  ;;  %v2268_v35 = vsub.f32 %v11497_v47, %v2177_v9  ;;  %v2018_v52 = vpop.f32.mrb[55].mxu1  ;;  %v11500_v54 = vld [vmem:[#allocation92_spill] sm:$0xff] }
 0x4c5   :  { %v2179_v59 = vpop.f32.mrb[71].mxu0  ;;  %v9651_v25 = vpop.eup %6612  ;;  %v2267_v13 = vsub.f32 %v11498_v44, %v2018_v52  ;;  %2515 = vmatprep.mubr.f32.mxu1 %v9647_v46 }
 0x4c6   :  { %v2269_v48 = vsub.f32 %v11499_v42, %v2179_v59  ;;  %v9656_v2 = vpop.eup %6614  ;;  %v2342_v39 = vmul.f32 1.442695, %v2266_v62  ;;  %2660 = vmatprep.mubr.f32.mxu0 %v9651_v25  ;;  %2516 = vmatmul.mubr.f32.gmra.mrb[82].mxu1 %v9645_v60  ;;  %v2346_v6 = vmul.f32 1.442695, %v2268_v35  ;;  %v11501_v62 = vld [vmem:[#allocation94_spill] sm:$0xff]  ;;  %v11502_v59 = vld [vmem:[#allocation93_spill] sm:$0xff] }
 0x4c7   :  { %v2344_v37 = vmul.f32 1.442695, %v2267_v13  ;;  %2661 = vmatmul.mubr.f32.gmra.mrb[98].mxu0 %v9656_v2  ;;  %6416 = vmatpush3.bf16.xpose.msk.msra.mxu1 %vm8605_vm2, %v8669_v36 }
 0x4c8   :  { %v2348_v28 = vmul.f32 1.442695, %v2269_v48  ;;  %6464 = vmatpush3.bf16.xpose.msk.msra.mxu0 %vm8605_vm2, %v8680_v34  ;;  %6419 = vmatprep.subr.msk.bf16.mxu1 %vm8605_vm2, %v8700_v19  ;;  %6624 = vpow2.f32 %v2342_v39 }
 0x4c9   :  { %6467 = vmatprep.subr.msk.bf16.mxu0 %vm8605_vm2, %v8711_v40  ;;  %6626 = vpow2.f32 %v2344_v37  ;;  %v11503_v40 = vld [vmem:[#allocation95_spill] sm:$0xff] }
 0x4ca   :  { %v9673_v24 = vpop.eup %6616  ;;  %6628 = vpow2.f32 %v2348_v28 }
 0x4cb   :  { %v2022_v21 = vpop.f32.mrb[56].mxu1  ;;  %v2183_v36 = vpop.f32.mrb[72].mxu0  ;;  %6630 = vpow2.f32 %v2346_v6 }
 0x4cc   :  { %v9675_v9 = vpop.eup %6618  ;;  %v2270_v34 = vsub.f32 %v11500_v54, %v2022_v21  ;;  %v2272_v47 = vsub.f32 %v11501_v62, %v2183_v36  ;;  %v2024_v35 = vpop.f32.mrb[57].mxu1  ;;  %v11504_v54 = vld [vmem:[#allocation96_spill] sm:$0xff] }
 0x4cd   :  { %v2185_v19 = vpop.f32.mrb[73].mxu0  ;;  %v9679_v52 = vpop.eup %6620  ;;  %v2271_v44 = vsub.f32 %v11502_v59, %v2024_v35  ;;  %2520 = vmatprep.mubr.f32.mxu1 %v9675_v9 }
 0x4ce   :  { %v2273_v13 = vsub.f32 %v11503_v40, %v2185_v19  ;;  %v9684_v42 = vpop.eup %6622  ;;  %v2350_v48 = vmul.f32 1.442695, %v2270_v34  ;;  %2665 = vmatprep.mubr.f32.mxu0 %v9679_v52  ;;  %2521 = vmatmul.mubr.f32.gmra.mrb[84].mxu1 %v9673_v24  ;;  %v2354_v28 = vmul.f32 1.442695, %v2272_v47  ;;  %v11505_v34 = vld [vmem:[#allocation98_spill] sm:$0xff]  ;;  %v11506_v19 = vld [vmem:[#allocation97_spill] sm:$0xff] }
 0x4cf   :  { %v2352_v39 = vmul.f32 1.442695, %v2271_v44  ;;  %2666 = vmatmul.mubr.f32.gmra.mrb[100].mxu0 %v9684_v42  ;;  %6422 = vmatpush3.bf16.xpose.msk.msra.mxu1 %vm8605_vm2, %v8713_v15 }
 0x4d0   :  { %v2356_v37 = vmul.f32 1.442695, %v2273_v13  ;;  %6470 = vmatpush3.bf16.xpose.msk.msra.mxu0 %vm8605_vm2, %v8724_v33  ;;  %6425 = vmatprep.subr.msk.bf16.mxu1 %vm8605_vm2, %v8744_v22  ;;  %6632 = vpow2.f32 %v2350_v48 }
 0x4d1   :  { %6473 = vmatprep.subr.msk.bf16.mxu0 %vm8605_vm2, %v8755_v20  ;;  %6634 = vpow2.f32 %v2352_v39  ;;  %v11507_v20 = vld [vmem:[#allocation99_spill] sm:$0xff] }
 0x4d2   :  { %v9701_v6 = vpop.eup %6624  ;;  %6636 = vpow2.f32 %v2356_v37 }
 0x4d3   :  { %v2028_v21 = vpop.f32.mrb[58].mxu1  ;;  %v2189_v15 = vpop.f32.mrb[74].mxu0  ;;  %6638 = vpow2.f32 %v2354_v28 }
 0x4d4   :  { %v9703_v36 = vpop.eup %6626  ;;  %v2274_v33 = vsub.f32 %v11504_v54, %v2028_v21  ;;  %v2276_v62 = vsub.f32 %v11505_v34, %v2189_v15  ;;  %v2030_v47 = vpop.f32.mrb[59].mxu1  ;;  %v11508_v54 = vld [vmem:[#allocation100_spill] sm:$0xff] }
 0x4d5   :  { %v2191_v22 = vpop.f32.mrb[75].mxu0  ;;  %v9707_v35 = vpop.eup %6628  ;;  %v2275_v59 = vsub.f32 %v11506_v19, %v2030_v47  ;;  %2525 = vmatprep.mubr.f32.mxu1 %v9703_v36 }
 0x4d6   :  { %v2277_v44 = vsub.f32 %v11507_v20, %v2191_v22  ;;  %v9712_v40 = vpop.eup %6630  ;;  %v2358_v13 = vmul.f32 1.442695, %v2274_v33  ;;  %2670 = vmatprep.mubr.f32.mxu0 %v9707_v35  ;;  %2526 = vmatmul.mubr.f32.gmra.mrb[86].mxu1 %v9701_v6  ;;  %v2362_v37 = vmul.f32 1.442695, %v2276_v62  ;;  %v11509_v33 = vld [vmem:[#allocation102_spill] sm:$0xff]  ;;  %v11510_v22 = vld [vmem:[#allocation101_spill] sm:$0xff] }
 0x4d7   :  { %v2360_v48 = vmul.f32 1.442695, %v2275_v59  ;;  %2671 = vmatmul.mubr.f32.gmra.mrb[102].mxu0 %v9712_v40  ;;  %6428 = vmatpush3.bf16.xpose.msk.msra.mxu1 %vm8605_vm2, %v8757_v43 }
 0x4d8   :  { %v2364_v39 = vmul.f32 1.442695, %v2277_v44  ;;  %6476 = vmatpush3.bf16.xpose.msk.msra.mxu0 %vm8605_vm2, %v8768_v31  ;;  %6431 = vmatprep.subr.msk.bf16.mxu1 %vm8605_vm2, %v8788_v3  ;;  %6640 = vpow2.f32 %v2358_v13 }
 0x4d9   :  { %6479 = vmatprep.subr.msk.bf16.mxu0 %vm8605_vm2, %v8799_v61  ;;  %6642 = vpow2.f32 %v2360_v48  ;;  %v11511_v61 = vld [vmem:[#allocation103_spill] sm:$0xff] }
 0x4da   :  { %v9729_v28 = vpop.eup %6632  ;;  %6644 = vpow2.f32 %v2364_v39 }
 0x4db   :  { %v2034_v21 = vpop.f32.mrb[60].mxu1  ;;  %v2195_v43 = vpop.f32.mrb[76].mxu0  ;;  %6646 = vpow2.f32 %v2362_v37 }
 0x4dc   :  { %v9731_v15 = vpop.eup %6634  ;;  %v2278_v31 = vsub.f32 %v11508_v54, %v2034_v21  ;;  %v2280_v34 = vsub.f32 %v11509_v33, %v2195_v43  ;;  %v2036_v62 = vpop.f32.mrb[61].mxu1  ;;  %v11512_v54 = vld [vmem:[#allocation104_spill] sm:$0xff] }
 0x4dd   :  { %v2197_v3 = vpop.f32.mrb[77].mxu0  ;;  %v9735_v47 = vpop.eup %6636  ;;  %v2279_v19 = vsub.f32 %v11510_v22, %v2036_v62  ;;  %2530 = vmatprep.mubr.f32.mxu1 %v9731_v15 }
 0x4de   :  { %v2281_v59 = vsub.f32 %v11511_v61, %v2197_v3  ;;  %v9740_v20 = vpop.eup %6638  ;;  %v2366_v44 = vmul.f32 1.442695, %v2278_v31  ;;  %2675 = vmatprep.mubr.f32.mxu0 %v9735_v47  ;;  %2531 = vmatmul.mubr.f32.gmra.mrb[88].mxu1 %v9729_v28  ;;  %v2370_v39 = vmul.f32 1.442695, %v2280_v34 }
 0x4df   :  { %v2368_v13 = vmul.f32 1.442695, %v2279_v19  ;;  %2676 = vmatmul.mubr.f32.gmra.mrb[104].mxu0 %v9740_v20  ;;  %6434 = vmatpush3.bf16.xpose.msk.msra.mxu1 %vm8605_vm2, %v8801_v56 }
 0x4e0   :  { %v2372_v48 = vmul.f32 1.442695, %v2281_v59  ;;  %6482 = vmatpush3.bf16.xpose.msk.msra.mxu0 %vm8605_vm2, %v8812_v49  ;;  %6437 = vmatprep.subr.msk.bf16.mxu1 %vm8605_vm2, %v8841_v10  ;;  %6648 = vpow2.f32 %v2366_v44 }
 0x4e1   :  { %6485 = vmatprep.subr.msk.bf16.mxu0 %vm8605_vm2, %v8854_v8  ;;  %6650 = vpow2.f32 %v2368_v13  ;;  %v11513_v8 = vld [vmem:[#allocation105_spill] sm:$0xff] }
 0x4e2   :  { %v9757_v37 = vpop.eup %6640  ;;  %6652 = vpow2.f32 %v2372_v48 }
 0x4e3   :  { %v2040_v21 = vpop.f32.mrb[62].mxu1  ;;  %v2201_v56 = vpop.f32.mrb[78].mxu0  ;;  %6654 = vpow2.f32 %v2370_v39 }
 0x4e4   :  { %v9759_v43 = vpop.eup %6642  ;;  %v2282_v49 = vsub.f32 %v11512_v54, %v2040_v21  ;;  %v2284_v31 = vsub.f32 %v9226_v5, %v2201_v56  ;;  %v2042_v33 = vpop.f32.mrb[63].mxu1 }
 0x4e5   :  { %v2203_v10 = vpop.f32.mrb[79].mxu0  ;;  %v9763_v34 = vpop.eup %6644  ;;  %v2283_v62 = vsub.f32 %v9210_v45, %v2042_v33  ;;  %2535 = vmatprep.mubr.f32.mxu1 %v9759_v43 }
 0x4e6   :  { %v2285_v3 = vsub.f32 %v11513_v8, %v2203_v10  ;;  %v9768_v22 = vpop.eup %6646  ;;  %v2374_v19 = vmul.f32 1.442695, %v2282_v49  ;;  %2680 = vmatprep.mubr.f32.mxu0 %v9763_v34  ;;  %2536 = vmatmul.mubr.f32.gmra.mrb[90].mxu1 %v9757_v37  ;;  %v2378_v5 = vmul.f32 1.442695, %v2284_v31 }
 0x4e7   :  { %v2376_v61 = vmul.f32 1.442695, %v2283_v62  ;;  %2681 = vmatmul.mubr.f32.gmra.mrb[106].mxu0 %v9768_v22  ;;  %6440 = vmatpush3.bf16.xpose.msk.msra.mxu1 %vm8605_vm2, %v8856_v4 }
 0x4e8   :  { %v2380_v59 = vmul.f32 1.442695, %v2285_v3  ;;  %6488 = vmatpush3.bf16.xpose.msk.msra.mxu0 %vm8605_vm2, %v8872_v12  ;;  %6443 = vmatprep.subr.msk.bf16.mxu1 %vm8605_vm2, %v8890_v41  ;;  %6656 = vpow2.f32 %v2374_v19 }
 0x4e9   :  { %6491 = vmatprep.subr.msk.bf16.mxu0 %vm8605_vm2, %v11474_v32  ;;  %6658 = vpow2.f32 %v2376_v61 }
 0x4ea   :  { %v9785_v45 = vpop.eup %6648  ;;  %6660 = vpow2.f32 %v2380_v59 }
 0x4eb   :  { %v2046_v44 = vpop.f32.mrb[64].mxu1  ;;  %v2207_v4 = vpop.f32.mrb[80].mxu0  ;;  %6662 = vpow2.f32 %v2378_v5 }
 0x4ec   :  { %v9787_v13 = vpop.eup %6650  ;;  %v2286_v12 = vsub.f32 %v9244_v16, %v2046_v44  ;;  %v2288_v48 = vsub.f32 %v9258_v17, %v2207_v4  ;;  %v2048_v39 = vpop.f32.mrb[65].mxu1  ;;  %v11517_v44 = vld [vmem:[#allocation57_spill] sm:$0xff]  ;;  %v11518_v4 = vld [vmem:[#allocation56_spill] sm:$0xff] }
 0x4ed   :  { %v2209_v41 = vpop.f32.mrb[81].mxu0  ;;  %v9791_v21 = vpop.eup %6652  ;;  %v2287_v56 = vsub.f32 %v9250_v23, %v2048_v39  ;;  %2540 = vmatprep.mubr.f32.mxu1 %v9787_v13 }
 0x4ee   :  { %v2289_v32 = vsub.f32 %v9261_v57, %v2209_v41  ;;  %v9796_v54 = vpop.eup %6654  ;;  %v2382_v49 = vmul.f32 1.442695, %v2286_v12  ;;  %2685 = vmatprep.mubr.f32.mxu0 %v9791_v21  ;;  %2541 = vmatmul.mubr.f32.gmra.mrb[92].mxu1 %v9785_v45  ;;  %v2386_v17 = vmul.f32 1.442695, %v2288_v48  ;;  %v11519_v12 = vpack.c.bf16 %v11517_v44, %v11518_v4  ;;  %v11524_v44 = vld [vmem:[#allocation109_spill] sm:$0xff] }
 0x4ef   :  { %v2384_v16 = vmul.f32 1.442695, %v2287_v56  ;;  %2686 = vmatmul.mubr.f32.gmra.mrb[108].mxu0 %v9796_v54  ;;  %6446 = vmatpush3.bf16.xpose.msk.msra.mxu1 %vm8605_vm2, %v11475_v30 }
 0x4f0   :  { %v2388_v31 = vmul.f32 1.442695, %v2289_v32  ;;  %6494 = vmatpush3.bf16.xpose.msk.msra.mxu0 %vm8605_vm2, %v11476_v50  ;;  %6449 = vmatprep.subr.msk.bf16.mxu1 %vm8605_vm2, %v11477_v38  ;;  %6664 = vpow2.f32 %v2382_v49 }
 0x4f1   :  { %6497 = vmatprep.subr.msk.bf16.mxu0 %vm8605_vm2, %v11478_v11  ;;  %6666 = vpow2.f32 %v2384_v16  ;;  %v11520_v16 = vld [vmem:[#allocation106_spill] sm:$0xff] }
 0x4f2   :  { %v9813_v23 = vpop.eup %6656  ;;  %6668 = vpow2.f32 %v2388_v31 }
 0x4f3   :  { %v2052_v57 = vpop.f32.mrb[66].mxu1  ;;  %v2213_v30 = vpop.f32.mrb[82].mxu0  ;;  %6670 = vpow2.f32 %v2386_v17  ;;  %v11521_v17 = vld [vmem:[#allocation107_spill] sm:$0xff] }
 0x4f4   :  { %v9815_v33 = vpop.eup %6658  ;;  %v2290_v50 = vsub.f32 %v9272_v27, %v2052_v57  ;;  %v2292_v10 = vsub.f32 %v9286_v29, %v2213_v30  ;;  %v2054_v62 = vpop.f32.mrb[67].mxu1  ;;  %v11514_v29 = vld [vmem:[#allocation55_spill] sm:$0xff] }
 0x4f5   :  { %v2215_v38 = vpop.f32.mrb[83].mxu0  ;;  %v9819_v8 = vpop.eup %6660  ;;  %v2291_v3 = vsub.f32 %v9278_v58, %v2054_v62  ;;  %2545 = vmatprep.mubr.f32.mxu1 %v9815_v33 }
 0x4f6   :  { %v2293_v11 = vsub.f32 %v9289_v53, %v2215_v38  ;;  %v9824_v19 = vpop.eup %6662  ;;  %v2390_v61 = vmul.f32 1.442695, %v2290_v50  ;;  %2690 = vmatprep.mubr.f32.mxu0 %v9819_v8  ;;  %2546 = vmatmul.mubr.f32.gmra.mrb[94].mxu1 %v9813_v23  ;;  %v2394_v58 = vmul.f32 1.442695, %v2292_v10  ;;  %v11515_v53 = vld [vmem:[#allocation54_spill] sm:$0xff] }
 0x4f7   :  { %v2392_v27 = vmul.f32 1.442695, %v2291_v3  ;;  %2691 = vmatmul.mubr.f32.gmra.mrb[110].mxu0 %v9824_v19  ;;  %6452 = vmatpush3.bf16.xpose.msk.msra.mxu1 %vm8605_vm2, %v11479_v7  ;;  %v11516_v5 = vpack.c.bf16 %v11514_v29, %v11515_v53 }
 0x4f8   :  { %v2396_v59 = vmul.f32 1.442695, %v2293_v11  ;;  %6500 = vmatpush3.bf16.xpose.msk.msra.mxu0 %vm8605_vm2, %v11480_v14  ;;  %6672 = vpow2.f32 %v2390_v61  ;;  %v11522_v61 = vld [vmem:[#allocation108_spill] sm:$0xff] }
 0x4f9   :  { %5899 = vmatprep.subr.bf16.mxu1 %v11516_v5  ;;  %5963 = vmatprep.subr.bf16.mxu0 %v11519_v12  ;;  %6674 = vpow2.f32 %v2392_v27  ;;  %v11525_v12 = vld [vmem:[#allocation111_spill] sm:$0xff] }
 0x4fa   :  { %v9841_v48 = vpop.eup %6664  ;;  %6676 = vpow2.f32 %v2396_v59  ;;  %v11523_v59 = vld [vmem:[#allocation110_spill] sm:$0xff] }
 0x4fb   :  { %v2058_v39 = vpop.f32.mrb[68].mxu1  ;;  %v2219_v7 = vpop.f32.mrb[84].mxu0  ;;  %6678 = vpow2.f32 %v2394_v58 }
 0x4fc   :  { %v9843_v41 = vpop.eup %6666  ;;  %v2294_v18 = vsub.f32 %v9300_v26, %v2058_v39  ;;  %v2296_v14 = vsub.f32 %v9314_v51, %v2219_v7  ;;  %v2060_v56 = vpop.f32.mrb[69].mxu1 }
 0x4fd   :  { %v2221_v32 = vpop.f32.mrb[85].mxu0  ;;  %v9847_v49 = vpop.eup %6668  ;;  %v2295_v31 = vsub.f32 %v11520_v16, %v2060_v56  ;;  %2550 = vmatprep.mubr.f32.mxu1 %v9843_v41 }
 0x4fe   :  { %v2297_v57 = vsub.f32 %v11521_v17, %v2221_v32  ;;  %v9852_v30 = vpop.eup %6670  ;;  %v2398_v50 = vmul.f32 1.442695, %v2294_v18  ;;  %2695 = vmatprep.mubr.f32.mxu0 %v9847_v49  ;;  %2551 = vmatmul.mubr.f32.gmra.mrb[96].mxu1 %v9841_v48  ;;  %v2402_v51 = vmul.f32 1.442695, %v2296_v14 }
 0x4ff   :  { %v2400_v26 = vmul.f32 1.442695, %v2295_v31  ;;  %2696 = vmatmul.mubr.f32.gmra.mrb[112].mxu0 %v9852_v30 }
 0x500   :  { %v2404_v10 = vmul.f32 1.442695, %v2297_v57  ;;  %6680 = vpow2.f32 %v2398_v50  ;;  %v11527_v50 = vld [vmem:[#allocation112_spill] sm:$0xff] }
 0x501   :  { %6682 = vpow2.f32 %v2400_v26 }
 0x502   :  { %v9857_v62 = vpop.eup %6672  ;;  %6684 = vpow2.f32 %v2404_v10  ;;  %v11528_v10 = vld [vmem:[#allocation114_spill] sm:$0xff] }
 0x503   :  { %v2064_v38 = vpop.f32.mrb[70].mxu1  ;;  %v2225_v3 = vpop.f32.mrb[86].mxu0  ;;  %6686 = vpow2.f32 %v2402_v51 }
 0x504   :  { %v9859_v11 = vpop.eup %6674  ;;  %v2298_v27 = vsub.f32 %v11522_v61, %v2064_v38  ;;  %v2300_v58 = vsub.f32 %v11523_v59, %v2225_v3  ;;  %v2066_v29 = vpop.f32.mrb[71].mxu1 }
 0x505   :  { %v2227_v53 = vpop.f32.mrb[87].mxu0  ;;  %v9863_v5 = vpop.eup %6676  ;;  %v2299_v4 = vsub.f32 %v11524_v44, %v2066_v29  ;;  %2555 = vmatprep.mubr.f32.mxu1 %v9859_v11 }
 0x506   :  { %v2301_v39 = vsub.f32 %v11525_v12, %v2227_v53  ;;  %v9868_v7 = vpop.eup %6678  ;;  %v2406_v18 = vmul.f32 1.442695, %v2298_v27  ;;  %2700 = vmatprep.mubr.f32.mxu0 %v9863_v5  ;;  %2556 = vmatmul.mubr.f32.gmra.mrb[98].mxu1 %v9857_v62  ;;  %v2410_v32 = vmul.f32 1.442695, %v2300_v58  ;;  %v11530_v27 = vld [vmem:[#allocation113_spill] sm:$0xff]  ;;  %v11531_v58 = vld [vmem:[#allocation115_spill] sm:$0xff] }
 0x507   :  { %v2408_v14 = vmul.f32 1.442695, %v2299_v4  ;;  %2701 = vmatmul.mubr.f32.gmra.mrb[114].mxu0 %v9868_v7 }
 0x508   :  { %v2412_v56 = vmul.f32 1.442695, %v2301_v39  ;;  %6688 = vpow2.f32 %v2406_v18 }
 0x509   :  { %6690 = vpow2.f32 %v2408_v14 }
 0x50a   :  { %v9873_v16 = vpop.eup %6680  ;;  %6692 = vpow2.f32 %v2412_v56 }
 0x50b   :  { %v2070_v31 = vpop.f32.mrb[72].mxu1  ;;  %v2231_v17 = vpop.f32.mrb[88].mxu0  ;;  %6694 = vpow2.f32 %v2410_v32 }
 0x50c   :  { %v9875_v57 = vpop.eup %6682  ;;  %v2302_v26 = vsub.f32 %v11527_v50, %v2070_v31  ;;  %v2304_v51 = vsub.f32 %v11528_v10, %v2231_v17  ;;  %v2072_v38 = vpop.f32.mrb[73].mxu1  ;;  %v11533_v31 = vld [vmem:[#allocation116_spill] sm:$0xff]  ;;  %v11534_v50 = vld [vmem:[#allocation118_spill] sm:$0xff] }
 0x50d   :  { %11526 = vst [vmem:[#allocation27_spill] sm:$0xff] %v9875_v57  ;;  %v2233_v3 = vpop.f32.mrb[89].mxu0  ;;  %v9879_v61 = vpop.eup %6684  ;;  %v2303_v59 = vsub.f32 %v11530_v27, %v2072_v38  ;;  %2560 = vmatprep.mubr.f32.mxu1 %v9875_v57  ;;  %v11536_v27 = vld [vmem:[#allocation117_spill] sm:$0xff] }
 0x50e   :  { %11529 = vst [vmem:[#allocation75_spill] sm:$0xff] %v9879_v61  ;;  %v2305_v29 = vsub.f32 %v11531_v58, %v2233_v3  ;;  %v9884_v53 = vpop.eup %6686  ;;  %v2414_v44 = vmul.f32 1.442695, %v2302_v26  ;;  %2705 = vmatprep.mubr.f32.mxu0 %v9879_v61  ;;  %2561 = vmatmul.mubr.f32.gmra.mrb[100].mxu1 %v9873_v16  ;;  %v2418_v39 = vmul.f32 1.442695, %v2304_v51  ;;  %v11581_v57 = vld [vmem:[#allocation13_spill] sm:$0xff] }
 0x50f   :  { %v2416_v4 = vmul.f32 1.442695, %v2303_v59  ;;  %2706 = vmatmul.mubr.f32.gmra.mrb[116].mxu0 %v9884_v53  ;;  %v11537_v59 = vld [vmem:[#allocation119_spill] sm:$0xff] }
 0x510   :  { %v2420_v12 = vmul.f32 1.442695, %v2305_v29  ;;  %6696 = vpow2.f32 %v2414_v44 }
 0x511   :  { %6698 = vpow2.f32 %v2416_v4 }
 0x512   :  { %v9889_v18 = vpop.eup %6688  ;;  %6700 = vpow2.f32 %v2420_v12 }
 0x513   :  { %v2076_v14 = vpop.f32.mrb[74].mxu1  ;;  %v2237_v56 = vpop.f32.mrb[90].mxu0  ;;  %6702 = vpow2.f32 %v2418_v39 }
 0x514   :  { %v9891_v32 = vpop.eup %6690  ;;  %v2306_v17 = vsub.f32 %v11533_v31, %v2076_v14  ;;  %v2308_v26 = vsub.f32 %v11534_v50, %v2237_v56  ;;  %v2078_v10 = vpop.f32.mrb[75].mxu1 }
 0x515   :  { %11532 = vst [vmem:[#allocation76_spill] sm:$0xff] %v9891_v32  ;;  %v2239_v38 = vpop.f32.mrb[91].mxu0  ;;  %v9895_v3 = vpop.eup %6692  ;;  %v2307_v51 = vsub.f32 %v11536_v27, %v2078_v10  ;;  %2565 = vmatprep.mubr.f32.mxu1 %v9891_v32 }
 0x516   :  { %11535 = vst [vmem:[#allocation78_spill] sm:$0xff] %v9895_v3  ;;  %v2309_v58 = vsub.f32 %v11537_v59, %v2239_v38  ;;  %v9900_v29 = vpop.eup %6694  ;;  %v2422_v44 = vmul.f32 1.442695, %v2306_v17  ;;  %2710 = vmatprep.mubr.f32.mxu0 %v9895_v3  ;;  %2566 = vmatmul.mubr.f32.gmra.mrb[102].mxu1 %v9889_v18  ;;  %v2426_v39 = vmul.f32 1.442695, %v2308_v26  ;;  %v11541_v17 = vld [vmem:[#allocation120_spill] sm:$0xff] }
 0x517   :  { %11538 = vst [vmem:[#allocation82_spill] sm:$0xff] %v9900_v29  ;;  %v2424_v4 = vmul.f32 1.442695, %v2307_v51  ;;  %2711 = vmatmul.mubr.f32.gmra.mrb[118].mxu0 %v9900_v29  ;;  %v11542_v38 = vld [vmem:[#allocation122_spill] sm:$0xff]  ;;  %v11544_v3 = vld [vmem:[#allocation121_spill] sm:$0xff] }
 0x518   :  { %v2428_v12 = vmul.f32 1.442695, %v2309_v58  ;;  %6704 = vpow2.f32 %v2422_v44  ;;  %v11545_v44 = vld [vmem:[#allocation123_spill] sm:$0xff]  ;;  %v11582_v29 = vld [vmem:[#allocation9_spill] sm:$0xff] }
 0x519   :  { %6706 = vpow2.f32 %v2424_v4 }
 0x51a   :  { %v9905_v14 = vpop.eup %6696  ;;  %6708 = vpow2.f32 %v2428_v12 }
 0x51b   :  { %11539 = vst [vmem:[#allocation84_spill] sm:$0xff] %v9905_v14  ;;  %v2082_v56 = vpop.f32.mrb[76].mxu1  ;;  %v2243_v31 = vpop.f32.mrb[92].mxu0  ;;  %6710 = vpow2.f32 %v2426_v39 }
 0x51c   :  { %v9907_v50 = vpop.eup %6698  ;;  %v2310_v10 = vsub.f32 %v11541_v17, %v2082_v56  ;;  %v2312_v27 = vsub.f32 %v11542_v38, %v2243_v31  ;;  %v2084_v59 = vpop.f32.mrb[77].mxu1 }
 0x51d   :  { %11540 = vst [vmem:[#allocation85_spill] sm:$0xff] %v9907_v50  ;;  %v2245_v51 = vpop.f32.mrb[93].mxu0  ;;  %v9911_v58 = vpop.eup %6700  ;;  %v2311_v26 = vsub.f32 %v11544_v3, %v2084_v59  ;;  %2570 = vmatprep.mubr.f32.mxu1 %v9907_v50 }
 0x51e   :  { %11543 = vst [vmem:[#allocation7_spill] sm:$0xff] %v9911_v58  ;;  %v2313_v4 = vsub.f32 %v11545_v44, %v2245_v51  ;;  %v9916_v12 = vpop.eup %6702  ;;  %v2430_v61 = vmul.f32 1.442695, %v2310_v10  ;;  %2715 = vmatprep.mubr.f32.mxu0 %v9911_v58  ;;  %2571 = vmatmul.mubr.f32.gmra.mrb[104].mxu1 %v9905_v14  ;;  %v2434_v31 = vmul.f32 1.442695, %v2312_v27  ;;  %v11549_v10 = vld [vmem:[#allocation124_spill] sm:$0xff] }
 0x51f   :  { %11546 = vst [vmem:[#allocation32_spill] sm:$0xff] %v9916_v12  ;;  %v2432_v39 = vmul.f32 1.442695, %v2311_v26  ;;  %2716 = vmatmul.mubr.f32.gmra.mrb[120].mxu0 %v9916_v12  ;;  %v11550_v44 = vld [vmem:[#allocation126_spill] sm:$0xff]  ;;  %v11552_v12 = vld [vmem:[#allocation125_spill] sm:$0xff] }
 0x520   :  { %v2436_v56 = vmul.f32 1.442695, %v2313_v4  ;;  %6712 = vpow2.f32 %v2430_v61  ;;  %v11553_v61 = vld [vmem:[#allocation127_spill] sm:$0xff] }
 0x521   :  { %6714 = vpow2.f32 %v2432_v39 }
 0x522   :  { %v9921_v17 = vpop.eup %6704  ;;  %6716 = vpow2.f32 %v2436_v56 }
 0x523   :  { %11547 = vst [vmem:[#allocation5_spill] sm:$0xff] %v9921_v17  ;;  %v2088_v3 = vpop.f32.mrb[78].mxu1  ;;  %v2249_v38 = vpop.f32.mrb[94].mxu0  ;;  %6718 = vpow2.f32 %v2434_v31 }
 0x524   :  { %v9923_v59 = vpop.eup %6706  ;;  %v2314_v51 = vsub.f32 %v11549_v10, %v2088_v3  ;;  %v2316_v58 = vsub.f32 %v11550_v44, %v2249_v38  ;;  %v2090_v50 = vpop.f32.mrb[79].mxu1 }
 0x525   :  { %11548 = vst [vmem:[#allocation17_spill] sm:$0xff] %v9923_v59  ;;  %v2251_v26 = vpop.f32.mrb[95].mxu0  ;;  %v9927_v4 = vpop.eup %6708  ;;  %v2315_v27 = vsub.f32 %v11552_v12, %v2090_v50  ;;  %2575 = vmatprep.mubr.f32.mxu1 %v9923_v59 }
 0x526   :  { %11551 = vst [vmem:[#allocation24_spill] sm:$0xff] %v9927_v4  ;;  %v2317_v39 = vsub.f32 %v11553_v61, %v2251_v26  ;;  %v9932_v56 = vpop.eup %6710  ;;  %v2438_v14 = vmul.f32 1.442695, %v2314_v51  ;;  %2720 = vmatprep.mubr.f32.mxu0 %v9927_v4  ;;  %2576 = vmatmul.mubr.f32.gmra.mrb[106].mxu1 %v9921_v17  ;;  %v2442_v38 = vmul.f32 1.442695, %v2316_v58  ;;  %v11573_v4 = vld [vmem:[#allocation2_spill] sm:$0xff] }
 0x527   :  { %11554 = vst [vmem:[#allocation14_spill] sm:$0xff] %v9932_v56  ;;  %v2440_v31 = vmul.f32 1.442695, %v2315_v27  ;;  %2721 = vmatmul.mubr.f32.gmra.mrb[122].mxu0 %v9932_v56 }
 0x528   :  { %v2444_v3 = vmul.f32 1.442695, %v2317_v39  ;;  %6720 = vpow2.f32 %v2438_v14 }
 0x529   :  { %6722 = vpow2.f32 %v2440_v31 }
 0x52a   :  { %v9937_v10 = vpop.eup %6712  ;;  %6724 = vpow2.f32 %v2444_v3 }
 0x52b   :  { %11555 = vst [vmem:[#allocation37_spill] sm:$0xff] %v9937_v10  ;;  %v9939_v50 = vpop.eup %6714  ;;  %6726 = vpow2.f32 %v2442_v38 }
 0x52c   :  { %11556 = vst [vmem:[#allocation36_spill] sm:$0xff] %v9939_v50  ;;  %v9941_v12 = vpop.eup %6716  ;;  %2580 = vmatprep.mubr.f32.mxu1 %v9939_v50  ;;  %v11564_v50 = vld [vmem:[#allocation40_spill] sm:$0xff] }
 0x52d   :  { %11557 = vst [vmem:[#allocation79_spill] sm:$0xff] %v9941_v12  ;;  %v9944_v51 = vpop.eup %6718  ;;  %2725 = vmatprep.mubr.f32.mxu0 %v9941_v12  ;;  %2581 = vmatmul.mubr.f32.gmra.mrb[108].mxu1 %v9937_v10 }
 0x52e   :  { %11558 = vst [vmem:[#allocation77_spill] sm:$0xff] %v9944_v51  ;;  %2726 = vmatmul.mubr.f32.gmra.mrb[124].mxu0 %v9944_v51 }
 0x532   :  { %v9949_v14 = vpop.eup %6720 }
 0x533   :  { %11559 = vst [vmem:[#allocation80_spill] sm:$0xff] %v9949_v14  ;;  %v9951_v58 = vpop.eup %6722 }
 0x534   :  { %11560 = vst [vmem:[#allocation81_spill] sm:$0xff] %v9951_v58  ;;  %v9953_v44 = vpop.eup %6724  ;;  %2585 = vmatprep.mubr.f32.mxu1 %v9951_v58  ;;  %v11563_v58 = vld [vmem:[#allocation44_spill] sm:$0xff] }
 0x535   :  { %11561 = vst [vmem:[#allocation86_spill] sm:$0xff] %v9953_v44  ;;  %v9956_v26 = vpop.eup %6726  ;;  %2730 = vmatprep.mubr.f32.mxu0 %v9953_v44  ;;  %2586 = vmatmul.mubr.f32.gmra.mrb[110].mxu1 %v9949_v14  ;;  %v11565_v51 = vpack.c.bf16 %v11563_v58, %v11564_v50  ;;  %v11567_v14 = vld [vmem:[#allocation41_spill] sm:$0xff]  ;;  %v11575_v50 = vld [vmem:[#allocation42_spill] sm:$0xff] }
 0x536   :  { %11562 = vst [vmem:[#allocation83_spill] sm:$0xff] %v9956_v26  ;;  %2731 = vmatmul.mubr.f32.gmra.mrb[126].mxu0 %v9956_v26  ;;  %v11566_v26 = vld [vmem:[#allocation45_spill] sm:$0xff] }
 0x537   :  { %v11568_v10 = vpack.c.bf16 %v11566_v26, %v11567_v14  ;;  %v11578_v14 = vld [vmem:[#allocation43_spill] sm:$0xff] }
 0x591   :  { %v5643_v27 = vpop.f32.mrb[80].mxu1 }
 0x592   :  { %v5723_v61 = vpop.f32.mrb[96].mxu0  ;;  %v5644_v39 = vpop.f32.mrb[81].mxu1 }
 0x593   :  { %v5645_v31 = vadd.f32 %v5644_v39, %v5643_v27  ;;  %v5724_v3 = vpop.f32.mrb[97].mxu0  ;;  %v11569_v39 = vld [vmem:[#allocation3_spill] sm:$0xff] }
 0x594   :  { %v5725_v38 = vadd.f32 %v5724_v3, %v5723_v61 }
 0x596   :  { %v2658_v12 = vadd.f32 %v5725_v38, %v5645_v31  ;;  %v11570_v31 = vld [vmem:[#allocation66_spill] sm:$0xff]  ;;  %v11572_v38 = vld [vmem:[#allocation4_spill] sm:$0xff] }
 0x597   :  { %v11571_v3 = vpack.c.bf16 %v11569_v39, %v11570_v31  ;;  %v11574_v59 = vpack.c.bf16 %v11572_v38, %v11573_v4  ;;  %v11583_v39 = vpack.c.bf16 %v11581_v57, %v11582_v29  ;;  %v11584_v31 = vld [vmem:[#allocation15_spill] sm:$0xff]  ;;  %v11591_v57 = vld [vmem:[#allocation49_spill] sm:$0xff] }
 0x598   :  { %5803 = vmatprep.mubr.msk.f32.mxu1 %vm1691_vm1, %v2658_v12  ;;  %5867 = vmatprep.mubr.msk.f32.mxu0 %vm1691_vm1, %v2658_v12 }
 0x599   :  { %5804 = vmatmul.mubr.msk.f32.vlgmr.msra.gmra.mrb[112].mxu1 %vm1691_vm1, %v2658_v12  ;;  %5868 = vmatmul.mubr.msk.f32.vlgmr.msra.gmra.mrb[128].mxu0 %vm1691_vm1, %v2658_v12  ;;  %v5646_v44 = vpop.f32.mrb[82].mxu1 }
 0x59a   :  { %5900 = vmatpush3.bf16.msra.mxu1 %v11565_v51  ;;  %5964 = vmatpush3.bf16.msra.mxu0 %v11568_v10  ;;  %v5726_v27 = vpop.f32.mrb[98].mxu0  ;;  %v5647_v61 = vpop.f32.mrb[83].mxu1  ;;  %v11576_v51 = vld [vmem:[#allocation38_spill] sm:$0xff]  ;;  %v11579_v10 = vld [vmem:[#allocation39_spill] sm:$0xff] }
 0x59b   :  { %5901 = vmatprep.subr.bf16.mxu1 %v11571_v3  ;;  %5965 = vmatprep.subr.bf16.mxu0 %v11574_v59  ;;  %v5648_v12 = vadd.f32 %v5647_v61, %v5646_v44  ;;  %v5727_v56 = vpop.f32.mrb[99].mxu0  ;;  %v11577_v58 = vpack.c.bf16 %v11575_v50, %v11576_v51  ;;  %v11580_v26 = vpack.c.bf16 %v11578_v14, %v11579_v10  ;;  %v11585_v3 = vld [vmem:[#allocation10_spill] sm:$0xff]  ;;  %v11587_v59 = vld [vmem:[#allocation52_spill] sm:$0xff] }
 0x59c   :  { %v5728_v17 = vadd.f32 %v5727_v56, %v5726_v27  ;;  %v11586_v4 = vpack.c.bf16 %v11584_v31, %v11585_v3  ;;  %v11588_v56 = vld [vmem:[#allocation48_spill] sm:$0xff]  ;;  %v11590_v27 = vld [vmem:[#allocation53_spill] sm:$0xff]  ;;  %v11594_v50 = vld [vmem:[#allocation6_spill] sm:$0xff] }
 0x59d   :  { %v11589_v44 = vpack.c.bf16 %v11587_v59, %v11588_v56  ;;  %v11592_v29 = vpack.c.bf16 %v11590_v27, %v11591_v57  ;;  %v11597_v14 = vld [vmem:[#allocation8_spill] sm:$0xff]  ;;  %v11599_v3 = vld [vmem:[#allocation50_spill] sm:$0xff]  ;;  %v11602_v56 = vld [vmem:[#allocation51_spill] sm:$0xff] }
 0x59e   :  { %v2663_v32 = vadd.f32 %v5728_v17, %v5648_v12  ;;  %5902 = vmatpush3.bf16.msra.mxu1 %v11577_v58  ;;  %5966 = vmatpush3.bf16.msra.mxu0 %v11580_v26  ;;  %v11593_v12 = vld [vmem:[#allocation11_spill] sm:$0xff]  ;;  %v11596_v58 = vld [vmem:[#allocation12_spill] sm:$0xff] }
 0x59f   :  { %5903 = vmatprep.subr.bf16.mxu1 %v11583_v39  ;;  %5967 = vmatprep.subr.bf16.mxu0 %v11586_v4  ;;  %v11595_v51 = vpack.c.bf16 %v11593_v12, %v11594_v50  ;;  %v11598_v10 = vpack.c.bf16 %v11596_v58, %v11597_v14  ;;  %v11600_v4 = vld [vmem:[#allocation46_spill] sm:$0xff]  ;;  %v11605_v57 = vld [vmem:[#allocation23_spill] sm:$0xff]  ;;  %v11608_v50 = vld [vmem:[#allocation25_spill] sm:$0xff] }
 0x5a0   :  { %5805 = vmatprep.mubr.msk.f32.mxu1 %vm1691_vm1, %v2663_v32  ;;  %5869 = vmatprep.mubr.msk.f32.mxu0 %vm1691_vm1, %v2663_v32  ;;  %v11601_v59 = vpack.c.bf16 %v11599_v3, %v11600_v4  ;;  %v11617_v4 = vld [vmem:[#allocation21_spill] sm:$0xff] }
 0x5a1   :  { %5806 = vmatmul.mubr.msk.f32.gmra.mrb[114].mxu1 %vm1691_vm1, %v2663_v32  ;;  %5870 = vmatmul.mubr.msk.f32.gmra.mrb[130].mxu0 %vm1691_vm1, %v2663_v32  ;;  %v5649_v17 = vpop.f32.mrb[84].mxu1 }
 0x5a2   :  { %5904 = vmatpush3.bf16.msra.mxu1 %v11589_v44  ;;  %5968 = vmatpush3.bf16.msra.mxu0 %v11592_v29  ;;  %v5729_v61 = vpop.f32.mrb[100].mxu0  ;;  %v5650_v38 = vpop.f32.mrb[85].mxu1  ;;  %v11603_v44 = vld [vmem:[#allocation47_spill] sm:$0xff] }
 0x5a3   :  { %5905 = vmatprep.subr.bf16.mxu1 %v11595_v51  ;;  %5969 = vmatprep.subr.bf16.mxu0 %v11598_v10  ;;  %v5651_v32 = vadd.f32 %v5650_v38, %v5649_v17  ;;  %v5730_v26 = vpop.f32.mrb[101].mxu0  ;;  %v11604_v27 = vpack.c.bf16 %v11602_v56, %v11603_v44  ;;  %v11606_v29 = vld [vmem:[#allocation19_spill] sm:$0xff]  ;;  %v11609_v51 = vld [vmem:[#allocation20_spill] sm:$0xff]  ;;  %v11614_v10 = vld [vmem:[#allocation65_spill] sm:$0xff] }
 0x5a4   :  { %v5731_v39 = vadd.f32 %v5730_v26, %v5729_v61  ;;  %v11607_v12 = vpack.c.bf16 %v11605_v57, %v11606_v29  ;;  %v11610_v58 = vpack.c.bf16 %v11608_v50, %v11609_v51  ;;  %v11611_v61 = vld [vmem:[#allocation64_spill] sm:$0xff]  ;;  %v11620_v44 = vld [vmem:[#allocation18_spill] sm:$0xff] }
 0x5a5   :  { %v11612_v38 = vld [vmem:[#allocation60_spill] sm:$0xff]  ;;  %v11623_v51 = vld [vmem:[#allocation62_spill] sm:$0xff] }
 0x5a6   :  { %v2668_v31 = vadd.f32 %v5731_v39, %v5651_v32  ;;  %5906 = vmatpush3.bf16.msra.mxu1 %v11601_v59  ;;  %5970 = vmatpush3.bf16.msra.mxu0 %v11604_v27  ;;  %v11613_v14 = vpack.c.bf16 %v11611_v61, %v11612_v38  ;;  %v11615_v32 = vld [vmem:[#allocation61_spill] sm:$0xff]  ;;  %v11618_v59 = vld [vmem:[#allocation16_spill] sm:$0xff]  ;;  %v11626_v38 = vld [vmem:[#allocation63_spill] sm:$0xff] }
 0x5a7   :  { %5907 = vmatprep.subr.bf16.mxu1 %v11607_v12  ;;  %5971 = vmatprep.subr.bf16.mxu0 %v11610_v58  ;;  %v11616_v26 = vpack.c.bf16 %v11614_v10, %v11615_v32  ;;  %v11619_v56 = vpack.c.bf16 %v11617_v4, %v11618_v59  ;;  %v11621_v27 = vld [vmem:[#allocation33_spill] sm:$0xff]  ;;  %v11624_v58 = vld [vmem:[#allocation58_spill] sm:$0xff] }
 0x5a8   :  { %5807 = vmatprep.mubr.msk.f32.mxu1 %vm1691_vm1, %v2668_v31  ;;  %5871 = vmatprep.mubr.msk.f32.mxu0 %vm1691_vm1, %v2668_v31  ;;  %v11622_v57 = vpack.c.bf16 %v11620_v44, %v11621_v27  ;;  %v11625_v61 = vpack.c.bf16 %v11623_v51, %v11624_v58  ;;  %v11629_v32 = vld [vmem:[#allocation29_spill] sm:$0xff]  ;;  %v11632_v59 = vld [vmem:[#allocation30_spill] sm:$0xff] }
 0x5a9   :  { %5808 = vmatmul.mubr.msk.f32.gmra.mrb[116].mxu1 %vm1691_vm1, %v2668_v31  ;;  %5872 = vmatmul.mubr.msk.f32.gmra.mrb[132].mxu0 %vm1691_vm1, %v2668_v31  ;;  %v5652_v17 = vpop.f32.mrb[86].mxu1  ;;  %v11641_v58 = vld [vmem:[#allocation26_spill] sm:$0xff] }
 0x5aa   :  { %5908 = vmatpush3.bf16.msra.mxu1 %v11613_v14  ;;  %5972 = vmatpush3.bf16.msra.mxu0 %v11616_v26  ;;  %v5732_v39 = vpop.f32.mrb[102].mxu0  ;;  %v5653_v3 = vpop.f32.mrb[87].mxu1  ;;  %v11627_v14 = vld [vmem:[#allocation59_spill] sm:$0xff]  ;;  %v11630_v26 = vld [vmem:[#allocation22_spill] sm:$0xff] }
 0x5ab   :  { %5909 = vmatprep.subr.bf16.mxu1 %v11619_v56  ;;  %5973 = vmatprep.subr.bf16.mxu0 %v11622_v57  ;;  %v5654_v31 = vadd.f32 %v5653_v3, %v5652_v17  ;;  %v5733_v29 = vpop.f32.mrb[103].mxu0  ;;  %v11628_v10 = vpack.c.bf16 %v11626_v38, %v11627_v14  ;;  %v11631_v4 = vpack.c.bf16 %v11629_v32, %v11630_v26  ;;  %v11633_v56 = vld [vmem:[#allocation34_spill] sm:$0xff]  ;;  %v11636_v3 = vld [vmem:[#allocation69_spill] sm:$0xff]  ;;  %v11644_v14 = vld [vmem:[#allocation28_spill] sm:$0xff] }
 0x5ac   :  { %v5734_v12 = vadd.f32 %v5733_v29, %v5732_v39  ;;  %v11634_v44 = vpack.c.bf16 %v11632_v59, %v11633_v56  ;;  %v11635_v39 = vld [vmem:[#allocation73_spill] sm:$0xff]  ;;  %v11638_v57 = vld [vmem:[#allocation74_spill] sm:$0xff]  ;;  %v11647_v56 = vld [vmem:[#allocation71_spill] sm:$0xff] }
 0x5ad   :  { %v11637_v27 = vpack.c.bf16 %v11635_v39, %v11636_v3  ;;  %v11650_v3 = vld [vmem:[#allocation72_spill] sm:$0xff] }
 0x5ae   :  { %v2673_v50 = vadd.f32 %v5734_v12, %v5654_v31  ;;  %5910 = vmatpush3.bf16.msra.mxu1 %v11625_v61  ;;  %5974 = vmatpush3.bf16.msra.mxu0 %v11628_v10  ;;  %v11639_v31 = vld [vmem:[#allocation70_spill] sm:$0xff]  ;;  %v11642_v61 = vld [vmem:[#allocation35_spill] sm:$0xff] }
 0x5af   :  { %5911 = vmatprep.subr.bf16.mxu1 %v11631_v4  ;;  %5975 = vmatprep.subr.bf16.mxu0 %v11634_v44  ;;  %v11640_v29 = vpack.c.bf16 %v11638_v57, %v11639_v31  ;;  %v11643_v38 = vpack.c.bf16 %v11641_v58, %v11642_v61  ;;  %v11645_v10 = vld [vmem:[#allocation31_spill] sm:$0xff] }
 0x5b0   :  { %5809 = vmatprep.mubr.msk.f32.mxu1 %vm1691_vm1, %v2673_v50  ;;  %5873 = vmatprep.mubr.msk.f32.mxu0 %vm1691_vm1, %v2673_v50  ;;  %v11646_v32 = vpack.c.bf16 %v11644_v14, %v11645_v10  ;;  %v11648_v44 = vld [vmem:[#allocation67_spill] sm:$0xff] }
 0x5b1   :  { %5810 = vmatmul.mubr.msk.f32.gmra.mrb[118].mxu1 %vm1691_vm1, %v2673_v50  ;;  %5874 = vmatmul.mubr.msk.f32.gmra.mrb[134].mxu0 %vm1691_vm1, %v2673_v50  ;;  %v5655_v17 = vpop.f32.mrb[88].mxu1  ;;  %v11649_v39 = vpack.c.bf16 %v11647_v56, %v11648_v44 }
 0x5b2   :  { %5912 = vmatpush3.bf16.msra.mxu1 %v11637_v27  ;;  %5976 = vmatpush3.bf16.msra.mxu0 %v11640_v29  ;;  %v5735_v12 = vpop.f32.mrb[104].mxu0  ;;  %v5656_v51 = vpop.f32.mrb[89].mxu1  ;;  %v11651_v27 = vld [vmem:[#allocation68_spill] sm:$0xff] }
 0x5b3   :  { %5913 = vmatprep.subr.bf16.mxu1 %v11643_v38  ;;  %5977 = vmatprep.subr.bf16.mxu0 %v11646_v32  ;;  %v5657_v50 = vadd.f32 %v5656_v51, %v5655_v17  ;;  %v5736_v26 = vpop.f32.mrb[105].mxu0  ;;  %v11652_v57 = vpack.c.bf16 %v11650_v3, %v11651_v27 }
 0x5b4   :  { %v5737_v4 = vadd.f32 %v5736_v26, %v5735_v12 }
 0x5b6   :  { %v2678_v59 = vadd.f32 %v5737_v4, %v5657_v50  ;;  %5914 = vmatpush3.bf16.msra.mxu1 %v11649_v39  ;;  %5978 = vmatpush3.bf16.msra.mxu0 %v11652_v57 }
 0x5b8   :  { %5811 = vmatprep.mubr.msk.f32.mxu1 %vm1691_vm1, %v2678_v59  ;;  %5875 = vmatprep.mubr.msk.f32.mxu0 %vm1691_vm1, %v2678_v59 }
 0x5b9   :  { %5812 = vmatmul.mubr.msk.f32.gmra.mrb[120].mxu1 %vm1691_vm1, %v2678_v59  ;;  %5876 = vmatmul.mubr.msk.f32.gmra.mrb[136].mxu0 %vm1691_vm1, %v2678_v59  ;;  %v5658_v17 = vpop.f32.mrb[90].mxu1 }
 0x5ba   :  { %v5738_v31 = vpop.f32.mrb[106].mxu0  ;;  %v5659_v29 = vpop.f32.mrb[91].mxu1 }
 0x5bb   :  { %v5660_v12 = vadd.f32 %v5659_v29, %v5658_v17  ;;  %v5739_v51 = vpop.f32.mrb[107].mxu0 }
 0x5bc   :  { %v5740_v58 = vadd.f32 %v5739_v51, %v5738_v31 }
 0x5be   :  { %v2683_v61 = vadd.f32 %v5740_v58, %v5660_v12 }
 0x5c0   :  { %5813 = vmatprep.mubr.msk.f32.mxu1 %vm1691_vm1, %v2683_v61  ;;  %5877 = vmatprep.mubr.msk.f32.mxu0 %vm1691_vm1, %v2683_v61 }
 0x5c1   :  { %5814 = vmatmul.mubr.msk.f32.gmra.mrb[122].mxu1 %vm1691_vm1, %v2683_v61  ;;  %5878 = vmatmul.mubr.msk.f32.gmra.mrb[138].mxu0 %vm1691_vm1, %v2683_v61  ;;  %v5661_v38 = vpop.f32.mrb[92].mxu1 }
 0x5c2   :  { %v5741_v14 = vpop.f32.mrb[108].mxu0  ;;  %v5662_v10 = vpop.f32.mrb[93].mxu1 }
 0x5c3   :  { %v5663_v32 = vadd.f32 %v5662_v10, %v5661_v38  ;;  %v5742_v50 = vpop.f32.mrb[109].mxu0 }
 0x5c4   :  { %v5743_v26 = vadd.f32 %v5742_v50, %v5741_v14 }
 0x5c6   :  { %v2688_v4 = vadd.f32 %v5743_v26, %v5663_v32 }
 0x5c8   :  { %5815 = vmatprep.mubr.msk.f32.mxu1 %vm1691_vm1, %v2688_v4  ;;  %5879 = vmatprep.mubr.msk.f32.mxu0 %vm1691_vm1, %v2688_v4 }
 0x5c9   :  { %5816 = vmatmul.mubr.msk.f32.gmra.mrb[124].mxu1 %vm1691_vm1, %v2688_v4  ;;  %5880 = vmatmul.mubr.msk.f32.gmra.mrb[140].mxu0 %vm1691_vm1, %v2688_v4  ;;  %v5664_v59 = vpop.f32.mrb[94].mxu1 }
 0x5ca   :  { %v5744_v56 = vpop.f32.mrb[110].mxu0  ;;  %v5665_v44 = vpop.f32.mrb[95].mxu1 }
 0x5cb   :  { %v5666_v39 = vadd.f32 %v5665_v44, %v5664_v59  ;;  %v5745_v3 = vpop.f32.mrb[111].mxu0 }
 0x5cc   :  { %v5746_v27 = vadd.f32 %v5745_v3, %v5744_v56 }
 0x5ce   :  { %v2693_v57 = vadd.f32 %v5746_v27, %v5666_v39 }
 0x5d0   :  { %5817 = vmatprep.mubr.msk.f32.mxu1 %vm1691_vm1, %v2693_v57  ;;  %5881 = vmatprep.mubr.msk.f32.mxu0 %vm1691_vm1, %v2693_v57 }
 0x5d1   :  { %5818 = vmatmul.mubr.msk.f32.gmra.mrb[126].mxu1 %vm1691_vm1, %v2693_v57  ;;  %5882 = vmatmul.mubr.msk.f32.gmra.mrb[142].mxu0 %vm1691_vm1, %v2693_v57  ;;  %v5667_v17 = vpop.f32.mrb[96].mxu1 }
 0x5d2   :  { %v5747_v31 = vpop.f32.mrb[112].mxu0  ;;  %v5668_v29 = vpop.f32.mrb[97].mxu1 }
 0x5d3   :  { %v5669_v12 = vadd.f32 %v5668_v29, %v5667_v17  ;;  %v5748_v51 = vpop.f32.mrb[113].mxu0 }
 0x5d4   :  { %v5749_v58 = vadd.f32 %v5748_v51, %v5747_v31 }
 0x5d6   :  { %v2698_v61 = vadd.f32 %v5749_v58, %v5669_v12 }
 0x5d8   :  { %5819 = vmatprep.mubr.msk.f32.mxu1 %vm1691_vm1, %v2698_v61  ;;  %5883 = vmatprep.mubr.msk.f32.mxu0 %vm1691_vm1, %v2698_v61 }
 0x5d9   :  { %5820 = vmatmul.mubr.msk.f32.gmra.mrb[128].mxu1 %vm1691_vm1, %v2698_v61  ;;  %5884 = vmatmul.mubr.msk.f32.gmra.mrb[144].mxu0 %vm1691_vm1, %v2698_v61  ;;  %v5670_v38 = vpop.f32.mrb[98].mxu1 }
 0x5da   :  { %v5750_v14 = vpop.f32.mrb[114].mxu0  ;;  %v5671_v10 = vpop.f32.mrb[99].mxu1 }
 0x5db   :  { %v5672_v32 = vadd.f32 %v5671_v10, %v5670_v38  ;;  %v5751_v50 = vpop.f32.mrb[115].mxu0 }
 0x5dc   :  { %v5752_v26 = vadd.f32 %v5751_v50, %v5750_v14 }
 0x5de   :  { %v2703_v4 = vadd.f32 %v5752_v26, %v5672_v32 }
 0x5e0   :  { %5821 = vmatprep.mubr.msk.f32.mxu1 %vm1691_vm1, %v2703_v4  ;;  %5885 = vmatprep.mubr.msk.f32.mxu0 %vm1691_vm1, %v2703_v4 }
 0x5e1   :  { %5822 = vmatmul.mubr.msk.f32.gmra.mrb[130].mxu1 %vm1691_vm1, %v2703_v4  ;;  %5886 = vmatmul.mubr.msk.f32.gmra.mrb[146].mxu0 %vm1691_vm1, %v2703_v4  ;;  %v5673_v59 = vpop.f32.mrb[100].mxu1 }
 0x5e2   :  { %v5753_v56 = vpop.f32.mrb[116].mxu0  ;;  %v5674_v44 = vpop.f32.mrb[101].mxu1 }
 0x5e3   :  { %v5675_v39 = vadd.f32 %v5674_v44, %v5673_v59  ;;  %v5754_v3 = vpop.f32.mrb[117].mxu0 }
 0x5e4   :  { %v5755_v27 = vadd.f32 %v5754_v3, %v5753_v56 }
 0x5e6   :  { %v2708_v57 = vadd.f32 %v5755_v27, %v5675_v39 }
 0x5e8   :  { %5823 = vmatprep.mubr.msk.f32.mxu1 %vm1691_vm1, %v2708_v57  ;;  %5887 = vmatprep.mubr.msk.f32.mxu0 %vm1691_vm1, %v2708_v57 }
 0x5e9   :  { %5824 = vmatmul.mubr.msk.f32.gmra.mrb[132].mxu1 %vm1691_vm1, %v2708_v57  ;;  %5888 = vmatmul.mubr.msk.f32.gmra.mrb[148].mxu0 %vm1691_vm1, %v2708_v57  ;;  %v5676_v17 = vpop.f32.mrb[102].mxu1 }
 0x5ea   :  { %v5756_v31 = vpop.f32.mrb[118].mxu0  ;;  %v5677_v29 = vpop.f32.mrb[103].mxu1 }
 0x5eb   :  { %v5678_v12 = vadd.f32 %v5677_v29, %v5676_v17  ;;  %v5757_v51 = vpop.f32.mrb[119].mxu0 }
 0x5ec   :  { %v5758_v58 = vadd.f32 %v5757_v51, %v5756_v31 }
 0x5ee   :  { %v2713_v61 = vadd.f32 %v5758_v58, %v5678_v12 }
 0x5f0   :  { %5825 = vmatprep.mubr.msk.f32.mxu1 %vm1691_vm1, %v2713_v61  ;;  %5889 = vmatprep.mubr.msk.f32.mxu0 %vm1691_vm1, %v2713_v61 }
 0x5f1   :  { %5826 = vmatmul.mubr.msk.f32.gmra.mrb[134].mxu1 %vm1691_vm1, %v2713_v61  ;;  %5890 = vmatmul.mubr.msk.f32.gmra.mrb[150].mxu0 %vm1691_vm1, %v2713_v61  ;;  %v5679_v38 = vpop.f32.mrb[104].mxu1 }
 0x5f2   :  { %v5759_v14 = vpop.f32.mrb[120].mxu0  ;;  %v5680_v10 = vpop.f32.mrb[105].mxu1 }
 0x5f3   :  { %v5681_v32 = vadd.f32 %v5680_v10, %v5679_v38  ;;  %v5760_v50 = vpop.f32.mrb[121].mxu0 }
 0x5f4   :  { %v5761_v26 = vadd.f32 %v5760_v50, %v5759_v14 }
 0x5f6   :  { %v2718_v4 = vadd.f32 %v5761_v26, %v5681_v32 }
 0x5f8   :  { %5827 = vmatprep.mubr.msk.f32.mxu1 %vm1691_vm1, %v2718_v4  ;;  %5891 = vmatprep.mubr.msk.f32.mxu0 %vm1691_vm1, %v2718_v4 }
 0x5f9   :  { %5828 = vmatmul.mubr.msk.f32.gmra.mrb[136].mxu1 %vm1691_vm1, %v2718_v4  ;;  %5892 = vmatmul.mubr.msk.f32.gmra.mrb[152].mxu0 %vm1691_vm1, %v2718_v4  ;;  %v5682_v59 = vpop.f32.mrb[106].mxu1 }
 0x5fa   :  { %v5762_v56 = vpop.f32.mrb[122].mxu0  ;;  %v5683_v44 = vpop.f32.mrb[107].mxu1 }
 0x5fb   :  { %v5684_v39 = vadd.f32 %v5683_v44, %v5682_v59  ;;  %v5763_v3 = vpop.f32.mrb[123].mxu0 }
 0x5fc   :  { %v5764_v27 = vadd.f32 %v5763_v3, %v5762_v56 }
 0x5fe   :  { %v2723_v57 = vadd.f32 %v5764_v27, %v5684_v39 }
 0x600   :  { %5829 = vmatprep.mubr.msk.f32.mxu1 %vm1691_vm1, %v2723_v57  ;;  %5893 = vmatprep.mubr.msk.f32.mxu0 %vm1691_vm1, %v2723_v57  ;;  %v5685_v17 = vpop.f32.mrb[108].mxu1 }
 0x601   :  { %5830 = vmatmul.mubr.msk.f32.gmra.mrb[138].mxu1 %vm1691_vm1, %v2723_v57  ;;  %5894 = vmatmul.mubr.msk.f32.gmra.mrb[154].mxu0 %vm1691_vm1, %v2723_v57  ;;  %v5765_v31 = vpop.f32.mrb[124].mxu0  ;;  %v5686_v29 = vpop.f32.mrb[109].mxu1 }
 0x602   :  { %v5687_v12 = vadd.f32 %v5686_v29, %v5685_v17  ;;  %v5766_v51 = vpop.f32.mrb[125].mxu0 }
 0x603   :  { %v5767_v58 = vadd.f32 %v5766_v51, %v5765_v31 }
 0x605   :  { %v2728_v61 = vadd.f32 %v5767_v58, %v5687_v12 }
 0x607   :  { %5831 = vmatprep.mubr.msk.f32.mxu1 %vm1691_vm1, %v2728_v61  ;;  %5895 = vmatprep.mubr.msk.f32.mxu0 %vm1691_vm1, %v2728_v61 }
 0x608   :  { %5832 = vmatmul.mubr.msk.f32.gmra.mrb[140].mxu1 %vm1691_vm1, %v2728_v61  ;;  %5896 = vmatmul.mubr.msk.f32.gmra.mrb[156].mxu0 %vm1691_vm1, %v2728_v61  ;;  %v5688_v38 = vpop.f32.mrb[110].mxu1 }
 0x609   :  { %v5768_v14 = vpop.f32.mrb[126].mxu0  ;;  %v5689_v10 = vpop.f32.mrb[111].mxu1 }
 0x60a   :  { %v5690_v32 = vadd.f32 %v5689_v10, %v5688_v38  ;;  %v5769_v50 = vpop.f32.mrb[127].mxu0 }
 0x60b   :  { %v5770_v26 = vadd.f32 %v5769_v50, %v5768_v14 }
 0x60d   :  { %v2733_v4 = vadd.f32 %v5770_v26, %v5690_v32 }
 0x60f   :  { %5833 = vmatprep.mubr.msk.f32.mxu1 %vm1691_vm1, %v2733_v4  ;;  %5897 = vmatprep.mubr.msk.f32.mxu0 %vm1691_vm1, %v2733_v4 }
 0x610   :  { %5834 = vmatmul.mubr.msk.f32.gmra.mrb[142].mxu1 %vm1691_vm1, %v2733_v4  ;;  %5898 = vmatmul.mubr.msk.f32.gmra.mrb[158].mxu0 %vm1691_vm1, %v2733_v4 }
 0x66c   :  { %v2850_v59 = vpop.f32.mrb[112].mxu1  ;;  %v3011_v56 = vpop.f32.mrb[128].mxu0 }
 0x66d   :  { %v2852_v44 = vpop.f32.mrb[113].mxu1  ;;  %v3013_v39 = vpop.f32.mrb[129].mxu0  ;;  %6728 = vrcp.f32 %v2850_v59 }
 0x66e   :  { %6730 = vrcp.f32 %v3011_v56 }
 0x66f   :  { %6732 = vrcp.f32 %v2852_v44 }
 0x670   :  { %6734 = vrcp.f32 %v3013_v39 }
 0x674   :  { %v2856_v3 = vpop.f32.mrb[114].mxu1  ;;  %v3017_v27 = vpop.f32.mrb[130].mxu0 }
 0x675   :  { %6736 = vrcp.f32 %v2856_v3  ;;  %v2858_v57 = vpop.f32.mrb[115].mxu1  ;;  %v3019_v17 = vpop.f32.mrb[131].mxu0 }
 0x676   :  { %6738 = vrcp.f32 %v3017_v27 }
 0x677   :  { %6740 = vrcp.f32 %v2858_v57  ;;  %v6729_v31 = vpop.eup %6728 }
 0x678   :  { %6742 = vrcp.f32 %v3019_v17  ;;  %v6731_v29 = vpop.eup %6730  ;;  %v3170_v50 = vmul.f32 %v6729_v31, %v9617_v0 }
 0x679   :  { %v6733_v58 = vpop.eup %6732  ;;  %v3172_v59 = vmul.f32 %v6731_v29, %v9628_v55 }
 0x67a   :  { %v6735_v14 = vpop.eup %6734  ;;  %v3171_v39 = vmul.f32 %v6733_v58, %v9619_v63 }
 0x67b   :  { %v3173_v57 = vmul.f32 %v6735_v14, %v9623_v1 }
 0x67c   :  { %v2862_v12 = vpop.f32.mrb[116].mxu1  ;;  %v3023_v51 = vpop.f32.mrb[132].mxu0 }
 0x67d   :  { %v2864_v61 = vpop.f32.mrb[117].mxu1  ;;  %v3025_v38 = vpop.f32.mrb[133].mxu0  ;;  %6744 = vrcp.f32 %v2862_v12 }
 0x67e   :  { %6746 = vrcp.f32 %v3023_v51 }
 0x67f   :  { %v6737_v10 = vpop.eup %6736  ;;  %6748 = vrcp.f32 %v2864_v61 }
 0x680   :  { %v6739_v32 = vpop.eup %6738  ;;  %v3174_v26 = vmul.f32 %v6737_v10, %v9645_v60  ;;  %6750 = vrcp.f32 %v3025_v38 }
 0x681   :  { %v6741_v4 = vpop.eup %6740  ;;  %v3176_v56 = vmul.f32 %v6739_v32, %v9656_v2 }
 0x682   :  { %v6743_v44 = vpop.eup %6742  ;;  %v3175_v3 = vmul.f32 %v6741_v4, %v9647_v46  ;;  %v3234_v27 = vpack.c.bf16 %v3174_v26, %v3170_v50 }
 0x683   :  { %v3177_v0 = vmul.f32 %v6743_v44, %v9651_v25  ;;  %v3236_v17 = vpack.c.bf16 %v3176_v56, %v3172_v59 }
 0x684   :  { %v2868_v60 = vpop.f32.mrb[118].mxu1  ;;  %v3029_v31 = vpop.f32.mrb[134].mxu0  ;;  %v3235_v55 = vpack.c.bf16 %v3175_v3, %v3171_v39 }
 0x685   :  { %6752 = vrcp.f32 %v2868_v60  ;;  %v2870_v2 = vpop.f32.mrb[119].mxu1  ;;  %v3031_v29 = vpop.f32.mrb[135].mxu0  ;;  %v3237_v12 = vpack.c.bf16 %v3177_v0, %v3173_v57 }
 0x686   :  { %6754 = vrcp.f32 %v3029_v31  ;;  %3330 = vmatprep.mubr.bf16.mxu1 %v3235_v55 }
 0x687   :  { %6756 = vrcp.f32 %v2870_v2  ;;  %3427 = vmatprep.mubr.bf16.mxu0 %v3237_v12  ;;  %3331 = vmatmul.mubr.bf16.vlgmr.msra.gmra.mrb[144].mxu1 %v3234_v27  ;;  %v6745_v63 = vpop.eup %6744 }
 0x688   :  { %6758 = vrcp.f32 %v3031_v29  ;;  %3428 = vmatmul.mubr.bf16.vlgmr.msra.gmra.mrb[160].mxu0 %v3236_v17  ;;  %v6747_v1 = vpop.eup %6746  ;;  %v3178_v32 = vmul.f32 %v6745_v63, %v9673_v24 }
 0x689   :  { %v6749_v51 = vpop.eup %6748  ;;  %v3180_v4 = vmul.f32 %v6747_v1, %v9684_v42 }
 0x68a   :  { %v6751_v38 = vpop.eup %6750  ;;  %v3179_v44 = vmul.f32 %v6749_v51, %v9675_v9 }
 0x68b   :  { %v3181_v27 = vmul.f32 %v6751_v38, %v9679_v52 }
 0x68c   :  { %v2874_v46 = vpop.f32.mrb[120].mxu1  ;;  %v3035_v25 = vpop.f32.mrb[136].mxu0 }
 0x68d   :  { %v2876_v58 = vpop.f32.mrb[121].mxu1  ;;  %v3037_v61 = vpop.f32.mrb[137].mxu0  ;;  %6760 = vrcp.f32 %v2874_v46 }
 0x68e   :  { %6762 = vrcp.f32 %v3035_v25 }
 0x68f   :  { %v6753_v14 = vpop.eup %6752  ;;  %6764 = vrcp.f32 %v2876_v58 }
 0x690   :  { %v6755_v10 = vpop.eup %6754  ;;  %v3182_v50 = vmul.f32 %v6753_v14, %v9701_v6  ;;  %6766 = vrcp.f32 %v3037_v61 }
 0x691   :  { %v6757_v26 = vpop.eup %6756  ;;  %v3184_v59 = vmul.f32 %v6755_v10, %v9712_v40 }
 0x692   :  { %v6759_v56 = vpop.eup %6758  ;;  %v3183_v39 = vmul.f32 %v6757_v26, %v9703_v36  ;;  %v3238_v3 = vpack.c.bf16 %v3182_v50, %v3178_v32 }
 0x693   :  { %v3185_v24 = vmul.f32 %v6759_v56, %v9707_v35  ;;  %v3240_v57 = vpack.c.bf16 %v3184_v59, %v3180_v4 }
 0x694   :  { %v2880_v6 = vpop.f32.mrb[122].mxu1  ;;  %v3041_v0 = vpop.f32.mrb[138].mxu0  ;;  %v3239_v17 = vpack.c.bf16 %v3183_v39, %v3179_v44 }
 0x695   :  { %6768 = vrcp.f32 %v2880_v6  ;;  %v2882_v42 = vpop.f32.mrb[123].mxu1  ;;  %v3043_v40 = vpop.f32.mrb[139].mxu0  ;;  %v3241_v60 = vpack.c.bf16 %v3185_v24, %v3181_v27 }
 0x696   :  { %6770 = vrcp.f32 %v3041_v0  ;;  %3338 = vmatprep.mubr.bf16.mxu1 %v3239_v17 }
 0x697   :  { %6772 = vrcp.f32 %v2882_v42  ;;  %3435 = vmatprep.mubr.bf16.mxu0 %v3241_v60  ;;  %3339 = vmatmul.mubr.bf16.gmra.mrb[148].mxu1 %v3238_v3  ;;  %v6761_v9 = vpop.eup %6760 }
 0x698   :  { %6774 = vrcp.f32 %v3043_v40  ;;  %3436 = vmatmul.mubr.bf16.gmra.mrb[164].mxu0 %v3240_v57  ;;  %v6763_v52 = vpop.eup %6762  ;;  %v3186_v1 = vmul.f32 %v6761_v9, %v9729_v28 }
 0x699   :  { %v6765_v31 = vpop.eup %6764  ;;  %v3188_v51 = vmul.f32 %v6763_v52, %v9740_v20 }
 0x69a   :  { %v6767_v29 = vpop.eup %6766  ;;  %v3187_v38 = vmul.f32 %v6765_v31, %v9731_v15 }
 0x69b   :  { %v3189_v32 = vmul.f32 %v6767_v29, %v9735_v47 }
 0x69c   :  { %v2886_v36 = vpop.f32.mrb[124].mxu1  ;;  %v3047_v35 = vpop.f32.mrb[140].mxu0 }
 0x69d   :  { %v2888_v55 = vpop.f32.mrb[125].mxu1  ;;  %v3049_v2 = vpop.f32.mrb[141].mxu0  ;;  %6776 = vrcp.f32 %v2886_v36 }
 0x69e   :  { %6778 = vrcp.f32 %v3047_v35 }
 0x69f   :  { %v6769_v12 = vpop.eup %6768  ;;  %6780 = vrcp.f32 %v2888_v55 }
 0x6a0   :  { %v6771_v63 = vpop.eup %6770  ;;  %v3190_v46 = vmul.f32 %v6769_v12, %v9757_v37  ;;  %6782 = vrcp.f32 %v3049_v2 }
 0x6a1   :  { %v6773_v25 = vpop.eup %6772  ;;  %v3192_v58 = vmul.f32 %v6771_v63, %v9768_v22 }
 0x6a2   :  { %v6775_v61 = vpop.eup %6774  ;;  %v3191_v14 = vmul.f32 %v6773_v25, %v9759_v43  ;;  %v3242_v10 = vpack.c.bf16 %v3190_v46, %v3186_v1 }
 0x6a3   :  { %v3193_v28 = vmul.f32 %v6775_v61, %v9763_v34  ;;  %v3244_v50 = vpack.c.bf16 %v3192_v58, %v3188_v51 }
 0x6a4   :  { %v2892_v37 = vpop.f32.mrb[126].mxu1  ;;  %v3053_v26 = vpop.f32.mrb[142].mxu0  ;;  %v3243_v4 = vpack.c.bf16 %v3191_v14, %v3187_v38 }
 0x6a5   :  { %6784 = vrcp.f32 %v2892_v37  ;;  %v2894_v20 = vpop.f32.mrb[127].mxu1  ;;  %v3055_v22 = vpop.f32.mrb[143].mxu0  ;;  %v3245_v59 = vpack.c.bf16 %v3193_v28, %v3189_v32 }
 0x6a6   :  { %6786 = vrcp.f32 %v3053_v26  ;;  %3346 = vmatprep.mubr.bf16.mxu1 %v3243_v4 }
 0x6a7   :  { %6788 = vrcp.f32 %v2894_v20  ;;  %3443 = vmatprep.mubr.bf16.mxu0 %v3245_v59  ;;  %3347 = vmatmul.mubr.bf16.gmra.mrb[152].mxu1 %v3242_v10  ;;  %v6777_v15 = vpop.eup %6776 }
 0x6a8   :  { %6790 = vrcp.f32 %v3055_v22  ;;  %3444 = vmatmul.mubr.bf16.gmra.mrb[168].mxu0 %v3244_v50  ;;  %v6779_v47 = vpop.eup %6778  ;;  %v3194_v57 = vmul.f32 %v6777_v15, %v9785_v45 }
 0x6a9   :  { %v6781_v56 = vpop.eup %6780  ;;  %v3196_v17 = vmul.f32 %v6779_v47, %v9796_v54 }
 0x6aa   :  { %v6783_v3 = vpop.eup %6782  ;;  %v3195_v60 = vmul.f32 %v6781_v56, %v9787_v13 }
 0x6ab   :  { %v3197_v36 = vmul.f32 %v6783_v3, %v9791_v21 }
 0x6ac   :  { %v2898_v43 = vpop.f32.mrb[128].mxu1  ;;  %v3059_v34 = vpop.f32.mrb[144].mxu0 }
 0x6ad   :  { %v2900_v44 = vpop.f32.mrb[129].mxu1  ;;  %v3061_v39 = vpop.f32.mrb[145].mxu0  ;;  %6792 = vrcp.f32 %v2898_v43 }
 0x6ae   :  { %6794 = vrcp.f32 %v3059_v34 }
 0x6af   :  { %v6785_v27 = vpop.eup %6784  ;;  %6796 = vrcp.f32 %v2900_v44 }
 0x6b0   :  { %v6787_v24 = vpop.eup %6786  ;;  %v3198_v6 = vmul.f32 %v6785_v27, %v9813_v23  ;;  %6798 = vrcp.f32 %v3061_v39 }
 0x6b1   :  { %v6789_v0 = vpop.eup %6788  ;;  %v3200_v42 = vmul.f32 %v6787_v24, %v9824_v19  ;;  %v11653_v24 = vld [vmem:[#allocation82_spill] sm:$0xff] }
 0x6b2   :  { %v6791_v40 = vpop.eup %6790  ;;  %v3199_v9 = vmul.f32 %v6789_v0, %v9815_v33  ;;  %v3246_v52 = vpack.c.bf16 %v3198_v6, %v3194_v57  ;;  %v11654_v0 = vld [vmem:[#allocation27_spill] sm:$0xff] }
 0x6b3   :  { %v3201_v45 = vmul.f32 %v6791_v40, %v9819_v8  ;;  %v3248_v35 = vpack.c.bf16 %v3200_v42, %v3196_v17  ;;  %v11655_v42 = vld [vmem:[#allocation76_spill] sm:$0xff] }
 0x6b4   :  { %v2904_v23 = vpop.f32.mrb[130].mxu1  ;;  %v3065_v31 = vpop.f32.mrb[146].mxu0  ;;  %v3247_v55 = vpack.c.bf16 %v3199_v9, %v3195_v60  ;;  %v11656_v9 = vld [vmem:[#allocation75_spill] sm:$0xff] }
 0x6b5   :  { %6800 = vrcp.f32 %v2904_v23  ;;  %v2906_v54 = vpop.f32.mrb[131].mxu1  ;;  %v3067_v19 = vpop.f32.mrb[147].mxu0  ;;  %v3249_v2 = vpack.c.bf16 %v3201_v45, %v3197_v36  ;;  %v11657_v36 = vld [vmem:[#allocation78_spill] sm:$0xff] }
 0x6b6   :  { %6802 = vrcp.f32 %v3065_v31  ;;  %3354 = vmatprep.mubr.bf16.mxu1 %v3247_v55 }
 0x6b7   :  { %6804 = vrcp.f32 %v2906_v54  ;;  %3451 = vmatprep.mubr.bf16.mxu0 %v3249_v2  ;;  %3355 = vmatmul.mubr.bf16.gmra.mrb[156].mxu1 %v3246_v52  ;;  %v6793_v13 = vpop.eup %6792 }
 0x6b8   :  { %6806 = vrcp.f32 %v3067_v19  ;;  %3452 = vmatmul.mubr.bf16.gmra.mrb[172].mxu0 %v3248_v35  ;;  %v6795_v21 = vpop.eup %6794  ;;  %v3202_v51 = vmul.f32 %v6793_v13, %v9841_v48 }
 0x6b9   :  { %v6797_v29 = vpop.eup %6796  ;;  %v3204_v38 = vmul.f32 %v6795_v21, %v9852_v30 }
 0x6ba   :  { %v6799_v1 = vpop.eup %6798  ;;  %v3203_v32 = vmul.f32 %v6797_v29, %v9843_v41 }
 0x6bb   :  { %v3205_v37 = vmul.f32 %v6799_v1, %v9847_v49  ;;  %v11658_v1 = vld [vmem:[#allocation84_spill] sm:$0xff] }
 0x6bc   :  { %v2910_v33 = vpop.f32.mrb[132].mxu1  ;;  %v3071_v8 = vpop.f32.mrb[148].mxu0 }
 0x6bd   :  { %v2912_v12 = vpop.f32.mrb[133].mxu1  ;;  %v3073_v63 = vpop.f32.mrb[149].mxu0  ;;  %6808 = vrcp.f32 %v2910_v33 }
 0x6be   :  { %6810 = vrcp.f32 %v3071_v8 }
 0x6bf   :  { %v6801_v46 = vpop.eup %6800  ;;  %6812 = vrcp.f32 %v2912_v12 }
 0x6c0   :  { %v6803_v25 = vpop.eup %6802  ;;  %v3206_v58 = vmul.f32 %v6801_v46, %v9857_v62  ;;  %6814 = vrcp.f32 %v3073_v63 }
 0x6c1   :  { %v6805_v61 = vpop.eup %6804  ;;  %v3208_v14 = vmul.f32 %v6803_v25, %v9868_v7  ;;  %v11659_v25 = vld [vmem:[#allocation5_spill] sm:$0xff] }
 0x6c2   :  { %v6807_v10 = vpop.eup %6806  ;;  %v3207_v28 = vmul.f32 %v6805_v61, %v9859_v11  ;;  %v3250_v50 = vpack.c.bf16 %v3206_v58, %v3202_v51  ;;  %v11660_v61 = vld [vmem:[#allocation32_spill] sm:$0xff] }
 0x6c3   :  { %v3209_v48 = vmul.f32 %v6807_v10, %v9863_v5  ;;  %v3252_v26 = vpack.c.bf16 %v3208_v14, %v3204_v38  ;;  %v11661_v14 = vld [vmem:[#allocation14_spill] sm:$0xff] }
 0x6c4   :  { %v2916_v62 = vpop.f32.mrb[134].mxu1  ;;  %v3077_v4 = vpop.f32.mrb[150].mxu0  ;;  %v3251_v20 = vpack.c.bf16 %v3207_v28, %v3203_v32  ;;  %v11662_v28 = vld [vmem:[#allocation85_spill] sm:$0xff] }
 0x6c5   :  { %6816 = vrcp.f32 %v2916_v62  ;;  %v2918_v30 = vpop.f32.mrb[135].mxu1  ;;  %v3079_v7 = vpop.f32.mrb[151].mxu0  ;;  %v3253_v22 = vpack.c.bf16 %v3209_v48, %v3205_v37  ;;  %v11663_v37 = vld [vmem:[#allocation17_spill] sm:$0xff]  ;;  %v11664_v62 = vld [vmem:[#allocation7_spill] sm:$0xff] }
 0x6c6   :  { %6818 = vrcp.f32 %v3077_v4  ;;  %3362 = vmatprep.mubr.bf16.mxu1 %v3251_v20  ;;  %v11665_v20 = vld [vmem:[#allocation24_spill] sm:$0xff] }
 0x6c7   :  { %6820 = vrcp.f32 %v2918_v30  ;;  %3459 = vmatprep.mubr.bf16.mxu0 %v3253_v22  ;;  %3363 = vmatmul.mubr.bf16.gmra.mrb[160].mxu1 %v3250_v50  ;;  %v6809_v41 = vpop.eup %6808 }
 0x6c8   :  { %6822 = vrcp.f32 %v3079_v7  ;;  %3460 = vmatmul.mubr.bf16.gmra.mrb[176].mxu0 %v3252_v26  ;;  %v6811_v49 = vpop.eup %6810  ;;  %v3210_v44 = vmul.f32 %v6809_v41, %v9873_v16 }
 0x6c9   :  { %v6813_v59 = vpop.eup %6812  ;;  %v3212_v27 = vmul.f32 %v6811_v49, %v9884_v53 }
 0x6ca   :  { %v6815_v43 = vpop.eup %6814  ;;  %v3211_v17 = vmul.f32 %v6813_v59, %v11654_v0 }
 0x6cb   :  { %v3213_v52 = vmul.f32 %v6815_v43, %v11656_v9 }
 0x6cc   :  { %v2922_v11 = vpop.f32.mrb[136].mxu1  ;;  %v3083_v5 = vpop.f32.mrb[152].mxu0 }
 0x6cd   :  { %v2924_v15 = vpop.f32.mrb[137].mxu1  ;;  %v3085_v47 = vpop.f32.mrb[153].mxu0  ;;  %6824 = vrcp.f32 %v2922_v11 }
 0x6ce   :  { %6826 = vrcp.f32 %v3083_v5 }
 0x6cf   :  { %v6817_v34 = vpop.eup %6816  ;;  %6828 = vrcp.f32 %v2924_v15  ;;  %v6532_v15 = vld [vmem:[%s11033_s13] sm:$0xff]  }
 0x6d0   :  { %v6819_v56 = vpop.eup %6818  ;;  %v3214_v39 = vmul.f32 %v6817_v34, %v9889_v18  ;;  %6830 = vrcp.f32 %v3085_v47  ;;  %v6533_v47 = vld [vmem:[%s11033_s13 + $0x8] sm:$0xff]   ;;  %6189 = vmatprep.subr.bf16.mxu1 %v6532_v15 }
 0x6d1   :  { %v6821_v3 = vpop.eup %6820  ;;  %v3216_v57 = vmul.f32 %v6819_v56, %v11653_v24  ;;  %6190 = vmatpush3.bf16.msra.mxu1 %v6532_v15  ;;  %v11666_v24 = vld [vmem:[#allocation37_spill] sm:$0xff] }
 0x6d2   :  { %v6823_v6 = vpop.eup %6822  ;;  %v3215_v40 = vmul.f32 %v6821_v3, %v11655_v42  ;;  %v3254_v60 = vpack.c.bf16 %v3214_v39, %v3210_v44  ;;  %6191 = vmatprep.subr.bf16.mxu1 %v6533_v47  ;;  %v6534_v3 = vld [vmem:[%s11033_s13 + $0x10] sm:$0xff]   ;;  %v11668_v42 = vld [vmem:[#allocation77_spill] sm:$0xff] }
 0x6d3   :  { %v3217_v16 = vmul.f32 %v6823_v6, %v11657_v36  ;;  %v3256_v45 = vpack.c.bf16 %v3216_v57, %v3212_v27  ;;  %v11667_v6 = vld [vmem:[#allocation80_spill] sm:$0xff] }
 0x6d4   :  { %v2928_v18 = vpop.f32.mrb[138].mxu1  ;;  %v3089_v35 = vpop.f32.mrb[154].mxu0  ;;  %v3255_v23 = vpack.c.bf16 %v3215_v40, %v3211_v17  ;;  %v11670_v36 = vld [vmem:[#allocation36_spill] sm:$0xff] }
 0x6d5   :  { %6832 = vrcp.f32 %v2928_v18  ;;  %v2930_v53 = vpop.f32.mrb[139].mxu1  ;;  %v3091_v31 = vpop.f32.mrb[155].mxu0  ;;  %v3257_v55 = vpack.c.bf16 %v3217_v16, %v3213_v52  ;;  %6192 = vmatpush3.bf16.msra.mxu1 %v6533_v47 }
 0x6d6   :  { %6834 = vrcp.f32 %v3089_v35  ;;  %3370 = vmatprep.mubr.bf16.mxu1 %v3255_v23  ;;  %6193 = vmatprep.subr.bf16.mxu1 %v6534_v3  ;;  %v11672_v23 = vld [vmem:[#allocation79_spill] sm:$0xff] }
 0x6d7   :  { %6836 = vrcp.f32 %v2930_v53  ;;  %3467 = vmatprep.mubr.bf16.mxu0 %v3257_v55  ;;  %3371 = vmatmul.mubr.bf16.gmra.mrb[164].mxu1 %v3254_v60  ;;  %v6825_v54 = vpop.eup %6824  ;;  %v11669_v60 = vld [vmem:[#allocation83_spill] sm:$0xff] }
 0x6d8   :  { %6838 = vrcp.f32 %v3091_v31  ;;  %3468 = vmatmul.mubr.bf16.gmra.mrb[180].mxu0 %v3256_v45  ;;  %v6827_v19 = vpop.eup %6826  ;;  %v3218_v46 = vmul.f32 %v6825_v54, %v11658_v1  ;;  %v11671_v45 = vld [vmem:[#allocation81_spill] sm:$0xff]  ;;  %v11673_v31 = vld [vmem:[#allocation86_spill] sm:$0xff] }
 0x6d9   :  { %v6829_v21 = vpop.eup %6828  ;;  %v3220_v38 = vmul.f32 %v6827_v19, %v11660_v61  ;;  %6194 = vmatpush3.bf16.msra.mxu1 %v6534_v3  ;;  %v6535_v19 = vld [vmem:[%s11033_s13 + $0x18] sm:$0xff]  }
 0x6da   :  { %v6831_v29 = vpop.eup %6830  ;;  %v3219_v50 = vmul.f32 %v6829_v21, %v11662_v28  ;;  %6195 = vmatprep.subr.bf16.mxu1 %v6535_v19 }
 0x6db   :  { %v2934_v2 = vpop.f32.mrb[140].mxu1  ;;  %v3095_v13 = vpop.f32.mrb[156].mxu0  ;;  %v3221_v4 = vmul.f32 %v6831_v29, %v11664_v62 }
 0x6dc   :  { %v2936_v33 = vpop.f32.mrb[141].mxu1  ;;  %v3097_v8 = vpop.f32.mrb[157].mxu0  ;;  %6840 = vrcp.f32 %v2934_v2 }
 0x6dd   :  { %6842 = vrcp.f32 %v3095_v13  ;;  %6196 = vmatpush3.bf16.msra.mxu1 %v6535_v19 }
 0x6de   :  { %6844 = vrcp.f32 %v2936_v33 }
 0x6df   :  { %v6833_v12 = vpop.eup %6832  ;;  %6846 = vrcp.f32 %v3097_v8 }
 0x6e0   :  { %v6835_v63 = vpop.eup %6834  ;;  %v3222_v51 = vmul.f32 %v6833_v12, %v11659_v25 }
 0x6e1   :  { %v6837_v58 = vpop.eup %6836  ;;  %v3224_v10 = vmul.f32 %v6835_v63, %v11661_v14 }
 0x6e2   :  { %v6839_v32 = vpop.eup %6838  ;;  %v3223_v48 = vmul.f32 %v6837_v58, %v11663_v37  ;;  %v3258_v26 = vpack.c.bf16 %v3222_v51, %v3218_v46 }
 0x6e3   :  { %v3225_v30 = vmul.f32 %v6839_v32, %v11665_v20  ;;  %v3260_v7 = vpack.c.bf16 %v3224_v10, %v3220_v38  ;;  %v2940_v22 = vpop.f32.mrb[142].mxu1  ;;  %v3101_v41 = vpop.f32.mrb[158].mxu0 }
 0x6e4   :  { %v3259_v49 = vpack.c.bf16 %v3223_v48, %v3219_v50  ;;  %6848 = vrcp.f32 %v2940_v22  ;;  %v2942_v11 = vpop.f32.mrb[143].mxu1  ;;  %v3103_v5 = vpop.f32.mrb[159].mxu0 }
 0x6e5   :  { %v3261_v59 = vpack.c.bf16 %v3225_v30, %v3221_v4  ;;  %6850 = vrcp.f32 %v3101_v41 }
 0x6e6   :  { %3378 = vmatprep.mubr.bf16.mxu1 %v3259_v49  ;;  %6852 = vrcp.f32 %v2942_v11  ;;  %v6841_v43 = vpop.eup %6840 }
 0x6e7   :  { %3475 = vmatprep.mubr.bf16.mxu0 %v3261_v59  ;;  %3379 = vmatmul.mubr.bf16.gmra.mrb[168].mxu1 %v3258_v26  ;;  %6854 = vrcp.f32 %v3103_v5  ;;  %v6843_v34 = vpop.eup %6842  ;;  %v3226_v57 = vmul.f32 %v6841_v43, %v11666_v24 }
 0x6e8   :  { %3476 = vmatmul.mubr.bf16.gmra.mrb[184].mxu0 %v3260_v7  ;;  %v6845_v56 = vpop.eup %6844  ;;  %v3228_v40 = vmul.f32 %v6843_v34, %v11668_v42 }
 0x6e9   :  { %v6847_v44 = vpop.eup %6846  ;;  %v3227_v16 = vmul.f32 %v6845_v56, %v11670_v36 }
 0x6ea   :  { %v3229_v53 = vmul.f32 %v6847_v44, %v11672_v23 }
 0x6ee   :  { %v6849_v39 = vpop.eup %6848 }
 0x6ef   :  { %v6851_v27 = vpop.eup %6850  ;;  %v3230_v0 = vmul.f32 %v6849_v39, %v11667_v6 }
 0x6f0   :  { %v6853_v17 = vpop.eup %6852  ;;  %v3232_v9 = vmul.f32 %v6851_v27, %v11669_v60 }
 0x6f1   :  { %v6855_v52 = vpop.eup %6854  ;;  %v3231_v18 = vmul.f32 %v6853_v17, %v11671_v45  ;;  %v3262_v35 = vpack.c.bf16 %v3230_v0, %v3226_v57 }
 0x6f2   :  { %v3233_v55 = vmul.f32 %v6855_v52, %v11673_v31  ;;  %v3264_v54 = vpack.c.bf16 %v3232_v9, %v3228_v40 }
 0x6f3   :  { %v3263_v2 = vpack.c.bf16 %v3231_v18, %v3227_v16 }
 0x6f4   :  { %v3265_v13 = vpack.c.bf16 %v3233_v55, %v3229_v53 }
 0x6f5   :  { %3386 = vmatprep.mubr.bf16.mxu1 %v3263_v2 }
 0x6f6   :  { %3483 = vmatprep.mubr.bf16.mxu0 %v3265_v13  ;;  %3387 = vmatmul.mubr.bf16.gmra.mrb[172].mxu1 %v3262_v35 }
 0x6f7   :  { %3484 = vmatmul.mubr.bf16.gmra.mrb[188].mxu0 %v3264_v54 }
 0x75a   :  { %v5915_v21 = vpop.f32.mrb[144].mxu1 }
 0x75b   :  { %v5979_v33 = vpop.f32.mrb[160].mxu0  ;;  %v5916_v8 = vpop.f32.mrb[145].mxu1 }
 0x75c   :  { %v5917_v29 = vadd.f32 %v5916_v8, %v5915_v21  ;;  %v5980_v12 = vpop.f32.mrb[161].mxu0  ;;  %v5918_v63 = vpop.f32.mrb[146].mxu1 }
 0x75d   :  { %v5981_v1 = vadd.f32 %v5980_v12, %v5979_v33  ;;  %v5982_v46 = vpop.f32.mrb[162].mxu0  ;;  %v5919_v25 = vpop.f32.mrb[147].mxu1 }
 0x75e   :  { %v5920_v51 = vadd.f32 %v5919_v25, %v5918_v63  ;;  %v5983_v58 = vpop.f32.mrb[163].mxu0 }
 0x75f   :  { %v3430_v61 = vadd.f32 %v5981_v1, %v5917_v29  ;;  %v5984_v38 = vadd.f32 %v5983_v58, %v5982_v46 }
 0x761   :  { %v3433_v14 = vadd.f32 %v5984_v38, %v5920_v51 }
 0x763   :  { %v3492_v10 = vpack.c.bf16 %v3433_v14, %v3430_v61 }
 0x765   :  { %6197 = vmatprep.mubr.msk.bf16.mxu1 %vm96_vm0, %v3492_v10 }
 0x76a   :  { %v5921_v32 = vpop.f32.mrb[148].mxu1 }
 0x76b   :  { %v5985_v28 = vpop.f32.mrb[164].mxu0  ;;  %v5922_v50 = vpop.f32.mrb[149].mxu1 }
 0x76c   :  { %v5923_v37 = vadd.f32 %v5922_v50, %v5921_v32  ;;  %v5986_v48 = vpop.f32.mrb[165].mxu0  ;;  %v5924_v26 = vpop.f32.mrb[150].mxu1 }
 0x76d   :  { %v5987_v62 = vadd.f32 %v5986_v48, %v5985_v28  ;;  %v5988_v4 = vpop.f32.mrb[166].mxu0  ;;  %v5925_v20 = vpop.f32.mrb[151].mxu1 }
 0x76e   :  { %v5926_v30 = vadd.f32 %v5925_v20, %v5924_v26  ;;  %v5989_v7 = vpop.f32.mrb[167].mxu0 }
 0x76f   :  { %v3438_v22 = vadd.f32 %v5987_v62, %v5923_v37  ;;  %v5990_v41 = vadd.f32 %v5989_v7, %v5988_v4 }
 0x771   :  { %v3441_v49 = vadd.f32 %v5990_v41, %v5926_v30 }
 0x773   :  { %v3493_v11 = vpack.c.bf16 %v3441_v49, %v3438_v22 }
 0x775   :  { %6198 = vmatmul.mubr.msk.bf16.vlgmr.msra.gmra.mrb[176].mxu1 %vm96_vm0, %v3493_v11 }
 0x77a   :  { %v5927_v5 = vpop.f32.mrb[152].mxu1 }
 0x77b   :  { %v5991_v59 = vpop.f32.mrb[168].mxu0  ;;  %v5928_v15 = vpop.f32.mrb[153].mxu1 }
 0x77c   :  { %v5929_v47 = vadd.f32 %v5928_v15, %v5927_v5  ;;  %v5992_v43 = vpop.f32.mrb[169].mxu0  ;;  %v5930_v34 = vpop.f32.mrb[154].mxu1 }
 0x77d   :  { %v5993_v56 = vadd.f32 %v5992_v43, %v5991_v59  ;;  %v5994_v44 = vpop.f32.mrb[170].mxu0  ;;  %v5931_v39 = vpop.f32.mrb[155].mxu1 }
 0x77e   :  { %v5932_v3 = vadd.f32 %v5931_v39, %v5930_v34  ;;  %v5995_v27 = vpop.f32.mrb[171].mxu0 }
 0x77f   :  { %v3446_v24 = vadd.f32 %v5993_v56, %v5929_v47  ;;  %v5996_v57 = vadd.f32 %v5995_v27, %v5994_v44 }
 0x781   :  { %v3449_v6 = vadd.f32 %v5996_v57, %v5932_v3 }
 0x783   :  { %v3494_v0 = vpack.c.bf16 %v3449_v6, %v3446_v24 }
 0x785   :  { %6201 = vmatprep.mubr.msk.bf16.mxu1 %vm96_vm0, %v3494_v0 }
 0x78a   :  { %v5933_v17 = vpop.f32.mrb[156].mxu1 }
 0x78b   :  { %v5997_v42 = vpop.f32.mrb[172].mxu0  ;;  %v5934_v40 = vpop.f32.mrb[157].mxu1 }
 0x78c   :  { %v5935_v60 = vadd.f32 %v5934_v40, %v5933_v17  ;;  %v5998_v9 = vpop.f32.mrb[173].mxu0  ;;  %v5936_v52 = vpop.f32.mrb[158].mxu1 }
 0x78d   :  { %v5999_v36 = vadd.f32 %v5998_v9, %v5997_v42  ;;  %v6000_v16 = vpop.f32.mrb[174].mxu0  ;;  %v5937_v45 = vpop.f32.mrb[159].mxu1 }
 0x78e   :  { %v5938_v18 = vadd.f32 %v5937_v45, %v5936_v52  ;;  %v6001_v35 = vpop.f32.mrb[175].mxu0 }
 0x78f   :  { %v3454_v23 = vadd.f32 %v5999_v36, %v5935_v60  ;;  %v6002_v53 = vadd.f32 %v6001_v35, %v6000_v16 }
 0x791   :  { %v3457_v31 = vadd.f32 %v6002_v53, %v5938_v18 }
 0x793   :  { %v3495_v55 = vpack.c.bf16 %v3457_v31, %v3454_v23  ;;  %v10202_v23 = vld [vmem:[%s11034_s14] ss:$0 sm:$0xff] }
 0x795   :  { %6202 = vmatmul.mubr.msk.bf16.gmra.mrb[180].mxu1 %vm96_vm0, %v3495_v55 }
 0x79a   :  { %v5939_v54 = vpop.f32.mrb[160].mxu1 }
 0x79b   :  { %v6003_v19 = vpop.f32.mrb[176].mxu0  ;;  %v5940_v2 = vpop.f32.mrb[161].mxu1 }
 0x79c   :  { %v5941_v13 = vadd.f32 %v5940_v2, %v5939_v54  ;;  %v6004_v21 = vpop.f32.mrb[177].mxu0  ;;  %v5942_v33 = vpop.f32.mrb[162].mxu1 }
 0x79d   :  { %v6005_v8 = vadd.f32 %v6004_v21, %v6003_v19  ;;  %v6006_v29 = vpop.f32.mrb[178].mxu0  ;;  %v5943_v12 = vpop.f32.mrb[163].mxu1 }
 0x79e   :  { %v5944_v63 = vadd.f32 %v5943_v12, %v5942_v33  ;;  %v6007_v1 = vpop.f32.mrb[179].mxu0 }
 0x79f   :  { %v3462_v46 = vadd.f32 %v6005_v8, %v5941_v13  ;;  %v6008_v25 = vadd.f32 %v6007_v1, %v6006_v29  ;;  %v7050_v13 = vld [vmem:[%s11252_s27] sm:$0xff]  ;;  %v7051_v29 = vld [vmem:[%s11252_s27 + $0x10] sm:$0xff] }
 0x7a1   :  { %v3465_v51 = vadd.f32 %v6008_v25, %v5944_v63  ;;  %v7052_v63 = vld [vmem:[%s11252_s27 + $0x8] sm:$0xff]  ;;  %v7053_v25 = vld [vmem:[%s11252_s27 + $0x18] sm:$0xff] }
 0x7a3   :  { %v3496_v58 = vpack.c.bf16 %v3465_v51, %v3462_v46 }
 0x7a5   :  { %6205 = vmatprep.mubr.msk.bf16.mxu1 %vm96_vm0, %v3496_v58 }
 0x7aa   :  { %v5945_v61 = vpop.f32.mrb[164].mxu1 }
 0x7ab   :  { %v6009_v38 = vpop.f32.mrb[180].mxu0  ;;  %v5946_v14 = vpop.f32.mrb[165].mxu1 }
 0x7ac   :  { %v5947_v10 = vadd.f32 %v5946_v14, %v5945_v61  ;;  %v6010_v32 = vpop.f32.mrb[181].mxu0  ;;  %v5948_v28 = vpop.f32.mrb[166].mxu1 }
 0x7ad   :  { %v6011_v50 = vadd.f32 %v6010_v32, %v6009_v38  ;;  %v6012_v37 = vpop.f32.mrb[182].mxu0  ;;  %v5949_v48 = vpop.f32.mrb[167].mxu1 }
 0x7ae   :  { %v5950_v26 = vadd.f32 %v5949_v48, %v5948_v28  ;;  %v6013_v62 = vpop.f32.mrb[183].mxu0  ;;  %v7054_v48 = vld [vmem:[%s11252_s27 + $0x20] sm:$0xff] }
 0x7af   :  { %v3470_v4 = vadd.f32 %v6011_v50, %v5947_v10  ;;  %v6014_v20 = vadd.f32 %v6013_v62, %v6012_v37 }
 0x7b1   :  { %v3473_v30 = vadd.f32 %v6014_v20, %v5950_v26  ;;  %v7055_v20 = vld [vmem:[%s11252_s27 + $0x30] sm:$0xff] }
 0x7b3   :  { %v3497_v7 = vpack.c.bf16 %v3473_v30, %v3470_v4 }
 0x7b5   :  { %6206 = vmatmul.mubr.msk.bf16.gmra.mrb[184].mxu1 %vm96_vm0, %v3497_v7  ;;  %v7056_v7 = vld [vmem:[%s11252_s27 + $0x28] sm:$0xff] }
 0x7ba   :  { %v5951_v22 = vpop.f32.mrb[168].mxu1 }
 0x7bb   :  { %v6015_v41 = vpop.f32.mrb[184].mxu0  ;;  %v5952_v49 = vpop.f32.mrb[169].mxu1 }
 0x7bc   :  { %v5953_v11 = vadd.f32 %v5952_v49, %v5951_v22  ;;  %v6016_v5 = vpop.f32.mrb[185].mxu0  ;;  %v5954_v59 = vpop.f32.mrb[170].mxu1  ;;  %v7057_v49 = vld [vmem:[%s11252_s27 + $0x38] sm:$0xff] }
 0x7bd   :  { %v6017_v15 = vadd.f32 %v6016_v5, %v6015_v41  ;;  %v6018_v47 = vpop.f32.mrb[186].mxu0  ;;  %v5955_v43 = vpop.f32.mrb[171].mxu1 }
 0x7be   :  { %v5956_v34 = vadd.f32 %v5955_v43, %v5954_v59  ;;  %v6019_v56 = vpop.f32.mrb[187].mxu0 }
 0x7bf   :  { %v3478_v44 = vadd.f32 %v6017_v15, %v5953_v11  ;;  %v6020_v39 = vadd.f32 %v6019_v56, %v6018_v47 }
 0x7c1   :  { %v3481_v3 = vadd.f32 %v6020_v39, %v5956_v34 }
 0x7c3   :  { %v3498_v27 = vpack.c.bf16 %v3481_v3, %v3478_v44  ;;  %v7058_v3 = vld [vmem:[%s11252_s27 + $0x40] sm:$0xff] }
 0x7c5   :  { %6209 = vmatprep.mubr.msk.bf16.mxu1 %vm96_vm0, %v3498_v27 }
 0x7c9   :  { %v5957_v24 = vpop.f32.mrb[172].mxu1 }
 0x7ca   :  { %v6021_v57 = vpop.f32.mrb[188].mxu0  ;;  %v5958_v6 = vpop.f32.mrb[173].mxu1 }
 0x7cb   :  { %v5959_v0 = vadd.f32 %v5958_v6, %v5957_v24  ;;  %v6022_v17 = vpop.f32.mrb[189].mxu0  ;;  %v5960_v42 = vpop.f32.mrb[174].mxu1  ;;  %v7059_v6 = vld [vmem:[%s11252_s27 + $0x50] sm:$0xff] }
 0x7cc   :  { %v6023_v40 = vadd.f32 %v6022_v17, %v6021_v57  ;;  %v6024_v60 = vpop.f32.mrb[190].mxu0  ;;  %v5961_v9 = vpop.f32.mrb[175].mxu1  ;;  %v7060_v17 = vld [vmem:[%s11252_s27 + $0x48] sm:$0xff] }
 0x7cd   :  { %v5962_v52 = vadd.f32 %v5961_v9, %v5960_v42  ;;  %v6025_v36 = vpop.f32.mrb[191].mxu0 }
 0x7ce   :  { %v3486_v16 = vadd.f32 %v6023_v40, %v5959_v0  ;;  %v6026_v45 = vadd.f32 %v6025_v36, %v6024_v60  ;;  %v7061_v60 = vld [vmem:[%s11252_s27 + $0x58] sm:$0xff] }
 0x7d0   :  { %v3489_v18 = vadd.f32 %v6026_v45, %v5962_v52 }
 0x7d2   :  { %v3499_v35 = vpack.c.bf16 %v3489_v18, %v3486_v16 }
 0x7d4   :  { %6210 = vmatmul.mubr.msk.bf16.gmra.mrb[188].mxu1 %vm96_vm0, %v3499_v35 }
 0x848   :  { %v6199_v53 = vpop.f32.mrb[176].mxu1 }
 0x849   :  { %v3597_v31 = vpop.f32.mrb[177].mxu1  ;;  %v3606_v55 = vadd.f32 %v6199_v53, %v10202_v23 }
 0x84a   :  { %v3598_v54 = vadd.f32 %v10202_v23, %v3597_v31  ;;  %v6200_v19 = vpop.f32.mrb[178].mxu1 }
 0x84b   :  { %v3600_v2 = vpop.f32.mrb[179].mxu1  ;;  %v3609_v33 = vadd.f32 %v6200_v19, %v10202_v23  ;;  %v10216_v12 = vadd.f32 %v7051_v29, %v3606_v55  ;;  %v7064_v29 = vld [vmem:[%s11252_s27 + $0x68] sm:$0xff] }
 0x84c   :  { %v10209_v21 = vadd.f32 %v7050_v13, %v3598_v54  ;;  %v3601_v8 = vadd.f32 %v10202_v23, %v3600_v2  ;;  %v7062_v54 = vld [vmem:[%s11252_s27 + $0x60] sm:$0xff] }
 0x84d   :  { %v10228_v51 = vadd.f32 %v7053_v25, %v3609_v33  ;;  %v3684_v61 = vsel %vm96_vm0, %v10216_v12, 0.0  ;;  %v7063_v33 = vld [vmem:[%s11252_s27 + $0x70] sm:$0xff] }
 0x84e   :  { %v10221_v1 = vadd.f32 %v7052_v63, %v3601_v8  ;;  %v3678_v46 = vsel %vm96_vm0, %v10209_v21, 0.0 }
 0x84f   :  { %3679 = vadd.xlane.f32.xlu0 %v3678_v46  ;;  %v3687_v38 = vsel %vm96_vm0, %v10228_v51, 0.0 }
 0x850   :  { %v3681_v58 = vsel %vm96_vm0, %v10221_v1, 0.0 }
 0x851   :  { %3682 = vadd.xlane.f32.xlu1 %v3681_v58 }
 0x853   :  { %3685 = vadd.xlane.f32.xlu0 %v3684_v61 }
 0x855   :  { %3688 = vadd.xlane.f32.xlu1 %v3687_v38 }
 0x868   :  { %v6203_v14 = vpop.f32.mrb[180].mxu1 }
 0x869   :  { %v3613_v10 = vpop.f32.mrb[181].mxu1  ;;  %v3622_v32 = vadd.f32 %v6203_v14, %v10202_v23 }
 0x86a   :  { %v3614_v28 = vadd.f32 %v10202_v23, %v3613_v10  ;;  %v6204_v50 = vpop.f32.mrb[182].mxu1 }
 0x86b   :  { %v3616_v37 = vpop.f32.mrb[183].mxu1  ;;  %v3625_v62 = vadd.f32 %v6204_v50, %v10202_v23  ;;  %v10248_v30 = vadd.f32 %v7055_v20, %v3622_v32 }
 0x86c   :  { %v10241_v26 = vadd.f32 %v7054_v48, %v3614_v28  ;;  %v3617_v4 = vadd.f32 %v10202_v23, %v3616_v37 }
 0x86d   :  { %v10260_v11 = vadd.f32 %v7057_v49, %v3625_v62  ;;  %v3696_v59 = vsel %vm96_vm0, %v10248_v30, 0.0 }
 0x86e   :  { %v10253_v22 = vadd.f32 %v7056_v7, %v3617_v4  ;;  %v3690_v41 = vsel %vm96_vm0, %v10241_v26, 0.0 }
 0x86f   :  { %3691 = vadd.xlane.f32.xlu0 %v3690_v41  ;;  %v3699_v15 = vsel %vm96_vm0, %v10260_v11, 0.0 }
 0x870   :  { %v3693_v5 = vsel %vm96_vm0, %v10253_v22, 0.0 }
 0x871   :  { %3694 = vadd.xlane.f32.xlu1 %v3693_v5 }
 0x873   :  { %3697 = vadd.xlane.f32.xlu0 %v3696_v59 }
 0x875   :  { %3700 = vadd.xlane.f32.xlu1 %v3699_v15 }
 0x888   :  { %v6207_v47 = vpop.f32.mrb[184].mxu1 }
 0x889   :  { %v3629_v43 = vpop.f32.mrb[185].mxu1  ;;  %v3638_v34 = vadd.f32 %v6207_v47, %v10202_v23 }
 0x88a   :  { %v3630_v56 = vadd.f32 %v10202_v23, %v3629_v43  ;;  %v6208_v44 = vpop.f32.mrb[186].mxu1 }
 0x88b   :  { %v3632_v39 = vpop.f32.mrb[187].mxu1  ;;  %v3641_v24 = vadd.f32 %v6208_v44, %v10202_v23  ;;  %v10280_v0 = vadd.f32 %v7059_v6, %v3638_v34 }
 0x88c   :  { %v10273_v27 = vadd.f32 %v7058_v3, %v3630_v56  ;;  %v3633_v57 = vadd.f32 %v10202_v23, %v3632_v39 }
 0x88d   :  { %v10292_v9 = vadd.f32 %v7061_v60, %v3641_v24  ;;  %v3708_v36 = vsel %vm96_vm0, %v10280_v0, 0.0 }
 0x88e   :  { %v10285_v42 = vadd.f32 %v7060_v17, %v3633_v57  ;;  %v3702_v40 = vsel %vm96_vm0, %v10273_v27, 0.0 }
 0x88f   :  { %3703 = vadd.xlane.f32.xlu0 %v3702_v40  ;;  %v3711_v16 = vsel %vm96_vm0, %v10292_v9, 0.0 }
 0x890   :  { %v3705_v52 = vsel %vm96_vm0, %v10285_v42, 0.0 }
 0x891   :  { %3706 = vadd.xlane.f32.xlu1 %v3705_v52 }
 0x893   :  { %3709 = vadd.xlane.f32.xlu0 %v3708_v36 }
 0x895   :  { %3712 = vadd.xlane.f32.xlu1 %v3711_v16 }
 0x8a7   :  { %v6211_v45 = vpop.f32.mrb[188].mxu1 }
 0x8a8   :  { %v3645_v18 = vpop.f32.mrb[189].mxu1  ;;  %v3654_v35 = vadd.f32 %v6211_v45, %v10202_v23 }
 0x8a9   :  { %v3646_v53 = vadd.f32 %v10202_v23, %v3645_v18  ;;  %v6212_v31 = vpop.f32.mrb[190].mxu1 }
 0x8aa   :  { %v3648_v55 = vpop.f32.mrb[191].mxu1  ;;  %v3657_v2 = vadd.f32 %v6212_v31, %v10202_v23  ;;  %v10312_v8 = vadd.f32 %v7063_v33, %v3654_v35  ;;  %v7066_v33 = vmov 0  }
 0x8ab   :  { %v10305_v19 = vadd.f32 %v7062_v54, %v3646_v53  ;;  %v3649_v13 = vadd.f32 %v10202_v23, %v3648_v55  ;;  %v7065_v23 = vld [vmem:[%s11252_s27 + $0x78] sm:$0xff]  ;;  %4054 = vmatprep.mubr.bf16.mxu0 %v7066_v33 }
 0x8ac   :  { %v10324_v25 = vadd.f32 %v7065_v23, %v3657_v2  ;;  %v3720_v61 = vsel %vm96_vm0, %v10312_v8, 0.0  ;;  %v6536_v2 = vld [vmem:[%s11035_s17] ss:$8 sps:$4 sm:$0xff]   ;;  %v6539_v23 = vld [vmem:[%s11035_s17 + $0x10] ss:$8 sps:$4 sm:$0xff]  }
 0x8ad   :  { %v10317_v63 = vadd.f32 %v7064_v29, %v3649_v13  ;;  %v3714_v46 = vsel %vm96_vm0, %v10305_v19, 0.0  ;;  %v6538_v13 = vld [vmem:[%s11035_s17 + $0x4] ss:$8 sps:$4 sm:$0xff]  }
 0x8ae   :  { %3715 = vadd.xlane.f32.xlu0 %v3714_v46  ;;  %v3723_v38 = vsel %vm96_vm0, %v10324_v25, 0.0  ;;  %v6541_v46 = vld [vmem:[%s11035_s17 + $0x14] ss:$8 sps:$4 sm:$0xff]   ;;  %4022 = vmatprep.subr.bf16.mxu0 %v6538_v13 }
 0x8af   :  { %v3717_v58 = vsel %vm96_vm0, %v10317_v63, 0.0  ;;  %4023 = vmatpush1.bf16.msra.mxu0 %v6536_v2 }
 0x8b0   :  { %3718 = vadd.xlane.f32.xlu1 %v3717_v58  ;;  %4024 = vmatprep.subr.bf16.mxu0 %v6541_v46  ;;  %v6544_v58 = vld [vmem:[%s11035_s17 + $0x24] ss:$8 sps:$4 sm:$0xff]  }
 0x8b2   :  { %3721 = vadd.xlane.f32.xlu0 %v3720_v61  ;;  %v6542_v61 = vld [vmem:[%s11035_s17 + $0x20] ss:$8 sps:$4 sm:$0xff]  }
 0x8b3   :  { %4025 = vmatpush1.bf16.msra.mxu0 %v6539_v23 }
 0x8b4   :  { %3724 = vadd.xlane.f32.xlu1 %v3723_v38  ;;  %4026 = vmatprep.subr.bf16.mxu0 %v6544_v58  ;;  %v6547_v38 = vld [vmem:[%s11035_s17 + $0x34] ss:$8 sps:$4 sm:$0xff]  }
 0x8b7   :  { %4027 = vmatpush1.bf16.msra.mxu0 %v6542_v61 }
 0x8b8   :  { %4028 = vmatprep.subr.bf16.mxu0 %v6547_v38 }
 0x8dc   :  { %v3680_v14 = vpop.xlane.xlu0 %3679 }
 0x8dd   :  { %v3726_v10 = vmul.f32 0.015625, %v3680_v14  ;;  %v6545_v14 = vld [vmem:[%s11035_s17 + $0x30] ss:$8 sps:$4 sm:$0xff]  }
 0x8de   :  { %v3683_v32 = vpop.xlane.xlu1 %3682  ;;  %4029 = vmatpush1.bf16.msra.mxu0 %v6545_v14 }
 0x8df   :  { %v10333_v28 = vsub.f32 %v10209_v21, %v3726_v10  ;;  %v3727_v50 = vmul.f32 0.015625, %v3683_v32 }
 0x8e0   :  { %v3686_v37 = vpop.xlane.xlu0 %3685 }
 0x8e1   :  { %v10336_v48 = vsub.f32 %v10221_v1, %v3727_v50  ;;  %v3728_v62 = vmul.f32 0.015625, %v3686_v37  ;;  %v3758_v4 = vmul.f32 %v10333_v28, %v10333_v28 }
 0x8e2   :  { %v3689_v20 = vpop.xlane.xlu1 %3688 }
 0x8e3   :  { %v10341_v7 = vsub.f32 %v10216_v12, %v3728_v62  ;;  %v3729_v41 = vmul.f32 0.015625, %v3689_v20  ;;  %v3774_v49 = vsel %vm96_vm0, %v3758_v4, 0.0  ;;  %v3759_v5 = vmul.f32 %v10336_v48, %v10336_v48 }
 0x8e4   :  { %3775 = vadd.xlane.f32.xlu0 %v3774_v49 }
 0x8e5   :  { %v10347_v59 = vsub.f32 %v10228_v51, %v3729_v41  ;;  %v3777_v15 = vsel %vm96_vm0, %v3759_v5, 0.0  ;;  %v3760_v47 = vmul.f32 %v10341_v7, %v10341_v7 }
 0x8e6   :  { %3778 = vadd.xlane.f32.xlu1 %v3777_v15 }
 0x8e7   :  { %v3780_v43 = vsel %vm96_vm0, %v3760_v47, 0.0  ;;  %v3761_v34 = vmul.f32 %v10347_v59, %v10347_v59 }
 0x8e8   :  { %3781 = vadd.xlane.f32.xlu0 %v3780_v43 }
 0x8e9   :  { %v3783_v56 = vsel %vm96_vm0, %v3761_v34, 0.0 }
 0x8ea   :  { %3784 = vadd.xlane.f32.xlu1 %v3783_v56 }
 0x8fc   :  { %v3692_v44 = vpop.xlane.xlu0 %3691 }
 0x8fd   :  { %v3730_v39 = vmul.f32 0.015625, %v3692_v44 }
 0x8fe   :  { %v3695_v3 = vpop.xlane.xlu1 %3694 }
 0x8ff   :  { %v10357_v24 = vsub.f32 %v10241_v26, %v3730_v39  ;;  %v3731_v57 = vmul.f32 0.015625, %v3695_v3 }
 0x900   :  { %v3698_v6 = vpop.xlane.xlu0 %3697 }
 0x901   :  { %v10360_v17 = vsub.f32 %v10253_v22, %v3731_v57  ;;  %v3732_v40 = vmul.f32 0.015625, %v3698_v6  ;;  %v3762_v60 = vmul.f32 %v10357_v24, %v10357_v24 }
 0x902   :  { %v3701_v52 = vpop.xlane.xlu1 %3700 }
 0x903   :  { %v10365_v36 = vsub.f32 %v10248_v30, %v3732_v40  ;;  %v3733_v16 = vmul.f32 0.015625, %v3701_v52  ;;  %v3786_v45 = vsel %vm96_vm0, %v3762_v60, 0.0  ;;  %v3763_v18 = vmul.f32 %v10360_v17, %v10360_v17 }
 0x904   :  { %3787 = vadd.xlane.f32.xlu0 %v3786_v45 }
 0x905   :  { %v10371_v35 = vsub.f32 %v10260_v11, %v3733_v16  ;;  %v3789_v53 = vsel %vm96_vm0, %v3763_v18, 0.0  ;;  %v3764_v31 = vmul.f32 %v10365_v36, %v10365_v36 }
 0x906   :  { %3790 = vadd.xlane.f32.xlu1 %v3789_v53 }
 0x907   :  { %v3792_v55 = vsel %vm96_vm0, %v3764_v31, 0.0  ;;  %v3765_v54 = vmul.f32 %v10371_v35, %v10371_v35 }
 0x908   :  { %3793 = vadd.xlane.f32.xlu0 %v3792_v55 }
 0x909   :  { %v3795_v29 = vsel %vm96_vm0, %v3765_v54, 0.0 }
 0x90a   :  { %3796 = vadd.xlane.f32.xlu1 %v3795_v29 }
 0x91c   :  { %v3704_v10 = vpop.xlane.xlu0 %3703 }
 0x91d   :  { %v3734_v32 = vmul.f32 0.015625, %v3704_v10 }
 0x91e   :  { %v3707_v50 = vpop.xlane.xlu1 %3706 }
 0x91f   :  { %v10406_v37 = vsub.f32 %v10273_v27, %v3734_v32  ;;  %v3735_v62 = vmul.f32 0.015625, %v3707_v50 }
 0x920   :  { %v3710_v4 = vpop.xlane.xlu0 %3709 }
 0x921   :  { %v10409_v20 = vsub.f32 %v10285_v42, %v3735_v62  ;;  %v3736_v41 = vmul.f32 0.015625, %v3710_v4  ;;  %v3766_v49 = vmul.f32 %v10406_v37, %v10406_v37 }
 0x922   :  { %v3713_v5 = vpop.xlane.xlu1 %3712 }
 0x923   :  { %v10414_v15 = vsub.f32 %v10280_v0, %v3736_v41  ;;  %v3737_v47 = vmul.f32 0.015625, %v3713_v5  ;;  %v3798_v43 = vsel %vm96_vm0, %v3766_v49, 0.0  ;;  %v3767_v34 = vmul.f32 %v10409_v20, %v10409_v20 }
 0x924   :  { %3799 = vadd.xlane.f32.xlu0 %v3798_v43 }
 0x925   :  { %v10420_v56 = vsub.f32 %v10292_v9, %v3737_v47  ;;  %v3801_v44 = vsel %vm96_vm0, %v3767_v34, 0.0  ;;  %v3768_v39 = vmul.f32 %v10414_v15, %v10414_v15 }
 0x926   :  { %3802 = vadd.xlane.f32.xlu1 %v3801_v44 }
 0x927   :  { %v3804_v3 = vsel %vm96_vm0, %v3768_v39, 0.0  ;;  %v3769_v57 = vmul.f32 %v10420_v56, %v10420_v56 }
 0x928   :  { %3805 = vadd.xlane.f32.xlu0 %v3804_v3 }
 0x929   :  { %v3807_v6 = vsel %vm96_vm0, %v3769_v57, 0.0  ;;  %v10456_v57 = vld [vmem:[%s11036_s15] ss:$0 sm:$0xff] }
 0x92a   :  { %3808 = vadd.xlane.f32.xlu1 %v3807_v6 }
 0x93b   :  { %v3716_v40 = vpop.xlane.xlu0 %3715 }
 0x93c   :  { %v3738_v60 = vmul.f32 0.015625, %v3716_v40 }
 0x93d   :  { %v3719_v52 = vpop.xlane.xlu1 %3718 }
 0x93e   :  { %v10430_v16 = vsub.f32 %v10305_v19, %v3738_v60  ;;  %v3739_v45 = vmul.f32 0.015625, %v3719_v52 }
 0x93f   :  { %v3722_v18 = vpop.xlane.xlu0 %3721 }
 0x940   :  { %v10433_v53 = vsub.f32 %v10317_v63, %v3739_v45  ;;  %v3740_v31 = vmul.f32 0.015625, %v3722_v18  ;;  %v3770_v55 = vmul.f32 %v10430_v16, %v10430_v16  ;;  %v10464_v18 = vld [vmem:[%s11037_s16] ss:$0 sm:$0xff] }
 0x941   :  { %v3725_v54 = vpop.xlane.xlu1 %3724 }
 0x942   :  { %v10438_v2 = vsub.f32 %v10312_v8, %v3740_v31  ;;  %v3741_v13 = vmul.f32 0.015625, %v3725_v54  ;;  %v3810_v29 = vsel %vm96_vm0, %v3770_v55, 0.0  ;;  %v3771_v46 = vmul.f32 %v10433_v53, %v10433_v53 }
 0x943   :  { %3811 = vadd.xlane.f32.xlu0 %v3810_v29 }
 0x944   :  { %v10444_v23 = vsub.f32 %v10324_v25, %v3741_v13  ;;  %v3813_v58 = vsel %vm96_vm0, %v3771_v46, 0.0  ;;  %v3772_v61 = vmul.f32 %v10438_v2, %v10438_v2 }
 0x945   :  { %3814 = vadd.xlane.f32.xlu1 %v3813_v58 }
 0x946   :  { %v3816_v38 = vsel %vm96_vm0, %v3772_v61, 0.0  ;;  %v3773_v14 = vmul.f32 %v10444_v23, %v10444_v23 }
 0x947   :  { %3817 = vadd.xlane.f32.xlu0 %v3816_v38 }
 0x948   :  { %v3819_v10 = vsel %vm96_vm0, %v3773_v14, 0.0 }
 0x949   :  { %3820 = vadd.xlane.f32.xlu1 %v3819_v10 }
 0x971   :  { %v3776_v32 = vpop.xlane.xlu0 %3775 }
 0x972   :  { %v3822_v50 = vmul.f32 0.015625, %v3776_v32 }
 0x973   :  { %v3779_v62 = vpop.xlane.xlu1 %3778 }
 0x974   :  { %v3838_v4 = vadd.f32 1e-05, %v3822_v50  ;;  %v3823_v41 = vmul.f32 0.015625, %v3779_v62 }
 0x975   :  { %v3782_v49 = vpop.xlane.xlu0 %3781 }
 0x976   :  { %6856 = vrsqrt.f32 %v3838_v4  ;;  %v3839_v5 = vadd.f32 1e-05, %v3823_v41  ;;  %v3824_v47 = vmul.f32 0.015625, %v3782_v49 }
 0x977   :  { %v3785_v43 = vpop.xlane.xlu1 %3784 }
 0x978   :  { %6858 = vrsqrt.f32 %v3839_v5  ;;  %v3840_v34 = vadd.f32 1e-05, %v3824_v47  ;;  %v3825_v44 = vmul.f32 0.015625, %v3785_v43 }
 0x97a   :  { %6860 = vrsqrt.f32 %v3840_v34  ;;  %v3841_v39 = vadd.f32 1e-05, %v3825_v44 }
 0x97c   :  { %6862 = vrsqrt.f32 %v3841_v39 }
 0x980   :  { %v6857_v3 = vpop.eup %6856 }
 0x981   :  { %v3870_v6 = vmul.f32 %v6857_v3, %v10333_v28 }
 0x982   :  { %v6859_v40 = vpop.eup %6858 }
 0x983   :  { %v3892_v60 = vmul.f32 %v10456_v57, %v3870_v6  ;;  %v3871_v52 = vmul.f32 %v6859_v40, %v10336_v48 }
 0x984   :  { %v6861_v45 = vpop.eup %6860 }
 0x985   :  { %v3893_v31 = vmul.f32 %v10456_v57, %v3871_v52  ;;  %v3914_v54 = vadd.f32 %v10464_v18, %v3892_v60  ;;  %v3872_v28 = vmul.f32 %v6861_v45, %v10341_v7 }
 0x986   :  { %v6863_v55 = vpop.eup %6862 }
 0x987   :  { %v3915_v13 = vadd.f32 %v10464_v18, %v3893_v31  ;;  %v3873_v29 = vmul.f32 %v6863_v55, %v10347_v59  ;;  %v3894_v58 = vmul.f32 %v10456_v57, %v3872_v28 }
 0x989   :  { %v3930_v46 = vpack.c.bf16 %v3915_v13, %v3914_v54  ;;  %v3895_v48 = vmul.f32 %v10456_v57, %v3873_v29  ;;  %v3916_v38 = vadd.f32 %v10464_v18, %v3894_v58 }
 0x98b   :  { %5319 = vmatmul.mubr.msk.bf16.vlgmr.msra.gmra.mrb[192].mxu0 %vm96_vm0, %v3930_v46  ;;  %v3917_v61 = vadd.f32 %v10464_v18, %v3895_v48 }
 0x98c   :  { %4064 = vmatprep.mubr.bf16.mxu0 %v7066_v33 }
 0x98d   :  { %v3931_v10 = vpack.c.bf16 %v3917_v61, %v3916_v38 }
 0x991   :  { %v3788_v14 = vpop.xlane.xlu0 %3787 }
 0x992   :  { %v3826_v32 = vmul.f32 0.015625, %v3788_v14 }
 0x993   :  { %v3791_v50 = vpop.xlane.xlu1 %3790  ;;  %5320 = vmatmul.mubr.msk.bf16.gmra.mrb[196].mxu0 %vm96_vm0, %v3931_v10 }
 0x994   :  { %v3842_v7 = vadd.f32 1e-05, %v3826_v32  ;;  %v3827_v59 = vmul.f32 0.015625, %v3791_v50  ;;  %4074 = vmatprep.mubr.bf16.mxu0 %v7066_v33 }
 0x995   :  { %v3794_v62 = vpop.xlane.xlu0 %3793 }
 0x996   :  { %6864 = vrsqrt.f32 %v3842_v7  ;;  %v3843_v4 = vadd.f32 1e-05, %v3827_v59  ;;  %v3828_v41 = vmul.f32 0.015625, %v3794_v62 }
 0x997   :  { %v3797_v49 = vpop.xlane.xlu1 %3796 }
 0x998   :  { %6866 = vrsqrt.f32 %v3843_v4  ;;  %v3844_v5 = vadd.f32 1e-05, %v3828_v41  ;;  %v3829_v47 = vmul.f32 0.015625, %v3797_v49 }
 0x99a   :  { %6868 = vrsqrt.f32 %v3844_v5  ;;  %v3845_v43 = vadd.f32 1e-05, %v3829_v47 }
 0x99c   :  { %6870 = vrsqrt.f32 %v3845_v43 }
 0x9a0   :  { %v6865_v34 = vpop.eup %6864 }
 0x9a1   :  { %v3874_v44 = vmul.f32 %v6865_v34, %v10357_v24 }
 0x9a2   :  { %v6867_v39 = vpop.eup %6866 }
 0x9a3   :  { %v3875_v3 = vmul.f32 %v6867_v39, %v10360_v17  ;;  %v3896_v6 = vmul.f32 %v10456_v57, %v3874_v44 }
 0x9a4   :  { %v6869_v40 = vpop.eup %6868 }
 0x9a5   :  { %v3897_v60 = vmul.f32 %v10456_v57, %v3875_v3  ;;  %v3876_v45 = vmul.f32 %v6869_v40, %v10365_v36  ;;  %v3918_v55 = vadd.f32 %v10464_v18, %v3896_v6 }
 0x9a6   :  { %v6871_v52 = vpop.eup %6870 }
 0x9a7   :  { %v3877_v31 = vmul.f32 %v6871_v52, %v10371_v35  ;;  %v3919_v54 = vadd.f32 %v10464_v18, %v3897_v60  ;;  %v3898_v17 = vmul.f32 %v10456_v57, %v3876_v45 }
 0x9a9   :  { %v3932_v13 = vpack.c.bf16 %v3919_v54, %v3918_v55  ;;  %v3899_v24 = vmul.f32 %v10456_v57, %v3877_v31  ;;  %v3920_v29 = vadd.f32 %v10464_v18, %v3898_v17 }
 0x9ab   :  { %5321 = vmatmul.mubr.msk.bf16.gmra.mrb[200].mxu0 %vm96_vm0, %v3932_v13  ;;  %v3921_v28 = vadd.f32 %v10464_v18, %v3899_v24 }
 0x9ac   :  { %4084 = vmatprep.mubr.bf16.mxu0 %v7066_v33 }
 0x9ad   :  { %v3933_v46 = vpack.c.bf16 %v3921_v28, %v3920_v29 }
 0x9b1   :  { %v3800_v36 = vpop.xlane.xlu0 %3799 }
 0x9b2   :  { %v3830_v35 = vmul.f32 0.015625, %v3800_v36 }
 0x9b3   :  { %v3803_v48 = vpop.xlane.xlu1 %3802  ;;  %5322 = vmatmul.mubr.msk.bf16.gmra.mrb[204].mxu0 %vm96_vm0, %v3933_v46 }
 0x9b4   :  { %v3846_v58 = vadd.f32 1e-05, %v3830_v35  ;;  %v3831_v61 = vmul.f32 0.015625, %v3803_v48  ;;  %4094 = vmatprep.mubr.bf16.mxu0 %v7066_v33 }
 0x9b5   :  { %v3806_v38 = vpop.xlane.xlu0 %3805 }
 0x9b6   :  { %6872 = vrsqrt.f32 %v3846_v58  ;;  %v3847_v14 = vadd.f32 1e-05, %v3831_v61  ;;  %v3832_v10 = vmul.f32 0.015625, %v3806_v38 }
 0x9b7   :  { %v3809_v32 = vpop.xlane.xlu1 %3808 }
 0x9b8   :  { %6874 = vrsqrt.f32 %v3847_v14  ;;  %v3848_v50 = vadd.f32 1e-05, %v3832_v10  ;;  %v3833_v7 = vmul.f32 0.015625, %v3809_v32 }
 0x9ba   :  { %6876 = vrsqrt.f32 %v3848_v50  ;;  %v3849_v59 = vadd.f32 1e-05, %v3833_v7 }
 0x9bc   :  { %6878 = vrsqrt.f32 %v3849_v59 }
 0x9c0   :  { %v6873_v62 = vpop.eup %6872 }
 0x9c1   :  { %v3878_v4 = vmul.f32 %v6873_v62, %v10406_v37 }
 0x9c2   :  { %v6875_v41 = vpop.eup %6874 }
 0x9c3   :  { %v3879_v49 = vmul.f32 %v6875_v41, %v10409_v20  ;;  %v3900_v5 = vmul.f32 %v10456_v57, %v3878_v4 }
 0x9c4   :  { %v6877_v47 = vpop.eup %6876 }
 0x9c5   :  { %v3901_v43 = vmul.f32 %v10456_v57, %v3879_v49  ;;  %v3880_v44 = vmul.f32 %v6877_v47, %v10414_v15  ;;  %v3922_v3 = vadd.f32 %v10464_v18, %v3900_v5  ;;  %v6549_v5 = vld [vmem:[%s11038_s19] sm:$0xff]   ;;  %v6553_v47 = vld [vmem:[%s11038_s19 + $0x10] sm:$0xff]  }
 0x9c6   :  { %v6879_v34 = vpop.eup %6878 }
 0x9c7   :  { %v3881_v39 = vmul.f32 %v6879_v34, %v10420_v56  ;;  %v3923_v6 = vadd.f32 %v10464_v18, %v3901_v43  ;;  %v3902_v20 = vmul.f32 %v10456_v57, %v3880_v44  ;;  %v6554_v43 = vld [vmem:[%s11038_s19 + $0x58] sm:$0xff]   ;;  %v6556_v44 = vld [vmem:[%s11038_s19 + $0x60] sm:$0xff]  }
 0x9c8   :  { %v6555_v34 = vld [vmem:[%s11038_s19 + $0x18] sm:$0xff]  }
 0x9c9   :  { %v3934_v40 = vpack.c.bf16 %v3923_v6, %v3922_v3  ;;  %v3903_v37 = vmul.f32 %v10456_v57, %v3881_v39  ;;  %v3924_v52 = vadd.f32 %v10464_v18, %v3902_v20  ;;  %v6557_v39 = vld [vmem:[%s11038_s19 + $0x20] sm:$0xff]   ;;  %v6558_v3 = vld [vmem:[%s11038_s19 + $0x68] sm:$0xff]   ;;  %v6562_v20 = vld [vmem:[%s11038_s19 + $0x78] sm:$0xff]  }
 0x9ca   :  { %v6559_v6 = vld [vmem:[%s11038_s19 + $0x28] sm:$0xff]  }
 0x9cb   :  { %5323 = vmatmul.mubr.msk.bf16.gmra.mrb[208].mxu0 %vm96_vm0, %v3934_v40  ;;  %v3925_v60 = vadd.f32 %v10464_v18, %v3903_v37  ;;  %v6560_v40 = vld [vmem:[%s11038_s19 + $0x70] sm:$0xff]  }
 0x9cc   :  { %4104 = vmatprep.mubr.bf16.mxu0 %v7066_v33  ;;  %v6561_v37 = vld [vmem:[%s11038_s19 + $0x30] sm:$0xff]  }
 0x9cd   :  { %v3935_v45 = vpack.c.bf16 %v3925_v60, %v3924_v52  ;;  %v6563_v60 = vld [vmem:[%s11038_s19 + $0x38] sm:$0xff]   ;;  %v3948_v52 = vlaneseq }
 0x9d0   :  { %v3812_v15 = vpop.xlane.xlu0 %3811 }
 0x9d1   :  { %v3834_v56 = vmul.f32 0.015625, %v3812_v15  ;;  %v3949_v15 = vshrl.u32 %v3948_v52, 7 }
 0x9d2   :  { %v3815_v31 = vpop.xlane.xlu1 %3814 }
 0x9d3   :  { %5324 = vmatmul.mubr.msk.bf16.gmra.mrb[212].mxu0 %vm96_vm0, %v3935_v45  ;;  %v3850_v55 = vadd.f32 1e-05, %v3834_v56  ;;  %v3835_v54 = vmul.f32 0.015625, %v3815_v31  ;;  %v3950_v45 = vsub.s32 0, %v3949_v15  ;;  %v3946_v56 = vld [vmem:[%s11039_s18] sm:$0x3] }
 0x9d4   :  { %4114 = vmatprep.mubr.bf16.mxu0 %v7066_v33  ;;  %v3818_v13 = vpop.xlane.xlu0 %3817  ;;  %v3954_v31 = vsub.s32 1, %v3949_v15 }
 0x9d5   :  { %6880 = vrsqrt.f32 %v3850_v55  ;;  %v3851_v24 = vadd.f32 1e-05, %v3835_v54  ;;  %v3836_v17 = vmul.f32 0.015625, %v3818_v13  ;;  %v10577_v55 = vrot.slane %v3946_v56, %v3950_v45 }
 0x9d6   :  { %v3821_v28 = vpop.xlane.xlu1 %3820  ;;  %v10579_v54 = vrot.slane %v3946_v56, %v3954_v31 }
 0x9d7   :  { %6882 = vrsqrt.f32 %v3851_v24  ;;  %v3852_v29 = vadd.f32 1e-05, %v3836_v17  ;;  %v3837_v36 = vmul.f32 0.015625, %v3821_v28 }
 0x9d9   :  { %6884 = vrsqrt.f32 %v3852_v29  ;;  %v3853_v46 = vadd.f32 1e-05, %v3837_v36 }
 0x9db   :  { %6886 = vrsqrt.f32 %v3853_v46 }
 0x9df   :  { %v6881_v35 = vpop.eup %6880 }
 0x9e0   :  { %v3882_v48 = vmul.f32 %v6881_v35, %v10430_v16 }
 0x9e1   :  { %v6883_v58 = vpop.eup %6882 }
 0x9e2   :  { %v3883_v61 = vmul.f32 %v6883_v58, %v10433_v53  ;;  %v3904_v38 = vmul.f32 %v10456_v57, %v3882_v48 }
 0x9e3   :  { %v6885_v14 = vpop.eup %6884 }
 0x9e4   :  { %v3905_v10 = vmul.f32 %v10456_v57, %v3883_v61  ;;  %v3884_v50 = vmul.f32 %v6885_v14, %v10438_v2  ;;  %v3926_v59 = vadd.f32 %v10464_v18, %v3904_v38 }
 0x9e5   :  { %v6887_v32 = vpop.eup %6886 }
 0x9e6   :  { %v3885_v7 = vmul.f32 %v6887_v32, %v10444_v23  ;;  %v3927_v62 = vadd.f32 %v10464_v18, %v3905_v10  ;;  %v3906_v53 = vmul.f32 %v10456_v57, %v3884_v50  ;;  %v6548_v23 = vld [vmem:[%s11038_s19 + $0x40] sm:$0xff]  }
 0x9e7   :  { %6039 = vmatprep.subr.bf16.mxu1 %v6548_v23 }
 0x9e8   :  { %v3936_v4 = vpack.c.bf16 %v3927_v62, %v3926_v59  ;;  %v3907_v16 = vmul.f32 %v10456_v57, %v3885_v7  ;;  %v3928_v49 = vadd.f32 %v10464_v18, %v3906_v53  ;;  %6040 = vmatpush3.bf16.msra.mxu1 %v6549_v5  ;;  %v6551_v57 = vld [vmem:[%s11038_s19 + $0x8] sm:$0xff]  }
 0x9ea   :  { %5325 = vmatmul.mubr.msk.bf16.gmra.mrb[216].mxu0 %vm96_vm0, %v3936_v4  ;;  %v3929_v41 = vadd.f32 %v10464_v18, %v3907_v16  ;;  %v6552_v18 = vld [vmem:[%s11038_s19 + $0x50] sm:$0xff]  }
 0x9eb   :  { %4124 = vmatprep.mubr.bf16.mxu0 %v7066_v33  ;;  %v6550_v33 = vld [vmem:[%s11038_s19 + $0x48] sm:$0xff]  }
 0x9ec   :  { %v3937_v2 = vpack.c.bf16 %v3929_v41, %v3928_v49  ;;  %6041 = vmatprep.subr.bf16.mxu1 %v6550_v33 }
 0x9ed   :  { %6042 = vmatpush3.bf16.msra.mxu1 %v6551_v57 }
 0x9ee   :  { %6043 = vmatprep.subr.bf16.mxu1 %v6552_v18 }
 0x9f1   :  { %6044 = vmatpush3.bf16.msra.mxu1 %v6553_v47 }
 0x9f2   :  { %5326 = vmatmul.mubr.msk.bf16.gmra.mrb[220].mxu0 %vm96_vm0, %v3937_v2  ;;  %6045 = vmatprep.subr.bf16.mxu1 %v6554_v43 }
 0x9f5   :  { %6046 = vmatpush3.bf16.msra.mxu1 %v6555_v34 }
 0x9f6   :  { %6047 = vmatprep.subr.bf16.mxu1 %v6556_v44 }
 0x9f9   :  { %6048 = vmatpush3.bf16.msra.mxu1 %v6557_v39 }
 0x9fa   :  { %6049 = vmatprep.subr.bf16.mxu1 %v6558_v3 }
 0x9fd   :  { %6050 = vmatpush3.bf16.msra.mxu1 %v6559_v6 }
 0x9fe   :  { %6051 = vmatprep.subr.bf16.mxu1 %v6560_v40 }
 0xa01   :  { %6052 = vmatpush3.bf16.msra.mxu1 %v6561_v37 }
 0xa02   :  { %6053 = vmatprep.subr.bf16.mxu1 %v6562_v20 }
 0xa05   :  { %6054 = vmatpush3.bf16.msra.mxu1 %v6563_v60 }
 0xa5e   :  { %v4056_v13 = vpop.f32.mrb[192].mxu0 }
 0xa5f   :  { %v10582_v24 = vadd.f32 %v4056_v13, %v10577_v55  ;;  %v4058_v17 = vpop.f32.mrb[193].mxu0 }
 0xa60   :  { %v10585_v28 = vadd.f32 %v4058_v17, %v10579_v54  ;;  %v4060_v29 = vpop.f32.mrb[194].mxu0 }
 0xa61   :  { %v5327_v36 = vmul.f32 -1.702, %v10582_v24  ;;  %v10589_v46 = vadd.f32 %v4060_v29, %v10577_v55  ;;  %v4062_v35 = vpop.f32.mrb[195].mxu0 }
 0xa62   :  { %v5328_v48 = vmul.f32 -1.702, %v10585_v28  ;;  %v10593_v58 = vadd.f32 %v4062_v35, %v10579_v54 }
 0xa63   :  { %v4199_v61 = vmul.f32 1.442695, %v5327_v36  ;;  %v5329_v38 = vmul.f32 -1.702, %v10589_v46 }
 0xa64   :  { %v4201_v14 = vmul.f32 1.442695, %v5328_v48  ;;  %v5330_v10 = vmul.f32 -1.702, %v10593_v58 }
 0xa65   :  { %6888 = vpow2.f32 %v4199_v61  ;;  %v4203_v32 = vmul.f32 1.442695, %v5329_v38 }
 0xa66   :  { %6890 = vpow2.f32 %v4201_v14  ;;  %v4205_v50 = vmul.f32 1.442695, %v5330_v10  ;;  %v4066_v7 = vpop.f32.mrb[196].mxu0 }
 0xa67   :  { %6892 = vpow2.f32 %v4203_v32  ;;  %v10598_v59 = vadd.f32 %v4066_v7, %v10577_v55  ;;  %v4068_v62 = vpop.f32.mrb[197].mxu0 }
 0xa68   :  { %6894 = vpow2.f32 %v4205_v50  ;;  %v10601_v4 = vadd.f32 %v4068_v62, %v10579_v54  ;;  %v4070_v16 = vpop.f32.mrb[198].mxu0 }
 0xa69   :  { %v5331_v53 = vmul.f32 -1.702, %v10598_v59  ;;  %v10605_v41 = vadd.f32 %v4070_v16, %v10577_v55  ;;  %v4072_v49 = vpop.f32.mrb[199].mxu0 }
 0xa6a   :  { %v5332_v2 = vmul.f32 -1.702, %v10601_v4  ;;  %v10609_v23 = vadd.f32 %v4072_v49, %v10579_v54 }
 0xa6b   :  { %v4207_v5 = vmul.f32 1.442695, %v5331_v53  ;;  %v5333_v33 = vmul.f32 -1.702, %v10605_v41 }
 0xa6c   :  { %v4209_v57 = vmul.f32 1.442695, %v5332_v2  ;;  %v5334_v18 = vmul.f32 -1.702, %v10609_v23 }
 0xa6d   :  { %6896 = vpow2.f32 %v4207_v5  ;;  %v4211_v47 = vmul.f32 1.442695, %v5333_v33 }
 0xa6e   :  { %6898 = vpow2.f32 %v4209_v57  ;;  %v4213_v43 = vmul.f32 1.442695, %v5334_v18 }
 0xa6f   :  { %v6889_v34 = vpop.eup %6888  ;;  %6900 = vpow2.f32 %v4211_v47 }
 0xa70   :  { %v6891_v44 = vpop.eup %6890  ;;  %v4263_v39 = vadd.f32 1.0, %v6889_v34  ;;  %6902 = vpow2.f32 %v4213_v43 }
 0xa71   :  { %v6893_v3 = vpop.eup %6892  ;;  %v4264_v6 = vadd.f32 1.0, %v6891_v44 }
 0xa72   :  { %v6895_v40 = vpop.eup %6894  ;;  %6904 = vrcp.f32 %v4263_v39  ;;  %v4265_v37 = vadd.f32 1.0, %v6893_v3 }
 0xa73   :  { %6906 = vrcp.f32 %v4264_v6  ;;  %v4266_v20 = vadd.f32 1.0, %v6895_v40 }
 0xa74   :  { %6908 = vrcp.f32 %v4265_v37 }
 0xa75   :  { %6910 = vrcp.f32 %v4266_v20 }
 0xa77   :  { %v6897_v60 = vpop.eup %6896 }
 0xa78   :  { %v6899_v52 = vpop.eup %6898  ;;  %v4267_v15 = vadd.f32 1.0, %v6897_v60 }
 0xa79   :  { %v6901_v45 = vpop.eup %6900  ;;  %v4268_v56 = vadd.f32 1.0, %v6899_v52 }
 0xa7a   :  { %v6903_v31 = vpop.eup %6902  ;;  %6912 = vrcp.f32 %v4267_v15  ;;  %v4269_v13 = vadd.f32 1.0, %v6901_v45 }
 0xa7b   :  { %6914 = vrcp.f32 %v4268_v56  ;;  %v4270_v17 = vadd.f32 1.0, %v6903_v31 }
 0xa7c   :  { %v6905_v29 = vpop.eup %6904  ;;  %6916 = vrcp.f32 %v4269_v13 }
 0xa7d   :  { %v6907_v36 = vpop.eup %6906  ;;  %6918 = vrcp.f32 %v4270_v17  ;;  %v4359_v38 = vmul.f32 %v6905_v29, %v10582_v24 }
 0xa7e   :  { %v6909_v35 = vpop.eup %6908  ;;  %v4076_v48 = vpop.f32.mrb[200].mxu0  ;;  %v4360_v50 = vmul.f32 %v6907_v36, %v10585_v28 }
 0xa7f   :  { %v6911_v61 = vpop.eup %6910  ;;  %v4361_v14 = vmul.f32 %v6909_v35, %v10589_v46  ;;  %v10616_v10 = vadd.f32 %v4076_v48, %v10577_v55  ;;  %v4078_v32 = vpop.f32.mrb[201].mxu0 }
 0xa80   :  { %v4362_v7 = vmul.f32 %v6911_v61, %v10593_v58  ;;  %v10621_v62 = vadd.f32 %v4078_v32, %v10579_v54  ;;  %v4080_v16 = vpop.f32.mrb[202].mxu0 }
 0xa81   :  { %v4391_v53 = vpack.c.bf16 %v4361_v14, %v4359_v38  ;;  %v5335_v49 = vmul.f32 -1.702, %v10616_v10  ;;  %v10625_v2 = vadd.f32 %v4080_v16, %v10577_v55  ;;  %v4082_v24 = vpop.f32.mrb[203].mxu0 }
 0xa82   :  { %v5336_v46 = vmul.f32 -1.702, %v10621_v62  ;;  %v10629_v5 = vadd.f32 %v4082_v24, %v10579_v54  ;;  %v4392_v33 = vpack.c.bf16 %v4362_v7, %v4360_v50 }
 0xa83   :  { %v4215_v28 = vmul.f32 1.442695, %v5335_v49  ;;  %v5337_v58 = vmul.f32 -1.702, %v10625_v2 }
 0xa84   :  { %v6913_v57 = vpop.eup %6912  ;;  %v4217_v18 = vmul.f32 1.442695, %v5336_v46  ;;  %v5338_v47 = vmul.f32 -1.702, %v10629_v5  ;;  %4574 = vmatprep.mubr.bf16.mxu1 %v4392_v33 }
 0xa85   :  { %v6915_v43 = vpop.eup %6914  ;;  %6920 = vpow2.f32 %v4215_v28  ;;  %v4219_v34 = vmul.f32 1.442695, %v5337_v58  ;;  %4575 = vmatmul.mubr.bf16.vlgmr.msra.gmra.mrb[192].mxu1 %v4391_v53  ;;  %v4363_v40 = vmul.f32 %v6913_v57, %v10598_v59 }
 0xa86   :  { %v6917_v44 = vpop.eup %6916  ;;  %6922 = vpow2.f32 %v4217_v18  ;;  %v4221_v39 = vmul.f32 1.442695, %v5338_v47  ;;  %v4086_v3 = vpop.f32.mrb[204].mxu0  ;;  %v4364_v52 = vmul.f32 %v6915_v43, %v10601_v4 }
 0xa87   :  { %v6919_v6 = vpop.eup %6918  ;;  %v4365_v37 = vmul.f32 %v6917_v44, %v10605_v41  ;;  %6924 = vpow2.f32 %v4219_v34  ;;  %v10636_v20 = vadd.f32 %v4086_v3, %v10577_v55  ;;  %v4088_v60 = vpop.f32.mrb[205].mxu0 }
 0xa88   :  { %v4366_v15 = vmul.f32 %v6919_v6, %v10609_v23  ;;  %6926 = vpow2.f32 %v4221_v39  ;;  %v10641_v45 = vadd.f32 %v4088_v60, %v10579_v54  ;;  %v4090_v56 = vpop.f32.mrb[206].mxu0 }
 0xa89   :  { %v5339_v31 = vmul.f32 -1.702, %v10636_v20  ;;  %v10645_v59 = vadd.f32 %v4090_v56, %v10577_v55  ;;  %v4092_v41 = vpop.f32.mrb[207].mxu0  ;;  %v4393_v13 = vpack.c.bf16 %v4365_v37, %v4363_v40 }
 0xa8a   :  { %v5340_v17 = vmul.f32 -1.702, %v10641_v45  ;;  %v10649_v29 = vadd.f32 %v4092_v41, %v10579_v54  ;;  %v4394_v4 = vpack.c.bf16 %v4366_v15, %v4364_v52 }
 0xa8b   :  { %v4223_v36 = vmul.f32 1.442695, %v5339_v31  ;;  %v5341_v23 = vmul.f32 -1.702, %v10645_v59 }
 0xa8c   :  { %v4225_v35 = vmul.f32 1.442695, %v5340_v17  ;;  %v5342_v48 = vmul.f32 -1.702, %v10649_v29  ;;  %4582 = vmatprep.mubr.bf16.mxu1 %v4394_v4 }
 0xa8d   :  { %6928 = vpow2.f32 %v4223_v36  ;;  %v4227_v61 = vmul.f32 1.442695, %v5341_v23  ;;  %4583 = vmatmul.mubr.bf16.gmra.mrb[196].mxu1 %v4393_v13 }
 0xa8e   :  { %6930 = vpow2.f32 %v4225_v35  ;;  %v4229_v38 = vmul.f32 1.442695, %v5342_v48 }
 0xa8f   :  { %v6921_v14 = vpop.eup %6920  ;;  %6932 = vpow2.f32 %v4227_v61 }
 0xa90   :  { %v6923_v32 = vpop.eup %6922  ;;  %v4271_v50 = vadd.f32 1.0, %v6921_v14  ;;  %6934 = vpow2.f32 %v4229_v38 }
 0xa91   :  { %v6925_v7 = vpop.eup %6924  ;;  %v4272_v16 = vadd.f32 1.0, %v6923_v32 }
 0xa92   :  { %v6927_v53 = vpop.eup %6926  ;;  %6936 = vrcp.f32 %v4271_v50  ;;  %v4273_v49 = vadd.f32 1.0, %v6925_v7 }
 0xa93   :  { %6938 = vrcp.f32 %v4272_v16  ;;  %v4274_v24 = vadd.f32 1.0, %v6927_v53 }
 0xa94   :  { %6940 = vrcp.f32 %v4273_v49 }
 0xa95   :  { %6942 = vrcp.f32 %v4274_v24 }
 0xa97   :  { %v6929_v46 = vpop.eup %6928 }
 0xa98   :  { %v6931_v33 = vpop.eup %6930  ;;  %v4275_v28 = vadd.f32 1.0, %v6929_v46 }
 0xa99   :  { %v6933_v58 = vpop.eup %6932  ;;  %v4276_v57 = vadd.f32 1.0, %v6931_v33 }
 0xa9a   :  { %v6935_v18 = vpop.eup %6934  ;;  %6944 = vrcp.f32 %v4275_v28  ;;  %v4277_v47 = vadd.f32 1.0, %v6933_v58 }
 0xa9b   :  { %6946 = vrcp.f32 %v4276_v57  ;;  %v4278_v43 = vadd.f32 1.0, %v6935_v18 }
 0xa9c   :  { %v6937_v34 = vpop.eup %6936  ;;  %6948 = vrcp.f32 %v4277_v47 }
 0xa9d   :  { %v6939_v44 = vpop.eup %6938  ;;  %6950 = vrcp.f32 %v4278_v43  ;;  %v4367_v40 = vmul.f32 %v6937_v34, %v10616_v10 }
 0xa9e   :  { %v6941_v39 = vpop.eup %6940  ;;  %v4096_v3 = vpop.f32.mrb[208].mxu0  ;;  %v4368_v15 = vmul.f32 %v6939_v44, %v10621_v62 }
 0xa9f   :  { %v6943_v6 = vpop.eup %6942  ;;  %v4369_v37 = vmul.f32 %v6941_v39, %v10625_v2  ;;  %v10656_v60 = vadd.f32 %v4096_v3, %v10577_v55  ;;  %v4098_v52 = vpop.f32.mrb[209].mxu0 }
 0xaa0   :  { %v4370_v56 = vmul.f32 %v6943_v6, %v10629_v5  ;;  %v10661_v31 = vadd.f32 %v4098_v52, %v10579_v54  ;;  %v4100_v41 = vpop.f32.mrb[210].mxu0 }
 0xaa1   :  { %v5343_v13 = vmul.f32 -1.702, %v10656_v60  ;;  %v10665_v17 = vadd.f32 %v4100_v41, %v10577_v55  ;;  %v4102_v10 = vpop.f32.mrb[211].mxu0  ;;  %v4395_v4 = vpack.c.bf16 %v4369_v37, %v4367_v40 }
 0xaa2   :  { %v5344_v2 = vmul.f32 -1.702, %v10661_v31  ;;  %v10669_v36 = vadd.f32 %v4102_v10, %v10579_v54  ;;  %v4396_v23 = vpack.c.bf16 %v4370_v56, %v4368_v15 }
 0xaa3   :  { %v4231_v62 = vmul.f32 1.442695, %v5343_v13  ;;  %v5345_v5 = vmul.f32 -1.702, %v10665_v17 }
 0xaa4   :  { %v6945_v35 = vpop.eup %6944  ;;  %v4233_v48 = vmul.f32 1.442695, %v5344_v2  ;;  %v5346_v61 = vmul.f32 -1.702, %v10669_v36  ;;  %4590 = vmatprep.mubr.bf16.mxu1 %v4396_v23 }
 0xaa5   :  { %v6947_v38 = vpop.eup %6946  ;;  %6952 = vpow2.f32 %v4231_v62  ;;  %v4235_v14 = vmul.f32 1.442695, %v5345_v5  ;;  %4591 = vmatmul.mubr.bf16.gmra.mrb[200].mxu1 %v4395_v4  ;;  %v4371_v53 = vmul.f32 %v6945_v35, %v10636_v20 }
 0xaa6   :  { %v6949_v32 = vpop.eup %6948  ;;  %6954 = vpow2.f32 %v4233_v48  ;;  %v4237_v50 = vmul.f32 1.442695, %v5346_v61  ;;  %v4106_v7 = vpop.f32.mrb[212].mxu0  ;;  %v4372_v33 = vmul.f32 %v6947_v38, %v10641_v45 }
 0xaa7   :  { %v6951_v16 = vpop.eup %6950  ;;  %v4373_v49 = vmul.f32 %v6949_v32, %v10645_v59  ;;  %6956 = vpow2.f32 %v4235_v14  ;;  %v10676_v24 = vadd.f32 %v4106_v7, %v10577_v55  ;;  %v4108_v46 = vpop.f32.mrb[213].mxu0 }
 0xaa8   :  { %v4374_v28 = vmul.f32 %v6951_v16, %v10649_v29  ;;  %6958 = vpow2.f32 %v4237_v50  ;;  %v10681_v58 = vadd.f32 %v4108_v46, %v10579_v54  ;;  %v4110_v57 = vpop.f32.mrb[214].mxu0 }
 0xaa9   :  { %v5347_v18 = vmul.f32 -1.702, %v10676_v24  ;;  %v10685_v20 = vadd.f32 %v4110_v57, %v10577_v55  ;;  %v4112_v59 = vpop.f32.mrb[215].mxu0  ;;  %v4397_v47 = vpack.c.bf16 %v4373_v49, %v4371_v53 }
 0xaaa   :  { %v5348_v43 = vmul.f32 -1.702, %v10681_v58  ;;  %v10689_v34 = vadd.f32 %v4112_v59, %v10579_v54  ;;  %v4398_v45 = vpack.c.bf16 %v4374_v28, %v4372_v33 }
 0xaab   :  { %v4239_v44 = vmul.f32 1.442695, %v5347_v18  ;;  %v5349_v29 = vmul.f32 -1.702, %v10685_v20 }
 0xaac   :  { %v4241_v39 = vmul.f32 1.442695, %v5348_v43  ;;  %v5350_v3 = vmul.f32 -1.702, %v10689_v34  ;;  %4598 = vmatprep.mubr.bf16.mxu1 %v4398_v45 }
 0xaad   :  { %6960 = vpow2.f32 %v4239_v44  ;;  %v4243_v6 = vmul.f32 1.442695, %v5349_v29  ;;  %4599 = vmatmul.mubr.bf16.gmra.mrb[204].mxu1 %v4397_v47 }
 0xaae   :  { %6962 = vpow2.f32 %v4241_v39  ;;  %v4245_v40 = vmul.f32 1.442695, %v5350_v3 }
 0xaaf   :  { %v6953_v37 = vpop.eup %6952  ;;  %6964 = vpow2.f32 %v4243_v6 }
 0xab0   :  { %v6955_v52 = vpop.eup %6954  ;;  %v4279_v15 = vadd.f32 1.0, %v6953_v37  ;;  %6966 = vpow2.f32 %v4245_v40 }
 0xab1   :  { %v6957_v56 = vpop.eup %6956  ;;  %v4280_v41 = vadd.f32 1.0, %v6955_v52 }
 0xab2   :  { %v6959_v13 = vpop.eup %6958  ;;  %6968 = vrcp.f32 %v4279_v15  ;;  %v4281_v10 = vadd.f32 1.0, %v6957_v56 }
 0xab3   :  { %6970 = vrcp.f32 %v4280_v41  ;;  %v4282_v4 = vadd.f32 1.0, %v6959_v13 }
 0xab4   :  { %6972 = vrcp.f32 %v4281_v10 }
 0xab5   :  { %6974 = vrcp.f32 %v4282_v4 }
 0xab7   :  { %v6961_v2 = vpop.eup %6960 }
 0xab8   :  { %v6963_v23 = vpop.eup %6962  ;;  %v4283_v62 = vadd.f32 1.0, %v6961_v2 }
 0xab9   :  { %v6965_v5 = vpop.eup %6964  ;;  %v4284_v35 = vadd.f32 1.0, %v6963_v23 }
 0xaba   :  { %v6967_v48 = vpop.eup %6966  ;;  %6976 = vrcp.f32 %v4283_v62  ;;  %v4285_v61 = vadd.f32 1.0, %v6965_v5 }
 0xabb   :  { %6978 = vrcp.f32 %v4284_v35  ;;  %v4286_v38 = vadd.f32 1.0, %v6967_v48 }
 0xabc   :  { %v6969_v14 = vpop.eup %6968  ;;  %6980 = vrcp.f32 %v4285_v61 }
 0xabd   :  { %v6971_v32 = vpop.eup %6970  ;;  %6982 = vrcp.f32 %v4286_v38  ;;  %v4116_v7 = vpop.f32.mrb[216].mxu0  ;;  %v4375_v53 = vmul.f32 %v6969_v14, %v10656_v60 }
 0xabe   :  { %v6973_v50 = vpop.eup %6972  ;;  %v10696_v46 = vadd.f32 %v4116_v7, %v10577_v55  ;;  %v4118_v33 = vpop.f32.mrb[217].mxu0  ;;  %v4376_v28 = vmul.f32 %v6971_v32, %v10661_v31 }
 0xabf   :  { %v6975_v16 = vpop.eup %6974  ;;  %v4377_v49 = vmul.f32 %v6973_v50, %v10665_v17  ;;  %v10701_v18 = vadd.f32 %v4118_v33, %v10579_v54  ;;  %v4120_v59 = vpop.f32.mrb[218].mxu0 }
 0xac0   :  { %v4378_v57 = vmul.f32 %v6975_v16, %v10669_v36  ;;  %v5351_v47 = vmul.f32 -1.702, %v10696_v46  ;;  %v10705_v43 = vadd.f32 %v4120_v59, %v10577_v55  ;;  %v4122_v60 = vpop.f32.mrb[219].mxu0 }
 0xac1   :  { %v4399_v45 = vpack.c.bf16 %v4377_v49, %v4375_v53  ;;  %v5352_v17 = vmul.f32 -1.702, %v10701_v18  ;;  %v10709_v44 = vadd.f32 %v4122_v60, %v10579_v54 }
 0xac2   :  { %v4400_v29 = vpack.c.bf16 %v4378_v57, %v4376_v28  ;;  %v4247_v31 = vmul.f32 1.442695, %v5351_v47  ;;  %v5353_v36 = vmul.f32 -1.702, %v10705_v43 }
 0xac3   :  { %v4249_v3 = vmul.f32 1.442695, %v5352_v17  ;;  %v5354_v6 = vmul.f32 -1.702, %v10709_v44 }
 0xac4   :  { %v6977_v39 = vpop.eup %6976  ;;  %4606 = vmatprep.mubr.bf16.mxu1 %v4400_v29  ;;  %6984 = vpow2.f32 %v4247_v31  ;;  %v4251_v37 = vmul.f32 1.442695, %v5353_v36 }
 0xac5   :  { %v6979_v40 = vpop.eup %6978  ;;  %4607 = vmatmul.mubr.bf16.gmra.mrb[208].mxu1 %v4399_v45  ;;  %6986 = vpow2.f32 %v4249_v3  ;;  %v4253_v15 = vmul.f32 1.442695, %v5354_v6  ;;  %v4126_v56 = vpop.f32.mrb[220].mxu0  ;;  %v4379_v13 = vmul.f32 %v6977_v39, %v10676_v24 }
 0xac6   :  { %v6981_v52 = vpop.eup %6980  ;;  %6988 = vpow2.f32 %v4251_v37  ;;  %v10716_v4 = vadd.f32 %v4126_v56, %v10577_v55  ;;  %v4128_v2 = vpop.f32.mrb[221].mxu0  ;;  %v4380_v23 = vmul.f32 %v6979_v40, %v10681_v58 }
 0xac7   :  { %v6983_v41 = vpop.eup %6982  ;;  %v4381_v10 = vmul.f32 %v6981_v52, %v10685_v20  ;;  %6990 = vpow2.f32 %v4253_v15  ;;  %v10721_v5 = vadd.f32 %v4128_v2, %v10579_v54  ;;  %v4130_v35 = vpop.f32.mrb[222].mxu0 }
 0xac8   :  { %v4382_v62 = vmul.f32 %v6983_v41, %v10689_v34  ;;  %v5355_v48 = vmul.f32 -1.702, %v10716_v4  ;;  %v4131_v24 = vadd.f32 %v4130_v35, %v10577_v55  ;;  %v4132_v61 = vpop.f32.mrb[223].mxu0 }
 0xac9   :  { %v4401_v20 = vpack.c.bf16 %v4381_v10, %v4379_v13  ;;  %v5356_v38 = vmul.f32 -1.702, %v10721_v5  ;;  %v4133_v14 = vadd.f32 %v4132_v61, %v10579_v54 }
 0xaca   :  { %v4402_v32 = vpack.c.bf16 %v4382_v62, %v4380_v23  ;;  %v4255_v50 = vmul.f32 1.442695, %v5355_v48  ;;  %v5357_v58 = vmul.f32 -1.702, %v4131_v24 }
 0xacb   :  { %v4257_v7 = vmul.f32 1.442695, %v5356_v38  ;;  %v5358_v34 = vmul.f32 -1.702, %v4133_v14 }
 0xacc   :  { %4614 = vmatprep.mubr.bf16.mxu1 %v4402_v32  ;;  %6992 = vpow2.f32 %v4255_v50  ;;  %v4259_v16 = vmul.f32 1.442695, %v5357_v58 }
 0xacd   :  { %4615 = vmatmul.mubr.bf16.gmra.mrb[212].mxu1 %v4401_v20  ;;  %6994 = vpow2.f32 %v4257_v7  ;;  %v4261_v53 = vmul.f32 1.442695, %v5358_v34 }
 0xace   :  { %v6985_v49 = vpop.eup %6984  ;;  %6996 = vpow2.f32 %v4259_v16 }
 0xacf   :  { %v6987_v55 = vpop.eup %6986  ;;  %v4287_v33 = vadd.f32 1.0, %v6985_v49  ;;  %6998 = vpow2.f32 %v4261_v53 }
 0xad0   :  { %v6989_v28 = vpop.eup %6988  ;;  %v4288_v57 = vadd.f32 1.0, %v6987_v55 }
 0xad1   :  { %v6991_v59 = vpop.eup %6990  ;;  %7000 = vrcp.f32 %v4287_v33  ;;  %v4289_v54 = vadd.f32 1.0, %v6989_v28 }
 0xad2   :  { %7002 = vrcp.f32 %v4288_v57  ;;  %v4290_v47 = vadd.f32 1.0, %v6991_v59 }
 0xad3   :  { %7004 = vrcp.f32 %v4289_v54 }
 0xad4   :  { %7006 = vrcp.f32 %v4290_v47 }
 0xad6   :  { %v6993_v60 = vpop.eup %6992 }
 0xad7   :  { %v6995_v45 = vpop.eup %6994  ;;  %v4291_v17 = vadd.f32 1.0, %v6993_v60 }
 0xad8   :  { %v6997_v29 = vpop.eup %6996  ;;  %v4292_v31 = vadd.f32 1.0, %v6995_v45 }
 0xad9   :  { %v6999_v36 = vpop.eup %6998  ;;  %7008 = vrcp.f32 %v4291_v17  ;;  %v4293_v39 = vadd.f32 1.0, %v6997_v29 }
 0xada   :  { %7010 = vrcp.f32 %v4292_v31  ;;  %v4294_v3 = vadd.f32 1.0, %v6999_v36 }
 0xadb   :  { %v7001_v6 = vpop.eup %7000  ;;  %7012 = vrcp.f32 %v4293_v39 }
 0xadc   :  { %v7003_v40 = vpop.eup %7002  ;;  %7014 = vrcp.f32 %v4294_v3  ;;  %v4383_v15 = vmul.f32 %v7001_v6, %v10696_v46 }
 0xadd   :  { %v7005_v37 = vpop.eup %7004  ;;  %v4384_v41 = vmul.f32 %v7003_v40, %v10701_v18 }
 0xade   :  { %v7007_v52 = vpop.eup %7006  ;;  %v4385_v56 = vmul.f32 %v7005_v37, %v10705_v43 }
 0xadf   :  { %v4386_v13 = vmul.f32 %v7007_v52, %v10709_v44  ;;  %v10736_v44 = vld [vmem:[%s11040_s20] ss:$0 sm:$0xff] }
 0xae0   :  { %v4403_v10 = vpack.c.bf16 %v4385_v56, %v4383_v15 }
 0xae1   :  { %v4404_v2 = vpack.c.bf16 %v4386_v13, %v4384_v41 }
 0xae3   :  { %v7009_v23 = vpop.eup %7008  ;;  %4622 = vmatprep.mubr.bf16.mxu1 %v4404_v2 }
 0xae4   :  { %v7011_v62 = vpop.eup %7010  ;;  %4623 = vmatmul.mubr.bf16.gmra.mrb[216].mxu1 %v4403_v10  ;;  %v4387_v61 = vmul.f32 %v7009_v23, %v10716_v4 }
 0xae5   :  { %v7013_v35 = vpop.eup %7012  ;;  %v4388_v38 = vmul.f32 %v7011_v62, %v10721_v5 }
 0xae6   :  { %v7015_v48 = vpop.eup %7014  ;;  %v4389_v20 = vmul.f32 %v7013_v35, %v4131_v24 }
 0xae7   :  { %v4390_v46 = vmul.f32 %v7015_v48, %v4133_v14 }
 0xae8   :  { %v4405_v32 = vpack.c.bf16 %v4389_v20, %v4387_v61 }
 0xae9   :  { %v4406_v43 = vpack.c.bf16 %v4390_v46, %v4388_v38 }
 0xaeb   :  { %4630 = vmatprep.mubr.bf16.mxu1 %v4406_v43 }
 0xaec   :  { %4631 = vmatmul.mubr.bf16.gmra.mrb[220].mxu1 %v4405_v32 }
 0xb58   :  { %v6055_v18 = vpop.f32.mrb[192].mxu1 }
 0xb59   :  { %v6056_v50 = vpop.f32.mrb[193].mxu1 }
 0xb5a   :  { %v6057_v58 = vadd.f32 %v6056_v50, %v6055_v18  ;;  %v6058_v7 = vpop.f32.mrb[194].mxu1 }
 0xb5b   :  { %v6059_v34 = vpop.f32.mrb[195].mxu1 }
 0xb5c   :  { %v4577_v4 = vadd.f32 %v6057_v58, %v10736_v44  ;;  %v6060_v24 = vadd.f32 %v6059_v34, %v6058_v7 }
 0xb5e   :  { %v4580_v5 = vadd.f32 %v6060_v24, %v10736_v44  ;;  %v10741_v14 = vadd.f32 %v4577_v4, %v10209_v21 }
 0xb60   :  { %v6061_v16 = vpop.f32.mrb[196].mxu1  ;;  %v4657_v53 = vsel %vm96_vm0, %v10741_v14, 0.0  ;;  %v10746_v49 = vadd.f32 %v4580_v5, %v10221_v1 }
 0xb61   :  { %4658 = vadd.xlane.f32.xlu0 %v4657_v53  ;;  %v6062_v55 = vpop.f32.mrb[197].mxu1 }
 0xb62   :  { %v6063_v33 = vadd.f32 %v6062_v55, %v6061_v16  ;;  %v6064_v28 = vpop.f32.mrb[198].mxu1  ;;  %v4660_v57 = vsel %vm96_vm0, %v10746_v49, 0.0 }
 0xb63   :  { %4661 = vadd.xlane.f32.xlu1 %v4660_v57  ;;  %v6065_v59 = vpop.f32.mrb[199].mxu1 }
 0xb64   :  { %v4585_v54 = vadd.f32 %v6063_v33, %v10736_v44  ;;  %v6066_v21 = vadd.f32 %v6065_v59, %v6064_v28 }
 0xb66   :  { %v4588_v47 = vadd.f32 %v6066_v21, %v10736_v44  ;;  %v10753_v60 = vadd.f32 %v4585_v54, %v10216_v12 }
 0xb68   :  { %v4663_v1 = vsel %vm96_vm0, %v10753_v60, 0.0  ;;  %v10758_v45 = vadd.f32 %v4588_v47, %v10228_v51 }
 0xb69   :  { %4664 = vadd.xlane.f32.xlu0 %v4663_v1 }
 0xb6a   :  { %v4666_v17 = vsel %vm96_vm0, %v10758_v45, 0.0 }
 0xb6b   :  { %4667 = vadd.xlane.f32.xlu1 %v4666_v17 }
 0xb78   :  { %v6067_v29 = vpop.f32.mrb[200].mxu1 }
 0xb79   :  { %v6068_v31 = vpop.f32.mrb[201].mxu1 }
 0xb7a   :  { %v6069_v36 = vadd.f32 %v6068_v31, %v6067_v29  ;;  %v6070_v39 = vpop.f32.mrb[202].mxu1 }
 0xb7b   :  { %v6071_v3 = vpop.f32.mrb[203].mxu1 }
 0xb7c   :  { %v4593_v6 = vadd.f32 %v6069_v36, %v10736_v44  ;;  %v6072_v12 = vadd.f32 %v6071_v3, %v6070_v39 }
 0xb7e   :  { %v4596_v40 = vadd.f32 %v6072_v12, %v10736_v44  ;;  %v10765_v37 = vadd.f32 %v4593_v6, %v10241_v26 }
 0xb80   :  { %v6073_v51 = vpop.f32.mrb[204].mxu1  ;;  %v4669_v52 = vsel %vm96_vm0, %v10765_v37, 0.0  ;;  %v10770_v15 = vadd.f32 %v4596_v40, %v10253_v22 }
 0xb81   :  { %4670 = vadd.xlane.f32.xlu0 %v4669_v52  ;;  %v6074_v56 = vpop.f32.mrb[205].mxu1 }
 0xb82   :  { %v6075_v41 = vadd.f32 %v6074_v56, %v6073_v51  ;;  %v6076_v13 = vpop.f32.mrb[206].mxu1  ;;  %v4672_v10 = vsel %vm96_vm0, %v10770_v15, 0.0 }
 0xb83   :  { %4673 = vadd.xlane.f32.xlu1 %v4672_v10  ;;  %v6077_v2 = vpop.f32.mrb[207].mxu1 }
 0xb84   :  { %v4601_v23 = vadd.f32 %v6075_v41, %v10736_v44  ;;  %v6078_v26 = vadd.f32 %v6077_v2, %v6076_v13 }
 0xb86   :  { %v4604_v62 = vadd.f32 %v6078_v26, %v10736_v44  ;;  %v10777_v35 = vadd.f32 %v4601_v23, %v10248_v30 }
 0xb88   :  { %v4675_v22 = vsel %vm96_vm0, %v10777_v35, 0.0  ;;  %v10782_v48 = vadd.f32 %v4604_v62, %v10260_v11 }
 0xb89   :  { %4676 = vadd.xlane.f32.xlu0 %v4675_v22 }
 0xb8a   :  { %v4678_v61 = vsel %vm96_vm0, %v10782_v48, 0.0 }
 0xb8b   :  { %4679 = vadd.xlane.f32.xlu1 %v4678_v61 }
 0xb98   :  { %v6079_v20 = vpop.f32.mrb[208].mxu1 }
 0xb99   :  { %v6080_v38 = vpop.f32.mrb[209].mxu1 }
 0xb9a   :  { %v6081_v46 = vadd.f32 %v6080_v38, %v6079_v20  ;;  %v6082_v32 = vpop.f32.mrb[210].mxu1 }
 0xb9b   :  { %v6083_v43 = vpop.f32.mrb[211].mxu1 }
 0xb9c   :  { %v4609_v18 = vadd.f32 %v6081_v46, %v10736_v44  ;;  %v6084_v30 = vadd.f32 %v6083_v43, %v6082_v32 }
 0xb9e   :  { %v4612_v50 = vadd.f32 %v6084_v30, %v10736_v44  ;;  %v10789_v58 = vadd.f32 %v4609_v18, %v10273_v27 }
 0xba0   :  { %v6085_v11 = vpop.f32.mrb[212].mxu1  ;;  %v4681_v7 = vsel %vm96_vm0, %v10789_v58, 0.0  ;;  %v10794_v34 = vadd.f32 %v4612_v50, %v10285_v42 }
 0xba1   :  { %4682 = vadd.xlane.f32.xlu0 %v4681_v7  ;;  %v6086_v4 = vpop.f32.mrb[213].mxu1 }
 0xba2   :  { %v6087_v24 = vadd.f32 %v6086_v4, %v6085_v11  ;;  %v6088_v5 = vpop.f32.mrb[214].mxu1  ;;  %v4684_v16 = vsel %vm96_vm0, %v10794_v34, 0.0 }
 0xba3   :  { %4685 = vadd.xlane.f32.xlu1 %v4684_v16  ;;  %v6089_v53 = vpop.f32.mrb[215].mxu1 }
 0xba4   :  { %v4617_v55 = vadd.f32 %v6087_v24, %v10736_v44  ;;  %v6090_v27 = vadd.f32 %v6089_v53, %v6088_v5 }
 0xba6   :  { %v4620_v33 = vadd.f32 %v6090_v27, %v10736_v44  ;;  %v10801_v28 = vadd.f32 %v4617_v55, %v10280_v0 }
 0xba8   :  { %v4687_v42 = vsel %vm96_vm0, %v10801_v28, 0.0  ;;  %v10806_v57 = vadd.f32 %v4620_v33, %v10292_v9 }
 0xba9   :  { %4688 = vadd.xlane.f32.xlu0 %v4687_v42 }
 0xbaa   :  { %v4690_v59 = vsel %vm96_vm0, %v10806_v57, 0.0 }
 0xbab   :  { %4691 = vadd.xlane.f32.xlu1 %v4690_v59 }
 0xbb7   :  { %v6091_v54 = vpop.f32.mrb[216].mxu1 }
 0xbb8   :  { %v6092_v21 = vpop.f32.mrb[217].mxu1 }
 0xbb9   :  { %v6093_v47 = vadd.f32 %v6092_v21, %v6091_v54  ;;  %v6094_v1 = vpop.f32.mrb[218].mxu1 }
 0xbba   :  { %v6095_v17 = vpop.f32.mrb[219].mxu1 }
 0xbbb   :  { %v4625_v29 = vadd.f32 %v6093_v47, %v10736_v44  ;;  %v6096_v0 = vadd.f32 %v6095_v17, %v6094_v1 }
 0xbbd   :  { %v4628_v31 = vadd.f32 %v6096_v0, %v10736_v44  ;;  %v10813_v36 = vadd.f32 %v4625_v29, %v10305_v19  ;;  %v7067_v29 = vmov 0.0  }
 0xbbe   :  { %6213 = vmatprep.subr.bf16.mxu0 %v7067_v29  ;;  %6233 = vmatprep.subr.bf16.mxu1 %v7067_v29 }
 0xbbf   :  { %v6097_v9 = vpop.f32.mrb[220].mxu1  ;;  %v4693_v39 = vsel %vm96_vm0, %v10813_v36, 0.0  ;;  %v10818_v3 = vadd.f32 %v4628_v31, %v10317_v63  ;;  %6229 = vmatprep.mubr.msk.bf16.mxu0 %vm7068_vm6, %v7067_v29  ;;  %6241 = vmatprep.mubr.msk.bf16.mxu1 %vm7068_vm6, %v7067_v29 }
 0xbc0   :  { %4694 = vadd.xlane.f32.xlu0 %v4693_v39  ;;  %v6098_v6 = vpop.f32.mrb[221].mxu1 }
 0xbc1   :  { %v6099_v12 = vadd.f32 %v6098_v6, %v6097_v9  ;;  %v6100_v40 = vpop.f32.mrb[222].mxu1  ;;  %v4696_v51 = vsel %vm96_vm0, %v10818_v3, 0.0 }
 0xbc2   :  { %4697 = vadd.xlane.f32.xlu1 %v4696_v51  ;;  %v6101_v52 = vpop.f32.mrb[223].mxu1 }
 0xbc3   :  { %v4633_v56 = vadd.f32 %v6099_v12, %v10736_v44  ;;  %v6102_v19 = vadd.f32 %v6101_v52, %v6100_v40 }
 0xbc5   :  { %v4636_v41 = vadd.f32 %v6102_v19, %v10736_v44  ;;  %v10825_v13 = vadd.f32 %v4633_v56, %v10312_v8 }
 0xbc7   :  { %v4699_v63 = vsel %vm96_vm0, %v10825_v13, 0.0  ;;  %v10830_v10 = vadd.f32 %v4636_v41, %v10324_v25 }
 0xbc8   :  { %4700 = vadd.xlane.f32.xlu0 %v4699_v63 }
 0xbc9   :  { %v4702_v2 = vsel %vm96_vm0, %v10830_v10, 0.0 }
 0xbca   :  { %4703 = vadd.xlane.f32.xlu1 %v4702_v2 }
 0xbee   :  { %v4659_v23 = vpop.xlane.xlu0 %4658 }
 0xbef   :  { %v4705_v26 = vmul.f32 0.015625, %v4659_v23 }
 0xbf0   :  { %v4662_v62 = vpop.xlane.xlu1 %4661 }
 0xbf1   :  { %v10835_v22 = vsub.f32 %v10741_v14, %v4705_v26  ;;  %v4706_v44 = vmul.f32 0.015625, %v4662_v62 }
 0xbf3   :  { %v10838_v8 = vsub.f32 %v10746_v49, %v4706_v44  ;;  %v4737_v61 = vmul.f32 %v10835_v22, %v10835_v22 }
 0xbf5   :  { %v4753_v25 = vsel %vm96_vm0, %v4737_v61, 0.0  ;;  %v4738_v20 = vmul.f32 %v10838_v8, %v10838_v8 }
 0xbf6   :  { %4754 = vadd.xlane.f32.xlu0 %v4753_v25  ;;  %v4665_v38 = vpop.xlane.xlu0 %4664 }
 0xbf7   :  { %v4707_v46 = vmul.f32 0.015625, %v4665_v38  ;;  %v4756_v32 = vsel %vm96_vm0, %v4738_v20, 0.0 }
 0xbf8   :  { %v4668_v43 = vpop.xlane.xlu1 %4667  ;;  %4757 = vadd.xlane.f32.xlu1 %v4756_v32 }
 0xbf9   :  { %v10847_v14 = vsub.f32 %v10753_v60, %v4707_v46  ;;  %v4708_v49 = vmul.f32 0.015625, %v4668_v43 }
 0xbfb   :  { %v10850_v18 = vsub.f32 %v10758_v45, %v4708_v49  ;;  %v4739_v30 = vmul.f32 %v10847_v14, %v10847_v14 }
 0xbfd   :  { %v4759_v50 = vsel %vm96_vm0, %v4739_v30, 0.0  ;;  %v4740_v11 = vmul.f32 %v10850_v18, %v10850_v18 }
 0xbfe   :  { %4760 = vadd.xlane.f32.xlu0 %v4759_v50 }
 0xbff   :  { %v4762_v7 = vsel %vm96_vm0, %v4740_v11, 0.0 }
 0xc00   :  { %4763 = vadd.xlane.f32.xlu1 %v4762_v7 }
 0xc0e   :  { %v4671_v4 = vpop.xlane.xlu0 %4670 }
 0xc0f   :  { %v4709_v24 = vmul.f32 0.015625, %v4671_v4 }
 0xc10   :  { %v4674_v60 = vpop.xlane.xlu1 %4673 }
 0xc11   :  { %v10859_v5 = vsub.f32 %v10765_v37, %v4709_v24  ;;  %v4710_v45 = vmul.f32 0.015625, %v4674_v60 }
 0xc13   :  { %v10862_v16 = vsub.f32 %v10770_v15, %v4710_v45  ;;  %v4741_v53 = vmul.f32 %v10859_v5, %v10859_v5 }
 0xc15   :  { %v4765_v55 = vsel %vm96_vm0, %v4741_v53, 0.0  ;;  %v4742_v27 = vmul.f32 %v10862_v16, %v10862_v16 }
 0xc16   :  { %4766 = vadd.xlane.f32.xlu0 %v4765_v55  ;;  %v4677_v33 = vpop.xlane.xlu0 %4676 }
 0xc17   :  { %v4711_v42 = vmul.f32 0.015625, %v4677_v33  ;;  %v4768_v59 = vsel %vm96_vm0, %v4742_v27, 0.0  ;;  %v6564_v33 = vld [vmem:[%s11041_s23] sm:$0xff]  }
 0xc18   :  { %v4680_v54 = vpop.xlane.xlu1 %4679  ;;  %4769 = vadd.xlane.f32.xlu1 %v4768_v59  ;;  %6234 = vmatpush3.bf16.msra.mxu1 %v6564_v33  ;;  %v6565_v59 = vld [vmem:[%s11041_s23 + $0x8] sm:$0xff]  }
 0xc19   :  { %v10871_v37 = vsub.f32 %v10777_v35, %v4711_v42  ;;  %v4712_v15 = vmul.f32 0.015625, %v4680_v54  ;;  %6235 = vmatprep.subr.bf16.mxu1 %v7067_v29 }
 0xc1b   :  { %v10874_v21 = vsub.f32 %v10782_v48, %v4712_v15  ;;  %v4743_v47 = vmul.f32 %v10871_v37, %v10871_v37 }
 0xc1c   :  { %6236 = vmatpush3.bf16.msra.mxu1 %v6565_v59 }
 0xc1d   :  { %v4771_v1 = vsel %vm96_vm0, %v4743_v47, 0.0  ;;  %v4744_v17 = vmul.f32 %v10874_v21, %v10874_v21  ;;  %6237 = vmatprep.subr.bf16.mxu1 %v7067_v29 }
 0xc1e   :  { %4772 = vadd.xlane.f32.xlu0 %v4771_v1 }
 0xc1f   :  { %v4774_v0 = vsel %vm96_vm0, %v4744_v17, 0.0  ;;  %v6566_v17 = vld [vmem:[%s11041_s23 + $0x10] sm:$0xff]  }
 0xc20   :  { %4775 = vadd.xlane.f32.xlu1 %v4774_v0  ;;  %6238 = vmatpush3.bf16.msra.mxu1 %v6566_v17 }
 0xc21   :  { %6239 = vmatprep.subr.bf16.mxu1 %v7067_v29 }
 0xc2e   :  { %v4683_v35 = vpop.xlane.xlu0 %4682 }
 0xc2f   :  { %v4713_v48 = vmul.f32 0.015625, %v4683_v35 }
 0xc30   :  { %v4686_v31 = vpop.xlane.xlu1 %4685 }
 0xc31   :  { %v10885_v9 = vsub.f32 %v10789_v58, %v4713_v48  ;;  %v4714_v39 = vmul.f32 0.015625, %v4686_v31  ;;  %v10948_v48 = vld [vmem:[%s11042_s21] ss:$0 sm:$0xff] }
 0xc33   :  { %v10888_v6 = vsub.f32 %v10794_v34, %v4714_v39  ;;  %v4745_v12 = vmul.f32 %v10885_v9, %v10885_v9  ;;  %v6567_v39 = vld [vmem:[%s11041_s23 + $0x18] sm:$0xff]  }
 0xc34   :  { %6240 = vmatpush3.bf16.msra.mxu1 %v6567_v39 }
 0xc35   :  { %v4777_v40 = vsel %vm96_vm0, %v4745_v12, 0.0  ;;  %v4746_v51 = vmul.f32 %v10888_v6, %v10888_v6 }
 0xc36   :  { %4778 = vadd.xlane.f32.xlu0 %v4777_v40  ;;  %v4689_v52 = vpop.xlane.xlu0 %4688 }
 0xc37   :  { %v4715_v56 = vmul.f32 0.015625, %v4689_v52  ;;  %v4780_v19 = vsel %vm96_vm0, %v4746_v51, 0.0  ;;  %v10960_v52 = vld [vmem:[%s11043_s22] ss:$0 sm:$0xff] }
 0xc38   :  { %v4692_v41 = vpop.xlane.xlu1 %4691  ;;  %4781 = vadd.xlane.f32.xlu1 %v4780_v19 }
 0xc39   :  { %v10897_v58 = vsub.f32 %v10801_v28, %v4715_v56  ;;  %v4716_v34 = vmul.f32 0.015625, %v4692_v41 }
 0xc3b   :  { %v10900_v63 = vsub.f32 %v10806_v57, %v4716_v34  ;;  %v4747_v2 = vmul.f32 %v10897_v58, %v10897_v58 }
 0xc3d   :  { %v4783_v23 = vsel %vm96_vm0, %v4747_v2, 0.0  ;;  %v4748_v26 = vmul.f32 %v10900_v63, %v10900_v63 }
 0xc3e   :  { %4784 = vadd.xlane.f32.xlu0 %v4783_v23 }
 0xc3f   :  { %v4786_v62 = vsel %vm96_vm0, %v4748_v26, 0.0 }
 0xc40   :  { %4787 = vadd.xlane.f32.xlu1 %v4786_v62 }
 0xc4d   :  { %v4695_v44 = vpop.xlane.xlu0 %4694 }
 0xc4e   :  { %v4717_v61 = vmul.f32 0.015625, %v4695_v44 }
 0xc4f   :  { %v4698_v28 = vpop.xlane.xlu1 %4697 }
 0xc50   :  { %v10909_v25 = vsub.f32 %v10813_v36, %v4717_v61  ;;  %v4718_v57 = vmul.f32 0.015625, %v4698_v28 }
 0xc52   :  { %v10912_v20 = vsub.f32 %v10818_v3, %v4718_v57  ;;  %v4749_v38 = vmul.f32 %v10909_v25, %v10909_v25 }
 0xc54   :  { %v4789_v46 = vsel %vm96_vm0, %v4749_v38, 0.0  ;;  %v4750_v32 = vmul.f32 %v10912_v20, %v10912_v20 }
 0xc55   :  { %4790 = vadd.xlane.f32.xlu0 %v4789_v46  ;;  %v4701_v43 = vpop.xlane.xlu0 %4700 }
 0xc56   :  { %v4719_v49 = vmul.f32 0.015625, %v4701_v43  ;;  %v4792_v30 = vsel %vm96_vm0, %v4750_v32, 0.0 }
 0xc57   :  { %4793 = vadd.xlane.f32.xlu1 %v4792_v30  ;;  %v4704_v36 = vpop.xlane.xlu1 %4703 }
 0xc58   :  { %v10921_v50 = vsub.f32 %v10825_v13, %v4719_v49  ;;  %v4720_v3 = vmul.f32 0.015625, %v4704_v36 }
 0xc5a   :  { %v10924_v11 = vsub.f32 %v10830_v10, %v4720_v3  ;;  %v4751_v7 = vmul.f32 %v10921_v50, %v10921_v50 }
 0xc5c   :  { %v4795_v4 = vsel %vm96_vm0, %v4751_v7, 0.0  ;;  %v4752_v24 = vmul.f32 %v10924_v11, %v10924_v11 }
 0xc5d   :  { %4796 = vadd.xlane.f32.xlu0 %v4795_v4 }
 0xc5e   :  { %v4798_v60 = vsel %vm96_vm0, %v4752_v24, 0.0 }
 0xc5f   :  { %4799 = vadd.xlane.f32.xlu1 %v4798_v60 }
 0xc83   :  { %v4755_v45 = vpop.xlane.xlu0 %4754 }
 0xc84   :  { %v4801_v53 = vmul.f32 0.015625, %v4755_v45 }
 0xc85   :  { %v4758_v13 = vpop.xlane.xlu1 %4757 }
 0xc86   :  { %v4817_v55 = vadd.f32 1e-05, %v4801_v53  ;;  %v4802_v27 = vmul.f32 0.015625, %v4758_v13 }
 0xc88   :  { %7016 = vrsqrt.f32 %v4817_v55  ;;  %v4818_v10 = vadd.f32 1e-05, %v4802_v27 }
 0xc8a   :  { %7018 = vrsqrt.f32 %v4818_v10 }
 0xc8b   :  { %v4761_v42 = vpop.xlane.xlu0 %4760 }
 0xc8c   :  { %v4803_v54 = vmul.f32 0.015625, %v4761_v42 }
 0xc8d   :  { %v4764_v15 = vpop.xlane.xlu1 %4763 }
 0xc8e   :  { %v4819_v47 = vadd.f32 1e-05, %v4803_v54  ;;  %v4804_v1 = vmul.f32 0.015625, %v4764_v15 }
 0xc90   :  { %7020 = vrsqrt.f32 %v4819_v47  ;;  %v4820_v0 = vadd.f32 1e-05, %v4804_v1 }
 0xc92   :  { %v7017_v35 = vpop.eup %7016  ;;  %7022 = vrsqrt.f32 %v4820_v0 }
 0xc93   :  { %v4849_v31 = vmul.f32 %v7017_v35, %v10835_v22 }
 0xc94   :  { %v7019_v12 = vpop.eup %7018 }
 0xc95   :  { %v4850_v40 = vmul.f32 %v7019_v12, %v10838_v8  ;;  %v4871_v51 = vmul.f32 %v10948_v48, %v4849_v31 }
 0xc97   :  { %v4872_v56 = vmul.f32 %v10948_v48, %v4850_v40  ;;  %v4893_v22 = vadd.f32 %v10960_v52, %v4871_v51 }
 0xc99   :  { %v4894_v19 = vadd.f32 %v10960_v52, %v4872_v56 }
 0xc9a   :  { %v7021_v41 = vpop.eup %7020 }
 0xc9b   :  { %v4851_v34 = vmul.f32 %v7021_v41, %v10847_v14  ;;  %v4910_v2 = vpack.c.bf16 %v4894_v19, %v4893_v22 }
 0xc9c   :  { %v7023_v23 = vpop.eup %7022 }
 0xc9d   :  { %v4852_v8 = vmul.f32 %v7023_v23, %v10850_v18  ;;  %6214 = vmatpush3.bf16.msra.mxu0 %v4910_v2  ;;  %v4873_v26 = vmul.f32 %v10948_v48, %v4851_v34 }
 0xc9e   :  { %6215 = vmatprep.subr.bf16.mxu0 %v7067_v29 }
 0xc9f   :  { %v4874_v62 = vmul.f32 %v10948_v48, %v4852_v8  ;;  %v4895_v44 = vadd.f32 %v10960_v52, %v4873_v26 }
 0xca1   :  { %v4896_v61 = vadd.f32 %v10960_v52, %v4874_v62 }
 0xca3   :  { %v4767_v28 = vpop.xlane.xlu0 %4766  ;;  %v4911_v57 = vpack.c.bf16 %v4896_v61, %v4895_v44 }
 0xca4   :  { %v4805_v38 = vmul.f32 0.015625, %v4767_v28 }
 0xca5   :  { %v4770_v46 = vpop.xlane.xlu1 %4769  ;;  %6216 = vmatpush3.bf16.msra.mxu0 %v4911_v57 }
 0xca6   :  { %v4821_v14 = vadd.f32 1e-05, %v4805_v38  ;;  %v4806_v32 = vmul.f32 0.015625, %v4770_v46  ;;  %6217 = vmatprep.subr.bf16.mxu0 %v7067_v29 }
 0xca8   :  { %7024 = vrsqrt.f32 %v4821_v14  ;;  %v4822_v18 = vadd.f32 1e-05, %v4806_v32 }
 0xcaa   :  { %7026 = vrsqrt.f32 %v4822_v18 }
 0xcab   :  { %v4773_v43 = vpop.xlane.xlu0 %4772 }
 0xcac   :  { %v4807_v49 = vmul.f32 0.015625, %v4773_v43 }
 0xcad   :  { %v4776_v30 = vpop.xlane.xlu1 %4775 }
 0xcae   :  { %v4823_v36 = vadd.f32 1e-05, %v4807_v49  ;;  %v4808_v3 = vmul.f32 0.015625, %v4776_v30 }
 0xcb0   :  { %7028 = vrsqrt.f32 %v4823_v36  ;;  %v4824_v7 = vadd.f32 1e-05, %v4808_v3 }
 0xcb2   :  { %v7025_v4 = vpop.eup %7024  ;;  %7030 = vrsqrt.f32 %v4824_v7 }
 0xcb3   :  { %v4853_v24 = vmul.f32 %v7025_v4, %v10859_v5 }
 0xcb4   :  { %v7027_v60 = vpop.eup %7026 }
 0xcb5   :  { %v4854_v45 = vmul.f32 %v7027_v60, %v10862_v16  ;;  %v4875_v53 = vmul.f32 %v10948_v48, %v4853_v24 }
 0xcb7   :  { %v4876_v13 = vmul.f32 %v10948_v48, %v4854_v45  ;;  %v4897_v55 = vadd.f32 %v10960_v52, %v4875_v53 }
 0xcb9   :  { %v4898_v27 = vadd.f32 %v10960_v52, %v4876_v13 }
 0xcba   :  { %v7029_v10 = vpop.eup %7028 }
 0xcbb   :  { %v4855_v33 = vmul.f32 %v7029_v10, %v10871_v37  ;;  %v4912_v42 = vpack.c.bf16 %v4898_v27, %v4897_v55 }
 0xcbc   :  { %v7031_v59 = vpop.eup %7030 }
 0xcbd   :  { %v4856_v54 = vmul.f32 %v7031_v59, %v10874_v21  ;;  %6218 = vmatpush3.bf16.msra.mxu0 %v4912_v42  ;;  %v4877_v5 = vmul.f32 %v10948_v48, %v4855_v33 }
 0xcbe   :  { %6219 = vmatprep.subr.bf16.mxu0 %v7067_v29 }
 0xcbf   :  { %v4878_v16 = vmul.f32 %v10948_v48, %v4856_v54  ;;  %v4899_v15 = vadd.f32 %v10960_v52, %v4877_v5 }
 0xcc1   :  { %v4900_v47 = vadd.f32 %v10960_v52, %v4878_v16 }
 0xcc3   :  { %v4779_v1 = vpop.xlane.xlu0 %4778  ;;  %v4913_v17 = vpack.c.bf16 %v4900_v47, %v4899_v15 }
 0xcc4   :  { %v4809_v0 = vmul.f32 0.015625, %v4779_v1 }
 0xcc5   :  { %v4782_v35 = vpop.xlane.xlu1 %4781  ;;  %6220 = vmatpush3.bf16.msra.mxu0 %v4913_v17 }
 0xcc6   :  { %v4825_v37 = vadd.f32 1e-05, %v4809_v0  ;;  %v4810_v31 = vmul.f32 0.015625, %v4782_v35  ;;  %6221 = vmatprep.subr.bf16.mxu0 %v7067_v29 }
 0xcc8   :  { %7032 = vrsqrt.f32 %v4825_v37  ;;  %v4826_v21 = vadd.f32 1e-05, %v4810_v31 }
 0xcca   :  { %7034 = vrsqrt.f32 %v4826_v21 }
 0xccb   :  { %v4785_v39 = vpop.xlane.xlu0 %4784 }
 0xccc   :  { %v4811_v12 = vmul.f32 0.015625, %v4785_v39 }
 0xccd   :  { %v4788_v40 = vpop.xlane.xlu1 %4787 }
 0xcce   :  { %v4827_v51 = vadd.f32 1e-05, %v4811_v12  ;;  %v4812_v56 = vmul.f32 0.015625, %v4788_v40 }
 0xcd0   :  { %7036 = vrsqrt.f32 %v4827_v51  ;;  %v4828_v22 = vadd.f32 1e-05, %v4812_v56 }
 0xcd2   :  { %v7033_v19 = vpop.eup %7032  ;;  %7038 = vrsqrt.f32 %v4828_v22 }
 0xcd3   :  { %v4857_v41 = vmul.f32 %v7033_v19, %v10885_v9 }
 0xcd4   :  { %v7035_v34 = vpop.eup %7034 }
 0xcd5   :  { %v4858_v2 = vmul.f32 %v7035_v34, %v10888_v6  ;;  %v4879_v23 = vmul.f32 %v10948_v48, %v4857_v41 }
 0xcd7   :  { %v4880_v8 = vmul.f32 %v10948_v48, %v4858_v2  ;;  %v4901_v26 = vadd.f32 %v10960_v52, %v4879_v23 }
 0xcd9   :  { %v4902_v62 = vadd.f32 %v10960_v52, %v4880_v8 }
 0xcda   :  { %v7037_v44 = vpop.eup %7036 }
 0xcdb   :  { %v4859_v61 = vmul.f32 %v7037_v44, %v10897_v58  ;;  %v4914_v28 = vpack.c.bf16 %v4902_v62, %v4901_v26 }
 0xcdc   :  { %v7039_v57 = vpop.eup %7038 }
 0xcdd   :  { %v4860_v38 = vmul.f32 %v7039_v57, %v10900_v63  ;;  %6222 = vmatpush3.bf16.msra.mxu0 %v4914_v28  ;;  %v4881_v9 = vmul.f32 %v10948_v48, %v4859_v61 }
 0xcde   :  { %6223 = vmatprep.subr.bf16.mxu0 %v7067_v29 }
 0xcdf   :  { %v4882_v6 = vmul.f32 %v10948_v48, %v4860_v38  ;;  %v4903_v46 = vadd.f32 %v10960_v52, %v4881_v9 }
 0xce1   :  { %v4904_v14 = vadd.f32 %v10960_v52, %v4882_v6 }
 0xce2   :  { %v4791_v32 = vpop.xlane.xlu0 %4790 }
 0xce3   :  { %v4915_v18 = vpack.c.bf16 %v4904_v14, %v4903_v46  ;;  %v4813_v43 = vmul.f32 0.015625, %v4791_v32 }
 0xce4   :  { %v4794_v49 = vpop.xlane.xlu1 %4793 }
 0xce5   :  { %6224 = vmatpush3.bf16.msra.mxu0 %v4915_v18  ;;  %v4829_v58 = vadd.f32 1e-05, %v4813_v43  ;;  %v4814_v30 = vmul.f32 0.015625, %v4794_v49 }
 0xce6   :  { %6225 = vmatprep.subr.bf16.mxu0 %v7067_v29 }
 0xce7   :  { %7040 = vrsqrt.f32 %v4829_v58  ;;  %v4830_v63 = vadd.f32 1e-05, %v4814_v30 }
 0xce9   :  { %7042 = vrsqrt.f32 %v4830_v63 }
 0xcea   :  { %v4797_v36 = vpop.xlane.xlu0 %4796 }
 0xceb   :  { %v4815_v3 = vmul.f32 0.015625, %v4797_v36 }
 0xcec   :  { %v4800_v7 = vpop.xlane.xlu1 %4799 }
 0xced   :  { %v4831_v4 = vadd.f32 1e-05, %v4815_v3  ;;  %v4816_v24 = vmul.f32 0.015625, %v4800_v7 }
 0xcef   :  { %7044 = vrsqrt.f32 %v4831_v4  ;;  %v4832_v60 = vadd.f32 1e-05, %v4816_v24 }
 0xcf1   :  { %v7041_v45 = vpop.eup %7040  ;;  %7046 = vrsqrt.f32 %v4832_v60 }
 0xcf2   :  { %v4861_v53 = vmul.f32 %v7041_v45, %v10909_v25 }
 0xcf3   :  { %v7043_v13 = vpop.eup %7042 }
 0xcf4   :  { %v4862_v55 = vmul.f32 %v7043_v13, %v10912_v20  ;;  %v4883_v27 = vmul.f32 %v10948_v48, %v4861_v53 }
 0xcf6   :  { %v4884_v10 = vmul.f32 %v10948_v48, %v4862_v55  ;;  %v4905_v33 = vadd.f32 %v10960_v52, %v4883_v27 }
 0xcf8   :  { %v4906_v42 = vadd.f32 %v10960_v52, %v4884_v10 }
 0xcf9   :  { %v7045_v59 = vpop.eup %7044 }
 0xcfa   :  { %v4863_v54 = vmul.f32 %v7045_v59, %v10921_v50  ;;  %v4916_v5 = vpack.c.bf16 %v4906_v42, %v4905_v33  ;;  %v4909_v50 = vld [vmem:[%s11044_s1] sm:$0xf] }
 0xcfb   :  { %v7047_v16 = vpop.eup %7046 }
 0xcfc   :  { %v4864_v15 = vmul.f32 %v7047_v16, %v10924_v11  ;;  %6226 = vmatpush3.bf16.msra.mxu0 %v4916_v5  ;;  %v4885_v25 = vmul.f32 %v10948_v48, %v4863_v54 }
 0xcfd   :  { %6227 = vmatprep.subr.bf16.mxu0 %v7067_v29 }
 0xcfe   :  { %v4886_v20 = vmul.f32 %v10948_v48, %v4864_v15  ;;  %v4907_v47 = vadd.f32 %v10960_v52, %v4885_v25 }
 0xd00   :  { %v4908_v1 = vadd.f32 %v10960_v52, %v4886_v20 }
 0xd02   :  { %v4917_v17 = vpack.c.bf16 %v4908_v1, %v4907_v47 }
 0xd04   :  { %6228 = vmatpush3.bf16.msra.mxu0 %v4917_v17 }
 0xd07   :  { %6230 = vmatmul.mubr.bf16.vlgmr.msra.gmra.mrb[224].mxu0 %v4909_v50 }
 0xdda   :  { %v4952_v0 = vpop.f32.mrb[224].mxu0 }
 0xddb   :  { %v4958_v11 = vpack.c.bf16 %v4952_v0, %v4952_v0  ;;  %v6231_v35 = vpop.f32.mrb[225].mxu0 }
 0xddc   :  { %v4955_v37 = vpop.f32.mrb[226].mxu0 }
 0xddd   :  { %6242 = vmatmul.mubr.msk.bf16.vlgmr.msra.gmra.mrb[224].mxu1 %vm96_vm0, %v4958_v11  ;;  %v6232_v29 = vpop.f32.mrb[227].mxu0 }
 0xeb0   :  { %v5028_v31 = vpop.f32.mrb[224].mxu1 }
 0xeb1   :  { %v5034_v48 = vmul.f32 %v5028_v31, %v5028_v31  ;;  %v6243_v21 = vpop.f32.mrb[225].mxu1 }
 0xeb2   :  { %v5031_v39 = vpop.f32.mrb[226].mxu1 }
 0xeb3   :  { %v5036_v52 = vsel %vm5035_vm7, %v5034_v48, 0.0  ;;  %v6244_v12 = vpop.f32.mrb[227].mxu1 }
 0xeb4   :  { %5037 = vadd.xlane.f32.xlu0 %v5036_v52 }
 0xf41   :  { %v5038_v40 = vpop.xlane.xlu0 %5037 }
 0xf42   :  { %v5039_v51 = vadd.f32 1e-12, %v5038_v40 }
 0xf44   :  { %7048 = vrsqrt.f32 %v5039_v51 }
 0xf4e   :  { %v7049_v56 = vpop.eup %7048 }
 0xf4f   :  { %v5041_v22 = vmul.f32 %v7049_v56, %v5028_v31 }
 0xf51   :  { %5042 = vst.msk [vmem:[%s11045_s24] sm:$0xff] %vm5035_vm7, %v5041_v22 }

// kernel: denseclip_forward.3
= control target key start
LH: loop header
LB: loop body
LE: loop exit
PB: predicated region body
PF: predicated region fallthrough
CT: control target
= control target key end

     0   :  { %s1582_s0 = inlined_call_operand.vmem [shape: f32[128,16], index: 0, kind: input, shape index: {}]   ;;  %s1583_s1 = inlined_call_operand.vmem [shape: bf16[16,64], index: 1, kind: input, shape index: {}]   ;;  %s1584_s2 = inlined_call_operand.vmem [shape: f32[1,64], index: 2, kind: input, shape index: {}]   ;;  %s1585_s3 = inlined_call_operand.vmem [shape: bf16[64,32], index: 3, kind: input, shape index: {}]   ;;  %s1586_s4 = inlined_call_operand.vmem [shape: f32[1,32], index: 4, kind: input, shape index: {}]   ;;  %s1587_s5 = inlined_call_operand.vmem [shape: f32[8,32], index: 5, kind: input, shape index: {}]   ;;  %s1588_s6 = inlined_call_operand.<no memory space> [shape: f32[1], index: 6, kind: input, shape index: {}]   ;;  %s1589_s7 = inlined_call_operand.<no memory space> [shape: f32[1], index: 7, kind: input, shape index: {}]   ;;  %s1590_s8 = inlined_call_operand.vmem [shape: f32[128,32], index: 8, kind: output, shape index: {0}]   ;;  %s1591_s9 = inlined_call_operand.hbm [shape: f32[2,1,4], index: 9, kind: output, shape index: {1}]  }
   0x1   :  { %15 = sst [smem:[#allocation2]] %s1588_s6 }
   0x2   :  { %16 = sst [smem:[#allocation3]] %s1589_s7 }
   0x3   :  { %17 = vsyncpa [#allocation5], 0 }
   0x4   :  { %19 = vsyncpa [#allocation5 + $0x1], 0  ;;  %s1298_s13 = smov 0   ;;  %s1300_s14 = smov 0  }
   0x5   :  { %s1302_s15 = smov 0   ;;  %s1304_s16 = smov 0  }
   0x6 LB: > { %s1319_s6 = sadd.s32 4294967295, %s1238_s16   ;;  %s1004_s7 = sadd.s32 4294967294, %s1238_s16   ;;  %s1238_s16 = sphi %s1304_s16, %s1597_s16   ;;  %s1234_s15 = sphi %s1302_s15, %s1596_s15   ;;  %s1230_s14 = sphi %s1300_s14, %s1595_s14   ;;  %s1226_s13 = sphi %s1298_s13, %s1594_s13  }
   0x7   : > { %s1323_s17 = sadd.s32 1, %s1238_s16   ;;  %s231_s18 = sadd.s32 1, %s1234_s15 }
   0x8   : > { %s228_s19 = ssub.s32 %s1238_s16, %s1323_s17  ;;  %p241_p0 = scmp.ne.s32.totalorder %s1234_s15, %s1230_s14 }
   0x9   : > { %p229_p1 = scmp.eq.s32.totalorder %s228_s19, 0  ;;  %p242_p2 = scmp.eq.s32.totalorder %s1319_s6, 1 }
   0xa   : > { %p247_p3 = scmp.ne.s32.totalorder %s1230_s14, %s1226_s13  ;;  %p248_p4 = scmp.eq.s32.totalorder %s1004_s7, 1 }
   0xb   : > { %s1334_s20 = scalar_select %p229_p1, %s1234_s15, %s231_s18  }
   0xc   : > { %p1336_p5 = por %p242_p2, %p241_p0  ;;  %p1340_p6 = por %p248_p4, %p247_p3 }
   0xd   : > { %p1007_p7 = scmp.ge.s32.totalorder %s1238_s16, 1  ;;  %p296_p8 = scmp.lt.s32.totalorder %s1238_s16, 3 }
   0xf   : > { %p297_p9 = pnand %p1007_p7, %p296_p8 }
  0x10   : > { %v1133_v0 = vld [vmem:[%s1583_s1] sm:$0xff] (!%p297_p9)   ;;  %s1008_s25 = sshll.u32 (!%p297_p9), %s1319_s6, 3  ;;  %v1135_v2 = vld [vmem:[%s1585_s3 + $0x8] sm:$0xff] (!%p297_p9)   ;;  %vm376_vm0 = vcmask (!%p297_p9), 130048   ;;  %v1136_v15 = vld [vmem:[%s1585_s3 + $0x10] sm:$0xff] (!%p297_p9)   ;;  %vm505_vm1 = vcmask (!%p297_p9), 523264  }
  0x11   : > { %300 = sbr.rel (%p297_p9) target bundleno = 1013 (0x3f5), region = 52  ;;  %p337_p10 = scmp.lt.s32.totalorder (!%p297_p9), %s1008_s25, 15  ;;  %1052 = vmatprep.subr.bf16.mxu0 (!%p297_p9), %v1133_v0  ;;  %v1134_v1 = vld [vmem:[%s1585_s3] sm:$0xff] (!%p297_p9)   ;;  %v1137_v16 = vld [vmem:[%s1585_s3 + $0x18] sm:$0xff] (!%p297_p9)   ;;  %vm591_vm2 = vcmask (!%p297_p9), 261120   ;;  %vm744_vm3 = vcmask (!%p297_p9), 31744  }
  0x12   : > { %1053 = vmatpush3.bf16.msra.mxu0 (!%p297_p9), %v1133_v0  ;;  %1062 = vmatprep.subr.bf16.mxu1 (!%p297_p9), %v1134_v1  ;;  %v1012_v17 = vld [vmem:[%s1584_s2] ss:$0 sm:$0xff] (!%p297_p9)  ;;  %s648_s11 = sld [smem:[#allocation2]] (!%p297_p9)  ;;  %s334_s24 = sand.u32 (!%p297_p9), 1, %s1230_s14   ;;  %vm900_vm4 = vcmask (!%p297_p9), 24576  }
  0x13   : > { %1063 = vmatpush3.bf16.msra.mxu1 (!%p297_p9), %v1134_v1  ;;  %v1018_v46 = vld [vmem:[%s1586_s4] ss:$0 sm:$0xff] (!%p297_p9)  ;;  %s1031_s26 = sshll.u32 (!%p297_p9), %s1319_s6, 4  ;;  %s335_s27 = scalar_lea.vmem (!%p297_p9), [#allocation4], %s334_s24 }
  0x14   : > { %1064 = vmatprep.subr.bf16.mxu1 (!%p297_p9), %v1135_v2  ;;  %s924_s28 = sshll.u32 (!%p297_p9), %s335_s27, 4  ;;  %s1241_s6 = smov (!%p297_p9), [#allocation4]   ;;  %s1542_s28 = int_to_ptr.vmem [resolvable:$true] %s924_s28 }
  0x15   : > { %s1176_s7 = scalar_lea.vmem (!%p297_p9), %s1542_s28, 16  ;;  %s1180_s18 = sshll.u32 (!%p297_p9), %s1241_s6, 4  ;;  %s1181_s18 = int_to_ptr.vmem [resolvable:$false] %s1180_s18 }
  0x16   : > { %p1177_p11 = scmp.ne.s32.totalorder (!%p297_p9), %s1542_s28, %s1176_s7  ;;  %p1183_p0 = scmp.lt.s32.totalorder (!%p297_p9), %s1542_s28, %s1181_s18 }
  0x17   : > { %1065 = vmatpush3.bf16.msra.mxu1 (!%p297_p9), %v1135_v2 }
  0x18   : > { %s1599_s25 = smov (!%p337_p10, %s1008_s25), 15  ;;  %1066 = vmatprep.subr.bf16.mxu1 %v1136_v15  ;;  %p1178_p12 = pnand %p1177_p11, %p1336_p5 }
  0x19   : > { %s1009_s30 = sshll.u32 %s1599_s25, 3  ;;  %s1240_s25 = smov 124  }
  0x1a   : > { %s340_s12 = scalar_lea.vmem %s1582_s0, %s1009_s30  ;;  %s1430_s19 = scalar_lea.vmem %s1590_s8, %s1009_s30 }
  0x1b   : > { %v349_v3 = vld [vmem:[%s340_s12] sm:$0xff]  ;;  %v350_v4 = vld [vmem:[%s340_s12 + $0x8] sm:$0xff]  ;;  %v351_v5 = vld [vmem:[%s340_s12 + $0x10] sm:$0xff]  ;;  %1067 = vmatpush3.bf16.msra.mxu1 %v1136_v15  ;;  %p1179_p13 = pneg %p1178_p12 }
  0x1c   : > { %v357_v6 = vpack.c.bf16 %v350_v4, %v349_v3  ;;  %v352_v7 = vld [vmem:[%s340_s12 + $0x18] sm:$0xff]  ;;  %v353_v8 = vld [vmem:[%s340_s12 + $0x20] sm:$0xff]  ;;  %v354_v9 = vld [vmem:[%s340_s12 + $0x28] sm:$0xff]  ;;  %1068 = vmatprep.subr.bf16.mxu1 %v1137_v16 }
  0x1d   : > { %v358_v10 = vpack.c.bf16 %v352_v7, %v351_v5  ;;  %v359_v11 = vpack.c.bf16 %v354_v9, %v353_v8  ;;  %v355_v12 = vld [vmem:[%s340_s12 + $0x30] sm:$0xff]  ;;  %v356_v13 = vld [vmem:[%s340_s12 + $0x38] sm:$0xff]  ;;  %v662_v15 = vld [vmem:[%s1587_s5] sm:$0xff]  ;;  %s653_s12 = sld [smem:[#allocation3]] }
  0x1e   : > { %1054 = vmatprep.mubr.msk.bf16.mxu0 %vm376_vm0, %v357_v6  ;;  %v360_v14 = vpack.c.bf16 %v356_v13, %v355_v12 }
  0x1f   : > { %1055 = vmatmul.mubr.msk.bf16.vlgmr.msra.gmra.mrb[0].mxu0 %vm376_vm0, %v358_v10  ;;  %1069 = vmatpush3.bf16.msra.mxu1 %v1137_v16  ;;  %v663_v16 = vpack.c.bf16 %v662_v15, %v662_v15 }
  0x20   : > { %1058 = vmatprep.mubr.msk.bf16.mxu0 %vm376_vm0, %v359_v11 }
  0x21   : > { %1088 = vmatprep.subr.msk.bf16.mxu0 %vm591_vm2, %v663_v16 }
  0x27   : > { %1059 = vmatmul.mubr.msk.bf16.gmra.mrb[4].mxu0 %vm376_vm0, %v360_v14 }
  0xf2   : > { %v1056_v18 = vpop.f32.mrb[0].mxu0 }
  0xf3   : > { %v432_v19 = vadd.f32 %v1056_v18, %v1012_v17  ;;  %v423_v20 = vpop.f32.mrb[1].mxu0  ;;  %v649_v18 = vstv %s648_s11  ;;  %s1540_s11 = scalar_lea.hbm %s1591_s9, %s1031_s26 }
  0xf4   : > { %v424_v21 = vadd.f32 %v1012_v17, %v423_v20  ;;  %v1057_v22 = vpop.f32.mrb[2].mxu0  ;;  %v650_v20 = vmul.f32 1.442695, %v649_v18 }
  0xf5   : > { %v435_v23 = vadd.f32 %v1057_v22, %v1012_v17  ;;  %v426_v24 = vpop.f32.mrb[3].mxu0  ;;  %v456_v26 = vmax.f32 %v432_v19, 0.0  ;;  %v654_v19 = vstv %s653_s12  ;;  %s908_s12 = scalar_lea.sflag [#allocation5], %s334_s24 }
  0xf6   : > { %v427_v25 = vadd.f32 %v1012_v17, %v426_v24  ;;  %v454_v28 = vmax.f32 %v424_v21, 0.0  ;;  %v655_v21 = vmul.f32 1.442695, %v654_v19  ;;  %1138 = vpow2.f32 %v650_v20 }
  0xf7   : > { %v457_v27 = vmax.f32 %v435_v23, 0.0 }
  0xf8   : > { %v455_v29 = vmax.f32 %v427_v25, 0.0  ;;  %1140 = vpow2.f32 %v655_v21 }
  0xf9   : > { %v463_v30 = vpack.c.bf16 %v457_v27, %v456_v26 }
  0xfa   : > { %v1060_v31 = vpop.f32.mrb[4].mxu0  ;;  %v462_v32 = vpack.c.bf16 %v455_v29, %v454_v28 }
  0xfb   : > { %v448_v33 = vadd.f32 %v1060_v31, %v1012_v17  ;;  %v439_v34 = vpop.f32.mrb[5].mxu0 }
  0xfc   : > { %v440_v35 = vadd.f32 %v1012_v17, %v439_v34  ;;  %v1061_v36 = vpop.f32.mrb[6].mxu0  ;;  %1070 = vmatprep.mubr.msk.bf16.mxu1 %vm505_vm1, %v462_v32 }
  0xfd   : > { %v451_v37 = vadd.f32 %v1061_v36, %v1012_v17  ;;  %v442_v38 = vpop.f32.mrb[7].mxu0  ;;  %1071 = vmatmul.mubr.msk.bf16.vlgmr.msra.gmra.mrb[0].mxu1 %vm505_vm1, %v463_v30  ;;  %v460_v40 = vmax.f32 %v448_v33, 0.0 }
  0xfe   : > { %v443_v39 = vadd.f32 %v1012_v17, %v442_v38  ;;  %v458_v42 = vmax.f32 %v440_v35, 0.0  ;;  %v677_v17 = vsel %vm591_vm2, %v663_v16, 0 }
  0xff   : > { %v461_v41 = vmax.f32 %v451_v37, 0.0  ;;  %1079 = vmatpush3.bf16.xpose.msra.mxu0 %v677_v17 }
 0x100   : > { %v459_v43 = vmax.f32 %v443_v39, 0.0  ;;  %v1139_v22 = vpop.eup %1138 }
 0x101   : > { %v465_v44 = vpack.c.bf16 %v461_v41, %v460_v40  ;;  %1089 = vpush %v1139_v22 }
 0x102   : > { %v464_v45 = vpack.c.bf16 %v459_v43, %v458_v42  ;;  %v1141_v23 = vpop.eup %1140 }
 0x103   : > { %1091 = vpush %v1141_v23 }
 0x104   : > { %1074 = vmatprep.mubr.msk.bf16.mxu1 %vm505_vm1, %v464_v45 }
 0x105   : > { %1075 = vmatmul.mubr.msk.bf16.gmra.mrb[4].mxu1 %vm505_vm1, %v465_v44 }
 0x132   : > { %s1500_s30 = spop %1089 }
 0x134   : > { %s1092_s23 = spop %1091 }
 0x1d0   : > { %v1072_v47 = vpop.f32.mrb[0].mxu1 }
 0x1d1   : > { %v1380_v48 = vadd.f32 %v1072_v47, %v1018_v46  ;;  %v552_v49 = vpop.f32.mrb[1].mxu1 }
 0x1d2   : > { %v1382_v50 = vadd.f32 %v1018_v46, %v552_v49  ;;  %v1073_v51 = vpop.f32.mrb[2].mxu1 }
 0x1d3   : > { %v1384_v52 = vadd.f32 %v1073_v51, %v1018_v46  ;;  %v555_v53 = vpop.f32.mrb[3].mxu1  ;;  %v585_v54 = vmul.f32 %v1380_v48, %v1380_v48 }
 0x1d4   : > { %v1388_v55 = vadd.f32 %v1018_v46, %v555_v53  ;;  %v583_v56 = vmul.f32 %v1382_v50, %v1382_v50 }
 0x1d5   : > { %v598_v57 = vsel %vm591_vm2, %v585_v54, 0.0  ;;  %v586_v58 = vmul.f32 %v1384_v52, %v1384_v52 }
 0x1d6   : > { %599 = vadd.xlane.f32.xlu1 %v598_v57  ;;  %v592_v59 = vsel %vm591_vm2, %v583_v56, 0.0  ;;  %v584_v60 = vmul.f32 %v1388_v55, %v1388_v55 }
 0x1d7   : > { %593 = vadd.xlane.f32.xlu0 %v592_v59  ;;  %v601_v63 = vsel %vm591_vm2, %v586_v58, 0.0 }
 0x1d8   : > { %v1076_v61 = vpop.f32.mrb[4].mxu1  ;;  %v595_v3 = vsel %vm591_vm2, %v584_v60, 0.0 }
 0x1d9   : > { %v568_v62 = vpop.f32.mrb[5].mxu1  ;;  %v1399_v0 = vadd.f32 %v1076_v61, %v1018_v46 }
 0x1da   : > { %v1401_v1 = vadd.f32 %v1018_v46, %v568_v62  ;;  %602 = vadd.xlane.f32.xlu1 %v601_v63  ;;  %v1077_v2 = vpop.f32.mrb[6].mxu1 }
 0x1db   : > { %v571_v4 = vpop.f32.mrb[7].mxu1  ;;  %596 = vadd.xlane.f32.xlu0 %v595_v3  ;;  %v1404_v5 = vadd.f32 %v1077_v2, %v1018_v46  ;;  %v589_v10 = vmul.f32 %v1399_v0, %v1399_v0 }
 0x1dc   : > { %v1406_v6 = vadd.f32 %v1018_v46, %v571_v4  ;;  %v587_v7 = vmul.f32 %v1401_v1, %v1401_v1 }
 0x1dd   : > { %v590_v12 = vmul.f32 %v1404_v5, %v1404_v5  ;;  %v610_v13 = vsel %vm591_vm2, %v589_v10, 0.0 }
 0x1de   : > { %v604_v8 = vsel %vm591_vm2, %v587_v7, 0.0  ;;  %v588_v9 = vmul.f32 %v1406_v6, %v1406_v6 }
 0x1df   : > { %605 = vadd.xlane.f32.xlu0 %v604_v8  ;;  %v613_v14 = vsel %vm591_vm2, %v590_v12, 0.0 }
 0x1e0   : > { %v607_v11 = vsel %vm591_vm2, %v588_v9, 0.0 }
 0x1e1   : > { %608 = vadd.xlane.f32.xlu1 %v607_v11 }
 0x1e3   : > { %611 = vadd.xlane.f32.xlu0 %v610_v13 }
 0x1e5   : > { %614 = vadd.xlane.f32.xlu1 %v613_v14 }
 0x263   : > { %v600_v24 = vpop.xlane.xlu1 %599 }
 0x264   : > { %v618_v25 = vadd.f32 1e-12, %v600_v24  ;;  %v594_v26 = vpop.xlane.xlu0 %593 }
 0x265   : > { %v616_v27 = vadd.f32 1e-12, %v594_v26 }
 0x266   : > { %1142 = vrsqrt.f32 %v618_v25  ;;  %v774_v25 = vstv %s1092_s23 }
 0x267   : > { %1144 = vrsqrt.f32 %v616_v27  ;;  %v603_v28 = vpop.xlane.xlu1 %602 }
 0x268   : > { %v619_v29 = vadd.f32 1e-12, %v603_v28  ;;  %v597_v30 = vpop.xlane.xlu0 %596 }
 0x269   : > { %v617_v31 = vadd.f32 1e-12, %v597_v30 }
 0x26a   : > { %1146 = vrsqrt.f32 %v619_v29 }
 0x26b   : > { %1148 = vrsqrt.f32 %v617_v31 }
 0x26c   : > { %v606_v32 = vpop.xlane.xlu0 %605 }
 0x26d   : > { %v620_v33 = vadd.f32 1e-12, %v606_v32 }
 0x26e   : > { %v609_v34 = vpop.xlane.xlu1 %608 }
 0x26f   : > { %1150 = vrsqrt.f32 %v620_v33  ;;  %v621_v35 = vadd.f32 1e-12, %v609_v34 }
 0x270   : > { %v1143_v36 = vpop.eup %1142  ;;  %v612_v37 = vpop.xlane.xlu0 %611 }
 0x271   : > { %v1145_v38 = vpop.eup %1144  ;;  %v634_v39 = vmul.f32 %v1143_v36, %v1380_v48  ;;  %1152 = vrsqrt.f32 %v621_v35  ;;  %v622_v40 = vadd.f32 1e-12, %v612_v37 }
 0x272   : > { %v615_v41 = vpop.xlane.xlu1 %614  ;;  %v632_v42 = vmul.f32 %v1145_v38, %v1382_v50 }
 0x273   : > { %642 = vst.msk [vmem:[%s1430_s19 + $0x10] sm:$0xff] %vm591_vm2, %v634_v39  ;;  %1154 = vrsqrt.f32 %v622_v40  ;;  %v623_v43 = vadd.f32 1e-12, %v615_v41 }
 0x274   : > { %v1147_v44 = vpop.eup %1146  ;;  %640 = vst.msk [vmem:[%s1430_s19] sm:$0xff] %vm591_vm2, %v632_v42 }
 0x275   : > { %v1149_v45 = vpop.eup %1148  ;;  %v635_v46 = vmul.f32 %v1147_v44, %v1384_v52  ;;  %1156 = vrsqrt.f32 %v623_v43 }
 0x276   : > { %v633_v47 = vmul.f32 %v1149_v45, %v1388_v55 }
 0x277   : > { %643 = vst.msk [vmem:[%s1430_s19 + $0x18] sm:$0xff] %vm591_vm2, %v635_v46  ;;  %v659_v50 = vpack.c.bf16 %v635_v46, %v634_v39 }
 0x278   : > { %641 = vst.msk [vmem:[%s1430_s19 + $0x8] sm:$0xff] %vm591_vm2, %v633_v47  ;;  %v658_v48 = vpack.c.bf16 %v633_v47, %v632_v42 }
 0x279   : > { %v1151_v49 = vpop.eup %1150 }
 0x27a   : > { %1080 = vmatprep.mubr.msk.bf16.mxu0 %vm591_vm2, %v658_v48  ;;  %v636_v51 = vmul.f32 %v1151_v49, %v1401_v1 }
 0x27b   : > { %v1153_v53 = vpop.eup %1152  ;;  %1081 = vmatmul.mubr.msk.bf16.vlgmr.msra.gmra.mrb[8].mxu0 %vm591_vm2, %v659_v50 }
 0x27c   : > { %v637_v52 = vmul.f32 %v1153_v53, %v1406_v6  ;;  %644 = vst.msk [vmem:[%s1430_s19 + $0x20] sm:$0xff] %vm591_vm2, %v636_v51 }
 0x27d   : > { %v1155_v54 = vpop.eup %1154 }
 0x27e   : > { %645 = vst.msk [vmem:[%s1430_s19 + $0x28] sm:$0xff] %vm591_vm2, %v637_v52  ;;  %v660_v55 = vpack.c.bf16 %v637_v52, %v636_v51  ;;  %v638_v56 = vmul.f32 %v1155_v54, %v1399_v0 }
 0x27f   : > { %v1157_v57 = vpop.eup %1156 }
 0x280   : > { %1084 = vmatprep.mubr.msk.bf16.mxu0 %vm591_vm2, %v660_v55  ;;  %v639_v58 = vmul.f32 %v1157_v57, %v1404_v5  ;;  %646 = vst.msk [vmem:[%s1430_s19 + $0x30] sm:$0xff] %vm591_vm2, %v638_v56 }
 0x282   : > { %647 = vst.msk [vmem:[%s1430_s19 + $0x38] sm:$0xff] %vm591_vm2, %v639_v58  ;;  %v661_v59 = vpack.c.bf16 %v639_v58, %v638_v56  ;;  %s1182_s19 = scalar_lea.vmem %s1181_s18, 32 }
 0x283   : > { %p1184_p1 = scmp.lt.s32.totalorder %s1182_s19, %s1176_s7 }
 0x284   : > { %1085 = vmatmul.mubr.msk.bf16.gmra.mrb[12].mxu0 %vm591_vm2, %v661_v59 }
 0x285   : > { %p1185_p2 = por %p1184_p1, %p1183_p0 }
 0x287   : > { %p1186_p3 = pnand %p1185_p2, %p1179_p13 }
 0x34e   : > { %v1460_v60 = vpop.f32.mrb[8].mxu0 }
 0x34f   : > { %841 = vrot.lane.b32.xlu1 %v1460_v60, %s1240_s25  ;;  %v1463_v61 = vpop.f32.mrb[9].mxu0  ;;  %v747_v1 = vsel %vm744_vm3, %v1460_v60, -inf }
 0x350   : > { %837 = vrot.lane.b32.xlu0 %v1463_v61, %s1240_s25  ;;  %v1466_v62 = vpop.f32.mrb[10].mxu0  ;;  %v745_v4 = vsel %vm744_vm3, %v1463_v61, -inf }
 0x351   : > { %v1468_v63 = vpop.f32.mrb[11].mxu0  ;;  %v748_v8 = vsel %vm744_vm3, %v1466_v62, -inf }
 0x352   : > { %v746_v13 = vsel %vm744_vm3, %v1468_v63, -inf }
 0x353   : > { %839 = vrot.lane.b32.xlu1 %v1468_v63, %s1240_s25 }
 0x357   : > { %843 = vrot.lane.b32.xlu1 %v1466_v62, %s1240_s25  ;;  %v1472_v0 = vpop.f32.mrb[12].mxu0 }
 0x358   : > { %v753_v2 = vsel %vm744_vm3, %v1472_v0, -inf  ;;  %v1478_v3 = vpop.f32.mrb[13].mxu0 }
 0x359   : > { %v754_v5 = vmax.f32 %v747_v1, %v753_v2  ;;  %v749_v6 = vsel %vm744_vm3, %v1478_v3, -inf  ;;  %845 = vrot.lane.b32.xlu0 %v1478_v3, %s1240_s25  ;;  %v1485_v7 = vpop.f32.mrb[14].mxu0 }
 0x35a   : > { %v750_v9 = vmax.f32 %v745_v4, %v749_v6  ;;  %v755_v10 = vsel %vm744_vm3, %v1485_v7, -inf  ;;  %v1491_v11 = vpop.f32.mrb[15].mxu0 }
 0x35b   : > { %v756_v12 = vmax.f32 %v748_v8, %v755_v10  ;;  %v751_v14 = vsel %vm744_vm3, %v1491_v11, -inf  ;;  %847 = vrot.lane.b32.xlu1 %v1491_v11, %s1240_s25 }
 0x35c   : > { %v752_v15 = vmax.f32 %v746_v13, %v751_v14 }
 0x35d   : > { %v758_v16 = vmax.f32 %v754_v5, %v756_v12  ;;  %849 = vrot.lane.b32.xlu0 %v1472_v0, %s1240_s25 }
 0x35e   : > { %v757_v17 = vmax.f32 %v750_v9, %v752_v15 }
 0x35f   : > { %851 = vrot.lane.b32.xlu1 %v1485_v7, %s1240_s25 }
 0x360   : > { %v759_v18 = vmax.f32 %v757_v17, %v758_v16 }
 0x362   : > { %v760_v19 = vrot.slane %v759_v18, 4 }
 0x364   : > { %v761_v20 = vmax.f32 %v759_v18, %v760_v19 }
 0x366   : > { %v762_v21 = vrot.slane %v761_v20, 2 }
 0x368   : > { %v763_v22 = vmax.f32 %v761_v20, %v762_v21 }
 0x36a   : > { %v764_v23 = vrot.slane %v763_v22, 1 }
 0x36c   : > { %v765_v24 = vmax.f32 %v763_v22, %v764_v23 }
 0x36e   : > { %v771_v26 = vsub.f32 %v1491_v11, %v765_v24  ;;  %v766_v27 = vsub.f32 %v1463_v61, %v765_v24  ;;  %v767_v28 = vsub.f32 %v1468_v63, %v765_v24  ;;  %v768_v29 = vsub.f32 %v1460_v60, %v765_v24 }
 0x36f   : > { %v769_v30 = vsub.f32 %v1466_v62, %v765_v24  ;;  %v770_v31 = vsub.f32 %v1478_v3, %v765_v24  ;;  %v772_v32 = vsub.f32 %v1472_v0, %v765_v24  ;;  %v773_v33 = vsub.f32 %v1485_v7, %v765_v24 }
 0x370   : > { %v775_v34 = vmul.f32 %v774_v25, %v766_v27  ;;  %v776_v35 = vmul.f32 %v774_v25, %v767_v28  ;;  %v777_v39 = vmul.f32 %v774_v25, %v768_v29  ;;  %v780_v42 = vmul.f32 %v774_v25, %v771_v26 }
 0x371   : > { %v778_v36 = vmul.f32 %v774_v25, %v769_v30  ;;  %v779_v40 = vmul.f32 %v774_v25, %v770_v31  ;;  %v781_v44 = vmul.f32 %v774_v25, %v772_v32  ;;  %v782_v46 = vmul.f32 %v774_v25, %v773_v33 }
 0x372   : > { %v783_v37 = vmul.f32 1.442695, %v775_v34  ;;  %v785_v38 = vmul.f32 1.442695, %v776_v35  ;;  %v787_v43 = vmul.f32 1.442695, %v777_v39 }
 0x373   : > { %v789_v41 = vmul.f32 1.442695, %v778_v36  ;;  %v791_v45 = vmul.f32 1.442695, %v779_v40  ;;  %v793_v47 = vmul.f32 1.442695, %v780_v42 }
 0x374   : > { %1158 = vpow2.f32 %v783_v37  ;;  %v795_v48 = vmul.f32 1.442695, %v781_v44  ;;  %v797_v51 = vmul.f32 1.442695, %v782_v46 }
 0x375   : > { %1160 = vpow2.f32 %v785_v38 }
 0x376   : > { %1162 = vpow2.f32 %v789_v41 }
 0x377   : > { %1164 = vpow2.f32 %v787_v43 }
 0x378   : > { %1166 = vpow2.f32 %v791_v45 }
 0x379   : > { %1168 = vpow2.f32 %v793_v47 }
 0x37a   : > { %1170 = vpow2.f32 %v795_v48 }
 0x37b   : > { %1172 = vpow2.f32 %v797_v51 }
 0x37e   : > { %v1159_v49 = vpop.eup %1158 }
 0x37f   : > { %v1161_v50 = vpop.eup %1160  ;;  %v799_v53 = vsel %vm744_vm3, %v1159_v49, 0.0 }
 0x380   : > { %v800_v52 = vsel %vm744_vm3, %v1161_v50, 0.0  ;;  %v1163_v55 = vpop.eup %1162 }
 0x381   : > { %v801_v54 = vadd.f32 %v800_v52, %v799_v53  ;;  %v1165_v56 = vpop.eup %1164  ;;  %v804_v1 = vsel %vm744_vm3, %v1163_v55, 0.0 }
 0x382   : > { %v802_v57 = vsel %vm744_vm3, %v1165_v56, 0.0  ;;  %v1167_v58 = vpop.eup %1166 }
 0x383   : > { %v803_v59 = vadd.f32 %v802_v57, %v801_v54  ;;  %v1169_v2 = vpop.eup %1168  ;;  %v806_v5 = vsel %vm744_vm3, %v1167_v58, 0.0 }
 0x384   : > { %v1171_v6 = vpop.eup %1170  ;;  %v808_v9 = vsel %vm744_vm3, %v1169_v2, 0.0 }
 0x385   : > { %v805_v4 = vadd.f32 %v804_v1, %v803_v59  ;;  %v1173_v10 = vpop.eup %1172  ;;  %v810_v13 = vsel %vm744_vm3, %v1171_v6, 0.0 }
 0x386   : > { %v812_v15 = vsel %vm744_vm3, %v1173_v10, 0.0 }
 0x387   : > { %v807_v8 = vadd.f32 %v806_v5, %v805_v4 }
 0x389   : > { %v809_v12 = vadd.f32 %v808_v9, %v807_v8 }
 0x38b   : > { %v811_v14 = vadd.f32 %v810_v13, %v809_v12  ;;  %v898_v13 = vstv %s1500_s30 }
 0x38d   : > { %v813_v16 = vadd.f32 %v812_v15, %v811_v14 }
 0x38f   : > { %v814_v17 = vrot.slane %v813_v16, 4 }
 0x391   : > { %v815_v18 = vadd.f32 %v814_v17, %v813_v16 }
 0x393   : > { %v816_v19 = vrot.slane %v815_v18, 2 }
 0x395   : > { %v817_v20 = vadd.f32 %v816_v19, %v815_v18 }
 0x397   : > { %v818_v21 = vrot.slane %v817_v20, 1 }
 0x399   : > { %v819_v22 = vadd.f32 %v818_v21, %v817_v20 }
 0x39b   : > { %1174 = vrcp.f32 %v819_v22 }
 0x3a5   : > { %v1175_v23 = vpop.eup %1174 }
 0x3a6   : > { %v823_v24 = vmul.f32 %v1175_v23, %v1165_v56  ;;  %v821_v25 = vmul.f32 %v1175_v23, %v1159_v49  ;;  %v822_v26 = vmul.f32 %v1175_v23, %v1161_v50  ;;  %v824_v27 = vmul.f32 %v1175_v23, %v1163_v55 }
 0x3a7   : > { %v825_v28 = vmul.f32 %v1175_v23, %v1167_v58  ;;  %v826_v29 = vmul.f32 %v1175_v23, %v1169_v2  ;;  %v827_v30 = vmul.f32 %v1175_v23, %v1171_v6  ;;  %v828_v31 = vmul.f32 %v1175_v23, %v1173_v10 }
 0x3c1   : > { %v842_v32 = vpop.permute.xlu1 %841 }
 0x3c2   : > { %v863_v33 = vsub.f32 %v1460_v60, %v842_v32  ;;  %v838_v34 = vpop.permute.xlu0 %837 }
 0x3c3   : > { %v861_v35 = vsub.f32 %v1463_v61, %v838_v34 }
 0x3c4   : > { %v871_v36 = vmul.f32 %v863_v33, %v823_v24 }
 0x3c5   : > { %v869_v37 = vmul.f32 %v861_v35, %v821_v25  ;;  %v840_v38 = vpop.permute.xlu1 %839 }
 0x3c6   : > { %v862_v39 = vsub.f32 %v1468_v63, %v840_v38  ;;  %v880_v60 = vsel %vm744_vm3, %v871_v36, 0.0 }
 0x3c7   : > { %v877_v42 = vsel %vm744_vm3, %v869_v37, 0.0 }
 0x3c8   : > { %v870_v40 = vmul.f32 %v862_v39, %v822_v26 }
 0x3c9   : > { %v844_v41 = vpop.permute.xlu1 %843 }
 0x3ca   : > { %v878_v43 = vsel %vm744_vm3, %v870_v40, 0.0  ;;  %v864_v44 = vsub.f32 %v1466_v62, %v844_v41 }
 0x3cb   : > { %v879_v45 = vadd.f32 %v878_v43, %v877_v42  ;;  %v846_v46 = vpop.permute.xlu0 %845 }
 0x3cc   : > { %v872_v47 = vmul.f32 %v864_v44, %v824_v27  ;;  %v865_v61 = vsub.f32 %v1478_v3, %v846_v46 }
 0x3cd   : > { %v881_v48 = vadd.f32 %v880_v60, %v879_v45  ;;  %v848_v49 = vpop.permute.xlu1 %847 }
 0x3ce   : > { %v882_v50 = vsel %vm744_vm3, %v872_v47, 0.0  ;;  %v873_v63 = vmul.f32 %v865_v61, %v825_v28  ;;  %v866_v51 = vsub.f32 %v1491_v11, %v848_v49 }
 0x3cf   : > { %v883_v53 = vadd.f32 %v882_v50, %v881_v48  ;;  %v850_v52 = vpop.permute.xlu0 %849 }
 0x3d0   : > { %v884_v54 = vsel %vm744_vm3, %v873_v63, 0.0  ;;  %v874_v62 = vmul.f32 %v866_v51, %v826_v29  ;;  %v867_v55 = vsub.f32 %v1472_v0, %v850_v52 }
 0x3d1   : > { %v885_v56 = vadd.f32 %v884_v54, %v883_v53  ;;  %v852_v57 = vpop.permute.xlu1 %851 }
 0x3d2   : > { %v886_v3 = vsel %vm744_vm3, %v874_v62, 0.0  ;;  %v875_v58 = vmul.f32 %v867_v55, %v827_v30  ;;  %v868_v59 = vsub.f32 %v1485_v7, %v852_v57 }
 0x3d3   : > { %v887_v1 = vadd.f32 %v886_v3, %v885_v56 }
 0x3d4   : > { %v888_v11 = vsel %vm744_vm3, %v875_v58, 0.0  ;;  %v876_v2 = vmul.f32 %v868_v59, %v828_v31 }
 0x3d5   : > { %v889_v4 = vadd.f32 %v888_v11, %v887_v1 }
 0x3d6   : > { %v890_v5 = vsel %vm744_vm3, %v876_v2, 0.0 }
 0x3d7   : > { %v891_v6 = vadd.f32 %v890_v5, %v889_v4 }
 0x3d9   : > { %v892_v8 = vrot.slane %v891_v6, 4 }
 0x3db   : > { %v893_v9 = vadd.f32 %v892_v8, %v891_v6 }
 0x3dd   : > { %v894_v0 = vrot.slane %v893_v9, 2 }
 0x3df   : > { %v895_v10 = vadd.f32 %v894_v0, %v893_v9 }
 0x3e1   : > { %v896_v12 = vrot.slane %v895_v10, 1 }
 0x3e3   : > { %v897_v7 = vadd.f32 %v896_v12, %v895_v10 }
 0x3e5   : > { %v899_v14 = vmul.f32 %v898_v13, %v897_v7 }
 0x3e7   : > { %901 = vst.msk [vmem:[%s335_s27] sm:$0x1] %vm900_vm4, %v899_v14 }
 0x3e8   : > { %1189 = shalt.err (!%p1186_p3)
}
 0x3e9   : > { %s1190_s25 = scalar_lea.hbm %s1540_s11, 16  ;;  %s1194_s24 = scalar_lea.hbm %s1591_s9, 32 }
 0x3ea   : > { %p1191_p4 = scmp.ne.s32.totalorder %s1540_s11, %s1190_s25  ;;  %p1195_p9 = scmp.lt.u32.totalorder %s1540_s11, %s1591_s9 }
 0x3eb   : > { %p1196_p10 = scmp.lt.u32.totalorder %s1194_s24, %s1190_s25  ;;  %p1198_p12 = scmp.lt.u32.totalorder %s1190_s25, %s1540_s11 }
 0x3ec   : > { %p1192_p7 = pnand %p1191_p4, %p1336_p5 }
 0x3ed   : > { %p1197_p11 = por %p1196_p10, %p1195_p9 }
 0x3ee   : > { %p1193_p8 = pneg %p1192_p7 }
 0x3ef   : > { %p1199_p13 = por %p1198_p12, %p1197_p11 }
 0x3f1   : > { %p1200_p0 = pnand %p1199_p13, %p1193_p8 }
 0x3f3   : > { %1203 = shalt.err (!%p1200_p0)
}
 0x3f4   : > { %1093 = dma.vmem_to_hbm [thread:$0]  (%p1336_p5), %s1542_s28, 16, %s1540_s11, %s908_s12  }
 0x3f5 PF: > { %p1099_p1 = scmp.ge.s32.totalorder %s1238_s16, 2  ;;  %s944_s29 = sand.u32 1, %s1226_s13  }
 0x3f6   : > { %s945_s10 = scalar_lea.sflag [#allocation5], %s944_s29 }
 0x3f7   : > { %p1096_p2 = pnand %p1099_p1, %p1340_p6 }
 0x3f9   : > { %1221 = dma.done.wait (!%p1096_p2), %s945_s10, 16  }
 0x3fa   : > { %1223 = vsyncadd (!%p1096_p2), %s945_s10, 4294967280  ;;  %p22_p3 = scmp.ge.s32.totalorder %s1323_s17, 4   ;;  %s1594_s13 = smov %s1230_s14 }
 0x3fb   : > { %s1595_s14 = smov %s1234_s15  ;;  %s1596_s15 = smov %s1334_s20 }
 0x3fc   : > { %s1597_s16 = smov %s1323_s17  ;;  %24 = sbr.rel (!%p22_p3) target bundleno = 6 (0x6), region = 99 }
 0x403   :  { %949 = vsyncpa [#allocation5], 1 }
 0x404   :  { %951 = vsyncpa [#allocation5 + $0x1], 1 }

</bundles_post_ra>
